<compile_context>
chip_gen: v7x
topology: tpu7x:2x2x1
jax: 0.10.0
libtpu: 0.0.40
codegen_flags: <defaults>
</compile_context>

<pallas_src>
import functools

import jax
import jax.numpy as jnp
from jax.experimental import pallas as pl
from jax.experimental.pallas import tpu as pltpu


# ---------------------------------------------------------------------------
# Pallas kernel: one batch element, full sequence, of a GCRN (graph-GRU) layer.
#   sup_ref : (K*N, N)       stacked Chebyshev supports (compute dtype)
#   x_ref   : (1, T, N, Din) layer input sequence for this batch (compute dtype)
#   s0_ref  : (1, N, H)      initial hidden state (f32)
#   wgx_ref : (K, Din, 2H)   gate weights, x-rows per order (compute dtype)
#   wgs_ref : (K, H, 2H)     gate weights, state-rows per order
#   bg_ref  : (1, 2H)        gate bias (f32)
#   wux_ref : (K, Din, H)    candidate weights, x-rows per order
#   wus_ref : (K, H, H)      candidate weights, state-rows per order
#   bu_ref  : (1, H)         candidate bias (f32)
#   out_ref : (1, T, N, H)   output hidden-state sequence (compute dtype)
# ---------------------------------------------------------------------------
def gcrn_layer_kernel(sup_ref, x_ref, s0_ref, wgx_ref, wgs_ref, bg_ref,
                      wux_ref, wus_ref, bu_ref, out_ref):
    T = x_ref.shape[1]
    N = sup_ref.shape[1]
    K = sup_ref.shape[0] // N
    H = s0_ref.shape[-1]

    # Hoist everything time-invariant out of the unrolled time loop.
    sup = sup_ref[...]                        # (K*N, N), compute dtype
    cdt = sup.dtype
    bg = bg_ref[...]                          # (1, 2H) f32
    bu = bu_ref[...]                          # (1, H)  f32
    wgx = [wgx_ref[k] for k in range(K)]      # K x (Din, 2H)
    wgs = [wgs_ref[k] for k in range(K)]      # K x (H, 2H)
    wux = [wux_ref[k] for k in range(K)]      # K x (Din, H)
    wus = [wus_ref[k] for k in range(K)]      # K x (H, H)

    def order_blocks(m):
        # Split a stacked (K*N, C) support product into per-order (N, C)
        # blocks.  Static sublane slices at multiples of N=16 -> aligned.
        return [m[k * N:(k + 1) * N, :] for k in range(K)]

    def cheb_project(gx_blocks, gs_blocks, wx, ws, bias):
        # sum_k (S_k @ x) @ Wx_k + (S_k @ state') @ Ws_k + b, f32 accumulation.
        acc = None
        for k in range(K):
            p = jnp.dot(gx_blocks[k], wx[k], preferred_element_type=jnp.float32)
            p = p + jnp.dot(gs_blocks[k], ws[k],
                            preferred_element_type=jnp.float32)
            acc = p if acc is None else acc + p
        return acc + bias

    def step(t, s):
        # s: (N, H) recurrent state carried in f32 across timesteps.
        x_t = x_ref[0, t]                                        # (N, Din)
        gx = jnp.dot(sup, x_t, preferred_element_type=jnp.float32).astype(cdt)
        gs = jnp.dot(sup, s.astype(cdt),
                     preferred_element_type=jnp.float32).astype(cdt)
        gxb = order_blocks(gx)
        gsb = order_blocks(gs)

        zr = jax.nn.sigmoid(cheb_project(gxb, gsb, wgx, wgs, bg))  # (N,2H) f32
        z = zr[:, :H]
        r = zr[:, H:]

        gzs = jnp.dot(sup, (z * s).astype(cdt),
                      preferred_element_type=jnp.float32).astype(cdt)
        hc = jnp.tanh(cheb_project(gxb, order_blocks(gzs), wux, wus, bu))

        h = r * s + (1.0 - r) * hc                               # (N, H) f32
        out_ref[0, t] = h.astype(out_ref.dtype)
        return h

    jax.lax.fori_loop(0, T, step, s0_ref[0], unroll=True)


def gcrn_layer(sup2d, x_seq, s0, params, compute_dtype):
    """One GCRN layer over the full sequence.

    sup2d: (K*N, N) stacked Chebyshev supports; x_seq: (B, T, N, Din);
    s0: (B, N, H) f32.  Returns the layer output sequence (B, T, N, H) in
    compute_dtype (intermediate layers stay in the MXU dtype).
    """
    wg, bg, wu, bu = params                       # torch parameter layout
    B, T, N, Din = x_seq.shape
    H = s0.shape[-1]
    K = sup2d.shape[0] // N
    assert wg.shape == (K * (Din + H), 2 * H) and wu.shape == (K * (Din + H), H)

    # One-time (trace-level) split of the torch-layout weight rows into the
    # x-part and state-part of each Chebyshev order -> no in-kernel concat.
    wg3 = wg.reshape(K, Din + H, 2 * H)
    wu3 = wu.reshape(K, Din + H, H)
    wgx, wgs = wg3[:, :Din, :], wg3[:, Din:, :]
    wux, wus = wu3[:, :Din, :], wu3[:, Din:, :]

    cdt = compute_dtype
    return pl.pallas_call(
        gcrn_layer_kernel,
        out_shape=jax.ShapeDtypeStruct((B, T, N, H), cdt),
        grid_spec=pltpu.PrefetchScalarGridSpec(
            num_scalar_prefetch=0,
            grid=(B,),                                      # one step per batch
            in_specs=[
                pl.BlockSpec((K * N, N), lambda b: (0, 0)),           # supports
                pl.BlockSpec((1, T, N, Din), lambda b: (b, 0, 0, 0)), # x seq
                pl.BlockSpec((1, N, H), lambda b: (b, 0, 0)),         # init state
                pl.BlockSpec((K, Din, 2 * H), lambda b: (0, 0, 0)),   # gate Wx
                pl.BlockSpec((K, H, 2 * H), lambda b: (0, 0, 0)),     # gate Ws
                pl.BlockSpec((1, 2 * H), lambda b: (0, 0)),           # gate b
                pl.BlockSpec((K, Din, H), lambda b: (0, 0, 0)),       # cand Wx
                pl.BlockSpec((K, H, H), lambda b: (0, 0, 0)),         # cand Ws
                pl.BlockSpec((1, H), lambda b: (0, 0)),               # cand b
            ],
            out_specs=pl.BlockSpec((1, T, N, H), lambda b: (b, 0, 0, 0)),
        ),
        compiler_params=pltpu.CompilerParams(
            # Each grid step (one batch element) is fully independent, so the
            # batch axis may be sharded across TensorCores (v7x megacore).
            dimension_semantics=("parallel",),
        ),
    )(sup2d.astype(cdt), x_seq.astype(cdt), s0,
      wgx.astype(cdt), wgs.astype(cdt), bg,
      wux.astype(cdt), wus.astype(cdt), bu)


# ---------------------------------------------------------------------------
# Glue: parameter init, Chebyshev supports, layer loop.
# ---------------------------------------------------------------------------
def xavier_normal(key, shape):
    fan_in, fan_out = shape
    std = (2.0 / (fan_in + fan_out)) ** 0.5
    return std * jax.random.normal(key, shape, dtype=jnp.float32)


def make_gcn_params(key, dim_in_total, dim_out, cheb_k):
    w = xavier_normal(key, (cheb_k * dim_in_total, dim_out))   # torch layout
    b = jnp.zeros((1, dim_out), jnp.float32)                   # constant_(0)
    return w, b


def make_cell_params(key, dim_in, hidden, cheb_k):
    kg, ku = jax.random.split(key)
    wg, bg = make_gcn_params(kg, dim_in + hidden, 2 * hidden, cheb_k)
    wu, bu = make_gcn_params(ku, dim_in + hidden, hidden, cheb_k)
    return (wg, bg, wu, bu)


def chebyshev_supports(support, cheb_k):
    N = support.shape[0]
    sup_set = [jnp.eye(N, dtype=jnp.float32), support]
    for _ in range(2, cheb_k):
        sup_set.append(2.0 * support @ sup_set[-1] - sup_set[-2])
    return jnp.stack(sup_set[:cheb_k], axis=0)                 # (K, N, N)


@functools.partial(jax.jit, static_argnames=("cheb_k", "compute_dtype"))
def gcrnn_forward(x, init_states, support, layer_params, *, cheb_k,
                  compute_dtype=jnp.float32):
    """x: (B, T, N, Din). Returns (outputs (B,T,N,H) f32, [final hidden/layer])."""
    N = support.shape[0]
    sup2d = chebyshev_supports(support, cheb_k).reshape(cheb_k * N, N)
    current = x
    output_hidden = []
    for i, params in enumerate(layer_params):
        current = gcrn_layer(sup2d, current, init_states[i], params,
                             compute_dtype)
        output_hidden.append(current[:, -1].astype(jnp.float32))
    return current.astype(jnp.float32), output_hidden


# ---------------------------------------------------------------------------
# Pure-JAX reference (mirrors the PyTorch module) for correctness checks.
# ---------------------------------------------------------------------------
def ref_cell(supports, x_t, state, params):
    wg, bg, wu, bu = params
    K = supports.shape[0]
    H = state.shape[-1]

    def gcn(inp, w, b):
        xg = jnp.concatenate(
            [jnp.einsum('nm,bmc->bnc', supports[k], inp) for k in range(K)],
            axis=-1)
        return jnp.einsum('bni,io->bno', xg, w) + b[0]

    ins = jnp.concatenate([x_t, state], axis=-1)
    zr = jax.nn.sigmoid(gcn(ins, wg, bg))
    z, r = zr[..., :H], zr[..., H:]
    cand = jnp.concatenate([x_t, z * state], axis=-1)
    hc = jnp.tanh(gcn(cand, wu, bu))
    return r * state + (1 - r) * hc


def ref_forward(x, init_states, support, layer_params, cheb_k):
    supports = chebyshev_supports(support, cheb_k)
    current = x
    for i, params in enumerate(layer_params):
        state = init_states[i]
        inner = []
        for t in range(x.shape[1]):
            state = ref_cell(supports, current[:, t], state, params)
            inner.append(state)
        current = jnp.stack(inner, axis=1)
    return current


# ---------------------------------------------------------------------------
if __name__ == "__main__":
    B, T, N = 2, 8, 16           # batch, seq_len, node_num
    DIM_IN, HIDDEN = 4, 32       # dim_in, dim_out (hidden)
    CHEB_K, LAYERS = 3, 2

    key = jax.random.PRNGKey(0)
    k_x, k_a, k_p = jax.random.split(key, 3)

    # input sequence (B, T, N, C)
    x = jax.random.normal(k_x, (B, T, N, DIM_IN), dtype=jnp.float32)

    # symmetric row-normalized support (N, N)
    a = jax.random.uniform(k_a, (N, N), dtype=jnp.float32)
    a = 0.5 * (a + a.T)
    support = a / jnp.sum(a, axis=1, keepdims=True)

    # per-layer cell parameters (layer 0: dim_in -> hidden, rest: hidden -> hidden)
    layer_keys = jax.random.split(k_p, LAYERS)
    layer_params = [make_cell_params(layer_keys[0], DIM_IN, HIDDEN, CHEB_K)]
    for i in range(1, LAYERS):
        layer_params.append(make_cell_params(layer_keys[i], HIDDEN, HIDDEN, CHEB_K))

    # init hidden states: zeros (B, N, H) per layer
    init_states = [jnp.zeros((B, N, HIDDEN), jnp.float32) for _ in range(LAYERS)]

    # ---- f32 path: strict correctness check vs. pure-JAX reference ----
    outputs, output_hidden = gcrnn_forward(
        x, init_states, support, layer_params,
        cheb_k=CHEB_K, compute_dtype=jnp.float32)
    outputs = jax.block_until_ready(outputs)
    for h in output_hidden:
        jax.block_until_ready(h)

    ref = jax.block_until_ready(
        ref_forward(x, init_states, support, layer_params, CHEB_K))
    assert outputs.shape == (B, T, N, HIDDEN)
    assert jnp.allclose(outputs, ref, rtol=1e-3, atol=1e-3), "f32 mismatch vs reference"
    assert jnp.allclose(output_hidden[-1], ref[:, -1], rtol=1e-3, atol=1e-3)

    # ---- bf16 MXU path (prefer on v6e/v7x; keep f32 on v5e): loose sanity ----
    out_bf16, _ = gcrnn_forward(
        x, init_states, support, layer_params,
        cheb_k=CHEB_K, compute_dtype=jnp.bfloat16)
    out_bf16 = jax.block_until_ready(out_bf16)
    max_err = float(jnp.max(jnp.abs(out_bf16 - ref)))
    assert max_err < 0.5, f"bf16 path grossly wrong (max abs err {max_err})"

    print("KERNEL_OK")
</pallas_src>

<mosaic_0001>
module attributes {stable_mosaic.version = 11 : i64} {
  func.func @gcrn_layer_kernel(%arg0: i32, %arg1: memref<48x16xf32, #tpu.memory_space<vmem>>, %arg2: memref<1x8x16x4xf32, #tpu.memory_space<vmem>>, %arg3: memref<1x16x32xf32, #tpu.memory_space<vmem>>, %arg4: memref<3x4x64xf32, #tpu.memory_space<vmem>>, %arg5: memref<3x32x64xf32, #tpu.memory_space<vmem>>, %arg6: memref<1x64xf32, #tpu.memory_space<vmem>>, %arg7: memref<3x4x32xf32, #tpu.memory_space<vmem>>, %arg8: memref<3x32x32xf32, #tpu.memory_space<vmem>>, %arg9: memref<1x32xf32, #tpu.memory_space<vmem>>, %arg10: memref<1x8x16x32xf32, #tpu.memory_space<vmem>>) attributes {dimension_semantics = [#tpu.dimension_semantics<parallel>], iteration_bounds = array<i64: 2>, scalar_prefetch = 0 : i64, scratch_operands = 0 : i64, tpu.core_type = #tpu.core_type<tc>, window_params = [{pipeline_mode = #tpu.pipeline_mode<synchronous>, transform_indices = @transform_0, window_bounds = array<i64: 48, 16>}, {transform_indices = @transform_1, window_bounds = array<i64: 1, 8, 16, 4>}, {transform_indices = @transform_2, window_bounds = array<i64: 1, 16, 32>}, {pipeline_mode = #tpu.pipeline_mode<synchronous>, transform_indices = @transform_3, window_bounds = array<i64: 3, 4, 64>}, {pipeline_mode = #tpu.pipeline_mode<synchronous>, transform_indices = @transform_4, window_bounds = array<i64: 3, 32, 64>}, {pipeline_mode = #tpu.pipeline_mode<synchronous>, transform_indices = @transform_5, window_bounds = array<i64: 1, 64>}, {pipeline_mode = #tpu.pipeline_mode<synchronous>, transform_indices = @transform_6, window_bounds = array<i64: 3, 4, 32>}, {pipeline_mode = #tpu.pipeline_mode<synchronous>, transform_indices = @transform_7, window_bounds = array<i64: 3, 32, 32>}, {pipeline_mode = #tpu.pipeline_mode<synchronous>, transform_indices = @transform_8, window_bounds = array<i64: 1, 32>}, {transform_indices = @transform_9, window_bounds = array<i64: 1, 8, 16, 32>}]} {
    %c0 = arith.constant 0 : index
    %c0_0 = arith.constant 0 : index
    %0 = vector.load %arg1[%c0, %c0_0] : memref<48x16xf32, #tpu.memory_space<vmem>>, vector<48x16xf32>
    %c0_1 = arith.constant 0 : index
    %c0_2 = arith.constant 0 : index
    %1 = vector.load %arg6[%c0_1, %c0_2] : memref<1x64xf32, #tpu.memory_space<vmem>>, vector<1x64xf32>
    %c0_3 = arith.constant 0 : index
    %c0_4 = arith.constant 0 : index
    %2 = vector.load %arg9[%c0_3, %c0_4] : memref<1x32xf32, #tpu.memory_space<vmem>>, vector<1x32xf32>
    %c0_5 = arith.constant 0 : index
    %c0_6 = arith.constant 0 : index
    %c0_7 = arith.constant 0 : index
    %3 = vector.load %arg4[%c0_5, %c0_6, %c0_7] : memref<3x4x64xf32, #tpu.memory_space<vmem>>, vector<1x4x64xf32>
    %4 = vector.shape_cast %3 : vector<1x4x64xf32> to vector<4x64xf32>
    %c1 = arith.constant 1 : index
    %c0_8 = arith.constant 0 : index
    %c0_9 = arith.constant 0 : index
    %5 = vector.load %arg4[%c1, %c0_8, %c0_9] : memref<3x4x64xf32, #tpu.memory_space<vmem>>, vector<1x4x64xf32>
    %6 = vector.shape_cast %5 : vector<1x4x64xf32> to vector<4x64xf32>
    %c2 = arith.constant 2 : index
    %c0_10 = arith.constant 0 : index
    %c0_11 = arith.constant 0 : index
    %7 = vector.load %arg4[%c2, %c0_10, %c0_11] : memref<3x4x64xf32, #tpu.memory_space<vmem>>, vector<1x4x64xf32>
    %8 = vector.shape_cast %7 : vector<1x4x64xf32> to vector<4x64xf32>
    %c0_12 = arith.constant 0 : index
    %c0_13 = arith.constant 0 : index
    %c0_14 = arith.constant 0 : index
    %9 = vector.load %arg5[%c0_12, %c0_13, %c0_14] : memref<3x32x64xf32, #tpu.memory_space<vmem>>, vector<1x32x64xf32>
    %10 = vector.shape_cast %9 : vector<1x32x64xf32> to vector<32x64xf32>
    %c1_15 = arith.constant 1 : index
    %c0_16 = arith.constant 0 : index
    %c0_17 = arith.constant 0 : index
    %11 = vector.load %arg5[%c1_15, %c0_16, %c0_17] : memref<3x32x64xf32, #tpu.memory_space<vmem>>, vector<1x32x64xf32>
    %12 = vector.shape_cast %11 : vector<1x32x64xf32> to vector<32x64xf32>
    %c2_18 = arith.constant 2 : index
    %c0_19 = arith.constant 0 : index
    %c0_20 = arith.constant 0 : index
    %13 = vector.load %arg5[%c2_18, %c0_19, %c0_20] : memref<3x32x64xf32, #tpu.memory_space<vmem>>, vector<1x32x64xf32>
    %14 = vector.shape_cast %13 : vector<1x32x64xf32> to vector<32x64xf32>
    %c0_21 = arith.constant 0 : index
    %c0_22 = arith.constant 0 : index
    %c0_23 = arith.constant 0 : index
    %15 = vector.load %arg7[%c0_21, %c0_22, %c0_23] : memref<3x4x32xf32, #tpu.memory_space<vmem>>, vector<1x4x32xf32>
    %16 = vector.shape_cast %15 : vector<1x4x32xf32> to vector<4x32xf32>
    %c1_24 = arith.constant 1 : index
    %c0_25 = arith.constant 0 : index
    %c0_26 = arith.constant 0 : index
    %17 = vector.load %arg7[%c1_24, %c0_25, %c0_26] : memref<3x4x32xf32, #tpu.memory_space<vmem>>, vector<1x4x32xf32>
    %18 = vector.shape_cast %17 : vector<1x4x32xf32> to vector<4x32xf32>
    %c2_27 = arith.constant 2 : index
    %c0_28 = arith.constant 0 : index
    %c0_29 = arith.constant 0 : index
    %19 = vector.load %arg7[%c2_27, %c0_28, %c0_29] : memref<3x4x32xf32, #tpu.memory_space<vmem>>, vector<1x4x32xf32>
    %20 = vector.shape_cast %19 : vector<1x4x32xf32> to vector<4x32xf32>
    %c0_30 = arith.constant 0 : index
    %c0_31 = arith.constant 0 : index
    %c0_32 = arith.constant 0 : index
    %21 = vector.load %arg8[%c0_30, %c0_31, %c0_32] : memref<3x32x32xf32, #tpu.memory_space<vmem>>, vector<1x32x32xf32>
    %22 = vector.shape_cast %21 : vector<1x32x32xf32> to vector<32x32xf32>
    %c1_33 = arith.constant 1 : index
    %c0_34 = arith.constant 0 : index
    %c0_35 = arith.constant 0 : index
    %23 = vector.load %arg8[%c1_33, %c0_34, %c0_35] : memref<3x32x32xf32, #tpu.memory_space<vmem>>, vector<1x32x32xf32>
    %24 = vector.shape_cast %23 : vector<1x32x32xf32> to vector<32x32xf32>
    %c2_36 = arith.constant 2 : index
    %c0_37 = arith.constant 0 : index
    %c0_38 = arith.constant 0 : index
    %25 = vector.load %arg8[%c2_36, %c0_37, %c0_38] : memref<3x32x32xf32, #tpu.memory_space<vmem>>, vector<1x32x32xf32>
    %26 = vector.shape_cast %25 : vector<1x32x32xf32> to vector<32x32xf32>
    %c0_39 = arith.constant 0 : index
    %c0_40 = arith.constant 0 : index
    %c0_41 = arith.constant 0 : index
    %27 = vector.load %arg3[%c0_39, %c0_40, %c0_41] : memref<1x16x32xf32, #tpu.memory_space<vmem>>, vector<1x16x32xf32>
    %28 = vector.shape_cast %27 : vector<1x16x32xf32> to vector<16x32xf32>
    %c0_i32 = arith.constant 0 : i32
    %c0_42 = arith.constant 0 : index
    %29 = arith.index_cast %c0_i32 : i32 to index
    %c0_43 = arith.constant 0 : index
    %c0_44 = arith.constant 0 : index
    %30 = vector.load %arg2[%c0_42, %29, %c0_43, %c0_44] : memref<1x8x16x4xf32, #tpu.memory_space<vmem>>, vector<1x1x16x4xf32>
    %31 = vector.shape_cast %30 : vector<1x1x16x4xf32> to vector<16x4xf32>
    %cst = arith.constant dense<0.000000e+00> : vector<48x4xf32>
    %32 = tpu.matmul %0, %31, %cst {dimension_numbers = #tpu.dot_dimension_numbers<[1], [0], [0], [1], [0, 0, 1, 1], [], []>} : vector<48x16xf32>, vector<16x4xf32>, vector<48x4xf32> -> vector<48x4xf32>
    %cst_45 = arith.constant dense<0.000000e+00> : vector<48x32xf32>
    %33 = tpu.matmul %0, %28, %cst_45 {dimension_numbers = #tpu.dot_dimension_numbers<[1], [0], [0], [1], [0, 0, 1, 1], [], []>} : vector<48x16xf32>, vector<16x32xf32>, vector<48x32xf32> -> vector<48x32xf32>
    %34 = vector.extract_strided_slice %32 {offsets = [0, 0], sizes = [16, 4], strides = [1, 1]} : vector<48x4xf32> to vector<16x4xf32>
    %35 = vector.extract_strided_slice %32 {offsets = [16, 0], sizes = [16, 4], strides = [1, 1]} : vector<48x4xf32> to vector<16x4xf32>
    %36 = vector.extract_strided_slice %32 {offsets = [32, 0], sizes = [16, 4], strides = [1, 1]} : vector<48x4xf32> to vector<16x4xf32>
    %37 = vector.extract_strided_slice %33 {offsets = [0, 0], sizes = [16, 32], strides = [1, 1]} : vector<48x32xf32> to vector<16x32xf32>
    %38 = vector.extract_strided_slice %33 {offsets = [16, 0], sizes = [16, 32], strides = [1, 1]} : vector<48x32xf32> to vector<16x32xf32>
    %39 = vector.extract_strided_slice %33 {offsets = [32, 0], sizes = [16, 32], strides = [1, 1]} : vector<48x32xf32> to vector<16x32xf32>
    %cst_46 = arith.constant dense<0.000000e+00> : vector<16x64xf32>
    %40 = tpu.matmul %34, %4, %cst_46 {dimension_numbers = #tpu.dot_dimension_numbers<[1], [0], [0], [1], [0, 0, 1, 1], [], []>} : vector<16x4xf32>, vector<4x64xf32>, vector<16x64xf32> -> vector<16x64xf32>
    %cst_47 = arith.constant dense<0.000000e+00> : vector<16x64xf32>
    %41 = tpu.matmul %37, %10, %cst_47 {dimension_numbers = #tpu.dot_dimension_numbers<[1], [0], [0], [1], [0, 0, 1, 1], [], []>} : vector<16x32xf32>, vector<32x64xf32>, vector<16x64xf32> -> vector<16x64xf32>
    %42 = arith.addf %40, %41 : vector<16x64xf32>
    %cst_48 = arith.constant dense<0.000000e+00> : vector<16x64xf32>
    %43 = tpu.matmul %35, %6, %cst_48 {dimension_numbers = #tpu.dot_dimension_numbers<[1], [0], [0], [1], [0, 0, 1, 1], [], []>} : vector<16x4xf32>, vector<4x64xf32>, vector<16x64xf32> -> vector<16x64xf32>
    %cst_49 = arith.constant dense<0.000000e+00> : vector<16x64xf32>
    %44 = tpu.matmul %38, %12, %cst_49 {dimension_numbers = #tpu.dot_dimension_numbers<[1], [0], [0], [1], [0, 0, 1, 1], [], []>} : vector<16x32xf32>, vector<32x64xf32>, vector<16x64xf32> -> vector<16x64xf32>
    %45 = arith.addf %43, %44 : vector<16x64xf32>
    %46 = arith.addf %42, %45 : vector<16x64xf32>
    %cst_50 = arith.constant dense<0.000000e+00> : vector<16x64xf32>
    %47 = tpu.matmul %36, %8, %cst_50 {dimension_numbers = #tpu.dot_dimension_numbers<[1], [0], [0], [1], [0, 0, 1, 1], [], []>} : vector<16x4xf32>, vector<4x64xf32>, vector<16x64xf32> -> vector<16x64xf32>
    %cst_51 = arith.constant dense<0.000000e+00> : vector<16x64xf32>
    %48 = tpu.matmul %39, %14, %cst_51 {dimension_numbers = #tpu.dot_dimension_numbers<[1], [0], [0], [1], [0, 0, 1, 1], [], []>} : vector<16x32xf32>, vector<32x64xf32>, vector<16x64xf32> -> vector<16x64xf32>
    %49 = arith.addf %47, %48 : vector<16x64xf32>
    %50 = arith.addf %46, %49 : vector<16x64xf32>
    %51 = vector.broadcast %1 : vector<1x64xf32> to vector<16x64xf32>
    %52 = arith.addf %50, %51 : vector<16x64xf32>
    %53 = arith.negf %52 : vector<16x64xf32>
    %54 = math.exp %53 : vector<16x64xf32>
    %cst_52 = arith.constant 1.000000e+00 : f32
    %55 = vector.broadcast %cst_52 : f32 to vector<16x64xf32>
    %56 = arith.addf %55, %54 : vector<16x64xf32>
    %57 = arith.divf %55, %56 : vector<16x64xf32>
    %58 = vector.extract_strided_slice %57 {offsets = [0, 0], sizes = [16, 32], strides = [1, 1]} : vector<16x64xf32> to vector<16x32xf32>
    %59 = vector.extract_strided_slice %57 {offsets = [0, 32], sizes = [16, 32], strides = [1, 1]} : vector<16x64xf32> to vector<16x32xf32>
    %60 = arith.mulf %58, %28 : vector<16x32xf32>
    %cst_53 = arith.constant dense<0.000000e+00> : vector<48x32xf32>
    %61 = tpu.matmul %0, %60, %cst_53 {dimension_numbers = #tpu.dot_dimension_numbers<[1], [0], [0], [1], [0, 0, 1, 1], [], []>} : vector<48x16xf32>, vector<16x32xf32>, vector<48x32xf32> -> vector<48x32xf32>
    %62 = vector.extract_strided_slice %61 {offsets = [0, 0], sizes = [16, 32], strides = [1, 1]} : vector<48x32xf32> to vector<16x32xf32>
    %63 = vector.extract_strided_slice %61 {offsets = [16, 0], sizes = [16, 32], strides = [1, 1]} : vector<48x32xf32> to vector<16x32xf32>
    %64 = vector.extract_strided_slice %61 {offsets = [32, 0], sizes = [16, 32], strides = [1, 1]} : vector<48x32xf32> to vector<16x32xf32>
    %cst_54 = arith.constant dense<0.000000e+00> : vector<16x32xf32>
    %65 = tpu.matmul %34, %16, %cst_54 {dimension_numbers = #tpu.dot_dimension_numbers<[1], [0], [0], [1], [0, 0, 1, 1], [], []>} : vector<16x4xf32>, vector<4x32xf32>, vector<16x32xf32> -> vector<16x32xf32>
    %cst_55 = arith.constant dense<0.000000e+00> : vector<16x32xf32>
    %66 = tpu.matmul %62, %22, %cst_55 {dimension_numbers = #tpu.dot_dimension_numbers<[1], [0], [0], [1], [0, 0, 1, 1], [], []>} : vector<16x32xf32>, vector<32x32xf32>, vector<16x32xf32> -> vector<16x32xf32>
    %67 = arith.addf %65, %66 : vector<16x32xf32>
    %cst_56 = arith.constant dense<0.000000e+00> : vector<16x32xf32>
    %68 = tpu.matmul %35, %18, %cst_56 {dimension_numbers = #tpu.dot_dimension_numbers<[1], [0], [0], [1], [0, 0, 1, 1], [], []>} : vector<16x4xf32>, vector<4x32xf32>, vector<16x32xf32> -> vector<16x32xf32>
    %cst_57 = arith.constant dense<0.000000e+00> : vector<16x32xf32>
    %69 = tpu.matmul %63, %24, %cst_57 {dimension_numbers = #tpu.dot_dimension_numbers<[1], [0], [0], [1], [0, 0, 1, 1], [], []>} : vector<16x32xf32>, vector<32x32xf32>, vector<16x32xf32> -> vector<16x32xf32>
    %70 = arith.addf %68, %69 : vector<16x32xf32>
    %71 = arith.addf %67, %70 : vector<16x32xf32>
    %cst_58 = arith.constant dense<0.000000e+00> : vector<16x32xf32>
    %72 = tpu.matmul %36, %20, %cst_58 {dimension_numbers = #tpu.dot_dimension_numbers<[1], [0], [0], [1], [0, 0, 1, 1], [], []>} : vector<16x4xf32>, vector<4x32xf32>, vector<16x32xf32> -> vector<16x32xf32>
    %cst_59 = arith.constant dense<0.000000e+00> : vector<16x32xf32>
    %73 = tpu.matmul %64, %26, %cst_59 {dimension_numbers = #tpu.dot_dimension_numbers<[1], [0], [0], [1], [0, 0, 1, 1], [], []>} : vector<16x32xf32>, vector<32x32xf32>, vector<16x32xf32> -> vector<16x32xf32>
    %74 = arith.addf %72, %73 : vector<16x32xf32>
    %75 = arith.addf %71, %74 : vector<16x32xf32>
    %76 = vector.broadcast %2 : vector<1x32xf32> to vector<16x32xf32>
    %77 = arith.addf %75, %76 : vector<16x32xf32>
    %78 = math.tanh %77 : vector<16x32xf32>
    %79 = arith.mulf %59, %28 : vector<16x32xf32>
    %cst_60 = arith.constant 1.000000e+00 : f32
    %80 = vector.broadcast %cst_60 : f32 to vector<16x32xf32>
    %81 = arith.subf %80, %59 : vector<16x32xf32>
    %82 = arith.mulf %81, %78 : vector<16x32xf32>
    %83 = arith.addf %79, %82 : vector<16x32xf32>
    %c0_61 = arith.constant 0 : index
    %84 = arith.index_cast %c0_i32 : i32 to index
    %c0_62 = arith.constant 0 : index
    %c0_63 = arith.constant 0 : index
    %85 = vector.load %arg10[%c0_61, %84, %c0_62, %c0_63] : memref<1x8x16x32xf32, #tpu.memory_space<vmem>>, vector<1x1x16x32xf32>
    %86 = vector.shape_cast %85 : vector<1x1x16x32xf32> to vector<16x32xf32>
    %87 = vector.shape_cast %83 : vector<16x32xf32> to vector<1x1x16x32xf32>
    tpu.vector_store %arg10[%c0_61, %84, %c0_62, %c0_63], %87 {strides = array<i32>} : memref<1x8x16x32xf32, #tpu.memory_space<vmem>>, vector<1x1x16x32xf32>,
    %c1_i32 = arith.constant 1 : i32
    %c0_64 = arith.constant 0 : index
    %88 = arith.index_cast %c1_i32 : i32 to index
    %c0_65 = arith.constant 0 : index
    %c0_66 = arith.constant 0 : index
    %89 = vector.load %arg2[%c0_64, %88, %c0_65, %c0_66] : memref<1x8x16x4xf32, #tpu.memory_space<vmem>>, vector<1x1x16x4xf32>
    %90 = vector.shape_cast %89 : vector<1x1x16x4xf32> to vector<16x4xf32>
    %cst_67 = arith.constant dense<0.000000e+00> : vector<48x4xf32>
    %91 = tpu.matmul %0, %90, %cst_67 {dimension_numbers = #tpu.dot_dimension_numbers<[1], [0], [0], [1], [0, 0, 1, 1], [], []>} : vector<48x16xf32>, vector<16x4xf32>, vector<48x4xf32> -> vector<48x4xf32>
    %cst_68 = arith.constant dense<0.000000e+00> : vector<48x32xf32>
    %92 = tpu.matmul %0, %83, %cst_68 {dimension_numbers = #tpu.dot_dimension_numbers<[1], [0], [0], [1], [0, 0, 1, 1], [], []>} : vector<48x16xf32>, vector<16x32xf32>, vector<48x32xf32> -> vector<48x32xf32>
    %93 = vector.extract_strided_slice %91 {offsets = [0, 0], sizes = [16, 4], strides = [1, 1]} : vector<48x4xf32> to vector<16x4xf32>
    %94 = vector.extract_strided_slice %91 {offsets = [16, 0], sizes = [16, 4], strides = [1, 1]} : vector<48x4xf32> to vector<16x4xf32>
    %95 = vector.extract_strided_slice %91 {offsets = [32, 0], sizes = [16, 4], strides = [1, 1]} : vector<48x4xf32> to vector<16x4xf32>
    %96 = vector.extract_strided_slice %92 {offsets = [0, 0], sizes = [16, 32], strides = [1, 1]} : vector<48x32xf32> to vector<16x32xf32>
    %97 = vector.extract_strided_slice %92 {offsets = [16, 0], sizes = [16, 32], strides = [1, 1]} : vector<48x32xf32> to vector<16x32xf32>
    %98 = vector.extract_strided_slice %92 {offsets = [32, 0], sizes = [16, 32], strides = [1, 1]} : vector<48x32xf32> to vector<16x32xf32>
    %cst_69 = arith.constant dense<0.000000e+00> : vector<16x64xf32>
    %99 = tpu.matmul %93, %4, %cst_69 {dimension_numbers = #tpu.dot_dimension_numbers<[1], [0], [0], [1], [0, 0, 1, 1], [], []>} : vector<16x4xf32>, vector<4x64xf32>, vector<16x64xf32> -> vector<16x64xf32>
    %cst_70 = arith.constant dense<0.000000e+00> : vector<16x64xf32>
    %100 = tpu.matmul %96, %10, %cst_70 {dimension_numbers = #tpu.dot_dimension_numbers<[1], [0], [0], [1], [0, 0, 1, 1], [], []>} : vector<16x32xf32>, vector<32x64xf32>, vector<16x64xf32> -> vector<16x64xf32>
    %101 = arith.addf %99, %100 : vector<16x64xf32>
    %cst_71 = arith.constant dense<0.000000e+00> : vector<16x64xf32>
    %102 = tpu.matmul %94, %6, %cst_71 {dimension_numbers = #tpu.dot_dimension_numbers<[1], [0], [0], [1], [0, 0, 1, 1], [], []>} : vector<16x4xf32>, vector<4x64xf32>, vector<16x64xf32> -> vector<16x64xf32>
    %cst_72 = arith.constant dense<0.000000e+00> : vector<16x64xf32>
    %103 = tpu.matmul %97, %12, %cst_72 {dimension_numbers = #tpu.dot_dimension_numbers<[1], [0], [0], [1], [0, 0, 1, 1], [], []>} : vector<16x32xf32>, vector<32x64xf32>, vector<16x64xf32> -> vector<16x64xf32>
    %104 = arith.addf %102, %103 : vector<16x64xf32>
    %105 = arith.addf %101, %104 : vector<16x64xf32>
    %cst_73 = arith.constant dense<0.000000e+00> : vector<16x64xf32>
    %106 = tpu.matmul %95, %8, %cst_73 {dimension_numbers = #tpu.dot_dimension_numbers<[1], [0], [0], [1], [0, 0, 1, 1], [], []>} : vector<16x4xf32>, vector<4x64xf32>, vector<16x64xf32> -> vector<16x64xf32>
    %cst_74 = arith.constant dense<0.000000e+00> : vector<16x64xf32>
    %107 = tpu.matmul %98, %14, %cst_74 {dimension_numbers = #tpu.dot_dimension_numbers<[1], [0], [0], [1], [0, 0, 1, 1], [], []>} : vector<16x32xf32>, vector<32x64xf32>, vector<16x64xf32> -> vector<16x64xf32>
    %108 = arith.addf %106, %107 : vector<16x64xf32>
    %109 = arith.addf %105, %108 : vector<16x64xf32>
    %110 = vector.broadcast %1 : vector<1x64xf32> to vector<16x64xf32>
    %111 = arith.addf %109, %110 : vector<16x64xf32>
    %112 = arith.negf %111 : vector<16x64xf32>
    %113 = math.exp %112 : vector<16x64xf32>
    %cst_75 = arith.constant 1.000000e+00 : f32
    %114 = vector.broadcast %cst_75 : f32 to vector<16x64xf32>
    %115 = arith.addf %114, %113 : vector<16x64xf32>
    %116 = arith.divf %114, %115 : vector<16x64xf32>
    %117 = vector.extract_strided_slice %116 {offsets = [0, 0], sizes = [16, 32], strides = [1, 1]} : vector<16x64xf32> to vector<16x32xf32>
    %118 = vector.extract_strided_slice %116 {offsets = [0, 32], sizes = [16, 32], strides = [1, 1]} : vector<16x64xf32> to vector<16x32xf32>
    %119 = arith.mulf %117, %83 : vector<16x32xf32>
    %cst_76 = arith.constant dense<0.000000e+00> : vector<48x32xf32>
    %120 = tpu.matmul %0, %119, %cst_76 {dimension_numbers = #tpu.dot_dimension_numbers<[1], [0], [0], [1], [0, 0, 1, 1], [], []>} : vector<48x16xf32>, vector<16x32xf32>, vector<48x32xf32> -> vector<48x32xf32>
    %121 = vector.extract_strided_slice %120 {offsets = [0, 0], sizes = [16, 32], strides = [1, 1]} : vector<48x32xf32> to vector<16x32xf32>
    %122 = vector.extract_strided_slice %120 {offsets = [16, 0], sizes = [16, 32], strides = [1, 1]} : vector<48x32xf32> to vector<16x32xf32>
    %123 = vector.extract_strided_slice %120 {offsets = [32, 0], sizes = [16, 32], strides = [1, 1]} : vector<48x32xf32> to vector<16x32xf32>
    %cst_77 = arith.constant dense<0.000000e+00> : vector<16x32xf32>
    %124 = tpu.matmul %93, %16, %cst_77 {dimension_numbers = #tpu.dot_dimension_numbers<[1], [0], [0], [1], [0, 0, 1, 1], [], []>} : vector<16x4xf32>, vector<4x32xf32>, vector<16x32xf32> -> vector<16x32xf32>
    %cst_78 = arith.constant dense<0.000000e+00> : vector<16x32xf32>
    %125 = tpu.matmul %121, %22, %cst_78 {dimension_numbers = #tpu.dot_dimension_numbers<[1], [0], [0], [1], [0, 0, 1, 1], [], []>} : vector<16x32xf32>, vector<32x32xf32>, vector<16x32xf32> -> vector<16x32xf32>
    %126 = arith.addf %124, %125 : vector<16x32xf32>
    %cst_79 = arith.constant dense<0.000000e+00> : vector<16x32xf32>
    %127 = tpu.matmul %94, %18, %cst_79 {dimension_numbers = #tpu.dot_dimension_numbers<[1], [0], [0], [1], [0, 0, 1, 1], [], []>} : vector<16x4xf32>, vector<4x32xf32>, vector<16x32xf32> -> vector<16x32xf32>
    %cst_80 = arith.constant dense<0.000000e+00> : vector<16x32xf32>
    %128 = tpu.matmul %122, %24, %cst_80 {dimension_numbers = #tpu.dot_dimension_numbers<[1], [0], [0], [1], [0, 0, 1, 1], [], []>} : vector<16x32xf32>, vector<32x32xf32>, vector<16x32xf32> -> vector<16x32xf32>
    %129 = arith.addf %127, %128 : vector<16x32xf32>
    %130 = arith.addf %126, %129 : vector<16x32xf32>
    %cst_81 = arith.constant dense<0.000000e+00> : vector<16x32xf32>
    %131 = tpu.matmul %95, %20, %cst_81 {dimension_numbers = #tpu.dot_dimension_numbers<[1], [0], [0], [1], [0, 0, 1, 1], [], []>} : vector<16x4xf32>, vector<4x32xf32>, vector<16x32xf32> -> vector<16x32xf32>
    %cst_82 = arith.constant dense<0.000000e+00> : vector<16x32xf32>
    %132 = tpu.matmul %123, %26, %cst_82 {dimension_numbers = #tpu.dot_dimension_numbers<[1], [0], [0], [1], [0, 0, 1, 1], [], []>} : vector<16x32xf32>, vector<32x32xf32>, vector<16x32xf32> -> vector<16x32xf32>
    %133 = arith.addf %131, %132 : vector<16x32xf32>
    %134 = arith.addf %130, %133 : vector<16x32xf32>
    %135 = vector.broadcast %2 : vector<1x32xf32> to vector<16x32xf32>
    %136 = arith.addf %134, %135 : vector<16x32xf32>
    %137 = math.tanh %136 : vector<16x32xf32>
    %138 = arith.mulf %118, %83 : vector<16x32xf32>
    %cst_83 = arith.constant 1.000000e+00 : f32
    %139 = vector.broadcast %cst_83 : f32 to vector<16x32xf32>
    %140 = arith.subf %139, %118 : vector<16x32xf32>
    %141 = arith.mulf %140, %137 : vector<16x32xf32>
    %142 = arith.addf %138, %141 : vector<16x32xf32>
    %c0_84 = arith.constant 0 : index
    %143 = arith.index_cast %c1_i32 : i32 to index
    %c0_85 = arith.constant 0 : index
    %c0_86 = arith.constant 0 : index
    %144 = vector.load %arg10[%c0_84, %143, %c0_85, %c0_86] : memref<1x8x16x32xf32, #tpu.memory_space<vmem>>, vector<1x1x16x32xf32>
    %145 = vector.shape_cast %144 : vector<1x1x16x32xf32> to vector<16x32xf32>
    %146 = vector.shape_cast %142 : vector<16x32xf32> to vector<1x1x16x32xf32>
    tpu.vector_store %arg10[%c0_84, %143, %c0_85, %c0_86], %146 {strides = array<i32>} : memref<1x8x16x32xf32, #tpu.memory_space<vmem>>, vector<1x1x16x32xf32>,
    %c2_i32 = arith.constant 2 : i32
    %c0_87 = arith.constant 0 : index
    %147 = arith.index_cast %c2_i32 : i32 to index
    %c0_88 = arith.constant 0 : index
    %c0_89 = arith.constant 0 : index
    %148 = vector.load %arg2[%c0_87, %147, %c0_88, %c0_89] : memref<1x8x16x4xf32, #tpu.memory_space<vmem>>, vector<1x1x16x4xf32>
    %149 = vector.shape_cast %148 : vector<1x1x16x4xf32> to vector<16x4xf32>
    %cst_90 = arith.constant dense<0.000000e+00> : vector<48x4xf32>
    %150 = tpu.matmul %0, %149, %cst_90 {dimension_numbers = #tpu.dot_dimension_numbers<[1], [0], [0], [1], [0, 0, 1, 1], [], []>} : vector<48x16xf32>, vector<16x4xf32>, vector<48x4xf32> -> vector<48x4xf32>
    %cst_91 = arith.constant dense<0.000000e+00> : vector<48x32xf32>
    %151 = tpu.matmul %0, %142, %cst_91 {dimension_numbers = #tpu.dot_dimension_numbers<[1], [0], [0], [1], [0, 0, 1, 1], [], []>} : vector<48x16xf32>, vector<16x32xf32>, vector<48x32xf32> -> vector<48x32xf32>
    %152 = vector.extract_strided_slice %150 {offsets = [0, 0], sizes = [16, 4], strides = [1, 1]} : vector<48x4xf32> to vector<16x4xf32>
    %153 = vector.extract_strided_slice %150 {offsets = [16, 0], sizes = [16, 4], strides = [1, 1]} : vector<48x4xf32> to vector<16x4xf32>
    %154 = vector.extract_strided_slice %150 {offsets = [32, 0], sizes = [16, 4], strides = [1, 1]} : vector<48x4xf32> to vector<16x4xf32>
    %155 = vector.extract_strided_slice %151 {offsets = [0, 0], sizes = [16, 32], strides = [1, 1]} : vector<48x32xf32> to vector<16x32xf32>
    %156 = vector.extract_strided_slice %151 {offsets = [16, 0], sizes = [16, 32], strides = [1, 1]} : vector<48x32xf32> to vector<16x32xf32>
    %157 = vector.extract_strided_slice %151 {offsets = [32, 0], sizes = [16, 32], strides = [1, 1]} : vector<48x32xf32> to vector<16x32xf32>
    %cst_92 = arith.constant dense<0.000000e+00> : vector<16x64xf32>
    %158 = tpu.matmul %152, %4, %cst_92 {dimension_numbers = #tpu.dot_dimension_numbers<[1], [0], [0], [1], [0, 0, 1, 1], [], []>} : vector<16x4xf32>, vector<4x64xf32>, vector<16x64xf32> -> vector<16x64xf32>
    %cst_93 = arith.constant dense<0.000000e+00> : vector<16x64xf32>
    %159 = tpu.matmul %155, %10, %cst_93 {dimension_numbers = #tpu.dot_dimension_numbers<[1], [0], [0], [1], [0, 0, 1, 1], [], []>} : vector<16x32xf32>, vector<32x64xf32>, vector<16x64xf32> -> vector<16x64xf32>
    %160 = arith.addf %158, %159 : vector<16x64xf32>
    %cst_94 = arith.constant dense<0.000000e+00> : vector<16x64xf32>
    %161 = tpu.matmul %153, %6, %cst_94 {dimension_numbers = #tpu.dot_dimension_numbers<[1], [0], [0], [1], [0, 0, 1, 1], [], []>} : vector<16x4xf32>, vector<4x64xf32>, vector<16x64xf32> -> vector<16x64xf32>
    %cst_95 = arith.constant dense<0.000000e+00> : vector<16x64xf32>
    %162 = tpu.matmul %156, %12, %cst_95 {dimension_numbers = #tpu.dot_dimension_numbers<[1], [0], [0], [1], [0, 0, 1, 1], [], []>} : vector<16x32xf32>, vector<32x64xf32>, vector<16x64xf32> -> vector<16x64xf32>
    %163 = arith.addf %161, %162 : vector<16x64xf32>
    %164 = arith.addf %160, %163 : vector<16x64xf32>
    %cst_96 = arith.constant dense<0.000000e+00> : vector<16x64xf32>
    %165 = tpu.matmul %154, %8, %cst_96 {dimension_numbers = #tpu.dot_dimension_numbers<[1], [0], [0], [1], [0, 0, 1, 1], [], []>} : vector<16x4xf32>, vector<4x64xf32>, vector<16x64xf32> -> vector<16x64xf32>
    %cst_97 = arith.constant dense<0.000000e+00> : vector<16x64xf32>
    %166 = tpu.matmul %157, %14, %cst_97 {dimension_numbers = #tpu.dot_dimension_numbers<[1], [0], [0], [1], [0, 0, 1, 1], [], []>} : vector<16x32xf32>, vector<32x64xf32>, vector<16x64xf32> -> vector<16x64xf32>
    %167 = arith.addf %165, %166 : vector<16x64xf32>
    %168 = arith.addf %164, %167 : vector<16x64xf32>
    %169 = vector.broadcast %1 : vector<1x64xf32> to vector<16x64xf32>
    %170 = arith.addf %168, %169 : vector<16x64xf32>
    %171 = arith.negf %170 : vector<16x64xf32>
    %172 = math.exp %171 : vector<16x64xf32>
    %cst_98 = arith.constant 1.000000e+00 : f32
    %173 = vector.broadcast %cst_98 : f32 to vector<16x64xf32>
    %174 = arith.addf %173, %172 : vector<16x64xf32>
    %175 = arith.divf %173, %174 : vector<16x64xf32>
    %176 = vector.extract_strided_slice %175 {offsets = [0, 0], sizes = [16, 32], strides = [1, 1]} : vector<16x64xf32> to vector<16x32xf32>
    %177 = vector.extract_strided_slice %175 {offsets = [0, 32], sizes = [16, 32], strides = [1, 1]} : vector<16x64xf32> to vector<16x32xf32>
    %178 = arith.mulf %176, %142 : vector<16x32xf32>
    %cst_99 = arith.constant dense<0.000000e+00> : vector<48x32xf32>
    %179 = tpu.matmul %0, %178, %cst_99 {dimension_numbers = #tpu.dot_dimension_numbers<[1], [0], [0], [1], [0, 0, 1, 1], [], []>} : vector<48x16xf32>, vector<16x32xf32>, vector<48x32xf32> -> vector<48x32xf32>
    %180 = vector.extract_strided_slice %179 {offsets = [0, 0], sizes = [16, 32], strides = [1, 1]} : vector<48x32xf32> to vector<16x32xf32>
    %181 = vector.extract_strided_slice %179 {offsets = [16, 0], sizes = [16, 32], strides = [1, 1]} : vector<48x32xf32> to vector<16x32xf32>
    %182 = vector.extract_strided_slice %179 {offsets = [32, 0], sizes = [16, 32], strides = [1, 1]} : vector<48x32xf32> to vector<16x32xf32>
    %cst_100 = arith.constant dense<0.000000e+00> : vector<16x32xf32>
    %183 = tpu.matmul %152, %16, %cst_100 {dimension_numbers = #tpu.dot_dimension_numbers<[1], [0], [0], [1], [0, 0, 1, 1], [], []>} : vector<16x4xf32>, vector<4x32xf32>, vector<16x32xf32> -> vector<16x32xf32>
    %cst_101 = arith.constant dense<0.000000e+00> : vector<16x32xf32>
    %184 = tpu.matmul %180, %22, %cst_101 {dimension_numbers = #tpu.dot_dimension_numbers<[1], [0], [0], [1], [0, 0, 1, 1], [], []>} : vector<16x32xf32>, vector<32x32xf32>, vector<16x32xf32> -> vector<16x32xf32>
    %185 = arith.addf %183, %184 : vector<16x32xf32>
    %cst_102 = arith.constant dense<0.000000e+00> : vector<16x32xf32>
    %186 = tpu.matmul %153, %18, %cst_102 {dimension_numbers = #tpu.dot_dimension_numbers<[1], [0], [0], [1], [0, 0, 1, 1], [], []>} : vector<16x4xf32>, vector<4x32xf32>, vector<16x32xf32> -> vector<16x32xf32>
    %cst_103 = arith.constant dense<0.000000e+00> : vector<16x32xf32>
    %187 = tpu.matmul %181, %24, %cst_103 {dimension_numbers = #tpu.dot_dimension_numbers<[1], [0], [0], [1], [0, 0, 1, 1], [], []>} : vector<16x32xf32>, vector<32x32xf32>, vector<16x32xf32> -> vector<16x32xf32>
    %188 = arith.addf %186, %187 : vector<16x32xf32>
    %189 = arith.addf %185, %188 : vector<16x32xf32>
    %cst_104 = arith.constant dense<0.000000e+00> : vector<16x32xf32>
    %190 = tpu.matmul %154, %20, %cst_104 {dimension_numbers = #tpu.dot_dimension_numbers<[1], [0], [0], [1], [0, 0, 1, 1], [], []>} : vector<16x4xf32>, vector<4x32xf32>, vector<16x32xf32> -> vector<16x32xf32>
    %cst_105 = arith.constant dense<0.000000e+00> : vector<16x32xf32>
    %191 = tpu.matmul %182, %26, %cst_105 {dimension_numbers = #tpu.dot_dimension_numbers<[1], [0], [0], [1], [0, 0, 1, 1], [], []>} : vector<16x32xf32>, vector<32x32xf32>, vector<16x32xf32> -> vector<16x32xf32>
    %192 = arith.addf %190, %191 : vector<16x32xf32>
    %193 = arith.addf %189, %192 : vector<16x32xf32>
    %194 = vector.broadcast %2 : vector<1x32xf32> to vector<16x32xf32>
    %195 = arith.addf %193, %194 : vector<16x32xf32>
    %196 = math.tanh %195 : vector<16x32xf32>
    %197 = arith.mulf %177, %142 : vector<16x32xf32>
    %cst_106 = arith.constant 1.000000e+00 : f32
    %198 = vector.broadcast %cst_106 : f32 to vector<16x32xf32>
    %199 = arith.subf %198, %177 : vector<16x32xf32>
    %200 = arith.mulf %199, %196 : vector<16x32xf32>
    %201 = arith.addf %197, %200 : vector<16x32xf32>
    %c0_107 = arith.constant 0 : index
    %202 = arith.index_cast %c2_i32 : i32 to index
    %c0_108 = arith.constant 0 : index
    %c0_109 = arith.constant 0 : index
    %203 = vector.load %arg10[%c0_107, %202, %c0_108, %c0_109] : memref<1x8x16x32xf32, #tpu.memory_space<vmem>>, vector<1x1x16x32xf32>
    %204 = vector.shape_cast %203 : vector<1x1x16x32xf32> to vector<16x32xf32>
    %205 = vector.shape_cast %201 : vector<16x32xf32> to vector<1x1x16x32xf32>
    tpu.vector_store %arg10[%c0_107, %202, %c0_108, %c0_109], %205 {strides = array<i32>} : memref<1x8x16x32xf32, #tpu.memory_space<vmem>>, vector<1x1x16x32xf32>,
    %c3_i32 = arith.constant 3 : i32
    %c0_110 = arith.constant 0 : index
    %206 = arith.index_cast %c3_i32 : i32 to index
    %c0_111 = arith.constant 0 : index
    %c0_112 = arith.constant 0 : index
    %207 = vector.load %arg2[%c0_110, %206, %c0_111, %c0_112] : memref<1x8x16x4xf32, #tpu.memory_space<vmem>>, vector<1x1x16x4xf32>
    %208 = vector.shape_cast %207 : vector<1x1x16x4xf32> to vector<16x4xf32>
    %cst_113 = arith.constant dense<0.000000e+00> : vector<48x4xf32>
    %209 = tpu.matmul %0, %208, %cst_113 {dimension_numbers = #tpu.dot_dimension_numbers<[1], [0], [0], [1], [0, 0, 1, 1], [], []>} : vector<48x16xf32>, vector<16x4xf32>, vector<48x4xf32> -> vector<48x4xf32>
    %cst_114 = arith.constant dense<0.000000e+00> : vector<48x32xf32>
    %210 = tpu.matmul %0, %201, %cst_114 {dimension_numbers = #tpu.dot_dimension_numbers<[1], [0], [0], [1], [0, 0, 1, 1], [], []>} : vector<48x16xf32>, vector<16x32xf32>, vector<48x32xf32> -> vector<48x32xf32>
    %211 = vector.extract_strided_slice %209 {offsets = [0, 0], sizes = [16, 4], strides = [1, 1]} : vector<48x4xf32> to vector<16x4xf32>
    %212 = vector.extract_strided_slice %209 {offsets = [16, 0], sizes = [16, 4], strides = [1, 1]} : vector<48x4xf32> to vector<16x4xf32>
    %213 = vector.extract_strided_slice %209 {offsets = [32, 0], sizes = [16, 4], strides = [1, 1]} : vector<48x4xf32> to vector<16x4xf32>
    %214 = vector.extract_strided_slice %210 {offsets = [0, 0], sizes = [16, 32], strides = [1, 1]} : vector<48x32xf32> to vector<16x32xf32>
    %215 = vector.extract_strided_slice %210 {offsets = [16, 0], sizes = [16, 32], strides = [1, 1]} : vector<48x32xf32> to vector<16x32xf32>
    %216 = vector.extract_strided_slice %210 {offsets = [32, 0], sizes = [16, 32], strides = [1, 1]} : vector<48x32xf32> to vector<16x32xf32>
    %cst_115 = arith.constant dense<0.000000e+00> : vector<16x64xf32>
    %217 = tpu.matmul %211, %4, %cst_115 {dimension_numbers = #tpu.dot_dimension_numbers<[1], [0], [0], [1], [0, 0, 1, 1], [], []>} : vector<16x4xf32>, vector<4x64xf32>, vector<16x64xf32> -> vector<16x64xf32>
    %cst_116 = arith.constant dense<0.000000e+00> : vector<16x64xf32>
    %218 = tpu.matmul %214, %10, %cst_116 {dimension_numbers = #tpu.dot_dimension_numbers<[1], [0], [0], [1], [0, 0, 1, 1], [], []>} : vector<16x32xf32>, vector<32x64xf32>, vector<16x64xf32> -> vector<16x64xf32>
    %219 = arith.addf %217, %218 : vector<16x64xf32>
    %cst_117 = arith.constant dense<0.000000e+00> : vector<16x64xf32>
    %220 = tpu.matmul %212, %6, %cst_117 {dimension_numbers = #tpu.dot_dimension_numbers<[1], [0], [0], [1], [0, 0, 1, 1], [], []>} : vector<16x4xf32>, vector<4x64xf32>, vector<16x64xf32> -> vector<16x64xf32>
    %cst_118 = arith.constant dense<0.000000e+00> : vector<16x64xf32>
    %221 = tpu.matmul %215, %12, %cst_118 {dimension_numbers = #tpu.dot_dimension_numbers<[1], [0], [0], [1], [0, 0, 1, 1], [], []>} : vector<16x32xf32>, vector<32x64xf32>, vector<16x64xf32> -> vector<16x64xf32>
    %222 = arith.addf %220, %221 : vector<16x64xf32>
    %223 = arith.addf %219, %222 : vector<16x64xf32>
    %cst_119 = arith.constant dense<0.000000e+00> : vector<16x64xf32>
    %224 = tpu.matmul %213, %8, %cst_119 {dimension_numbers = #tpu.dot_dimension_numbers<[1], [0], [0], [1], [0, 0, 1, 1], [], []>} : vector<16x4xf32>, vector<4x64xf32>, vector<16x64xf32> -> vector<16x64xf32>
    %cst_120 = arith.constant dense<0.000000e+00> : vector<16x64xf32>
    %225 = tpu.matmul %216, %14, %cst_120 {dimension_numbers = #tpu.dot_dimension_numbers<[1], [0], [0], [1], [0, 0, 1, 1], [], []>} : vector<16x32xf32>, vector<32x64xf32>, vector<16x64xf32> -> vector<16x64xf32>
    %226 = arith.addf %224, %225 : vector<16x64xf32>
    %227 = arith.addf %223, %226 : vector<16x64xf32>
    %228 = vector.broadcast %1 : vector<1x64xf32> to vector<16x64xf32>
    %229 = arith.addf %227, %228 : vector<16x64xf32>
    %230 = arith.negf %229 : vector<16x64xf32>
    %231 = math.exp %230 : vector<16x64xf32>
    %cst_121 = arith.constant 1.000000e+00 : f32
    %232 = vector.broadcast %cst_121 : f32 to vector<16x64xf32>
    %233 = arith.addf %232, %231 : vector<16x64xf32>
    %234 = arith.divf %232, %233 : vector<16x64xf32>
    %235 = vector.extract_strided_slice %234 {offsets = [0, 0], sizes = [16, 32], strides = [1, 1]} : vector<16x64xf32> to vector<16x32xf32>
    %236 = vector.extract_strided_slice %234 {offsets = [0, 32], sizes = [16, 32], strides = [1, 1]} : vector<16x64xf32> to vector<16x32xf32>
    %237 = arith.mulf %235, %201 : vector<16x32xf32>
    %cst_122 = arith.constant dense<0.000000e+00> : vector<48x32xf32>
    %238 = tpu.matmul %0, %237, %cst_122 {dimension_numbers = #tpu.dot_dimension_numbers<[1], [0], [0], [1], [0, 0, 1, 1], [], []>} : vector<48x16xf32>, vector<16x32xf32>, vector<48x32xf32> -> vector<48x32xf32>
    %239 = vector.extract_strided_slice %238 {offsets = [0, 0], sizes = [16, 32], strides = [1, 1]} : vector<48x32xf32> to vector<16x32xf32>
    %240 = vector.extract_strided_slice %238 {offsets = [16, 0], sizes = [16, 32], strides = [1, 1]} : vector<48x32xf32> to vector<16x32xf32>
    %241 = vector.extract_strided_slice %238 {offsets = [32, 0], sizes = [16, 32], strides = [1, 1]} : vector<48x32xf32> to vector<16x32xf32>
    %cst_123 = arith.constant dense<0.000000e+00> : vector<16x32xf32>
    %242 = tpu.matmul %211, %16, %cst_123 {dimension_numbers = #tpu.dot_dimension_numbers<[1], [0], [0], [1], [0, 0, 1, 1], [], []>} : vector<16x4xf32>, vector<4x32xf32>, vector<16x32xf32> -> vector<16x32xf32>
    %cst_124 = arith.constant dense<0.000000e+00> : vector<16x32xf32>
    %243 = tpu.matmul %239, %22, %cst_124 {dimension_numbers = #tpu.dot_dimension_numbers<[1], [0], [0], [1], [0, 0, 1, 1], [], []>} : vector<16x32xf32>, vector<32x32xf32>, vector<16x32xf32> -> vector<16x32xf32>
    %244 = arith.addf %242, %243 : vector<16x32xf32>
    %cst_125 = arith.constant dense<0.000000e+00> : vector<16x32xf32>
    %245 = tpu.matmul %212, %18, %cst_125 {dimension_numbers = #tpu.dot_dimension_numbers<[1], [0], [0], [1], [0, 0, 1, 1], [], []>} : vector<16x4xf32>, vector<4x32xf32>, vector<16x32xf32> -> vector<16x32xf32>
    %cst_126 = arith.constant dense<0.000000e+00> : vector<16x32xf32>
    %246 = tpu.matmul %240, %24, %cst_126 {dimension_numbers = #tpu.dot_dimension_numbers<[1], [0], [0], [1], [0, 0, 1, 1], [], []>} : vector<16x32xf32>, vector<32x32xf32>, vector<16x32xf32> -> vector<16x32xf32>
    %247 = arith.addf %245, %246 : vector<16x32xf32>
    %248 = arith.addf %244, %247 : vector<16x32xf32>
    %cst_127 = arith.constant dense<0.000000e+00> : vector<16x32xf32>
    %249 = tpu.matmul %213, %20, %cst_127 {dimension_numbers = #tpu.dot_dimension_numbers<[1], [0], [0], [1], [0, 0, 1, 1], [], []>} : vector<16x4xf32>, vector<4x32xf32>, vector<16x32xf32> -> vector<16x32xf32>
    %cst_128 = arith.constant dense<0.000000e+00> : vector<16x32xf32>
    %250 = tpu.matmul %241, %26, %cst_128 {dimension_numbers = #tpu.dot_dimension_numbers<[1], [0], [0], [1], [0, 0, 1, 1], [], []>} : vector<16x32xf32>, vector<32x32xf32>, vector<16x32xf32> -> vector<16x32xf32>
    %251 = arith.addf %249, %250 : vector<16x32xf32>
    %252 = arith.addf %248, %251 : vector<16x32xf32>
    %253 = vector.broadcast %2 : vector<1x32xf32> to vector<16x32xf32>
    %254 = arith.addf %252, %253 : vector<16x32xf32>
    %255 = math.tanh %254 : vector<16x32xf32>
    %256 = arith.mulf %236, %201 : vector<16x32xf32>
    %cst_129 = arith.constant 1.000000e+00 : f32
    %257 = vector.broadcast %cst_129 : f32 to vector<16x32xf32>
    %258 = arith.subf %257, %236 : vector<16x32xf32>
    %259 = arith.mulf %258, %255 : vector<16x32xf32>
    %260 = arith.addf %256, %259 : vector<16x32xf32>
    %c0_130 = arith.constant 0 : index
    %261 = arith.index_cast %c3_i32 : i32 to index
    %c0_131 = arith.constant 0 : index
    %c0_132 = arith.constant 0 : index
    %262 = vector.load %arg10[%c0_130, %261, %c0_131, %c0_132] : memref<1x8x16x32xf32, #tpu.memory_space<vmem>>, vector<1x1x16x32xf32>
    %263 = vector.shape_cast %262 : vector<1x1x16x32xf32> to vector<16x32xf32>
    %264 = vector.shape_cast %260 : vector<16x32xf32> to vector<1x1x16x32xf32>
    tpu.vector_store %arg10[%c0_130, %261, %c0_131, %c0_132], %264 {strides = array<i32>} : memref<1x8x16x32xf32, #tpu.memory_space<vmem>>, vector<1x1x16x32xf32>,
    %c4_i32 = arith.constant 4 : i32
    %c0_133 = arith.constant 0 : index
    %265 = arith.index_cast %c4_i32 : i32 to index
    %c0_134 = arith.constant 0 : index
    %c0_135 = arith.constant 0 : index
    %266 = vector.load %arg2[%c0_133, %265, %c0_134, %c0_135] : memref<1x8x16x4xf32, #tpu.memory_space<vmem>>, vector<1x1x16x4xf32>
    %267 = vector.shape_cast %266 : vector<1x1x16x4xf32> to vector<16x4xf32>
    %cst_136 = arith.constant dense<0.000000e+00> : vector<48x4xf32>
    %268 = tpu.matmul %0, %267, %cst_136 {dimension_numbers = #tpu.dot_dimension_numbers<[1], [0], [0], [1], [0, 0, 1, 1], [], []>} : vector<48x16xf32>, vector<16x4xf32>, vector<48x4xf32> -> vector<48x4xf32>
    %cst_137 = arith.constant dense<0.000000e+00> : vector<48x32xf32>
    %269 = tpu.matmul %0, %260, %cst_137 {dimension_numbers = #tpu.dot_dimension_numbers<[1], [0], [0], [1], [0, 0, 1, 1], [], []>} : vector<48x16xf32>, vector<16x32xf32>, vector<48x32xf32> -> vector<48x32xf32>
    %270 = vector.extract_strided_slice %268 {offsets = [0, 0], sizes = [16, 4], strides = [1, 1]} : vector<48x4xf32> to vector<16x4xf32>
    %271 = vector.extract_strided_slice %268 {offsets = [16, 0], sizes = [16, 4], strides = [1, 1]} : vector<48x4xf32> to vector<16x4xf32>
    %272 = vector.extract_strided_slice %268 {offsets = [32, 0], sizes = [16, 4], strides = [1, 1]} : vector<48x4xf32> to vector<16x4xf32>
    %273 = vector.extract_strided_slice %269 {offsets = [0, 0], sizes = [16, 32], strides = [1, 1]} : vector<48x32xf32> to vector<16x32xf32>
    %274 = vector.extract_strided_slice %269 {offsets = [16, 0], sizes = [16, 32], strides = [1, 1]} : vector<48x32xf32> to vector<16x32xf32>
    %275 = vector.extract_strided_slice %269 {offsets = [32, 0], sizes = [16, 32], strides = [1, 1]} : vector<48x32xf32> to vector<16x32xf32>
    %cst_138 = arith.constant dense<0.000000e+00> : vector<16x64xf32>
    %276 = tpu.matmul %270, %4, %cst_138 {dimension_numbers = #tpu.dot_dimension_numbers<[1], [0], [0], [1], [0, 0, 1, 1], [], []>} : vector<16x4xf32>, vector<4x64xf32>, vector<16x64xf32> -> vector<16x64xf32>
    %cst_139 = arith.constant dense<0.000000e+00> : vector<16x64xf32>
    %277 = tpu.matmul %273, %10, %cst_139 {dimension_numbers = #tpu.dot_dimension_numbers<[1], [0], [0], [1], [0, 0, 1, 1], [], []>} : vector<16x32xf32>, vector<32x64xf32>, vector<16x64xf32> -> vector<16x64xf32>
    %278 = arith.addf %276, %277 : vector<16x64xf32>
    %cst_140 = arith.constant dense<0.000000e+00> : vector<16x64xf32>
    %279 = tpu.matmul %271, %6, %cst_140 {dimension_numbers = #tpu.dot_dimension_numbers<[1], [0], [0], [1], [0, 0, 1, 1], [], []>} : vector<16x4xf32>, vector<4x64xf32>, vector<16x64xf32> -> vector<16x64xf32>
    %cst_141 = arith.constant dense<0.000000e+00> : vector<16x64xf32>
    %280 = tpu.matmul %274, %12, %cst_141 {dimension_numbers = #tpu.dot_dimension_numbers<[1], [0], [0], [1], [0, 0, 1, 1], [], []>} : vector<16x32xf32>, vector<32x64xf32>, vector<16x64xf32> -> vector<16x64xf32>
    %281 = arith.addf %279, %280 : vector<16x64xf32>
    %282 = arith.addf %278, %281 : vector<16x64xf32>
    %cst_142 = arith.constant dense<0.000000e+00> : vector<16x64xf32>
    %283 = tpu.matmul %272, %8, %cst_142 {dimension_numbers = #tpu.dot_dimension_numbers<[1], [0], [0], [1], [0, 0, 1, 1], [], []>} : vector<16x4xf32>, vector<4x64xf32>, vector<16x64xf32> -> vector<16x64xf32>
    %cst_143 = arith.constant dense<0.000000e+00> : vector<16x64xf32>
    %284 = tpu.matmul %275, %14, %cst_143 {dimension_numbers = #tpu.dot_dimension_numbers<[1], [0], [0], [1], [0, 0, 1, 1], [], []>} : vector<16x32xf32>, vector<32x64xf32>, vector<16x64xf32> -> vector<16x64xf32>
    %285 = arith.addf %283, %284 : vector<16x64xf32>
    %286 = arith.addf %282, %285 : vector<16x64xf32>
    %287 = vector.broadcast %1 : vector<1x64xf32> to vector<16x64xf32>
    %288 = arith.addf %286, %287 : vector<16x64xf32>
    %289 = arith.negf %288 : vector<16x64xf32>
    %290 = math.exp %289 : vector<16x64xf32>
    %cst_144 = arith.constant 1.000000e+00 : f32
    %291 = vector.broadcast %cst_144 : f32 to vector<16x64xf32>
    %292 = arith.addf %291, %290 : vector<16x64xf32>
    %293 = arith.divf %291, %292 : vector<16x64xf32>
    %294 = vector.extract_strided_slice %293 {offsets = [0, 0], sizes = [16, 32], strides = [1, 1]} : vector<16x64xf32> to vector<16x32xf32>
    %295 = vector.extract_strided_slice %293 {offsets = [0, 32], sizes = [16, 32], strides = [1, 1]} : vector<16x64xf32> to vector<16x32xf32>
    %296 = arith.mulf %294, %260 : vector<16x32xf32>
    %cst_145 = arith.constant dense<0.000000e+00> : vector<48x32xf32>
    %297 = tpu.matmul %0, %296, %cst_145 {dimension_numbers = #tpu.dot_dimension_numbers<[1], [0], [0], [1], [0, 0, 1, 1], [], []>} : vector<48x16xf32>, vector<16x32xf32>, vector<48x32xf32> -> vector<48x32xf32>
    %298 = vector.extract_strided_slice %297 {offsets = [0, 0], sizes = [16, 32], strides = [1, 1]} : vector<48x32xf32> to vector<16x32xf32>
    %299 = vector.extract_strided_slice %297 {offsets = [16, 0], sizes = [16, 32], strides = [1, 1]} : vector<48x32xf32> to vector<16x32xf32>
    %300 = vector.extract_strided_slice %297 {offsets = [32, 0], sizes = [16, 32], strides = [1, 1]} : vector<48x32xf32> to vector<16x32xf32>
    %cst_146 = arith.constant dense<0.000000e+00> : vector<16x32xf32>
    %301 = tpu.matmul %270, %16, %cst_146 {dimension_numbers = #tpu.dot_dimension_numbers<[1], [0], [0], [1], [0, 0, 1, 1], [], []>} : vector<16x4xf32>, vector<4x32xf32>, vector<16x32xf32> -> vector<16x32xf32>
    %cst_147 = arith.constant dense<0.000000e+00> : vector<16x32xf32>
    %302 = tpu.matmul %298, %22, %cst_147 {dimension_numbers = #tpu.dot_dimension_numbers<[1], [0], [0], [1], [0, 0, 1, 1], [], []>} : vector<16x32xf32>, vector<32x32xf32>, vector<16x32xf32> -> vector<16x32xf32>
    %303 = arith.addf %301, %302 : vector<16x32xf32>
    %cst_148 = arith.constant dense<0.000000e+00> : vector<16x32xf32>
    %304 = tpu.matmul %271, %18, %cst_148 {dimension_numbers = #tpu.dot_dimension_numbers<[1], [0], [0], [1], [0, 0, 1, 1], [], []>} : vector<16x4xf32>, vector<4x32xf32>, vector<16x32xf32> -> vector<16x32xf32>
    %cst_149 = arith.constant dense<0.000000e+00> : vector<16x32xf32>
    %305 = tpu.matmul %299, %24, %cst_149 {dimension_numbers = #tpu.dot_dimension_numbers<[1], [0], [0], [1], [0, 0, 1, 1], [], []>} : vector<16x32xf32>, vector<32x32xf32>, vector<16x32xf32> -> vector<16x32xf32>
    %306 = arith.addf %304, %305 : vector<16x32xf32>
    %307 = arith.addf %303, %306 : vector<16x32xf32>
    %cst_150 = arith.constant dense<0.000000e+00> : vector<16x32xf32>
    %308 = tpu.matmul %272, %20, %cst_150 {dimension_numbers = #tpu.dot_dimension_numbers<[1], [0], [0], [1], [0, 0, 1, 1], [], []>} : vector<16x4xf32>, vector<4x32xf32>, vector<16x32xf32> -> vector<16x32xf32>
    %cst_151 = arith.constant dense<0.000000e+00> : vector<16x32xf32>
    %309 = tpu.matmul %300, %26, %cst_151 {dimension_numbers = #tpu.dot_dimension_numbers<[1], [0], [0], [1], [0, 0, 1, 1], [], []>} : vector<16x32xf32>, vector<32x32xf32>, vector<16x32xf32> -> vector<16x32xf32>
    %310 = arith.addf %308, %309 : vector<16x32xf32>
    %311 = arith.addf %307, %310 : vector<16x32xf32>
    %312 = vector.broadcast %2 : vector<1x32xf32> to vector<16x32xf32>
    %313 = arith.addf %311, %312 : vector<16x32xf32>
    %314 = math.tanh %313 : vector<16x32xf32>
    %315 = arith.mulf %295, %260 : vector<16x32xf32>
    %cst_152 = arith.constant 1.000000e+00 : f32
    %316 = vector.broadcast %cst_152 : f32 to vector<16x32xf32>
    %317 = arith.subf %316, %295 : vector<16x32xf32>
    %318 = arith.mulf %317, %314 : vector<16x32xf32>
    %319 = arith.addf %315, %318 : vector<16x32xf32>
    %c0_153 = arith.constant 0 : index
    %320 = arith.index_cast %c4_i32 : i32 to index
    %c0_154 = arith.constant 0 : index
    %c0_155 = arith.constant 0 : index
    %321 = vector.load %arg10[%c0_153, %320, %c0_154, %c0_155] : memref<1x8x16x32xf32, #tpu.memory_space<vmem>>, vector<1x1x16x32xf32>
    %322 = vector.shape_cast %321 : vector<1x1x16x32xf32> to vector<16x32xf32>
    %323 = vector.shape_cast %319 : vector<16x32xf32> to vector<1x1x16x32xf32>
    tpu.vector_store %arg10[%c0_153, %320, %c0_154, %c0_155], %323 {strides = array<i32>} : memref<1x8x16x32xf32, #tpu.memory_space<vmem>>, vector<1x1x16x32xf32>,
    %c5_i32 = arith.constant 5 : i32
    %c0_156 = arith.constant 0 : index
    %324 = arith.index_cast %c5_i32 : i32 to index
    %c0_157 = arith.constant 0 : index
    %c0_158 = arith.constant 0 : index
    %325 = vector.load %arg2[%c0_156, %324, %c0_157, %c0_158] : memref<1x8x16x4xf32, #tpu.memory_space<vmem>>, vector<1x1x16x4xf32>
    %326 = vector.shape_cast %325 : vector<1x1x16x4xf32> to vector<16x4xf32>
    %cst_159 = arith.constant dense<0.000000e+00> : vector<48x4xf32>
    %327 = tpu.matmul %0, %326, %cst_159 {dimension_numbers = #tpu.dot_dimension_numbers<[1], [0], [0], [1], [0, 0, 1, 1], [], []>} : vector<48x16xf32>, vector<16x4xf32>, vector<48x4xf32> -> vector<48x4xf32>
    %cst_160 = arith.constant dense<0.000000e+00> : vector<48x32xf32>
    %328 = tpu.matmul %0, %319, %cst_160 {dimension_numbers = #tpu.dot_dimension_numbers<[1], [0], [0], [1], [0, 0, 1, 1], [], []>} : vector<48x16xf32>, vector<16x32xf32>, vector<48x32xf32> -> vector<48x32xf32>
    %329 = vector.extract_strided_slice %327 {offsets = [0, 0], sizes = [16, 4], strides = [1, 1]} : vector<48x4xf32> to vector<16x4xf32>
    %330 = vector.extract_strided_slice %327 {offsets = [16, 0], sizes = [16, 4], strides = [1, 1]} : vector<48x4xf32> to vector<16x4xf32>
    %331 = vector.extract_strided_slice %327 {offsets = [32, 0], sizes = [16, 4], strides = [1, 1]} : vector<48x4xf32> to vector<16x4xf32>
    %332 = vector.extract_strided_slice %328 {offsets = [0, 0], sizes = [16, 32], strides = [1, 1]} : vector<48x32xf32> to vector<16x32xf32>
    %333 = vector.extract_strided_slice %328 {offsets = [16, 0], sizes = [16, 32], strides = [1, 1]} : vector<48x32xf32> to vector<16x32xf32>
    %334 = vector.extract_strided_slice %328 {offsets = [32, 0], sizes = [16, 32], strides = [1, 1]} : vector<48x32xf32> to vector<16x32xf32>
    %cst_161 = arith.constant dense<0.000000e+00> : vector<16x64xf32>
    %335 = tpu.matmul %329, %4, %cst_161 {dimension_numbers = #tpu.dot_dimension_numbers<[1], [0], [0], [1], [0, 0, 1, 1], [], []>} : vector<16x4xf32>, vector<4x64xf32>, vector<16x64xf32> -> vector<16x64xf32>
    %cst_162 = arith.constant dense<0.000000e+00> : vector<16x64xf32>
    %336 = tpu.matmul %332, %10, %cst_162 {dimension_numbers = #tpu.dot_dimension_numbers<[1], [0], [0], [1], [0, 0, 1, 1], [], []>} : vector<16x32xf32>, vector<32x64xf32>, vector<16x64xf32> -> vector<16x64xf32>
    %337 = arith.addf %335, %336 : vector<16x64xf32>
    %cst_163 = arith.constant dense<0.000000e+00> : vector<16x64xf32>
    %338 = tpu.matmul %330, %6, %cst_163 {dimension_numbers = #tpu.dot_dimension_numbers<[1], [0], [0], [1], [0, 0, 1, 1], [], []>} : vector<16x4xf32>, vector<4x64xf32>, vector<16x64xf32> -> vector<16x64xf32>
    %cst_164 = arith.constant dense<0.000000e+00> : vector<16x64xf32>
    %339 = tpu.matmul %333, %12, %cst_164 {dimension_numbers = #tpu.dot_dimension_numbers<[1], [0], [0], [1], [0, 0, 1, 1], [], []>} : vector<16x32xf32>, vector<32x64xf32>, vector<16x64xf32> -> vector<16x64xf32>
    %340 = arith.addf %338, %339 : vector<16x64xf32>
    %341 = arith.addf %337, %340 : vector<16x64xf32>
    %cst_165 = arith.constant dense<0.000000e+00> : vector<16x64xf32>
    %342 = tpu.matmul %331, %8, %cst_165 {dimension_numbers = #tpu.dot_dimension_numbers<[1], [0], [0], [1], [0, 0, 1, 1], [], []>} : vector<16x4xf32>, vector<4x64xf32>, vector<16x64xf32> -> vector<16x64xf32>
    %cst_166 = arith.constant dense<0.000000e+00> : vector<16x64xf32>
    %343 = tpu.matmul %334, %14, %cst_166 {dimension_numbers = #tpu.dot_dimension_numbers<[1], [0], [0], [1], [0, 0, 1, 1], [], []>} : vector<16x32xf32>, vector<32x64xf32>, vector<16x64xf32> -> vector<16x64xf32>
    %344 = arith.addf %342, %343 : vector<16x64xf32>
    %345 = arith.addf %341, %344 : vector<16x64xf32>
    %346 = vector.broadcast %1 : vector<1x64xf32> to vector<16x64xf32>
    %347 = arith.addf %345, %346 : vector<16x64xf32>
    %348 = arith.negf %347 : vector<16x64xf32>
    %349 = math.exp %348 : vector<16x64xf32>
    %cst_167 = arith.constant 1.000000e+00 : f32
    %350 = vector.broadcast %cst_167 : f32 to vector<16x64xf32>
    %351 = arith.addf %350, %349 : vector<16x64xf32>
    %352 = arith.divf %350, %351 : vector<16x64xf32>
    %353 = vector.extract_strided_slice %352 {offsets = [0, 0], sizes = [16, 32], strides = [1, 1]} : vector<16x64xf32> to vector<16x32xf32>
    %354 = vector.extract_strided_slice %352 {offsets = [0, 32], sizes = [16, 32], strides = [1, 1]} : vector<16x64xf32> to vector<16x32xf32>
    %355 = arith.mulf %353, %319 : vector<16x32xf32>
    %cst_168 = arith.constant dense<0.000000e+00> : vector<48x32xf32>
    %356 = tpu.matmul %0, %355, %cst_168 {dimension_numbers = #tpu.dot_dimension_numbers<[1], [0], [0], [1], [0, 0, 1, 1], [], []>} : vector<48x16xf32>, vector<16x32xf32>, vector<48x32xf32> -> vector<48x32xf32>
    %357 = vector.extract_strided_slice %356 {offsets = [0, 0], sizes = [16, 32], strides = [1, 1]} : vector<48x32xf32> to vector<16x32xf32>
    %358 = vector.extract_strided_slice %356 {offsets = [16, 0], sizes = [16, 32], strides = [1, 1]} : vector<48x32xf32> to vector<16x32xf32>
    %359 = vector.extract_strided_slice %356 {offsets = [32, 0], sizes = [16, 32], strides = [1, 1]} : vector<48x32xf32> to vector<16x32xf32>
    %cst_169 = arith.constant dense<0.000000e+00> : vector<16x32xf32>
    %360 = tpu.matmul %329, %16, %cst_169 {dimension_numbers = #tpu.dot_dimension_numbers<[1], [0], [0], [1], [0, 0, 1, 1], [], []>} : vector<16x4xf32>, vector<4x32xf32>, vector<16x32xf32> -> vector<16x32xf32>
    %cst_170 = arith.constant dense<0.000000e+00> : vector<16x32xf32>
    %361 = tpu.matmul %357, %22, %cst_170 {dimension_numbers = #tpu.dot_dimension_numbers<[1], [0], [0], [1], [0, 0, 1, 1], [], []>} : vector<16x32xf32>, vector<32x32xf32>, vector<16x32xf32> -> vector<16x32xf32>
    %362 = arith.addf %360, %361 : vector<16x32xf32>
    %cst_171 = arith.constant dense<0.000000e+00> : vector<16x32xf32>
    %363 = tpu.matmul %330, %18, %cst_171 {dimension_numbers = #tpu.dot_dimension_numbers<[1], [0], [0], [1], [0, 0, 1, 1], [], []>} : vector<16x4xf32>, vector<4x32xf32>, vector<16x32xf32> -> vector<16x32xf32>
    %cst_172 = arith.constant dense<0.000000e+00> : vector<16x32xf32>
    %364 = tpu.matmul %358, %24, %cst_172 {dimension_numbers = #tpu.dot_dimension_numbers<[1], [0], [0], [1], [0, 0, 1, 1], [], []>} : vector<16x32xf32>, vector<32x32xf32>, vector<16x32xf32> -> vector<16x32xf32>
    %365 = arith.addf %363, %364 : vector<16x32xf32>
    %366 = arith.addf %362, %365 : vector<16x32xf32>
    %cst_173 = arith.constant dense<0.000000e+00> : vector<16x32xf32>
    %367 = tpu.matmul %331, %20, %cst_173 {dimension_numbers = #tpu.dot_dimension_numbers<[1], [0], [0], [1], [0, 0, 1, 1], [], []>} : vector<16x4xf32>, vector<4x32xf32>, vector<16x32xf32> -> vector<16x32xf32>
    %cst_174 = arith.constant dense<0.000000e+00> : vector<16x32xf32>
    %368 = tpu.matmul %359, %26, %cst_174 {dimension_numbers = #tpu.dot_dimension_numbers<[1], [0], [0], [1], [0, 0, 1, 1], [], []>} : vector<16x32xf32>, vector<32x32xf32>, vector<16x32xf32> -> vector<16x32xf32>
    %369 = arith.addf %367, %368 : vector<16x32xf32>
    %370 = arith.addf %366, %369 : vector<16x32xf32>
    %371 = vector.broadcast %2 : vector<1x32xf32> to vector<16x32xf32>
    %372 = arith.addf %370, %371 : vector<16x32xf32>
    %373 = math.tanh %372 : vector<16x32xf32>
    %374 = arith.mulf %354, %319 : vector<16x32xf32>
    %cst_175 = arith.constant 1.000000e+00 : f32
    %375 = vector.broadcast %cst_175 : f32 to vector<16x32xf32>
    %376 = arith.subf %375, %354 : vector<16x32xf32>
    %377 = arith.mulf %376, %373 : vector<16x32xf32>
    %378 = arith.addf %374, %377 : vector<16x32xf32>
    %c0_176 = arith.constant 0 : index
    %379 = arith.index_cast %c5_i32 : i32 to index
    %c0_177 = arith.constant 0 : index
    %c0_178 = arith.constant 0 : index
    %380 = vector.load %arg10[%c0_176, %379, %c0_177, %c0_178] : memref<1x8x16x32xf32, #tpu.memory_space<vmem>>, vector<1x1x16x32xf32>
    %381 = vector.shape_cast %380 : vector<1x1x16x32xf32> to vector<16x32xf32>
    %382 = vector.shape_cast %378 : vector<16x32xf32> to vector<1x1x16x32xf32>
    tpu.vector_store %arg10[%c0_176, %379, %c0_177, %c0_178], %382 {strides = array<i32>} : memref<1x8x16x32xf32, #tpu.memory_space<vmem>>, vector<1x1x16x32xf32>,
    %c6_i32 = arith.constant 6 : i32
    %c0_179 = arith.constant 0 : index
    %383 = arith.index_cast %c6_i32 : i32 to index
    %c0_180 = arith.constant 0 : index
    %c0_181 = arith.constant 0 : index
    %384 = vector.load %arg2[%c0_179, %383, %c0_180, %c0_181] : memref<1x8x16x4xf32, #tpu.memory_space<vmem>>, vector<1x1x16x4xf32>
    %385 = vector.shape_cast %384 : vector<1x1x16x4xf32> to vector<16x4xf32>
    %cst_182 = arith.constant dense<0.000000e+00> : vector<48x4xf32>
    %386 = tpu.matmul %0, %385, %cst_182 {dimension_numbers = #tpu.dot_dimension_numbers<[1], [0], [0], [1], [0, 0, 1, 1], [], []>} : vector<48x16xf32>, vector<16x4xf32>, vector<48x4xf32> -> vector<48x4xf32>
    %cst_183 = arith.constant dense<0.000000e+00> : vector<48x32xf32>
    %387 = tpu.matmul %0, %378, %cst_183 {dimension_numbers = #tpu.dot_dimension_numbers<[1], [0], [0], [1], [0, 0, 1, 1], [], []>} : vector<48x16xf32>, vector<16x32xf32>, vector<48x32xf32> -> vector<48x32xf32>
    %388 = vector.extract_strided_slice %386 {offsets = [0, 0], sizes = [16, 4], strides = [1, 1]} : vector<48x4xf32> to vector<16x4xf32>
    %389 = vector.extract_strided_slice %386 {offsets = [16, 0], sizes = [16, 4], strides = [1, 1]} : vector<48x4xf32> to vector<16x4xf32>
    %390 = vector.extract_strided_slice %386 {offsets = [32, 0], sizes = [16, 4], strides = [1, 1]} : vector<48x4xf32> to vector<16x4xf32>
    %391 = vector.extract_strided_slice %387 {offsets = [0, 0], sizes = [16, 32], strides = [1, 1]} : vector<48x32xf32> to vector<16x32xf32>
    %392 = vector.extract_strided_slice %387 {offsets = [16, 0], sizes = [16, 32], strides = [1, 1]} : vector<48x32xf32> to vector<16x32xf32>
    %393 = vector.extract_strided_slice %387 {offsets = [32, 0], sizes = [16, 32], strides = [1, 1]} : vector<48x32xf32> to vector<16x32xf32>
    %cst_184 = arith.constant dense<0.000000e+00> : vector<16x64xf32>
    %394 = tpu.matmul %388, %4, %cst_184 {dimension_numbers = #tpu.dot_dimension_numbers<[1], [0], [0], [1], [0, 0, 1, 1], [], []>} : vector<16x4xf32>, vector<4x64xf32>, vector<16x64xf32> -> vector<16x64xf32>
    %cst_185 = arith.constant dense<0.000000e+00> : vector<16x64xf32>
    %395 = tpu.matmul %391, %10, %cst_185 {dimension_numbers = #tpu.dot_dimension_numbers<[1], [0], [0], [1], [0, 0, 1, 1], [], []>} : vector<16x32xf32>, vector<32x64xf32>, vector<16x64xf32> -> vector<16x64xf32>
    %396 = arith.addf %394, %395 : vector<16x64xf32>
    %cst_186 = arith.constant dense<0.000000e+00> : vector<16x64xf32>
    %397 = tpu.matmul %389, %6, %cst_186 {dimension_numbers = #tpu.dot_dimension_numbers<[1], [0], [0], [1], [0, 0, 1, 1], [], []>} : vector<16x4xf32>, vector<4x64xf32>, vector<16x64xf32> -> vector<16x64xf32>
    %cst_187 = arith.constant dense<0.000000e+00> : vector<16x64xf32>
    %398 = tpu.matmul %392, %12, %cst_187 {dimension_numbers = #tpu.dot_dimension_numbers<[1], [0], [0], [1], [0, 0, 1, 1], [], []>} : vector<16x32xf32>, vector<32x64xf32>, vector<16x64xf32> -> vector<16x64xf32>
    %399 = arith.addf %397, %398 : vector<16x64xf32>
    %400 = arith.addf %396, %399 : vector<16x64xf32>
    %cst_188 = arith.constant dense<0.000000e+00> : vector<16x64xf32>
    %401 = tpu.matmul %390, %8, %cst_188 {dimension_numbers = #tpu.dot_dimension_numbers<[1], [0], [0], [1], [0, 0, 1, 1], [], []>} : vector<16x4xf32>, vector<4x64xf32>, vector<16x64xf32> -> vector<16x64xf32>
    %cst_189 = arith.constant dense<0.000000e+00> : vector<16x64xf32>
    %402 = tpu.matmul %393, %14, %cst_189 {dimension_numbers = #tpu.dot_dimension_numbers<[1], [0], [0], [1], [0, 0, 1, 1], [], []>} : vector<16x32xf32>, vector<32x64xf32>, vector<16x64xf32> -> vector<16x64xf32>
    %403 = arith.addf %401, %402 : vector<16x64xf32>
    %404 = arith.addf %400, %403 : vector<16x64xf32>
    %405 = vector.broadcast %1 : vector<1x64xf32> to vector<16x64xf32>
    %406 = arith.addf %404, %405 : vector<16x64xf32>
    %407 = arith.negf %406 : vector<16x64xf32>
    %408 = math.exp %407 : vector<16x64xf32>
    %cst_190 = arith.constant 1.000000e+00 : f32
    %409 = vector.broadcast %cst_190 : f32 to vector<16x64xf32>
    %410 = arith.addf %409, %408 : vector<16x64xf32>
    %411 = arith.divf %409, %410 : vector<16x64xf32>
    %412 = vector.extract_strided_slice %411 {offsets = [0, 0], sizes = [16, 32], strides = [1, 1]} : vector<16x64xf32> to vector<16x32xf32>
    %413 = vector.extract_strided_slice %411 {offsets = [0, 32], sizes = [16, 32], strides = [1, 1]} : vector<16x64xf32> to vector<16x32xf32>
    %414 = arith.mulf %412, %378 : vector<16x32xf32>
    %cst_191 = arith.constant dense<0.000000e+00> : vector<48x32xf32>
    %415 = tpu.matmul %0, %414, %cst_191 {dimension_numbers = #tpu.dot_dimension_numbers<[1], [0], [0], [1], [0, 0, 1, 1], [], []>} : vector<48x16xf32>, vector<16x32xf32>, vector<48x32xf32> -> vector<48x32xf32>
    %416 = vector.extract_strided_slice %415 {offsets = [0, 0], sizes = [16, 32], strides = [1, 1]} : vector<48x32xf32> to vector<16x32xf32>
    %417 = vector.extract_strided_slice %415 {offsets = [16, 0], sizes = [16, 32], strides = [1, 1]} : vector<48x32xf32> to vector<16x32xf32>
    %418 = vector.extract_strided_slice %415 {offsets = [32, 0], sizes = [16, 32], strides = [1, 1]} : vector<48x32xf32> to vector<16x32xf32>
    %cst_192 = arith.constant dense<0.000000e+00> : vector<16x32xf32>
    %419 = tpu.matmul %388, %16, %cst_192 {dimension_numbers = #tpu.dot_dimension_numbers<[1], [0], [0], [1], [0, 0, 1, 1], [], []>} : vector<16x4xf32>, vector<4x32xf32>, vector<16x32xf32> -> vector<16x32xf32>
    %cst_193 = arith.constant dense<0.000000e+00> : vector<16x32xf32>
    %420 = tpu.matmul %416, %22, %cst_193 {dimension_numbers = #tpu.dot_dimension_numbers<[1], [0], [0], [1], [0, 0, 1, 1], [], []>} : vector<16x32xf32>, vector<32x32xf32>, vector<16x32xf32> -> vector<16x32xf32>
    %421 = arith.addf %419, %420 : vector<16x32xf32>
    %cst_194 = arith.constant dense<0.000000e+00> : vector<16x32xf32>
    %422 = tpu.matmul %389, %18, %cst_194 {dimension_numbers = #tpu.dot_dimension_numbers<[1], [0], [0], [1], [0, 0, 1, 1], [], []>} : vector<16x4xf32>, vector<4x32xf32>, vector<16x32xf32> -> vector<16x32xf32>
    %cst_195 = arith.constant dense<0.000000e+00> : vector<16x32xf32>
    %423 = tpu.matmul %417, %24, %cst_195 {dimension_numbers = #tpu.dot_dimension_numbers<[1], [0], [0], [1], [0, 0, 1, 1], [], []>} : vector<16x32xf32>, vector<32x32xf32>, vector<16x32xf32> -> vector<16x32xf32>
    %424 = arith.addf %422, %423 : vector<16x32xf32>
    %425 = arith.addf %421, %424 : vector<16x32xf32>
    %cst_196 = arith.constant dense<0.000000e+00> : vector<16x32xf32>
    %426 = tpu.matmul %390, %20, %cst_196 {dimension_numbers = #tpu.dot_dimension_numbers<[1], [0], [0], [1], [0, 0, 1, 1], [], []>} : vector<16x4xf32>, vector<4x32xf32>, vector<16x32xf32> -> vector<16x32xf32>
    %cst_197 = arith.constant dense<0.000000e+00> : vector<16x32xf32>
    %427 = tpu.matmul %418, %26, %cst_197 {dimension_numbers = #tpu.dot_dimension_numbers<[1], [0], [0], [1], [0, 0, 1, 1], [], []>} : vector<16x32xf32>, vector<32x32xf32>, vector<16x32xf32> -> vector<16x32xf32>
    %428 = arith.addf %426, %427 : vector<16x32xf32>
    %429 = arith.addf %425, %428 : vector<16x32xf32>
    %430 = vector.broadcast %2 : vector<1x32xf32> to vector<16x32xf32>
    %431 = arith.addf %429, %430 : vector<16x32xf32>
    %432 = math.tanh %431 : vector<16x32xf32>
    %433 = arith.mulf %413, %378 : vector<16x32xf32>
    %cst_198 = arith.constant 1.000000e+00 : f32
    %434 = vector.broadcast %cst_198 : f32 to vector<16x32xf32>
    %435 = arith.subf %434, %413 : vector<16x32xf32>
    %436 = arith.mulf %435, %432 : vector<16x32xf32>
    %437 = arith.addf %433, %436 : vector<16x32xf32>
    %c0_199 = arith.constant 0 : index
    %438 = arith.index_cast %c6_i32 : i32 to index
    %c0_200 = arith.constant 0 : index
    %c0_201 = arith.constant 0 : index
    %439 = vector.load %arg10[%c0_199, %438, %c0_200, %c0_201] : memref<1x8x16x32xf32, #tpu.memory_space<vmem>>, vector<1x1x16x32xf32>
    %440 = vector.shape_cast %439 : vector<1x1x16x32xf32> to vector<16x32xf32>
    %441 = vector.shape_cast %437 : vector<16x32xf32> to vector<1x1x16x32xf32>
    tpu.vector_store %arg10[%c0_199, %438, %c0_200, %c0_201], %441 {strides = array<i32>} : memref<1x8x16x32xf32, #tpu.memory_space<vmem>>, vector<1x1x16x32xf32>,
    %c7_i32 = arith.constant 7 : i32
    %c0_202 = arith.constant 0 : index
    %442 = arith.index_cast %c7_i32 : i32 to index
    %c0_203 = arith.constant 0 : index
    %c0_204 = arith.constant 0 : index
    %443 = vector.load %arg2[%c0_202, %442, %c0_203, %c0_204] : memref<1x8x16x4xf32, #tpu.memory_space<vmem>>, vector<1x1x16x4xf32>
    %444 = vector.shape_cast %443 : vector<1x1x16x4xf32> to vector<16x4xf32>
    %cst_205 = arith.constant dense<0.000000e+00> : vector<48x4xf32>
    %445 = tpu.matmul %0, %444, %cst_205 {dimension_numbers = #tpu.dot_dimension_numbers<[1], [0], [0], [1], [0, 0, 1, 1], [], []>} : vector<48x16xf32>, vector<16x4xf32>, vector<48x4xf32> -> vector<48x4xf32>
    %cst_206 = arith.constant dense<0.000000e+00> : vector<48x32xf32>
    %446 = tpu.matmul %0, %437, %cst_206 {dimension_numbers = #tpu.dot_dimension_numbers<[1], [0], [0], [1], [0, 0, 1, 1], [], []>} : vector<48x16xf32>, vector<16x32xf32>, vector<48x32xf32> -> vector<48x32xf32>
    %447 = vector.extract_strided_slice %445 {offsets = [0, 0], sizes = [16, 4], strides = [1, 1]} : vector<48x4xf32> to vector<16x4xf32>
    %448 = vector.extract_strided_slice %445 {offsets = [16, 0], sizes = [16, 4], strides = [1, 1]} : vector<48x4xf32> to vector<16x4xf32>
    %449 = vector.extract_strided_slice %445 {offsets = [32, 0], sizes = [16, 4], strides = [1, 1]} : vector<48x4xf32> to vector<16x4xf32>
    %450 = vector.extract_strided_slice %446 {offsets = [0, 0], sizes = [16, 32], strides = [1, 1]} : vector<48x32xf32> to vector<16x32xf32>
    %451 = vector.extract_strided_slice %446 {offsets = [16, 0], sizes = [16, 32], strides = [1, 1]} : vector<48x32xf32> to vector<16x32xf32>
    %452 = vector.extract_strided_slice %446 {offsets = [32, 0], sizes = [16, 32], strides = [1, 1]} : vector<48x32xf32> to vector<16x32xf32>
    %cst_207 = arith.constant dense<0.000000e+00> : vector<16x64xf32>
    %453 = tpu.matmul %447, %4, %cst_207 {dimension_numbers = #tpu.dot_dimension_numbers<[1], [0], [0], [1], [0, 0, 1, 1], [], []>} : vector<16x4xf32>, vector<4x64xf32>, vector<16x64xf32> -> vector<16x64xf32>
    %cst_208 = arith.constant dense<0.000000e+00> : vector<16x64xf32>
    %454 = tpu.matmul %450, %10, %cst_208 {dimension_numbers = #tpu.dot_dimension_numbers<[1], [0], [0], [1], [0, 0, 1, 1], [], []>} : vector<16x32xf32>, vector<32x64xf32>, vector<16x64xf32> -> vector<16x64xf32>
    %455 = arith.addf %453, %454 : vector<16x64xf32>
    %cst_209 = arith.constant dense<0.000000e+00> : vector<16x64xf32>
    %456 = tpu.matmul %448, %6, %cst_209 {dimension_numbers = #tpu.dot_dimension_numbers<[1], [0], [0], [1], [0, 0, 1, 1], [], []>} : vector<16x4xf32>, vector<4x64xf32>, vector<16x64xf32> -> vector<16x64xf32>
    %cst_210 = arith.constant dense<0.000000e+00> : vector<16x64xf32>
    %457 = tpu.matmul %451, %12, %cst_210 {dimension_numbers = #tpu.dot_dimension_numbers<[1], [0], [0], [1], [0, 0, 1, 1], [], []>} : vector<16x32xf32>, vector<32x64xf32>, vector<16x64xf32> -> vector<16x64xf32>
    %458 = arith.addf %456, %457 : vector<16x64xf32>
    %459 = arith.addf %455, %458 : vector<16x64xf32>
    %cst_211 = arith.constant dense<0.000000e+00> : vector<16x64xf32>
    %460 = tpu.matmul %449, %8, %cst_211 {dimension_numbers = #tpu.dot_dimension_numbers<[1], [0], [0], [1], [0, 0, 1, 1], [], []>} : vector<16x4xf32>, vector<4x64xf32>, vector<16x64xf32> -> vector<16x64xf32>
    %cst_212 = arith.constant dense<0.000000e+00> : vector<16x64xf32>
    %461 = tpu.matmul %452, %14, %cst_212 {dimension_numbers = #tpu.dot_dimension_numbers<[1], [0], [0], [1], [0, 0, 1, 1], [], []>} : vector<16x32xf32>, vector<32x64xf32>, vector<16x64xf32> -> vector<16x64xf32>
    %462 = arith.addf %460, %461 : vector<16x64xf32>
    %463 = arith.addf %459, %462 : vector<16x64xf32>
    %464 = vector.broadcast %1 : vector<1x64xf32> to vector<16x64xf32>
    %465 = arith.addf %463, %464 : vector<16x64xf32>
    %466 = arith.negf %465 : vector<16x64xf32>
    %467 = math.exp %466 : vector<16x64xf32>
    %cst_213 = arith.constant 1.000000e+00 : f32
    %468 = vector.broadcast %cst_213 : f32 to vector<16x64xf32>
    %469 = arith.addf %468, %467 : vector<16x64xf32>
    %470 = arith.divf %468, %469 : vector<16x64xf32>
    %471 = vector.extract_strided_slice %470 {offsets = [0, 0], sizes = [16, 32], strides = [1, 1]} : vector<16x64xf32> to vector<16x32xf32>
    %472 = vector.extract_strided_slice %470 {offsets = [0, 32], sizes = [16, 32], strides = [1, 1]} : vector<16x64xf32> to vector<16x32xf32>
    %473 = arith.mulf %471, %437 : vector<16x32xf32>
    %cst_214 = arith.constant dense<0.000000e+00> : vector<48x32xf32>
    %474 = tpu.matmul %0, %473, %cst_214 {dimension_numbers = #tpu.dot_dimension_numbers<[1], [0], [0], [1], [0, 0, 1, 1], [], []>} : vector<48x16xf32>, vector<16x32xf32>, vector<48x32xf32> -> vector<48x32xf32>
    %475 = vector.extract_strided_slice %474 {offsets = [0, 0], sizes = [16, 32], strides = [1, 1]} : vector<48x32xf32> to vector<16x32xf32>
    %476 = vector.extract_strided_slice %474 {offsets = [16, 0], sizes = [16, 32], strides = [1, 1]} : vector<48x32xf32> to vector<16x32xf32>
    %477 = vector.extract_strided_slice %474 {offsets = [32, 0], sizes = [16, 32], strides = [1, 1]} : vector<48x32xf32> to vector<16x32xf32>
    %cst_215 = arith.constant dense<0.000000e+00> : vector<16x32xf32>
    %478 = tpu.matmul %447, %16, %cst_215 {dimension_numbers = #tpu.dot_dimension_numbers<[1], [0], [0], [1], [0, 0, 1, 1], [], []>} : vector<16x4xf32>, vector<4x32xf32>, vector<16x32xf32> -> vector<16x32xf32>
    %cst_216 = arith.constant dense<0.000000e+00> : vector<16x32xf32>
    %479 = tpu.matmul %475, %22, %cst_216 {dimension_numbers = #tpu.dot_dimension_numbers<[1], [0], [0], [1], [0, 0, 1, 1], [], []>} : vector<16x32xf32>, vector<32x32xf32>, vector<16x32xf32> -> vector<16x32xf32>
    %480 = arith.addf %478, %479 : vector<16x32xf32>
    %cst_217 = arith.constant dense<0.000000e+00> : vector<16x32xf32>
    %481 = tpu.matmul %448, %18, %cst_217 {dimension_numbers = #tpu.dot_dimension_numbers<[1], [0], [0], [1], [0, 0, 1, 1], [], []>} : vector<16x4xf32>, vector<4x32xf32>, vector<16x32xf32> -> vector<16x32xf32>
    %cst_218 = arith.constant dense<0.000000e+00> : vector<16x32xf32>
    %482 = tpu.matmul %476, %24, %cst_218 {dimension_numbers = #tpu.dot_dimension_numbers<[1], [0], [0], [1], [0, 0, 1, 1], [], []>} : vector<16x32xf32>, vector<32x32xf32>, vector<16x32xf32> -> vector<16x32xf32>
    %483 = arith.addf %481, %482 : vector<16x32xf32>
    %484 = arith.addf %480, %483 : vector<16x32xf32>
    %cst_219 = arith.constant dense<0.000000e+00> : vector<16x32xf32>
    %485 = tpu.matmul %449, %20, %cst_219 {dimension_numbers = #tpu.dot_dimension_numbers<[1], [0], [0], [1], [0, 0, 1, 1], [], []>} : vector<16x4xf32>, vector<4x32xf32>, vector<16x32xf32> -> vector<16x32xf32>
    %cst_220 = arith.constant dense<0.000000e+00> : vector<16x32xf32>
    %486 = tpu.matmul %477, %26, %cst_220 {dimension_numbers = #tpu.dot_dimension_numbers<[1], [0], [0], [1], [0, 0, 1, 1], [], []>} : vector<16x32xf32>, vector<32x32xf32>, vector<16x32xf32> -> vector<16x32xf32>
    %487 = arith.addf %485, %486 : vector<16x32xf32>
    %488 = arith.addf %484, %487 : vector<16x32xf32>
    %489 = vector.broadcast %2 : vector<1x32xf32> to vector<16x32xf32>
    %490 = arith.addf %488, %489 : vector<16x32xf32>
    %491 = math.tanh %490 : vector<16x32xf32>
    %492 = arith.mulf %472, %437 : vector<16x32xf32>
    %cst_221 = arith.constant 1.000000e+00 : f32
    %493 = vector.broadcast %cst_221 : f32 to vector<16x32xf32>
    %494 = arith.subf %493, %472 : vector<16x32xf32>
    %495 = arith.mulf %494, %491 : vector<16x32xf32>
    %496 = arith.addf %492, %495 : vector<16x32xf32>
    %c0_222 = arith.constant 0 : index
    %497 = arith.index_cast %c7_i32 : i32 to index
    %c0_223 = arith.constant 0 : index
    %c0_224 = arith.constant 0 : index
    %498 = vector.load %arg10[%c0_222, %497, %c0_223, %c0_224] : memref<1x8x16x32xf32, #tpu.memory_space<vmem>>, vector<1x1x16x32xf32>
    %499 = vector.shape_cast %498 : vector<1x1x16x32xf32> to vector<16x32xf32>
    %500 = vector.shape_cast %496 : vector<16x32xf32> to vector<1x1x16x32xf32>
    tpu.vector_store %arg10[%c0_222, %497, %c0_223, %c0_224], %500 {strides = array<i32>} : memref<1x8x16x32xf32, #tpu.memory_space<vmem>>, vector<1x1x16x32xf32>,
    %c8_i32 = arith.constant 8 : i32
    return
  }
  func.func @transform_0(%arg0: i32) -> (i32, i32) {
    %c0_i32 = arith.constant 0 : i32
    %c0_i32_0 = arith.constant 0 : i32
    %c0_i32_1 = arith.constant 0 : i32
    return %c0_i32, %c0_i32_0 : i32, i32
  }
  func.func @transform_1(%arg0: i32) -> (i32, i32, i32, i32) {
    %c0_i32 = arith.constant 0 : i32
    %c0_i32_0 = arith.constant 0 : i32
    %c0_i32_1 = arith.constant 0 : i32
    %c0_i32_2 = arith.constant 0 : i32
    return %arg0, %c0_i32, %c0_i32_0, %c0_i32_1 : i32, i32, i32, i32
  }
  func.func @transform_2(%arg0: i32) -> (i32, i32, i32) {
    %c0_i32 = arith.constant 0 : i32
    %c0_i32_0 = arith.constant 0 : i32
    %c0_i32_1 = arith.constant 0 : i32
    return %arg0, %c0_i32, %c0_i32_0 : i32, i32, i32
  }
  func.func @transform_3(%arg0: i32) -> (i32, i32, i32) {
    %c0_i32 = arith.constant 0 : i32
    %c0_i32_0 = arith.constant 0 : i32
    %c0_i32_1 = arith.constant 0 : i32
    %c0_i32_2 = arith.constant 0 : i32
    return %c0_i32, %c0_i32_0, %c0_i32_1 : i32, i32, i32
  }
  func.func @transform_4(%arg0: i32) -> (i32, i32, i32) {
    %c0_i32 = arith.constant 0 : i32
    %c0_i32_0 = arith.constant 0 : i32
    %c0_i32_1 = arith.constant 0 : i32
    %c0_i32_2 = arith.constant 0 : i32
    return %c0_i32, %c0_i32_0, %c0_i32_1 : i32, i32, i32
  }
  func.func @transform_5(%arg0: i32) -> (i32, i32) {
    %c0_i32 = arith.constant 0 : i32
    %c0_i32_0 = arith.constant 0 : i32
    %c0_i32_1 = arith.constant 0 : i32
    return %c0_i32, %c0_i32_0 : i32, i32
  }
  func.func @transform_6(%arg0: i32) -> (i32, i32, i32) {
    %c0_i32 = arith.constant 0 : i32
    %c0_i32_0 = arith.constant 0 : i32
    %c0_i32_1 = arith.constant 0 : i32
    %c0_i32_2 = arith.constant 0 : i32
    return %c0_i32, %c0_i32_0, %c0_i32_1 : i32, i32, i32
  }
  func.func @transform_7(%arg0: i32) -> (i32, i32, i32) {
    %c0_i32 = arith.constant 0 : i32
    %c0_i32_0 = arith.constant 0 : i32
    %c0_i32_1 = arith.constant 0 : i32
    %c0_i32_2 = arith.constant 0 : i32
    return %c0_i32, %c0_i32_0, %c0_i32_1 : i32, i32, i32
  }
  func.func @transform_8(%arg0: i32) -> (i32, i32) {
    %c0_i32 = arith.constant 0 : i32
    %c0_i32_0 = arith.constant 0 : i32
    %c0_i32_1 = arith.constant 0 : i32
    return %c0_i32, %c0_i32_0 : i32, i32
  }
  func.func @transform_9(%arg0: i32) -> (i32, i32, i32, i32) {
    %c0_i32 = arith.constant 0 : i32
    %c0_i32_0 = arith.constant 0 : i32
    %c0_i32_1 = arith.constant 0 : i32
    %c0_i32_2 = arith.constant 0 : i32
    return %arg0, %c0_i32, %c0_i32_0, %c0_i32_1 : i32, i32, i32, i32
  }
}

module attributes {stable_mosaic.version = 11 : i64} {
  func.func @gcrn_layer_kernel(%arg0: i32, %arg1: memref<48x16xf32, #tpu.memory_space<vmem>>, %arg2: memref<1x8x16x32xf32, #tpu.memory_space<vmem>>, %arg3: memref<1x16x32xf32, #tpu.memory_space<vmem>>, %arg4: memref<3x32x64xf32, #tpu.memory_space<vmem>>, %arg5: memref<3x32x64xf32, #tpu.memory_space<vmem>>, %arg6: memref<1x64xf32, #tpu.memory_space<vmem>>, %arg7: memref<3x32x32xf32, #tpu.memory_space<vmem>>, %arg8: memref<3x32x32xf32, #tpu.memory_space<vmem>>, %arg9: memref<1x32xf32, #tpu.memory_space<vmem>>, %arg10: memref<1x8x16x32xf32, #tpu.memory_space<vmem>>) attributes {dimension_semantics = [#tpu.dimension_semantics<parallel>], iteration_bounds = array<i64: 2>, scalar_prefetch = 0 : i64, scratch_operands = 0 : i64, tpu.core_type = #tpu.core_type<tc>, window_params = [{pipeline_mode = #tpu.pipeline_mode<synchronous>, transform_indices = @transform_0, window_bounds = array<i64: 48, 16>}, {transform_indices = @transform_1, window_bounds = array<i64: 1, 8, 16, 32>}, {transform_indices = @transform_2, window_bounds = array<i64: 1, 16, 32>}, {pipeline_mode = #tpu.pipeline_mode<synchronous>, transform_indices = @transform_3, window_bounds = array<i64: 3, 32, 64>}, {pipeline_mode = #tpu.pipeline_mode<synchronous>, transform_indices = @transform_4, window_bounds = array<i64: 3, 32, 64>}, {pipeline_mode = #tpu.pipeline_mode<synchronous>, transform_indices = @transform_5, window_bounds = array<i64: 1, 64>}, {pipeline_mode = #tpu.pipeline_mode<synchronous>, transform_indices = @transform_6, window_bounds = array<i64: 3, 32, 32>}, {pipeline_mode = #tpu.pipeline_mode<synchronous>, transform_indices = @transform_7, window_bounds = array<i64: 3, 32, 32>}, {pipeline_mode = #tpu.pipeline_mode<synchronous>, transform_indices = @transform_8, window_bounds = array<i64: 1, 32>}, {transform_indices = @transform_9, window_bounds = array<i64: 1, 8, 16, 32>}]} {
    %c0 = arith.constant 0 : index
    %c0_0 = arith.constant 0 : index
    %0 = vector.load %arg1[%c0, %c0_0] : memref<48x16xf32, #tpu.memory_space<vmem>>, vector<48x16xf32>
    %c0_1 = arith.constant 0 : index
    %c0_2 = arith.constant 0 : index
    %1 = vector.load %arg6[%c0_1, %c0_2] : memref<1x64xf32, #tpu.memory_space<vmem>>, vector<1x64xf32>
    %c0_3 = arith.constant 0 : index
    %c0_4 = arith.constant 0 : index
    %2 = vector.load %arg9[%c0_3, %c0_4] : memref<1x32xf32, #tpu.memory_space<vmem>>, vector<1x32xf32>
    %c0_5 = arith.constant 0 : index
    %c0_6 = arith.constant 0 : index
    %c0_7 = arith.constant 0 : index
    %3 = vector.load %arg4[%c0_5, %c0_6, %c0_7] : memref<3x32x64xf32, #tpu.memory_space<vmem>>, vector<1x32x64xf32>
    %4 = vector.shape_cast %3 : vector<1x32x64xf32> to vector<32x64xf32>
    %c1 = arith.constant 1 : index
    %c0_8 = arith.constant 0 : index
    %c0_9 = arith.constant 0 : index
    %5 = vector.load %arg4[%c1, %c0_8, %c0_9] : memref<3x32x64xf32, #tpu.memory_space<vmem>>, vector<1x32x64xf32>
    %6 = vector.shape_cast %5 : vector<1x32x64xf32> to vector<32x64xf32>
    %c2 = arith.constant 2 : index
    %c0_10 = arith.constant 0 : index
    %c0_11 = arith.constant 0 : index
    %7 = vector.load %arg4[%c2, %c0_10, %c0_11] : memref<3x32x64xf32, #tpu.memory_space<vmem>>, vector<1x32x64xf32>
    %8 = vector.shape_cast %7 : vector<1x32x64xf32> to vector<32x64xf32>
    %c0_12 = arith.constant 0 : index
    %c0_13 = arith.constant 0 : index
    %c0_14 = arith.constant 0 : index
    %9 = vector.load %arg5[%c0_12, %c0_13, %c0_14] : memref<3x32x64xf32, #tpu.memory_space<vmem>>, vector<1x32x64xf32>
    %10 = vector.shape_cast %9 : vector<1x32x64xf32> to vector<32x64xf32>
    %c1_15 = arith.constant 1 : index
    %c0_16 = arith.constant 0 : index
    %c0_17 = arith.constant 0 : index
    %11 = vector.load %arg5[%c1_15, %c0_16, %c0_17] : memref<3x32x64xf32, #tpu.memory_space<vmem>>, vector<1x32x64xf32>
    %12 = vector.shape_cast %11 : vector<1x32x64xf32> to vector<32x64xf32>
    %c2_18 = arith.constant 2 : index
    %c0_19 = arith.constant 0 : index
    %c0_20 = arith.constant 0 : index
    %13 = vector.load %arg5[%c2_18, %c0_19, %c0_20] : memref<3x32x64xf32, #tpu.memory_space<vmem>>, vector<1x32x64xf32>
    %14 = vector.shape_cast %13 : vector<1x32x64xf32> to vector<32x64xf32>
    %c0_21 = arith.constant 0 : index
    %c0_22 = arith.constant 0 : index
    %c0_23 = arith.constant 0 : index
    %15 = vector.load %arg7[%c0_21, %c0_22, %c0_23] : memref<3x32x32xf32, #tpu.memory_space<vmem>>, vector<1x32x32xf32>
    %16 = vector.shape_cast %15 : vector<1x32x32xf32> to vector<32x32xf32>
    %c1_24 = arith.constant 1 : index
    %c0_25 = arith.constant 0 : index
    %c0_26 = arith.constant 0 : index
    %17 = vector.load %arg7[%c1_24, %c0_25, %c0_26] : memref<3x32x32xf32, #tpu.memory_space<vmem>>, vector<1x32x32xf32>
    %18 = vector.shape_cast %17 : vector<1x32x32xf32> to vector<32x32xf32>
    %c2_27 = arith.constant 2 : index
    %c0_28 = arith.constant 0 : index
    %c0_29 = arith.constant 0 : index
    %19 = vector.load %arg7[%c2_27, %c0_28, %c0_29] : memref<3x32x32xf32, #tpu.memory_space<vmem>>, vector<1x32x32xf32>
    %20 = vector.shape_cast %19 : vector<1x32x32xf32> to vector<32x32xf32>
    %c0_30 = arith.constant 0 : index
    %c0_31 = arith.constant 0 : index
    %c0_32 = arith.constant 0 : index
    %21 = vector.load %arg8[%c0_30, %c0_31, %c0_32] : memref<3x32x32xf32, #tpu.memory_space<vmem>>, vector<1x32x32xf32>
    %22 = vector.shape_cast %21 : vector<1x32x32xf32> to vector<32x32xf32>
    %c1_33 = arith.constant 1 : index
    %c0_34 = arith.constant 0 : index
    %c0_35 = arith.constant 0 : index
    %23 = vector.load %arg8[%c1_33, %c0_34, %c0_35] : memref<3x32x32xf32, #tpu.memory_space<vmem>>, vector<1x32x32xf32>
    %24 = vector.shape_cast %23 : vector<1x32x32xf32> to vector<32x32xf32>
    %c2_36 = arith.constant 2 : index
    %c0_37 = arith.constant 0 : index
    %c0_38 = arith.constant 0 : index
    %25 = vector.load %arg8[%c2_36, %c0_37, %c0_38] : memref<3x32x32xf32, #tpu.memory_space<vmem>>, vector<1x32x32xf32>
    %26 = vector.shape_cast %25 : vector<1x32x32xf32> to vector<32x32xf32>
    %c0_39 = arith.constant 0 : index
    %c0_40 = arith.constant 0 : index
    %c0_41 = arith.constant 0 : index
    %27 = vector.load %arg3[%c0_39, %c0_40, %c0_41] : memref<1x16x32xf32, #tpu.memory_space<vmem>>, vector<1x16x32xf32>
    %28 = vector.shape_cast %27 : vector<1x16x32xf32> to vector<16x32xf32>
    %c0_i32 = arith.constant 0 : i32
    %c0_42 = arith.constant 0 : index
    %29 = arith.index_cast %c0_i32 : i32 to index
    %c0_43 = arith.constant 0 : index
    %c0_44 = arith.constant 0 : index
    %30 = vector.load %arg2[%c0_42, %29, %c0_43, %c0_44] : memref<1x8x16x32xf32, #tpu.memory_space<vmem>>, vector<1x1x16x32xf32>
    %31 = vector.shape_cast %30 : vector<1x1x16x32xf32> to vector<16x32xf32>
    %cst = arith.constant dense<0.000000e+00> : vector<48x32xf32>
    %32 = tpu.matmul %0, %31, %cst {dimension_numbers = #tpu.dot_dimension_numbers<[1], [0], [0], [1], [0, 0, 1, 1], [], []>} : vector<48x16xf32>, vector<16x32xf32>, vector<48x32xf32> -> vector<48x32xf32>
    %cst_45 = arith.constant dense<0.000000e+00> : vector<48x32xf32>
    %33 = tpu.matmul %0, %28, %cst_45 {dimension_numbers = #tpu.dot_dimension_numbers<[1], [0], [0], [1], [0, 0, 1, 1], [], []>} : vector<48x16xf32>, vector<16x32xf32>, vector<48x32xf32> -> vector<48x32xf32>
    %34 = vector.extract_strided_slice %32 {offsets = [0, 0], sizes = [16, 32], strides = [1, 1]} : vector<48x32xf32> to vector<16x32xf32>
    %35 = vector.extract_strided_slice %32 {offsets = [16, 0], sizes = [16, 32], strides = [1, 1]} : vector<48x32xf32> to vector<16x32xf32>
    %36 = vector.extract_strided_slice %32 {offsets = [32, 0], sizes = [16, 32], strides = [1, 1]} : vector<48x32xf32> to vector<16x32xf32>
    %37 = vector.extract_strided_slice %33 {offsets = [0, 0], sizes = [16, 32], strides = [1, 1]} : vector<48x32xf32> to vector<16x32xf32>
    %38 = vector.extract_strided_slice %33 {offsets = [16, 0], sizes = [16, 32], strides = [1, 1]} : vector<48x32xf32> to vector<16x32xf32>
    %39 = vector.extract_strided_slice %33 {offsets = [32, 0], sizes = [16, 32], strides = [1, 1]} : vector<48x32xf32> to vector<16x32xf32>
    %cst_46 = arith.constant dense<0.000000e+00> : vector<16x64xf32>
    %40 = tpu.matmul %34, %4, %cst_46 {dimension_numbers = #tpu.dot_dimension_numbers<[1], [0], [0], [1], [0, 0, 1, 1], [], []>} : vector<16x32xf32>, vector<32x64xf32>, vector<16x64xf32> -> vector<16x64xf32>
    %cst_47 = arith.constant dense<0.000000e+00> : vector<16x64xf32>
    %41 = tpu.matmul %37, %10, %cst_47 {dimension_numbers = #tpu.dot_dimension_numbers<[1], [0], [0], [1], [0, 0, 1, 1], [], []>} : vector<16x32xf32>, vector<32x64xf32>, vector<16x64xf32> -> vector<16x64xf32>
    %42 = arith.addf %40, %41 : vector<16x64xf32>
    %cst_48 = arith.constant dense<0.000000e+00> : vector<16x64xf32>
    %43 = tpu.matmul %35, %6, %cst_48 {dimension_numbers = #tpu.dot_dimension_numbers<[1], [0], [0], [1], [0, 0, 1, 1], [], []>} : vector<16x32xf32>, vector<32x64xf32>, vector<16x64xf32> -> vector<16x64xf32>
    %cst_49 = arith.constant dense<0.000000e+00> : vector<16x64xf32>
    %44 = tpu.matmul %38, %12, %cst_49 {dimension_numbers = #tpu.dot_dimension_numbers<[1], [0], [0], [1], [0, 0, 1, 1], [], []>} : vector<16x32xf32>, vector<32x64xf32>, vector<16x64xf32> -> vector<16x64xf32>
    %45 = arith.addf %43, %44 : vector<16x64xf32>
    %46 = arith.addf %42, %45 : vector<16x64xf32>
    %cst_50 = arith.constant dense<0.000000e+00> : vector<16x64xf32>
    %47 = tpu.matmul %36, %8, %cst_50 {dimension_numbers = #tpu.dot_dimension_numbers<[1], [0], [0], [1], [0, 0, 1, 1], [], []>} : vector<16x32xf32>, vector<32x64xf32>, vector<16x64xf32> -> vector<16x64xf32>
    %cst_51 = arith.constant dense<0.000000e+00> : vector<16x64xf32>
    %48 = tpu.matmul %39, %14, %cst_51 {dimension_numbers = #tpu.dot_dimension_numbers<[1], [0], [0], [1], [0, 0, 1, 1], [], []>} : vector<16x32xf32>, vector<32x64xf32>, vector<16x64xf32> -> vector<16x64xf32>
    %49 = arith.addf %47, %48 : vector<16x64xf32>
    %50 = arith.addf %46, %49 : vector<16x64xf32>
    %51 = vector.broadcast %1 : vector<1x64xf32> to vector<16x64xf32>
    %52 = arith.addf %50, %51 : vector<16x64xf32>
    %53 = arith.negf %52 : vector<16x64xf32>
    %54 = math.exp %53 : vector<16x64xf32>
    %cst_52 = arith.constant 1.000000e+00 : f32
    %55 = vector.broadcast %cst_52 : f32 to vector<16x64xf32>
    %56 = arith.addf %55, %54 : vector<16x64xf32>
    %57 = arith.divf %55, %56 : vector<16x64xf32>
    %58 = vector.extract_strided_slice %57 {offsets = [0, 0], sizes = [16, 32], strides = [1, 1]} : vector<16x64xf32> to vector<16x32xf32>
    %59 = vector.extract_strided_slice %57 {offsets = [0, 32], sizes = [16, 32], strides = [1, 1]} : vector<16x64xf32> to vector<16x32xf32>
    %60 = arith.mulf %58, %28 : vector<16x32xf32>
    %cst_53 = arith.constant dense<0.000000e+00> : vector<48x32xf32>
    %61 = tpu.matmul %0, %60, %cst_53 {dimension_numbers = #tpu.dot_dimension_numbers<[1], [0], [0], [1], [0, 0, 1, 1], [], []>} : vector<48x16xf32>, vector<16x32xf32>, vector<48x32xf32> -> vector<48x32xf32>
    %62 = vector.extract_strided_slice %61 {offsets = [0, 0], sizes = [16, 32], strides = [1, 1]} : vector<48x32xf32> to vector<16x32xf32>
    %63 = vector.extract_strided_slice %61 {offsets = [16, 0], sizes = [16, 32], strides = [1, 1]} : vector<48x32xf32> to vector<16x32xf32>
    %64 = vector.extract_strided_slice %61 {offsets = [32, 0], sizes = [16, 32], strides = [1, 1]} : vector<48x32xf32> to vector<16x32xf32>
    %cst_54 = arith.constant dense<0.000000e+00> : vector<16x32xf32>
    %65 = tpu.matmul %34, %16, %cst_54 {dimension_numbers = #tpu.dot_dimension_numbers<[1], [0], [0], [1], [0, 0, 1, 1], [], []>} : vector<16x32xf32>, vector<32x32xf32>, vector<16x32xf32> -> vector<16x32xf32>
    %cst_55 = arith.constant dense<0.000000e+00> : vector<16x32xf32>
    %66 = tpu.matmul %62, %22, %cst_55 {dimension_numbers = #tpu.dot_dimension_numbers<[1], [0], [0], [1], [0, 0, 1, 1], [], []>} : vector<16x32xf32>, vector<32x32xf32>, vector<16x32xf32> -> vector<16x32xf32>
    %67 = arith.addf %65, %66 : vector<16x32xf32>
    %cst_56 = arith.constant dense<0.000000e+00> : vector<16x32xf32>
    %68 = tpu.matmul %35, %18, %cst_56 {dimension_numbers = #tpu.dot_dimension_numbers<[1], [0], [0], [1], [0, 0, 1, 1], [], []>} : vector<16x32xf32>, vector<32x32xf32>, vector<16x32xf32> -> vector<16x32xf32>
    %cst_57 = arith.constant dense<0.000000e+00> : vector<16x32xf32>
    %69 = tpu.matmul %63, %24, %cst_57 {dimension_numbers = #tpu.dot_dimension_numbers<[1], [0], [0], [1], [0, 0, 1, 1], [], []>} : vector<16x32xf32>, vector<32x32xf32>, vector<16x32xf32> -> vector<16x32xf32>
    %70 = arith.addf %68, %69 : vector<16x32xf32>
    %71 = arith.addf %67, %70 : vector<16x32xf32>
    %cst_58 = arith.constant dense<0.000000e+00> : vector<16x32xf32>
    %72 = tpu.matmul %36, %20, %cst_58 {dimension_numbers = #tpu.dot_dimension_numbers<[1], [0], [0], [1], [0, 0, 1, 1], [], []>} : vector<16x32xf32>, vector<32x32xf32>, vector<16x32xf32> -> vector<16x32xf32>
    %cst_59 = arith.constant dense<0.000000e+00> : vector<16x32xf32>
    %73 = tpu.matmul %64, %26, %cst_59 {dimension_numbers = #tpu.dot_dimension_numbers<[1], [0], [0], [1], [0, 0, 1, 1], [], []>} : vector<16x32xf32>, vector<32x32xf32>, vector<16x32xf32> -> vector<16x32xf32>
    %74 = arith.addf %72, %73 : vector<16x32xf32>
    %75 = arith.addf %71, %74 : vector<16x32xf32>
    %76 = vector.broadcast %2 : vector<1x32xf32> to vector<16x32xf32>
    %77 = arith.addf %75, %76 : vector<16x32xf32>
    %78 = math.tanh %77 : vector<16x32xf32>
    %79 = arith.mulf %59, %28 : vector<16x32xf32>
    %cst_60 = arith.constant 1.000000e+00 : f32
    %80 = vector.broadcast %cst_60 : f32 to vector<16x32xf32>
    %81 = arith.subf %80, %59 : vector<16x32xf32>
    %82 = arith.mulf %81, %78 : vector<16x32xf32>
    %83 = arith.addf %79, %82 : vector<16x32xf32>
    %c0_61 = arith.constant 0 : index
    %84 = arith.index_cast %c0_i32 : i32 to index
    %c0_62 = arith.constant 0 : index
    %c0_63 = arith.constant 0 : index
    %85 = vector.load %arg10[%c0_61, %84, %c0_62, %c0_63] : memref<1x8x16x32xf32, #tpu.memory_space<vmem>>, vector<1x1x16x32xf32>
    %86 = vector.shape_cast %85 : vector<1x1x16x32xf32> to vector<16x32xf32>
    %87 = vector.shape_cast %83 : vector<16x32xf32> to vector<1x1x16x32xf32>
    tpu.vector_store %arg10[%c0_61, %84, %c0_62, %c0_63], %87 {strides = array<i32>} : memref<1x8x16x32xf32, #tpu.memory_space<vmem>>, vector<1x1x16x32xf32>,
    %c1_i32 = arith.constant 1 : i32
    %c0_64 = arith.constant 0 : index
    %88 = arith.index_cast %c1_i32 : i32 to index
    %c0_65 = arith.constant 0 : index
    %c0_66 = arith.constant 0 : index
    %89 = vector.load %arg2[%c0_64, %88, %c0_65, %c0_66] : memref<1x8x16x32xf32, #tpu.memory_space<vmem>>, vector<1x1x16x32xf32>
    %90 = vector.shape_cast %89 : vector<1x1x16x32xf32> to vector<16x32xf32>
    %cst_67 = arith.constant dense<0.000000e+00> : vector<48x32xf32>
    %91 = tpu.matmul %0, %90, %cst_67 {dimension_numbers = #tpu.dot_dimension_numbers<[1], [0], [0], [1], [0, 0, 1, 1], [], []>} : vector<48x16xf32>, vector<16x32xf32>, vector<48x32xf32> -> vector<48x32xf32>
    %cst_68 = arith.constant dense<0.000000e+00> : vector<48x32xf32>
    %92 = tpu.matmul %0, %83, %cst_68 {dimension_numbers = #tpu.dot_dimension_numbers<[1], [0], [0], [1], [0, 0, 1, 1], [], []>} : vector<48x16xf32>, vector<16x32xf32>, vector<48x32xf32> -> vector<48x32xf32>
    %93 = vector.extract_strided_slice %91 {offsets = [0, 0], sizes = [16, 32], strides = [1, 1]} : vector<48x32xf32> to vector<16x32xf32>
    %94 = vector.extract_strided_slice %91 {offsets = [16, 0], sizes = [16, 32], strides = [1, 1]} : vector<48x32xf32> to vector<16x32xf32>
    %95 = vector.extract_strided_slice %91 {offsets = [32, 0], sizes = [16, 32], strides = [1, 1]} : vector<48x32xf32> to vector<16x32xf32>
    %96 = vector.extract_strided_slice %92 {offsets = [0, 0], sizes = [16, 32], strides = [1, 1]} : vector<48x32xf32> to vector<16x32xf32>
    %97 = vector.extract_strided_slice %92 {offsets = [16, 0], sizes = [16, 32], strides = [1, 1]} : vector<48x32xf32> to vector<16x32xf32>
    %98 = vector.extract_strided_slice %92 {offsets = [32, 0], sizes = [16, 32], strides = [1, 1]} : vector<48x32xf32> to vector<16x32xf32>
    %cst_69 = arith.constant dense<0.000000e+00> : vector<16x64xf32>
    %99 = tpu.matmul %93, %4, %cst_69 {dimension_numbers = #tpu.dot_dimension_numbers<[1], [0], [0], [1], [0, 0, 1, 1], [], []>} : vector<16x32xf32>, vector<32x64xf32>, vector<16x64xf32> -> vector<16x64xf32>
    %cst_70 = arith.constant dense<0.000000e+00> : vector<16x64xf32>
    %100 = tpu.matmul %96, %10, %cst_70 {dimension_numbers = #tpu.dot_dimension_numbers<[1], [0], [0], [1], [0, 0, 1, 1], [], []>} : vector<16x32xf32>, vector<32x64xf32>, vector<16x64xf32> -> vector<16x64xf32>
    %101 = arith.addf %99, %100 : vector<16x64xf32>
    %cst_71 = arith.constant dense<0.000000e+00> : vector<16x64xf32>
    %102 = tpu.matmul %94, %6, %cst_71 {dimension_numbers = #tpu.dot_dimension_numbers<[1], [0], [0], [1], [0, 0, 1, 1], [], []>} : vector<16x32xf32>, vector<32x64xf32>, vector<16x64xf32> -> vector<16x64xf32>
    %cst_72 = arith.constant dense<0.000000e+00> : vector<16x64xf32>
    %103 = tpu.matmul %97, %12, %cst_72 {dimension_numbers = #tpu.dot_dimension_numbers<[1], [0], [0], [1], [0, 0, 1, 1], [], []>} : vector<16x32xf32>, vector<32x64xf32>, vector<16x64xf32> -> vector<16x64xf32>
    %104 = arith.addf %102, %103 : vector<16x64xf32>
    %105 = arith.addf %101, %104 : vector<16x64xf32>
    %cst_73 = arith.constant dense<0.000000e+00> : vector<16x64xf32>
    %106 = tpu.matmul %95, %8, %cst_73 {dimension_numbers = #tpu.dot_dimension_numbers<[1], [0], [0], [1], [0, 0, 1, 1], [], []>} : vector<16x32xf32>, vector<32x64xf32>, vector<16x64xf32> -> vector<16x64xf32>
    %cst_74 = arith.constant dense<0.000000e+00> : vector<16x64xf32>
    %107 = tpu.matmul %98, %14, %cst_74 {dimension_numbers = #tpu.dot_dimension_numbers<[1], [0], [0], [1], [0, 0, 1, 1], [], []>} : vector<16x32xf32>, vector<32x64xf32>, vector<16x64xf32> -> vector<16x64xf32>
    %108 = arith.addf %106, %107 : vector<16x64xf32>
    %109 = arith.addf %105, %108 : vector<16x64xf32>
    %110 = vector.broadcast %1 : vector<1x64xf32> to vector<16x64xf32>
    %111 = arith.addf %109, %110 : vector<16x64xf32>
    %112 = arith.negf %111 : vector<16x64xf32>
    %113 = math.exp %112 : vector<16x64xf32>
    %cst_75 = arith.constant 1.000000e+00 : f32
    %114 = vector.broadcast %cst_75 : f32 to vector<16x64xf32>
    %115 = arith.addf %114, %113 : vector<16x64xf32>
    %116 = arith.divf %114, %115 : vector<16x64xf32>
    %117 = vector.extract_strided_slice %116 {offsets = [0, 0], sizes = [16, 32], strides = [1, 1]} : vector<16x64xf32> to vector<16x32xf32>
    %118 = vector.extract_strided_slice %116 {offsets = [0, 32], sizes = [16, 32], strides = [1, 1]} : vector<16x64xf32> to vector<16x32xf32>
    %119 = arith.mulf %117, %83 : vector<16x32xf32>
    %cst_76 = arith.constant dense<0.000000e+00> : vector<48x32xf32>
    %120 = tpu.matmul %0, %119, %cst_76 {dimension_numbers = #tpu.dot_dimension_numbers<[1], [0], [0], [1], [0, 0, 1, 1], [], []>} : vector<48x16xf32>, vector<16x32xf32>, vector<48x32xf32> -> vector<48x32xf32>
    %121 = vector.extract_strided_slice %120 {offsets = [0, 0], sizes = [16, 32], strides = [1, 1]} : vector<48x32xf32> to vector<16x32xf32>
    %122 = vector.extract_strided_slice %120 {offsets = [16, 0], sizes = [16, 32], strides = [1, 1]} : vector<48x32xf32> to vector<16x32xf32>
    %123 = vector.extract_strided_slice %120 {offsets = [32, 0], sizes = [16, 32], strides = [1, 1]} : vector<48x32xf32> to vector<16x32xf32>
    %cst_77 = arith.constant dense<0.000000e+00> : vector<16x32xf32>
    %124 = tpu.matmul %93, %16, %cst_77 {dimension_numbers = #tpu.dot_dimension_numbers<[1], [0], [0], [1], [0, 0, 1, 1], [], []>} : vector<16x32xf32>, vector<32x32xf32>, vector<16x32xf32> -> vector<16x32xf32>
    %cst_78 = arith.constant dense<0.000000e+00> : vector<16x32xf32>
    %125 = tpu.matmul %121, %22, %cst_78 {dimension_numbers = #tpu.dot_dimension_numbers<[1], [0], [0], [1], [0, 0, 1, 1], [], []>} : vector<16x32xf32>, vector<32x32xf32>, vector<16x32xf32> -> vector<16x32xf32>
    %126 = arith.addf %124, %125 : vector<16x32xf32>
    %cst_79 = arith.constant dense<0.000000e+00> : vector<16x32xf32>
    %127 = tpu.matmul %94, %18, %cst_79 {dimension_numbers = #tpu.dot_dimension_numbers<[1], [0], [0], [1], [0, 0, 1, 1], [], []>} : vector<16x32xf32>, vector<32x32xf32>, vector<16x32xf32> -> vector<16x32xf32>
    %cst_80 = arith.constant dense<0.000000e+00> : vector<16x32xf32>
    %128 = tpu.matmul %122, %24, %cst_80 {dimension_numbers = #tpu.dot_dimension_numbers<[1], [0], [0], [1], [0, 0, 1, 1], [], []>} : vector<16x32xf32>, vector<32x32xf32>, vector<16x32xf32> -> vector<16x32xf32>
    %129 = arith.addf %127, %128 : vector<16x32xf32>
    %130 = arith.addf %126, %129 : vector<16x32xf32>
    %cst_81 = arith.constant dense<0.000000e+00> : vector<16x32xf32>
    %131 = tpu.matmul %95, %20, %cst_81 {dimension_numbers = #tpu.dot_dimension_numbers<[1], [0], [0], [1], [0, 0, 1, 1], [], []>} : vector<16x32xf32>, vector<32x32xf32>, vector<16x32xf32> -> vector<16x32xf32>
    %cst_82 = arith.constant dense<0.000000e+00> : vector<16x32xf32>
    %132 = tpu.matmul %123, %26, %cst_82 {dimension_numbers = #tpu.dot_dimension_numbers<[1], [0], [0], [1], [0, 0, 1, 1], [], []>} : vector<16x32xf32>, vector<32x32xf32>, vector<16x32xf32> -> vector<16x32xf32>
    %133 = arith.addf %131, %132 : vector<16x32xf32>
    %134 = arith.addf %130, %133 : vector<16x32xf32>
    %135 = vector.broadcast %2 : vector<1x32xf32> to vector<16x32xf32>
    %136 = arith.addf %134, %135 : vector<16x32xf32>
    %137 = math.tanh %136 : vector<16x32xf32>
    %138 = arith.mulf %118, %83 : vector<16x32xf32>
    %cst_83 = arith.constant 1.000000e+00 : f32
    %139 = vector.broadcast %cst_83 : f32 to vector<16x32xf32>
    %140 = arith.subf %139, %118 : vector<16x32xf32>
    %141 = arith.mulf %140, %137 : vector<16x32xf32>
    %142 = arith.addf %138, %141 : vector<16x32xf32>
    %c0_84 = arith.constant 0 : index
    %143 = arith.index_cast %c1_i32 : i32 to index
    %c0_85 = arith.constant 0 : index
    %c0_86 = arith.constant 0 : index
    %144 = vector.load %arg10[%c0_84, %143, %c0_85, %c0_86] : memref<1x8x16x32xf32, #tpu.memory_space<vmem>>, vector<1x1x16x32xf32>
    %145 = vector.shape_cast %144 : vector<1x1x16x32xf32> to vector<16x32xf32>
    %146 = vector.shape_cast %142 : vector<16x32xf32> to vector<1x1x16x32xf32>
    tpu.vector_store %arg10[%c0_84, %143, %c0_85, %c0_86], %146 {strides = array<i32>} : memref<1x8x16x32xf32, #tpu.memory_space<vmem>>, vector<1x1x16x32xf32>,
    %c2_i32 = arith.constant 2 : i32
    %c0_87 = arith.constant 0 : index
    %147 = arith.index_cast %c2_i32 : i32 to index
    %c0_88 = arith.constant 0 : index
    %c0_89 = arith.constant 0 : index
    %148 = vector.load %arg2[%c0_87, %147, %c0_88, %c0_89] : memref<1x8x16x32xf32, #tpu.memory_space<vmem>>, vector<1x1x16x32xf32>
    %149 = vector.shape_cast %148 : vector<1x1x16x32xf32> to vector<16x32xf32>
    %cst_90 = arith.constant dense<0.000000e+00> : vector<48x32xf32>
    %150 = tpu.matmul %0, %149, %cst_90 {dimension_numbers = #tpu.dot_dimension_numbers<[1], [0], [0], [1], [0, 0, 1, 1], [], []>} : vector<48x16xf32>, vector<16x32xf32>, vector<48x32xf32> -> vector<48x32xf32>
    %cst_91 = arith.constant dense<0.000000e+00> : vector<48x32xf32>
    %151 = tpu.matmul %0, %142, %cst_91 {dimension_numbers = #tpu.dot_dimension_numbers<[1], [0], [0], [1], [0, 0, 1, 1], [], []>} : vector<48x16xf32>, vector<16x32xf32>, vector<48x32xf32> -> vector<48x32xf32>
    %152 = vector.extract_strided_slice %150 {offsets = [0, 0], sizes = [16, 32], strides = [1, 1]} : vector<48x32xf32> to vector<16x32xf32>
    %153 = vector.extract_strided_slice %150 {offsets = [16, 0], sizes = [16, 32], strides = [1, 1]} : vector<48x32xf32> to vector<16x32xf32>
    %154 = vector.extract_strided_slice %150 {offsets = [32, 0], sizes = [16, 32], strides = [1, 1]} : vector<48x32xf32> to vector<16x32xf32>
    %155 = vector.extract_strided_slice %151 {offsets = [0, 0], sizes = [16, 32], strides = [1, 1]} : vector<48x32xf32> to vector<16x32xf32>
    %156 = vector.extract_strided_slice %151 {offsets = [16, 0], sizes = [16, 32], strides = [1, 1]} : vector<48x32xf32> to vector<16x32xf32>
    %157 = vector.extract_strided_slice %151 {offsets = [32, 0], sizes = [16, 32], strides = [1, 1]} : vector<48x32xf32> to vector<16x32xf32>
    %cst_92 = arith.constant dense<0.000000e+00> : vector<16x64xf32>
    %158 = tpu.matmul %152, %4, %cst_92 {dimension_numbers = #tpu.dot_dimension_numbers<[1], [0], [0], [1], [0, 0, 1, 1], [], []>} : vector<16x32xf32>, vector<32x64xf32>, vector<16x64xf32> -> vector<16x64xf32>
    %cst_93 = arith.constant dense<0.000000e+00> : vector<16x64xf32>
    %159 = tpu.matmul %155, %10, %cst_93 {dimension_numbers = #tpu.dot_dimension_numbers<[1], [0], [0], [1], [0, 0, 1, 1], [], []>} : vector<16x32xf32>, vector<32x64xf32>, vector<16x64xf32> -> vector<16x64xf32>
    %160 = arith.addf %158, %159 : vector<16x64xf32>
    %cst_94 = arith.constant dense<0.000000e+00> : vector<16x64xf32>
    %161 = tpu.matmul %153, %6, %cst_94 {dimension_numbers = #tpu.dot_dimension_numbers<[1], [0], [0], [1], [0, 0, 1, 1], [], []>} : vector<16x32xf32>, vector<32x64xf32>, vector<16x64xf32> -> vector<16x64xf32>
    %cst_95 = arith.constant dense<0.000000e+00> : vector<16x64xf32>
    %162 = tpu.matmul %156, %12, %cst_95 {dimension_numbers = #tpu.dot_dimension_numbers<[1], [0], [0], [1], [0, 0, 1, 1], [], []>} : vector<16x32xf32>, vector<32x64xf32>, vector<16x64xf32> -> vector<16x64xf32>
    %163 = arith.addf %161, %162 : vector<16x64xf32>
    %164 = arith.addf %160, %163 : vector<16x64xf32>
    %cst_96 = arith.constant dense<0.000000e+00> : vector<16x64xf32>
    %165 = tpu.matmul %154, %8, %cst_96 {dimension_numbers = #tpu.dot_dimension_numbers<[1], [0], [0], [1], [0, 0, 1, 1], [], []>} : vector<16x32xf32>, vector<32x64xf32>, vector<16x64xf32> -> vector<16x64xf32>
    %cst_97 = arith.constant dense<0.000000e+00> : vector<16x64xf32>
    %166 = tpu.matmul %157, %14, %cst_97 {dimension_numbers = #tpu.dot_dimension_numbers<[1], [0], [0], [1], [0, 0, 1, 1], [], []>} : vector<16x32xf32>, vector<32x64xf32>, vector<16x64xf32> -> vector<16x64xf32>
    %167 = arith.addf %165, %166 : vector<16x64xf32>
    %168 = arith.addf %164, %167 : vector<16x64xf32>
    %169 = vector.broadcast %1 : vector<1x64xf32> to vector<16x64xf32>
    %170 = arith.addf %168, %169 : vector<16x64xf32>
    %171 = arith.negf %170 : vector<16x64xf32>
    %172 = math.exp %171 : vector<16x64xf32>
    %cst_98 = arith.constant 1.000000e+00 : f32
    %173 = vector.broadcast %cst_98 : f32 to vector<16x64xf32>
    %174 = arith.addf %173, %172 : vector<16x64xf32>
    %175 = arith.divf %173, %174 : vector<16x64xf32>
    %176 = vector.extract_strided_slice %175 {offsets = [0, 0], sizes = [16, 32], strides = [1, 1]} : vector<16x64xf32> to vector<16x32xf32>
    %177 = vector.extract_strided_slice %175 {offsets = [0, 32], sizes = [16, 32], strides = [1, 1]} : vector<16x64xf32> to vector<16x32xf32>
    %178 = arith.mulf %176, %142 : vector<16x32xf32>
    %cst_99 = arith.constant dense<0.000000e+00> : vector<48x32xf32>
    %179 = tpu.matmul %0, %178, %cst_99 {dimension_numbers = #tpu.dot_dimension_numbers<[1], [0], [0], [1], [0, 0, 1, 1], [], []>} : vector<48x16xf32>, vector<16x32xf32>, vector<48x32xf32> -> vector<48x32xf32>
    %180 = vector.extract_strided_slice %179 {offsets = [0, 0], sizes = [16, 32], strides = [1, 1]} : vector<48x32xf32> to vector<16x32xf32>
    %181 = vector.extract_strided_slice %179 {offsets = [16, 0], sizes = [16, 32], strides = [1, 1]} : vector<48x32xf32> to vector<16x32xf32>
    %182 = vector.extract_strided_slice %179 {offsets = [32, 0], sizes = [16, 32], strides = [1, 1]} : vector<48x32xf32> to vector<16x32xf32>
    %cst_100 = arith.constant dense<0.000000e+00> : vector<16x32xf32>
    %183 = tpu.matmul %152, %16, %cst_100 {dimension_numbers = #tpu.dot_dimension_numbers<[1], [0], [0], [1], [0, 0, 1, 1], [], []>} : vector<16x32xf32>, vector<32x32xf32>, vector<16x32xf32> -> vector<16x32xf32>
    %cst_101 = arith.constant dense<0.000000e+00> : vector<16x32xf32>
    %184 = tpu.matmul %180, %22, %cst_101 {dimension_numbers = #tpu.dot_dimension_numbers<[1], [0], [0], [1], [0, 0, 1, 1], [], []>} : vector<16x32xf32>, vector<32x32xf32>, vector<16x32xf32> -> vector<16x32xf32>
    %185 = arith.addf %183, %184 : vector<16x32xf32>
    %cst_102 = arith.constant dense<0.000000e+00> : vector<16x32xf32>
    %186 = tpu.matmul %153, %18, %cst_102 {dimension_numbers = #tpu.dot_dimension_numbers<[1], [0], [0], [1], [0, 0, 1, 1], [], []>} : vector<16x32xf32>, vector<32x32xf32>, vector<16x32xf32> -> vector<16x32xf32>
    %cst_103 = arith.constant dense<0.000000e+00> : vector<16x32xf32>
    %187 = tpu.matmul %181, %24, %cst_103 {dimension_numbers = #tpu.dot_dimension_numbers<[1], [0], [0], [1], [0, 0, 1, 1], [], []>} : vector<16x32xf32>, vector<32x32xf32>, vector<16x32xf32> -> vector<16x32xf32>
    %188 = arith.addf %186, %187 : vector<16x32xf32>
    %189 = arith.addf %185, %188 : vector<16x32xf32>
    %cst_104 = arith.constant dense<0.000000e+00> : vector<16x32xf32>
    %190 = tpu.matmul %154, %20, %cst_104 {dimension_numbers = #tpu.dot_dimension_numbers<[1], [0], [0], [1], [0, 0, 1, 1], [], []>} : vector<16x32xf32>, vector<32x32xf32>, vector<16x32xf32> -> vector<16x32xf32>
    %cst_105 = arith.constant dense<0.000000e+00> : vector<16x32xf32>
    %191 = tpu.matmul %182, %26, %cst_105 {dimension_numbers = #tpu.dot_dimension_numbers<[1], [0], [0], [1], [0, 0, 1, 1], [], []>} : vector<16x32xf32>, vector<32x32xf32>, vector<16x32xf32> -> vector<16x32xf32>
    %192 = arith.addf %190, %191 : vector<16x32xf32>
    %193 = arith.addf %189, %192 : vector<16x32xf32>
    %194 = vector.broadcast %2 : vector<1x32xf32> to vector<16x32xf32>
    %195 = arith.addf %193, %194 : vector<16x32xf32>
    %196 = math.tanh %195 : vector<16x32xf32>
    %197 = arith.mulf %177, %142 : vector<16x32xf32>
    %cst_106 = arith.constant 1.000000e+00 : f32
    %198 = vector.broadcast %cst_106 : f32 to vector<16x32xf32>
    %199 = arith.subf %198, %177 : vector<16x32xf32>
    %200 = arith.mulf %199, %196 : vector<16x32xf32>
    %201 = arith.addf %197, %200 : vector<16x32xf32>
    %c0_107 = arith.constant 0 : index
    %202 = arith.index_cast %c2_i32 : i32 to index
    %c0_108 = arith.constant 0 : index
    %c0_109 = arith.constant 0 : index
    %203 = vector.load %arg10[%c0_107, %202, %c0_108, %c0_109] : memref<1x8x16x32xf32, #tpu.memory_space<vmem>>, vector<1x1x16x32xf32>
    %204 = vector.shape_cast %203 : vector<1x1x16x32xf32> to vector<16x32xf32>
    %205 = vector.shape_cast %201 : vector<16x32xf32> to vector<1x1x16x32xf32>
    tpu.vector_store %arg10[%c0_107, %202, %c0_108, %c0_109], %205 {strides = array<i32>} : memref<1x8x16x32xf32, #tpu.memory_space<vmem>>, vector<1x1x16x32xf32>,
    %c3_i32 = arith.constant 3 : i32
    %c0_110 = arith.constant 0 : index
    %206 = arith.index_cast %c3_i32 : i32 to index
    %c0_111 = arith.constant 0 : index
    %c0_112 = arith.constant 0 : index
    %207 = vector.load %arg2[%c0_110, %206, %c0_111, %c0_112] : memref<1x8x16x32xf32, #tpu.memory_space<vmem>>, vector<1x1x16x32xf32>
    %208 = vector.shape_cast %207 : vector<1x1x16x32xf32> to vector<16x32xf32>
    %cst_113 = arith.constant dense<0.000000e+00> : vector<48x32xf32>
    %209 = tpu.matmul %0, %208, %cst_113 {dimension_numbers = #tpu.dot_dimension_numbers<[1], [0], [0], [1], [0, 0, 1, 1], [], []>} : vector<48x16xf32>, vector<16x32xf32>, vector<48x32xf32> -> vector<48x32xf32>
    %cst_114 = arith.constant dense<0.000000e+00> : vector<48x32xf32>
    %210 = tpu.matmul %0, %201, %cst_114 {dimension_numbers = #tpu.dot_dimension_numbers<[1], [0], [0], [1], [0, 0, 1, 1], [], []>} : vector<48x16xf32>, vector<16x32xf32>, vector<48x32xf32> -> vector<48x32xf32>
    %211 = vector.extract_strided_slice %209 {offsets = [0, 0], sizes = [16, 32], strides = [1, 1]} : vector<48x32xf32> to vector<16x32xf32>
    %212 = vector.extract_strided_slice %209 {offsets = [16, 0], sizes = [16, 32], strides = [1, 1]} : vector<48x32xf32> to vector<16x32xf32>
    %213 = vector.extract_strided_slice %209 {offsets = [32, 0], sizes = [16, 32], strides = [1, 1]} : vector<48x32xf32> to vector<16x32xf32>
    %214 = vector.extract_strided_slice %210 {offsets = [0, 0], sizes = [16, 32], strides = [1, 1]} : vector<48x32xf32> to vector<16x32xf32>
    %215 = vector.extract_strided_slice %210 {offsets = [16, 0], sizes = [16, 32], strides = [1, 1]} : vector<48x32xf32> to vector<16x32xf32>
    %216 = vector.extract_strided_slice %210 {offsets = [32, 0], sizes = [16, 32], strides = [1, 1]} : vector<48x32xf32> to vector<16x32xf32>
    %cst_115 = arith.constant dense<0.000000e+00> : vector<16x64xf32>
    %217 = tpu.matmul %211, %4, %cst_115 {dimension_numbers = #tpu.dot_dimension_numbers<[1], [0], [0], [1], [0, 0, 1, 1], [], []>} : vector<16x32xf32>, vector<32x64xf32>, vector<16x64xf32> -> vector<16x64xf32>
    %cst_116 = arith.constant dense<0.000000e+00> : vector<16x64xf32>
    %218 = tpu.matmul %214, %10, %cst_116 {dimension_numbers = #tpu.dot_dimension_numbers<[1], [0], [0], [1], [0, 0, 1, 1], [], []>} : vector<16x32xf32>, vector<32x64xf32>, vector<16x64xf32> -> vector<16x64xf32>
    %219 = arith.addf %217, %218 : vector<16x64xf32>
    %cst_117 = arith.constant dense<0.000000e+00> : vector<16x64xf32>
    %220 = tpu.matmul %212, %6, %cst_117 {dimension_numbers = #tpu.dot_dimension_numbers<[1], [0], [0], [1], [0, 0, 1, 1], [], []>} : vector<16x32xf32>, vector<32x64xf32>, vector<16x64xf32> -> vector<16x64xf32>
    %cst_118 = arith.constant dense<0.000000e+00> : vector<16x64xf32>
    %221 = tpu.matmul %215, %12, %cst_118 {dimension_numbers = #tpu.dot_dimension_numbers<[1], [0], [0], [1], [0, 0, 1, 1], [], []>} : vector<16x32xf32>, vector<32x64xf32>, vector<16x64xf32> -> vector<16x64xf32>
    %222 = arith.addf %220, %221 : vector<16x64xf32>
    %223 = arith.addf %219, %222 : vector<16x64xf32>
    %cst_119 = arith.constant dense<0.000000e+00> : vector<16x64xf32>
    %224 = tpu.matmul %213, %8, %cst_119 {dimension_numbers = #tpu.dot_dimension_numbers<[1], [0], [0], [1], [0, 0, 1, 1], [], []>} : vector<16x32xf32>, vector<32x64xf32>, vector<16x64xf32> -> vector<16x64xf32>
    %cst_120 = arith.constant dense<0.000000e+00> : vector<16x64xf32>
    %225 = tpu.matmul %216, %14, %cst_120 {dimension_numbers = #tpu.dot_dimension_numbers<[1], [0], [0], [1], [0, 0, 1, 1], [], []>} : vector<16x32xf32>, vector<32x64xf32>, vector<16x64xf32> -> vector<16x64xf32>
    %226 = arith.addf %224, %225 : vector<16x64xf32>
    %227 = arith.addf %223, %226 : vector<16x64xf32>
    %228 = vector.broadcast %1 : vector<1x64xf32> to vector<16x64xf32>
    %229 = arith.addf %227, %228 : vector<16x64xf32>
    %230 = arith.negf %229 : vector<16x64xf32>
    %231 = math.exp %230 : vector<16x64xf32>
    %cst_121 = arith.constant 1.000000e+00 : f32
    %232 = vector.broadcast %cst_121 : f32 to vector<16x64xf32>
    %233 = arith.addf %232, %231 : vector<16x64xf32>
    %234 = arith.divf %232, %233 : vector<16x64xf32>
    %235 = vector.extract_strided_slice %234 {offsets = [0, 0], sizes = [16, 32], strides = [1, 1]} : vector<16x64xf32> to vector<16x32xf32>
    %236 = vector.extract_strided_slice %234 {offsets = [0, 32], sizes = [16, 32], strides = [1, 1]} : vector<16x64xf32> to vector<16x32xf32>
    %237 = arith.mulf %235, %201 : vector<16x32xf32>
    %cst_122 = arith.constant dense<0.000000e+00> : vector<48x32xf32>
    %238 = tpu.matmul %0, %237, %cst_122 {dimension_numbers = #tpu.dot_dimension_numbers<[1], [0], [0], [1], [0, 0, 1, 1], [], []>} : vector<48x16xf32>, vector<16x32xf32>, vector<48x32xf32> -> vector<48x32xf32>
    %239 = vector.extract_strided_slice %238 {offsets = [0, 0], sizes = [16, 32], strides = [1, 1]} : vector<48x32xf32> to vector<16x32xf32>
    %240 = vector.extract_strided_slice %238 {offsets = [16, 0], sizes = [16, 32], strides = [1, 1]} : vector<48x32xf32> to vector<16x32xf32>
    %241 = vector.extract_strided_slice %238 {offsets = [32, 0], sizes = [16, 32], strides = [1, 1]} : vector<48x32xf32> to vector<16x32xf32>
    %cst_123 = arith.constant dense<0.000000e+00> : vector<16x32xf32>
    %242 = tpu.matmul %211, %16, %cst_123 {dimension_numbers = #tpu.dot_dimension_numbers<[1], [0], [0], [1], [0, 0, 1, 1], [], []>} : vector<16x32xf32>, vector<32x32xf32>, vector<16x32xf32> -> vector<16x32xf32>
    %cst_124 = arith.constant dense<0.000000e+00> : vector<16x32xf32>
    %243 = tpu.matmul %239, %22, %cst_124 {dimension_numbers = #tpu.dot_dimension_numbers<[1], [0], [0], [1], [0, 0, 1, 1], [], []>} : vector<16x32xf32>, vector<32x32xf32>, vector<16x32xf32> -> vector<16x32xf32>
    %244 = arith.addf %242, %243 : vector<16x32xf32>
    %cst_125 = arith.constant dense<0.000000e+00> : vector<16x32xf32>
    %245 = tpu.matmul %212, %18, %cst_125 {dimension_numbers = #tpu.dot_dimension_numbers<[1], [0], [0], [1], [0, 0, 1, 1], [], []>} : vector<16x32xf32>, vector<32x32xf32>, vector<16x32xf32> -> vector<16x32xf32>
    %cst_126 = arith.constant dense<0.000000e+00> : vector<16x32xf32>
    %246 = tpu.matmul %240, %24, %cst_126 {dimension_numbers = #tpu.dot_dimension_numbers<[1], [0], [0], [1], [0, 0, 1, 1], [], []>} : vector<16x32xf32>, vector<32x32xf32>, vector<16x32xf32> -> vector<16x32xf32>
    %247 = arith.addf %245, %246 : vector<16x32xf32>
    %248 = arith.addf %244, %247 : vector<16x32xf32>
    %cst_127 = arith.constant dense<0.000000e+00> : vector<16x32xf32>
    %249 = tpu.matmul %213, %20, %cst_127 {dimension_numbers = #tpu.dot_dimension_numbers<[1], [0], [0], [1], [0, 0, 1, 1], [], []>} : vector<16x32xf32>, vector<32x32xf32>, vector<16x32xf32> -> vector<16x32xf32>
    %cst_128 = arith.constant dense<0.000000e+00> : vector<16x32xf32>
    %250 = tpu.matmul %241, %26, %cst_128 {dimension_numbers = #tpu.dot_dimension_numbers<[1], [0], [0], [1], [0, 0, 1, 1], [], []>} : vector<16x32xf32>, vector<32x32xf32>, vector<16x32xf32> -> vector<16x32xf32>
    %251 = arith.addf %249, %250 : vector<16x32xf32>
    %252 = arith.addf %248, %251 : vector<16x32xf32>
    %253 = vector.broadcast %2 : vector<1x32xf32> to vector<16x32xf32>
    %254 = arith.addf %252, %253 : vector<16x32xf32>
    %255 = math.tanh %254 : vector<16x32xf32>
    %256 = arith.mulf %236, %201 : vector<16x32xf32>
    %cst_129 = arith.constant 1.000000e+00 : f32
    %257 = vector.broadcast %cst_129 : f32 to vector<16x32xf32>
    %258 = arith.subf %257, %236 : vector<16x32xf32>
    %259 = arith.mulf %258, %255 : vector<16x32xf32>
    %260 = arith.addf %256, %259 : vector<16x32xf32>
    %c0_130 = arith.constant 0 : index
    %261 = arith.index_cast %c3_i32 : i32 to index
    %c0_131 = arith.constant 0 : index
    %c0_132 = arith.constant 0 : index
    %262 = vector.load %arg10[%c0_130, %261, %c0_131, %c0_132] : memref<1x8x16x32xf32, #tpu.memory_space<vmem>>, vector<1x1x16x32xf32>
    %263 = vector.shape_cast %262 : vector<1x1x16x32xf32> to vector<16x32xf32>
    %264 = vector.shape_cast %260 : vector<16x32xf32> to vector<1x1x16x32xf32>
    tpu.vector_store %arg10[%c0_130, %261, %c0_131, %c0_132], %264 {strides = array<i32>} : memref<1x8x16x32xf32, #tpu.memory_space<vmem>>, vector<1x1x16x32xf32>,
    %c4_i32 = arith.constant 4 : i32
    %c0_133 = arith.constant 0 : index
    %265 = arith.index_cast %c4_i32 : i32 to index
    %c0_134 = arith.constant 0 : index
    %c0_135 = arith.constant 0 : index
    %266 = vector.load %arg2[%c0_133, %265, %c0_134, %c0_135] : memref<1x8x16x32xf32, #tpu.memory_space<vmem>>, vector<1x1x16x32xf32>
    %267 = vector.shape_cast %266 : vector<1x1x16x32xf32> to vector<16x32xf32>
    %cst_136 = arith.constant dense<0.000000e+00> : vector<48x32xf32>
    %268 = tpu.matmul %0, %267, %cst_136 {dimension_numbers = #tpu.dot_dimension_numbers<[1], [0], [0], [1], [0, 0, 1, 1], [], []>} : vector<48x16xf32>, vector<16x32xf32>, vector<48x32xf32> -> vector<48x32xf32>
    %cst_137 = arith.constant dense<0.000000e+00> : vector<48x32xf32>
    %269 = tpu.matmul %0, %260, %cst_137 {dimension_numbers = #tpu.dot_dimension_numbers<[1], [0], [0], [1], [0, 0, 1, 1], [], []>} : vector<48x16xf32>, vector<16x32xf32>, vector<48x32xf32> -> vector<48x32xf32>
    %270 = vector.extract_strided_slice %268 {offsets = [0, 0], sizes = [16, 32], strides = [1, 1]} : vector<48x32xf32> to vector<16x32xf32>
    %271 = vector.extract_strided_slice %268 {offsets = [16, 0], sizes = [16, 32], strides = [1, 1]} : vector<48x32xf32> to vector<16x32xf32>
    %272 = vector.extract_strided_slice %268 {offsets = [32, 0], sizes = [16, 32], strides = [1, 1]} : vector<48x32xf32> to vector<16x32xf32>
    %273 = vector.extract_strided_slice %269 {offsets = [0, 0], sizes = [16, 32], strides = [1, 1]} : vector<48x32xf32> to vector<16x32xf32>
    %274 = vector.extract_strided_slice %269 {offsets = [16, 0], sizes = [16, 32], strides = [1, 1]} : vector<48x32xf32> to vector<16x32xf32>
    %275 = vector.extract_strided_slice %269 {offsets = [32, 0], sizes = [16, 32], strides = [1, 1]} : vector<48x32xf32> to vector<16x32xf32>
    %cst_138 = arith.constant dense<0.000000e+00> : vector<16x64xf32>
    %276 = tpu.matmul %270, %4, %cst_138 {dimension_numbers = #tpu.dot_dimension_numbers<[1], [0], [0], [1], [0, 0, 1, 1], [], []>} : vector<16x32xf32>, vector<32x64xf32>, vector<16x64xf32> -> vector<16x64xf32>
    %cst_139 = arith.constant dense<0.000000e+00> : vector<16x64xf32>
    %277 = tpu.matmul %273, %10, %cst_139 {dimension_numbers = #tpu.dot_dimension_numbers<[1], [0], [0], [1], [0, 0, 1, 1], [], []>} : vector<16x32xf32>, vector<32x64xf32>, vector<16x64xf32> -> vector<16x64xf32>
    %278 = arith.addf %276, %277 : vector<16x64xf32>
    %cst_140 = arith.constant dense<0.000000e+00> : vector<16x64xf32>
    %279 = tpu.matmul %271, %6, %cst_140 {dimension_numbers = #tpu.dot_dimension_numbers<[1], [0], [0], [1], [0, 0, 1, 1], [], []>} : vector<16x32xf32>, vector<32x64xf32>, vector<16x64xf32> -> vector<16x64xf32>
    %cst_141 = arith.constant dense<0.000000e+00> : vector<16x64xf32>
    %280 = tpu.matmul %274, %12, %cst_141 {dimension_numbers = #tpu.dot_dimension_numbers<[1], [0], [0], [1], [0, 0, 1, 1], [], []>} : vector<16x32xf32>, vector<32x64xf32>, vector<16x64xf32> -> vector<16x64xf32>
    %281 = arith.addf %279, %280 : vector<16x64xf32>
    %282 = arith.addf %278, %281 : vector<16x64xf32>
    %cst_142 = arith.constant dense<0.000000e+00> : vector<16x64xf32>
    %283 = tpu.matmul %272, %8, %cst_142 {dimension_numbers = #tpu.dot_dimension_numbers<[1], [0], [0], [1], [0, 0, 1, 1], [], []>} : vector<16x32xf32>, vector<32x64xf32>, vector<16x64xf32> -> vector<16x64xf32>
    %cst_143 = arith.constant dense<0.000000e+00> : vector<16x64xf32>
    %284 = tpu.matmul %275, %14, %cst_143 {dimension_numbers = #tpu.dot_dimension_numbers<[1], [0], [0], [1], [0, 0, 1, 1], [], []>} : vector<16x32xf32>, vector<32x64xf32>, vector<16x64xf32> -> vector<16x64xf32>
    %285 = arith.addf %283, %284 : vector<16x64xf32>
    %286 = arith.addf %282, %285 : vector<16x64xf32>
    %287 = vector.broadcast %1 : vector<1x64xf32> to vector<16x64xf32>
    %288 = arith.addf %286, %287 : vector<16x64xf32>
    %289 = arith.negf %288 : vector<16x64xf32>
    %290 = math.exp %289 : vector<16x64xf32>
    %cst_144 = arith.constant 1.000000e+00 : f32
    %291 = vector.broadcast %cst_144 : f32 to vector<16x64xf32>
    %292 = arith.addf %291, %290 : vector<16x64xf32>
    %293 = arith.divf %291, %292 : vector<16x64xf32>
    %294 = vector.extract_strided_slice %293 {offsets = [0, 0], sizes = [16, 32], strides = [1, 1]} : vector<16x64xf32> to vector<16x32xf32>
    %295 = vector.extract_strided_slice %293 {offsets = [0, 32], sizes = [16, 32], strides = [1, 1]} : vector<16x64xf32> to vector<16x32xf32>
    %296 = arith.mulf %294, %260 : vector<16x32xf32>
    %cst_145 = arith.constant dense<0.000000e+00> : vector<48x32xf32>
    %297 = tpu.matmul %0, %296, %cst_145 {dimension_numbers = #tpu.dot_dimension_numbers<[1], [0], [0], [1], [0, 0, 1, 1], [], []>} : vector<48x16xf32>, vector<16x32xf32>, vector<48x32xf32> -> vector<48x32xf32>
    %298 = vector.extract_strided_slice %297 {offsets = [0, 0], sizes = [16, 32], strides = [1, 1]} : vector<48x32xf32> to vector<16x32xf32>
    %299 = vector.extract_strided_slice %297 {offsets = [16, 0], sizes = [16, 32], strides = [1, 1]} : vector<48x32xf32> to vector<16x32xf32>
    %300 = vector.extract_strided_slice %297 {offsets = [32, 0], sizes = [16, 32], strides = [1, 1]} : vector<48x32xf32> to vector<16x32xf32>
    %cst_146 = arith.constant dense<0.000000e+00> : vector<16x32xf32>
    %301 = tpu.matmul %270, %16, %cst_146 {dimension_numbers = #tpu.dot_dimension_numbers<[1], [0], [0], [1], [0, 0, 1, 1], [], []>} : vector<16x32xf32>, vector<32x32xf32>, vector<16x32xf32> -> vector<16x32xf32>
    %cst_147 = arith.constant dense<0.000000e+00> : vector<16x32xf32>
    %302 = tpu.matmul %298, %22, %cst_147 {dimension_numbers = #tpu.dot_dimension_numbers<[1], [0], [0], [1], [0, 0, 1, 1], [], []>} : vector<16x32xf32>, vector<32x32xf32>, vector<16x32xf32> -> vector<16x32xf32>
    %303 = arith.addf %301, %302 : vector<16x32xf32>
    %cst_148 = arith.constant dense<0.000000e+00> : vector<16x32xf32>
    %304 = tpu.matmul %271, %18, %cst_148 {dimension_numbers = #tpu.dot_dimension_numbers<[1], [0], [0], [1], [0, 0, 1, 1], [], []>} : vector<16x32xf32>, vector<32x32xf32>, vector<16x32xf32> -> vector<16x32xf32>
    %cst_149 = arith.constant dense<0.000000e+00> : vector<16x32xf32>
    %305 = tpu.matmul %299, %24, %cst_149 {dimension_numbers = #tpu.dot_dimension_numbers<[1], [0], [0], [1], [0, 0, 1, 1], [], []>} : vector<16x32xf32>, vector<32x32xf32>, vector<16x32xf32> -> vector<16x32xf32>
    %306 = arith.addf %304, %305 : vector<16x32xf32>
    %307 = arith.addf %303, %306 : vector<16x32xf32>
    %cst_150 = arith.constant dense<0.000000e+00> : vector<16x32xf32>
    %308 = tpu.matmul %272, %20, %cst_150 {dimension_numbers = #tpu.dot_dimension_numbers<[1], [0], [0], [1], [0, 0, 1, 1], [], []>} : vector<16x32xf32>, vector<32x32xf32>, vector<16x32xf32> -> vector<16x32xf32>
    %cst_151 = arith.constant dense<0.000000e+00> : vector<16x32xf32>
    %309 = tpu.matmul %300, %26, %cst_151 {dimension_numbers = #tpu.dot_dimension_numbers<[1], [0], [0], [1], [0, 0, 1, 1], [], []>} : vector<16x32xf32>, vector<32x32xf32>, vector<16x32xf32> -> vector<16x32xf32>
    %310 = arith.addf %308, %309 : vector<16x32xf32>
    %311 = arith.addf %307, %310 : vector<16x32xf32>
    %312 = vector.broadcast %2 : vector<1x32xf32> to vector<16x32xf32>
    %313 = arith.addf %311, %312 : vector<16x32xf32>
    %314 = math.tanh %313 : vector<16x32xf32>
    %315 = arith.mulf %295, %260 : vector<16x32xf32>
    %cst_152 = arith.constant 1.000000e+00 : f32
    %316 = vector.broadcast %cst_152 : f32 to vector<16x32xf32>
    %317 = arith.subf %316, %295 : vector<16x32xf32>
    %318 = arith.mulf %317, %314 : vector<16x32xf32>
    %319 = arith.addf %315, %318 : vector<16x32xf32>
    %c0_153 = arith.constant 0 : index
    %320 = arith.index_cast %c4_i32 : i32 to index
    %c0_154 = arith.constant 0 : index
    %c0_155 = arith.constant 0 : index
    %321 = vector.load %arg10[%c0_153, %320, %c0_154, %c0_155] : memref<1x8x16x32xf32, #tpu.memory_space<vmem>>, vector<1x1x16x32xf32>
    %322 = vector.shape_cast %321 : vector<1x1x16x32xf32> to vector<16x32xf32>
    %323 = vector.shape_cast %319 : vector<16x32xf32> to vector<1x1x16x32xf32>
    tpu.vector_store %arg10[%c0_153, %320, %c0_154, %c0_155], %323 {strides = array<i32>} : memref<1x8x16x32xf32, #tpu.memory_space<vmem>>, vector<1x1x16x32xf32>,
    %c5_i32 = arith.constant 5 : i32
    %c0_156 = arith.constant 0 : index
    %324 = arith.index_cast %c5_i32 : i32 to index
    %c0_157 = arith.constant 0 : index
    %c0_158 = arith.constant 0 : index
    %325 = vector.load %arg2[%c0_156, %324, %c0_157, %c0_158] : memref<1x8x16x32xf32, #tpu.memory_space<vmem>>, vector<1x1x16x32xf32>
    %326 = vector.shape_cast %325 : vector<1x1x16x32xf32> to vector<16x32xf32>
    %cst_159 = arith.constant dense<0.000000e+00> : vector<48x32xf32>
    %327 = tpu.matmul %0, %326, %cst_159 {dimension_numbers = #tpu.dot_dimension_numbers<[1], [0], [0], [1], [0, 0, 1, 1], [], []>} : vector<48x16xf32>, vector<16x32xf32>, vector<48x32xf32> -> vector<48x32xf32>
    %cst_160 = arith.constant dense<0.000000e+00> : vector<48x32xf32>
    %328 = tpu.matmul %0, %319, %cst_160 {dimension_numbers = #tpu.dot_dimension_numbers<[1], [0], [0], [1], [0, 0, 1, 1], [], []>} : vector<48x16xf32>, vector<16x32xf32>, vector<48x32xf32> -> vector<48x32xf32>
    %329 = vector.extract_strided_slice %327 {offsets = [0, 0], sizes = [16, 32], strides = [1, 1]} : vector<48x32xf32> to vector<16x32xf32>
    %330 = vector.extract_strided_slice %327 {offsets = [16, 0], sizes = [16, 32], strides = [1, 1]} : vector<48x32xf32> to vector<16x32xf32>
    %331 = vector.extract_strided_slice %327 {offsets = [32, 0], sizes = [16, 32], strides = [1, 1]} : vector<48x32xf32> to vector<16x32xf32>
    %332 = vector.extract_strided_slice %328 {offsets = [0, 0], sizes = [16, 32], strides = [1, 1]} : vector<48x32xf32> to vector<16x32xf32>
    %333 = vector.extract_strided_slice %328 {offsets = [16, 0], sizes = [16, 32], strides = [1, 1]} : vector<48x32xf32> to vector<16x32xf32>
    %334 = vector.extract_strided_slice %328 {offsets = [32, 0], sizes = [16, 32], strides = [1, 1]} : vector<48x32xf32> to vector<16x32xf32>
    %cst_161 = arith.constant dense<0.000000e+00> : vector<16x64xf32>
    %335 = tpu.matmul %329, %4, %cst_161 {dimension_numbers = #tpu.dot_dimension_numbers<[1], [0], [0], [1], [0, 0, 1, 1], [], []>} : vector<16x32xf32>, vector<32x64xf32>, vector<16x64xf32> -> vector<16x64xf32>
    %cst_162 = arith.constant dense<0.000000e+00> : vector<16x64xf32>
    %336 = tpu.matmul %332, %10, %cst_162 {dimension_numbers = #tpu.dot_dimension_numbers<[1], [0], [0], [1], [0, 0, 1, 1], [], []>} : vector<16x32xf32>, vector<32x64xf32>, vector<16x64xf32> -> vector<16x64xf32>
    %337 = arith.addf %335, %336 : vector<16x64xf32>
    %cst_163 = arith.constant dense<0.000000e+00> : vector<16x64xf32>
    %338 = tpu.matmul %330, %6, %cst_163 {dimension_numbers = #tpu.dot_dimension_numbers<[1], [0], [0], [1], [0, 0, 1, 1], [], []>} : vector<16x32xf32>, vector<32x64xf32>, vector<16x64xf32> -> vector<16x64xf32>
    %cst_164 = arith.constant dense<0.000000e+00> : vector<16x64xf32>
    %339 = tpu.matmul %333, %12, %cst_164 {dimension_numbers = #tpu.dot_dimension_numbers<[1], [0], [0], [1], [0, 0, 1, 1], [], []>} : vector<16x32xf32>, vector<32x64xf32>, vector<16x64xf32> -> vector<16x64xf32>
    %340 = arith.addf %338, %339 : vector<16x64xf32>
    %341 = arith.addf %337, %340 : vector<16x64xf32>
    %cst_165 = arith.constant dense<0.000000e+00> : vector<16x64xf32>
    %342 = tpu.matmul %331, %8, %cst_165 {dimension_numbers = #tpu.dot_dimension_numbers<[1], [0], [0], [1], [0, 0, 1, 1], [], []>} : vector<16x32xf32>, vector<32x64xf32>, vector<16x64xf32> -> vector<16x64xf32>
    %cst_166 = arith.constant dense<0.000000e+00> : vector<16x64xf32>
    %343 = tpu.matmul %334, %14, %cst_166 {dimension_numbers = #tpu.dot_dimension_numbers<[1], [0], [0], [1], [0, 0, 1, 1], [], []>} : vector<16x32xf32>, vector<32x64xf32>, vector<16x64xf32> -> vector<16x64xf32>
    %344 = arith.addf %342, %343 : vector<16x64xf32>
    %345 = arith.addf %341, %344 : vector<16x64xf32>
    %346 = vector.broadcast %1 : vector<1x64xf32> to vector<16x64xf32>
    %347 = arith.addf %345, %346 : vector<16x64xf32>
    %348 = arith.negf %347 : vector<16x64xf32>
    %349 = math.exp %348 : vector<16x64xf32>
    %cst_167 = arith.constant 1.000000e+00 : f32
    %350 = vector.broadcast %cst_167 : f32 to vector<16x64xf32>
    %351 = arith.addf %350, %349 : vector<16x64xf32>
    %352 = arith.divf %350, %351 : vector<16x64xf32>
    %353 = vector.extract_strided_slice %352 {offsets = [0, 0], sizes = [16, 32], strides = [1, 1]} : vector<16x64xf32> to vector<16x32xf32>
    %354 = vector.extract_strided_slice %352 {offsets = [0, 32], sizes = [16, 32], strides = [1, 1]} : vector<16x64xf32> to vector<16x32xf32>
    %355 = arith.mulf %353, %319 : vector<16x32xf32>
    %cst_168 = arith.constant dense<0.000000e+00> : vector<48x32xf32>
    %356 = tpu.matmul %0, %355, %cst_168 {dimension_numbers = #tpu.dot_dimension_numbers<[1], [0], [0], [1], [0, 0, 1, 1], [], []>} : vector<48x16xf32>, vector<16x32xf32>, vector<48x32xf32> -> vector<48x32xf32>
    %357 = vector.extract_strided_slice %356 {offsets = [0, 0], sizes = [16, 32], strides = [1, 1]} : vector<48x32xf32> to vector<16x32xf32>
    %358 = vector.extract_strided_slice %356 {offsets = [16, 0], sizes = [16, 32], strides = [1, 1]} : vector<48x32xf32> to vector<16x32xf32>
    %359 = vector.extract_strided_slice %356 {offsets = [32, 0], sizes = [16, 32], strides = [1, 1]} : vector<48x32xf32> to vector<16x32xf32>
    %cst_169 = arith.constant dense<0.000000e+00> : vector<16x32xf32>
    %360 = tpu.matmul %329, %16, %cst_169 {dimension_numbers = #tpu.dot_dimension_numbers<[1], [0], [0], [1], [0, 0, 1, 1], [], []>} : vector<16x32xf32>, vector<32x32xf32>, vector<16x32xf32> -> vector<16x32xf32>
    %cst_170 = arith.constant dense<0.000000e+00> : vector<16x32xf32>
    %361 = tpu.matmul %357, %22, %cst_170 {dimension_numbers = #tpu.dot_dimension_numbers<[1], [0], [0], [1], [0, 0, 1, 1], [], []>} : vector<16x32xf32>, vector<32x32xf32>, vector<16x32xf32> -> vector<16x32xf32>
    %362 = arith.addf %360, %361 : vector<16x32xf32>
    %cst_171 = arith.constant dense<0.000000e+00> : vector<16x32xf32>
    %363 = tpu.matmul %330, %18, %cst_171 {dimension_numbers = #tpu.dot_dimension_numbers<[1], [0], [0], [1], [0, 0, 1, 1], [], []>} : vector<16x32xf32>, vector<32x32xf32>, vector<16x32xf32> -> vector<16x32xf32>
    %cst_172 = arith.constant dense<0.000000e+00> : vector<16x32xf32>
    %364 = tpu.matmul %358, %24, %cst_172 {dimension_numbers = #tpu.dot_dimension_numbers<[1], [0], [0], [1], [0, 0, 1, 1], [], []>} : vector<16x32xf32>, vector<32x32xf32>, vector<16x32xf32> -> vector<16x32xf32>
    %365 = arith.addf %363, %364 : vector<16x32xf32>
    %366 = arith.addf %362, %365 : vector<16x32xf32>
    %cst_173 = arith.constant dense<0.000000e+00> : vector<16x32xf32>
    %367 = tpu.matmul %331, %20, %cst_173 {dimension_numbers = #tpu.dot_dimension_numbers<[1], [0], [0], [1], [0, 0, 1, 1], [], []>} : vector<16x32xf32>, vector<32x32xf32>, vector<16x32xf32> -> vector<16x32xf32>
    %cst_174 = arith.constant dense<0.000000e+00> : vector<16x32xf32>
    %368 = tpu.matmul %359, %26, %cst_174 {dimension_numbers = #tpu.dot_dimension_numbers<[1], [0], [0], [1], [0, 0, 1, 1], [], []>} : vector<16x32xf32>, vector<32x32xf32>, vector<16x32xf32> -> vector<16x32xf32>
    %369 = arith.addf %367, %368 : vector<16x32xf32>
    %370 = arith.addf %366, %369 : vector<16x32xf32>
    %371 = vector.broadcast %2 : vector<1x32xf32> to vector<16x32xf32>
    %372 = arith.addf %370, %371 : vector<16x32xf32>
    %373 = math.tanh %372 : vector<16x32xf32>
    %374 = arith.mulf %354, %319 : vector<16x32xf32>
    %cst_175 = arith.constant 1.000000e+00 : f32
    %375 = vector.broadcast %cst_175 : f32 to vector<16x32xf32>
    %376 = arith.subf %375, %354 : vector<16x32xf32>
    %377 = arith.mulf %376, %373 : vector<16x32xf32>
    %378 = arith.addf %374, %377 : vector<16x32xf32>
    %c0_176 = arith.constant 0 : index
    %379 = arith.index_cast %c5_i32 : i32 to index
    %c0_177 = arith.constant 0 : index
    %c0_178 = arith.constant 0 : index
    %380 = vector.load %arg10[%c0_176, %379, %c0_177, %c0_178] : memref<1x8x16x32xf32, #tpu.memory_space<vmem>>, vector<1x1x16x32xf32>
    %381 = vector.shape_cast %380 : vector<1x1x16x32xf32> to vector<16x32xf32>
    %382 = vector.shape_cast %378 : vector<16x32xf32> to vector<1x1x16x32xf32>
    tpu.vector_store %arg10[%c0_176, %379, %c0_177, %c0_178], %382 {strides = array<i32>} : memref<1x8x16x32xf32, #tpu.memory_space<vmem>>, vector<1x1x16x32xf32>,
    %c6_i32 = arith.constant 6 : i32
    %c0_179 = arith.constant 0 : index
    %383 = arith.index_cast %c6_i32 : i32 to index
    %c0_180 = arith.constant 0 : index
    %c0_181 = arith.constant 0 : index
    %384 = vector.load %arg2[%c0_179, %383, %c0_180, %c0_181] : memref<1x8x16x32xf32, #tpu.memory_space<vmem>>, vector<1x1x16x32xf32>
    %385 = vector.shape_cast %384 : vector<1x1x16x32xf32> to vector<16x32xf32>
    %cst_182 = arith.constant dense<0.000000e+00> : vector<48x32xf32>
    %386 = tpu.matmul %0, %385, %cst_182 {dimension_numbers = #tpu.dot_dimension_numbers<[1], [0], [0], [1], [0, 0, 1, 1], [], []>} : vector<48x16xf32>, vector<16x32xf32>, vector<48x32xf32> -> vector<48x32xf32>
    %cst_183 = arith.constant dense<0.000000e+00> : vector<48x32xf32>
    %387 = tpu.matmul %0, %378, %cst_183 {dimension_numbers = #tpu.dot_dimension_numbers<[1], [0], [0], [1], [0, 0, 1, 1], [], []>} : vector<48x16xf32>, vector<16x32xf32>, vector<48x32xf32> -> vector<48x32xf32>
    %388 = vector.extract_strided_slice %386 {offsets = [0, 0], sizes = [16, 32], strides = [1, 1]} : vector<48x32xf32> to vector<16x32xf32>
    %389 = vector.extract_strided_slice %386 {offsets = [16, 0], sizes = [16, 32], strides = [1, 1]} : vector<48x32xf32> to vector<16x32xf32>
    %390 = vector.extract_strided_slice %386 {offsets = [32, 0], sizes = [16, 32], strides = [1, 1]} : vector<48x32xf32> to vector<16x32xf32>
    %391 = vector.extract_strided_slice %387 {offsets = [0, 0], sizes = [16, 32], strides = [1, 1]} : vector<48x32xf32> to vector<16x32xf32>
    %392 = vector.extract_strided_slice %387 {offsets = [16, 0], sizes = [16, 32], strides = [1, 1]} : vector<48x32xf32> to vector<16x32xf32>
    %393 = vector.extract_strided_slice %387 {offsets = [32, 0], sizes = [16, 32], strides = [1, 1]} : vector<48x32xf32> to vector<16x32xf32>
    %cst_184 = arith.constant dense<0.000000e+00> : vector<16x64xf32>
    %394 = tpu.matmul %388, %4, %cst_184 {dimension_numbers = #tpu.dot_dimension_numbers<[1], [0], [0], [1], [0, 0, 1, 1], [], []>} : vector<16x32xf32>, vector<32x64xf32>, vector<16x64xf32> -> vector<16x64xf32>
    %cst_185 = arith.constant dense<0.000000e+00> : vector<16x64xf32>
    %395 = tpu.matmul %391, %10, %cst_185 {dimension_numbers = #tpu.dot_dimension_numbers<[1], [0], [0], [1], [0, 0, 1, 1], [], []>} : vector<16x32xf32>, vector<32x64xf32>, vector<16x64xf32> -> vector<16x64xf32>
    %396 = arith.addf %394, %395 : vector<16x64xf32>
    %cst_186 = arith.constant dense<0.000000e+00> : vector<16x64xf32>
    %397 = tpu.matmul %389, %6, %cst_186 {dimension_numbers = #tpu.dot_dimension_numbers<[1], [0], [0], [1], [0, 0, 1, 1], [], []>} : vector<16x32xf32>, vector<32x64xf32>, vector<16x64xf32> -> vector<16x64xf32>
    %cst_187 = arith.constant dense<0.000000e+00> : vector<16x64xf32>
    %398 = tpu.matmul %392, %12, %cst_187 {dimension_numbers = #tpu.dot_dimension_numbers<[1], [0], [0], [1], [0, 0, 1, 1], [], []>} : vector<16x32xf32>, vector<32x64xf32>, vector<16x64xf32> -> vector<16x64xf32>
    %399 = arith.addf %397, %398 : vector<16x64xf32>
    %400 = arith.addf %396, %399 : vector<16x64xf32>
    %cst_188 = arith.constant dense<0.000000e+00> : vector<16x64xf32>
    %401 = tpu.matmul %390, %8, %cst_188 {dimension_numbers = #tpu.dot_dimension_numbers<[1], [0], [0], [1], [0, 0, 1, 1], [], []>} : vector<16x32xf32>, vector<32x64xf32>, vector<16x64xf32> -> vector<16x64xf32>
    %cst_189 = arith.constant dense<0.000000e+00> : vector<16x64xf32>
    %402 = tpu.matmul %393, %14, %cst_189 {dimension_numbers = #tpu.dot_dimension_numbers<[1], [0], [0], [1], [0, 0, 1, 1], [], []>} : vector<16x32xf32>, vector<32x64xf32>, vector<16x64xf32> -> vector<16x64xf32>
    %403 = arith.addf %401, %402 : vector<16x64xf32>
    %404 = arith.addf %400, %403 : vector<16x64xf32>
    %405 = vector.broadcast %1 : vector<1x64xf32> to vector<16x64xf32>
    %406 = arith.addf %404, %405 : vector<16x64xf32>
    %407 = arith.negf %406 : vector<16x64xf32>
    %408 = math.exp %407 : vector<16x64xf32>
    %cst_190 = arith.constant 1.000000e+00 : f32
    %409 = vector.broadcast %cst_190 : f32 to vector<16x64xf32>
    %410 = arith.addf %409, %408 : vector<16x64xf32>
    %411 = arith.divf %409, %410 : vector<16x64xf32>
    %412 = vector.extract_strided_slice %411 {offsets = [0, 0], sizes = [16, 32], strides = [1, 1]} : vector<16x64xf32> to vector<16x32xf32>
    %413 = vector.extract_strided_slice %411 {offsets = [0, 32], sizes = [16, 32], strides = [1, 1]} : vector<16x64xf32> to vector<16x32xf32>
    %414 = arith.mulf %412, %378 : vector<16x32xf32>
    %cst_191 = arith.constant dense<0.000000e+00> : vector<48x32xf32>
    %415 = tpu.matmul %0, %414, %cst_191 {dimension_numbers = #tpu.dot_dimension_numbers<[1], [0], [0], [1], [0, 0, 1, 1], [], []>} : vector<48x16xf32>, vector<16x32xf32>, vector<48x32xf32> -> vector<48x32xf32>
    %416 = vector.extract_strided_slice %415 {offsets = [0, 0], sizes = [16, 32], strides = [1, 1]} : vector<48x32xf32> to vector<16x32xf32>
    %417 = vector.extract_strided_slice %415 {offsets = [16, 0], sizes = [16, 32], strides = [1, 1]} : vector<48x32xf32> to vector<16x32xf32>
    %418 = vector.extract_strided_slice %415 {offsets = [32, 0], sizes = [16, 32], strides = [1, 1]} : vector<48x32xf32> to vector<16x32xf32>
    %cst_192 = arith.constant dense<0.000000e+00> : vector<16x32xf32>
    %419 = tpu.matmul %388, %16, %cst_192 {dimension_numbers = #tpu.dot_dimension_numbers<[1], [0], [0], [1], [0, 0, 1, 1], [], []>} : vector<16x32xf32>, vector<32x32xf32>, vector<16x32xf32> -> vector<16x32xf32>
    %cst_193 = arith.constant dense<0.000000e+00> : vector<16x32xf32>
    %420 = tpu.matmul %416, %22, %cst_193 {dimension_numbers = #tpu.dot_dimension_numbers<[1], [0], [0], [1], [0, 0, 1, 1], [], []>} : vector<16x32xf32>, vector<32x32xf32>, vector<16x32xf32> -> vector<16x32xf32>
    %421 = arith.addf %419, %420 : vector<16x32xf32>
    %cst_194 = arith.constant dense<0.000000e+00> : vector<16x32xf32>
    %422 = tpu.matmul %389, %18, %cst_194 {dimension_numbers = #tpu.dot_dimension_numbers<[1], [0], [0], [1], [0, 0, 1, 1], [], []>} : vector<16x32xf32>, vector<32x32xf32>, vector<16x32xf32> -> vector<16x32xf32>
    %cst_195 = arith.constant dense<0.000000e+00> : vector<16x32xf32>
    %423 = tpu.matmul %417, %24, %cst_195 {dimension_numbers = #tpu.dot_dimension_numbers<[1], [0], [0], [1], [0, 0, 1, 1], [], []>} : vector<16x32xf32>, vector<32x32xf32>, vector<16x32xf32> -> vector<16x32xf32>
    %424 = arith.addf %422, %423 : vector<16x32xf32>
    %425 = arith.addf %421, %424 : vector<16x32xf32>
    %cst_196 = arith.constant dense<0.000000e+00> : vector<16x32xf32>
    %426 = tpu.matmul %390, %20, %cst_196 {dimension_numbers = #tpu.dot_dimension_numbers<[1], [0], [0], [1], [0, 0, 1, 1], [], []>} : vector<16x32xf32>, vector<32x32xf32>, vector<16x32xf32> -> vector<16x32xf32>
    %cst_197 = arith.constant dense<0.000000e+00> : vector<16x32xf32>
    %427 = tpu.matmul %418, %26, %cst_197 {dimension_numbers = #tpu.dot_dimension_numbers<[1], [0], [0], [1], [0, 0, 1, 1], [], []>} : vector<16x32xf32>, vector<32x32xf32>, vector<16x32xf32> -> vector<16x32xf32>
    %428 = arith.addf %426, %427 : vector<16x32xf32>
    %429 = arith.addf %425, %428 : vector<16x32xf32>
    %430 = vector.broadcast %2 : vector<1x32xf32> to vector<16x32xf32>
    %431 = arith.addf %429, %430 : vector<16x32xf32>
    %432 = math.tanh %431 : vector<16x32xf32>
    %433 = arith.mulf %413, %378 : vector<16x32xf32>
    %cst_198 = arith.constant 1.000000e+00 : f32
    %434 = vector.broadcast %cst_198 : f32 to vector<16x32xf32>
    %435 = arith.subf %434, %413 : vector<16x32xf32>
    %436 = arith.mulf %435, %432 : vector<16x32xf32>
    %437 = arith.addf %433, %436 : vector<16x32xf32>
    %c0_199 = arith.constant 0 : index
    %438 = arith.index_cast %c6_i32 : i32 to index
    %c0_200 = arith.constant 0 : index
    %c0_201 = arith.constant 0 : index
    %439 = vector.load %arg10[%c0_199, %438, %c0_200, %c0_201] : memref<1x8x16x32xf32, #tpu.memory_space<vmem>>, vector<1x1x16x32xf32>
    %440 = vector.shape_cast %439 : vector<1x1x16x32xf32> to vector<16x32xf32>
    %441 = vector.shape_cast %437 : vector<16x32xf32> to vector<1x1x16x32xf32>
    tpu.vector_store %arg10[%c0_199, %438, %c0_200, %c0_201], %441 {strides = array<i32>} : memref<1x8x16x32xf32, #tpu.memory_space<vmem>>, vector<1x1x16x32xf32>,
    %c7_i32 = arith.constant 7 : i32
    %c0_202 = arith.constant 0 : index
    %442 = arith.index_cast %c7_i32 : i32 to index
    %c0_203 = arith.constant 0 : index
    %c0_204 = arith.constant 0 : index
    %443 = vector.load %arg2[%c0_202, %442, %c0_203, %c0_204] : memref<1x8x16x32xf32, #tpu.memory_space<vmem>>, vector<1x1x16x32xf32>
    %444 = vector.shape_cast %443 : vector<1x1x16x32xf32> to vector<16x32xf32>
    %cst_205 = arith.constant dense<0.000000e+00> : vector<48x32xf32>
    %445 = tpu.matmul %0, %444, %cst_205 {dimension_numbers = #tpu.dot_dimension_numbers<[1], [0], [0], [1], [0, 0, 1, 1], [], []>} : vector<48x16xf32>, vector<16x32xf32>, vector<48x32xf32> -> vector<48x32xf32>
    %cst_206 = arith.constant dense<0.000000e+00> : vector<48x32xf32>
    %446 = tpu.matmul %0, %437, %cst_206 {dimension_numbers = #tpu.dot_dimension_numbers<[1], [0], [0], [1], [0, 0, 1, 1], [], []>} : vector<48x16xf32>, vector<16x32xf32>, vector<48x32xf32> -> vector<48x32xf32>
    %447 = vector.extract_strided_slice %445 {offsets = [0, 0], sizes = [16, 32], strides = [1, 1]} : vector<48x32xf32> to vector<16x32xf32>
    %448 = vector.extract_strided_slice %445 {offsets = [16, 0], sizes = [16, 32], strides = [1, 1]} : vector<48x32xf32> to vector<16x32xf32>
    %449 = vector.extract_strided_slice %445 {offsets = [32, 0], sizes = [16, 32], strides = [1, 1]} : vector<48x32xf32> to vector<16x32xf32>
    %450 = vector.extract_strided_slice %446 {offsets = [0, 0], sizes = [16, 32], strides = [1, 1]} : vector<48x32xf32> to vector<16x32xf32>
    %451 = vector.extract_strided_slice %446 {offsets = [16, 0], sizes = [16, 32], strides = [1, 1]} : vector<48x32xf32> to vector<16x32xf32>
    %452 = vector.extract_strided_slice %446 {offsets = [32, 0], sizes = [16, 32], strides = [1, 1]} : vector<48x32xf32> to vector<16x32xf32>
    %cst_207 = arith.constant dense<0.000000e+00> : vector<16x64xf32>
    %453 = tpu.matmul %447, %4, %cst_207 {dimension_numbers = #tpu.dot_dimension_numbers<[1], [0], [0], [1], [0, 0, 1, 1], [], []>} : vector<16x32xf32>, vector<32x64xf32>, vector<16x64xf32> -> vector<16x64xf32>
    %cst_208 = arith.constant dense<0.000000e+00> : vector<16x64xf32>
    %454 = tpu.matmul %450, %10, %cst_208 {dimension_numbers = #tpu.dot_dimension_numbers<[1], [0], [0], [1], [0, 0, 1, 1], [], []>} : vector<16x32xf32>, vector<32x64xf32>, vector<16x64xf32> -> vector<16x64xf32>
    %455 = arith.addf %453, %454 : vector<16x64xf32>
    %cst_209 = arith.constant dense<0.000000e+00> : vector<16x64xf32>
    %456 = tpu.matmul %448, %6, %cst_209 {dimension_numbers = #tpu.dot_dimension_numbers<[1], [0], [0], [1], [0, 0, 1, 1], [], []>} : vector<16x32xf32>, vector<32x64xf32>, vector<16x64xf32> -> vector<16x64xf32>
    %cst_210 = arith.constant dense<0.000000e+00> : vector<16x64xf32>
    %457 = tpu.matmul %451, %12, %cst_210 {dimension_numbers = #tpu.dot_dimension_numbers<[1], [0], [0], [1], [0, 0, 1, 1], [], []>} : vector<16x32xf32>, vector<32x64xf32>, vector<16x64xf32> -> vector<16x64xf32>
    %458 = arith.addf %456, %457 : vector<16x64xf32>
    %459 = arith.addf %455, %458 : vector<16x64xf32>
    %cst_211 = arith.constant dense<0.000000e+00> : vector<16x64xf32>
    %460 = tpu.matmul %449, %8, %cst_211 {dimension_numbers = #tpu.dot_dimension_numbers<[1], [0], [0], [1], [0, 0, 1, 1], [], []>} : vector<16x32xf32>, vector<32x64xf32>, vector<16x64xf32> -> vector<16x64xf32>
    %cst_212 = arith.constant dense<0.000000e+00> : vector<16x64xf32>
    %461 = tpu.matmul %452, %14, %cst_212 {dimension_numbers = #tpu.dot_dimension_numbers<[1], [0], [0], [1], [0, 0, 1, 1], [], []>} : vector<16x32xf32>, vector<32x64xf32>, vector<16x64xf32> -> vector<16x64xf32>
    %462 = arith.addf %460, %461 : vector<16x64xf32>
    %463 = arith.addf %459, %462 : vector<16x64xf32>
    %464 = vector.broadcast %1 : vector<1x64xf32> to vector<16x64xf32>
    %465 = arith.addf %463, %464 : vector<16x64xf32>
    %466 = arith.negf %465 : vector<16x64xf32>
    %467 = math.exp %466 : vector<16x64xf32>
    %cst_213 = arith.constant 1.000000e+00 : f32
    %468 = vector.broadcast %cst_213 : f32 to vector<16x64xf32>
    %469 = arith.addf %468, %467 : vector<16x64xf32>
    %470 = arith.divf %468, %469 : vector<16x64xf32>
    %471 = vector.extract_strided_slice %470 {offsets = [0, 0], sizes = [16, 32], strides = [1, 1]} : vector<16x64xf32> to vector<16x32xf32>
    %472 = vector.extract_strided_slice %470 {offsets = [0, 32], sizes = [16, 32], strides = [1, 1]} : vector<16x64xf32> to vector<16x32xf32>
    %473 = arith.mulf %471, %437 : vector<16x32xf32>
    %cst_214 = arith.constant dense<0.000000e+00> : vector<48x32xf32>
    %474 = tpu.matmul %0, %473, %cst_214 {dimension_numbers = #tpu.dot_dimension_numbers<[1], [0], [0], [1], [0, 0, 1, 1], [], []>} : vector<48x16xf32>, vector<16x32xf32>, vector<48x32xf32> -> vector<48x32xf32>
    %475 = vector.extract_strided_slice %474 {offsets = [0, 0], sizes = [16, 32], strides = [1, 1]} : vector<48x32xf32> to vector<16x32xf32>
    %476 = vector.extract_strided_slice %474 {offsets = [16, 0], sizes = [16, 32], strides = [1, 1]} : vector<48x32xf32> to vector<16x32xf32>
    %477 = vector.extract_strided_slice %474 {offsets = [32, 0], sizes = [16, 32], strides = [1, 1]} : vector<48x32xf32> to vector<16x32xf32>
    %cst_215 = arith.constant dense<0.000000e+00> : vector<16x32xf32>
    %478 = tpu.matmul %447, %16, %cst_215 {dimension_numbers = #tpu.dot_dimension_numbers<[1], [0], [0], [1], [0, 0, 1, 1], [], []>} : vector<16x32xf32>, vector<32x32xf32>, vector<16x32xf32> -> vector<16x32xf32>
    %cst_216 = arith.constant dense<0.000000e+00> : vector<16x32xf32>
    %479 = tpu.matmul %475, %22, %cst_216 {dimension_numbers = #tpu.dot_dimension_numbers<[1], [0], [0], [1], [0, 0, 1, 1], [], []>} : vector<16x32xf32>, vector<32x32xf32>, vector<16x32xf32> -> vector<16x32xf32>
    %480 = arith.addf %478, %479 : vector<16x32xf32>
    %cst_217 = arith.constant dense<0.000000e+00> : vector<16x32xf32>
    %481 = tpu.matmul %448, %18, %cst_217 {dimension_numbers = #tpu.dot_dimension_numbers<[1], [0], [0], [1], [0, 0, 1, 1], [], []>} : vector<16x32xf32>, vector<32x32xf32>, vector<16x32xf32> -> vector<16x32xf32>
    %cst_218 = arith.constant dense<0.000000e+00> : vector<16x32xf32>
    %482 = tpu.matmul %476, %24, %cst_218 {dimension_numbers = #tpu.dot_dimension_numbers<[1], [0], [0], [1], [0, 0, 1, 1], [], []>} : vector<16x32xf32>, vector<32x32xf32>, vector<16x32xf32> -> vector<16x32xf32>
    %483 = arith.addf %481, %482 : vector<16x32xf32>
    %484 = arith.addf %480, %483 : vector<16x32xf32>
    %cst_219 = arith.constant dense<0.000000e+00> : vector<16x32xf32>
    %485 = tpu.matmul %449, %20, %cst_219 {dimension_numbers = #tpu.dot_dimension_numbers<[1], [0], [0], [1], [0, 0, 1, 1], [], []>} : vector<16x32xf32>, vector<32x32xf32>, vector<16x32xf32> -> vector<16x32xf32>
    %cst_220 = arith.constant dense<0.000000e+00> : vector<16x32xf32>
    %486 = tpu.matmul %477, %26, %cst_220 {dimension_numbers = #tpu.dot_dimension_numbers<[1], [0], [0], [1], [0, 0, 1, 1], [], []>} : vector<16x32xf32>, vector<32x32xf32>, vector<16x32xf32> -> vector<16x32xf32>
    %487 = arith.addf %485, %486 : vector<16x32xf32>
    %488 = arith.addf %484, %487 : vector<16x32xf32>
    %489 = vector.broadcast %2 : vector<1x32xf32> to vector<16x32xf32>
    %490 = arith.addf %488, %489 : vector<16x32xf32>
    %491 = math.tanh %490 : vector<16x32xf32>
    %492 = arith.mulf %472, %437 : vector<16x32xf32>
    %cst_221 = arith.constant 1.000000e+00 : f32
    %493 = vector.broadcast %cst_221 : f32 to vector<16x32xf32>
    %494 = arith.subf %493, %472 : vector<16x32xf32>
    %495 = arith.mulf %494, %491 : vector<16x32xf32>
    %496 = arith.addf %492, %495 : vector<16x32xf32>
    %c0_222 = arith.constant 0 : index
    %497 = arith.index_cast %c7_i32 : i32 to index
    %c0_223 = arith.constant 0 : index
    %c0_224 = arith.constant 0 : index
    %498 = vector.load %arg10[%c0_222, %497, %c0_223, %c0_224] : memref<1x8x16x32xf32, #tpu.memory_space<vmem>>, vector<1x1x16x32xf32>
    %499 = vector.shape_cast %498 : vector<1x1x16x32xf32> to vector<16x32xf32>
    %500 = vector.shape_cast %496 : vector<16x32xf32> to vector<1x1x16x32xf32>
    tpu.vector_store %arg10[%c0_222, %497, %c0_223, %c0_224], %500 {strides = array<i32>} : memref<1x8x16x32xf32, #tpu.memory_space<vmem>>, vector<1x1x16x32xf32>,
    %c8_i32 = arith.constant 8 : i32
    return
  }
  func.func @transform_0(%arg0: i32) -> (i32, i32) {
    %c0_i32 = arith.constant 0 : i32
    %c0_i32_0 = arith.constant 0 : i32
    %c0_i32_1 = arith.constant 0 : i32
    return %c0_i32, %c0_i32_0 : i32, i32
  }
  func.func @transform_1(%arg0: i32) -> (i32, i32, i32, i32) {
    %c0_i32 = arith.constant 0 : i32
    %c0_i32_0 = arith.constant 0 : i32
    %c0_i32_1 = arith.constant 0 : i32
    %c0_i32_2 = arith.constant 0 : i32
    return %arg0, %c0_i32, %c0_i32_0, %c0_i32_1 : i32, i32, i32, i32
  }
  func.func @transform_2(%arg0: i32) -> (i32, i32, i32) {
    %c0_i32 = arith.constant 0 : i32
    %c0_i32_0 = arith.constant 0 : i32
    %c0_i32_1 = arith.constant 0 : i32
    return %arg0, %c0_i32, %c0_i32_0 : i32, i32, i32
  }
  func.func @transform_3(%arg0: i32) -> (i32, i32, i32) {
    %c0_i32 = arith.constant 0 : i32
    %c0_i32_0 = arith.constant 0 : i32
    %c0_i32_1 = arith.constant 0 : i32
    %c0_i32_2 = arith.constant 0 : i32
    return %c0_i32, %c0_i32_0, %c0_i32_1 : i32, i32, i32
  }
  func.func @transform_4(%arg0: i32) -> (i32, i32, i32) {
    %c0_i32 = arith.constant 0 : i32
    %c0_i32_0 = arith.constant 0 : i32
    %c0_i32_1 = arith.constant 0 : i32
    %c0_i32_2 = arith.constant 0 : i32
    return %c0_i32, %c0_i32_0, %c0_i32_1 : i32, i32, i32
  }
  func.func @transform_5(%arg0: i32) -> (i32, i32) {
    %c0_i32 = arith.constant 0 : i32
    %c0_i32_0 = arith.constant 0 : i32
    %c0_i32_1 = arith.constant 0 : i32
    return %c0_i32, %c0_i32_0 : i32, i32
  }
  func.func @transform_6(%arg0: i32) -> (i32, i32, i32) {
    %c0_i32 = arith.constant 0 : i32
    %c0_i32_0 = arith.constant 0 : i32
    %c0_i32_1 = arith.constant 0 : i32
    %c0_i32_2 = arith.constant 0 : i32
    return %c0_i32, %c0_i32_0, %c0_i32_1 : i32, i32, i32
  }
  func.func @transform_7(%arg0: i32) -> (i32, i32, i32) {
    %c0_i32 = arith.constant 0 : i32
    %c0_i32_0 = arith.constant 0 : i32
    %c0_i32_1 = arith.constant 0 : i32
    %c0_i32_2 = arith.constant 0 : i32
    return %c0_i32, %c0_i32_0, %c0_i32_1 : i32, i32, i32
  }
  func.func @transform_8(%arg0: i32) -> (i32, i32) {
    %c0_i32 = arith.constant 0 : i32
    %c0_i32_0 = arith.constant 0 : i32
    %c0_i32_1 = arith.constant 0 : i32
    return %c0_i32, %c0_i32_0 : i32, i32
  }
  func.func @transform_9(%arg0: i32) -> (i32, i32, i32, i32) {
    %c0_i32 = arith.constant 0 : i32
    %c0_i32_0 = arith.constant 0 : i32
    %c0_i32_1 = arith.constant 0 : i32
    %c0_i32_2 = arith.constant 0 : i32
    return %arg0, %c0_i32, %c0_i32_0, %c0_i32_1 : i32, i32, i32, i32
  }
}

</mosaic_0001>

<bundles_post_ra>
// kernel: gcrnn_forward.2
= control target key start
LH: loop header
LB: loop body
LE: loop exit
PB: predicated region body
PF: predicated region fallthrough
CT: control target
= control target key end

     0   :  { %s13899_s30 = smov 0   ;;  %s15544_s0 = inlined_call_operand.vmem [shape: f32[48,16], index: 0, kind: input, shape index: {}]   ;;  %s15545_s1 = inlined_call_operand.vmem [shape: f32[2,8,16,4], index: 1, kind: input, shape index: {}]   ;;  %s15546_s2 = inlined_call_operand.vmem [shape: f32[2,16,32], index: 2, kind: input, shape index: {}]   ;;  %s15547_s3 = inlined_call_operand.vmem [shape: f32[3,4,64], index: 3, kind: input, shape index: {}]   ;;  %s15548_s4 = inlined_call_operand.vmem [shape: f32[3,32,64], index: 4, kind: input, shape index: {}]   ;;  %s15549_s5 = inlined_call_operand.vmem [shape: f32[1,64], index: 5, kind: input, shape index: {}]   ;;  %s15550_s6 = inlined_call_operand.vmem [shape: f32[3,4,32], index: 6, kind: input, shape index: {}]   ;;  %s15551_s7 = inlined_call_operand.vmem [shape: f32[3,32,32], index: 7, kind: input, shape index: {}]   ;;  %s15552_s8 = inlined_call_operand.vmem [shape: f32[1,32], index: 8, kind: input, shape index: {}]   ;;  %s15553_s9 = inlined_call_operand.vmem [shape: f32[2,8,16,32], index: 9, kind: output, shape index: {}]  }
   0x1 LB: > { %s10902_s10 = sadd.s32 4294967295, %s13845_s30   ;;  %p10906_p0 = scmp.ge.s32.totalorder %s13845_s30, 1  ;;  %s13845_s30 = sphi %s13899_s30, %s19_s30  }
   0x2   : > { %p297_p1 = scmp.lt.s32.totalorder %s13845_s30, 3 }
   0x4   : > { %p298_p2 = pnand %p10906_p0, %p297_p1 }
   0x5   : > { %p338_p3 = scmp.lt.s32.totalorder (!%p298_p2), %s10902_s10, 1  ;;  %v13910_v0 = vld [vmem:[%s15544_s0] sm:$0xff] (!%p298_p2)  ;;  %vm403_vm0 = vcmask (!%p298_p2), 130048   ;;  %v367_v2 = vld [vmem:[%s15548_s4 + $0x8] sm:$0xff] (!%p298_p2)  ;;  %v368_v10 = vld [vmem:[%s15548_s4 + $0x10] sm:$0xff] (!%p298_p2)  ;;  %vm701_vm1 = vcmask (!%p298_p2), 1043456  }
   0x6   : > { %301 = sbr.rel (%p298_p2) target bundleno = 9806 (0x264e), region = 56  ;;  %12009 = vmatprep.mubr.msk.f32.mxu1 (!%p298_p2), %vm403_vm0, %v13910_v0  ;;  %11996 = vmatprep.mubr.msk.f32.mxu0 (!%p298_p2), %vm403_vm0, %v13910_v0  ;;  %v366_v1 = vld [vmem:[%s15548_s4] sm:$0xff] (!%p298_p2)  ;;  %v369_v11 = vld [vmem:[%s15548_s4 + $0x18] sm:$0xff] (!%p298_p2)  ;;  %v13955_v12 = vld [vmem:[%s15544_s0 + $0x8] sm:$0xff] (!%p298_p2)  ;;  %s13847_s24 = smov (!%p298_p2), 32   ;;  %vm612_vm2 = vcmask (!%p298_p2), 261120  }
   0x7   : > { %v13944_v9 = vpack.c.bf16 (!%p298_p2), %v367_v2, %v366_v1  ;;  %v13960_v13 = vld [vmem:[%s15544_s0 + $0x10] sm:$0xff] (!%p298_p2)  ;;  %v13963_v14 = vpack.c.bf16 (!%p298_p2), %v369_v11, %v368_v10  ;;  %v13974_v15 = vld [vmem:[%s15544_s0 + $0x18] sm:$0xff] (!%p298_p2)  ;;  %v13981_v16 = vld [vmem:[%s15544_s0 + $0x20] sm:$0xff] (!%p298_p2)  ;;  %vm694_vm3 = vcmask (!%p298_p2), 31744   ;;  %s13848_s12 = smov (!%p298_p2), 96  }
   0x8   : > { %v13994_v17 = vld [vmem:[%s15544_s0 + $0x28] sm:$0xff] (!%p298_p2)  ;;  %v14008_v18 = vld [vmem:[%s15547_s3] sm:$0xf] (!%p298_p2)  ;;  %v10917_v29 = vld [vmem:[%s15548_s4 + $0x30] sm:$0xff] (!%p298_p2) }
   0x9   : > { %v10915_v19 = vld [vmem:[%s15548_s4 + $0x20] sm:$0xff] (!%p298_p2)  ;;  %v10916_v20 = vld [vmem:[%s15548_s4 + $0x28] sm:$0xff] (!%p298_p2)  ;;  %v10918_v30 = vld [vmem:[%s15548_s4 + $0x38] sm:$0xff] (!%p298_p2) }
   0xa   : > { %v14024_v24 = vpack.c.bf16 (!%p298_p2), %v10916_v20, %v10915_v19  ;;  %v14045_v33 = vpack.c.bf16 (!%p298_p2), %v10918_v30, %v10917_v29  ;;  %v14059_v37 = vld [vmem:[%s15547_s3 + $0x4] sm:$0xf] (!%p298_p2)  ;;  %v10920_v39 = vld [vmem:[%s15548_s4 + $0x48] sm:$0xff] (!%p298_p2)  ;;  %v10921_v41 = vld [vmem:[%s15548_s4 + $0x50] sm:$0xff] (!%p298_p2) }
   0xb   : > { %v10919_v38 = vld [vmem:[%s15548_s4 + $0x40] sm:$0xff] (!%p298_p2)  ;;  %v10922_v42 = vld [vmem:[%s15548_s4 + $0x58] sm:$0xff] (!%p298_p2)  ;;  %v14094_v44 = vld [vmem:[%s15547_s3 + $0x8] sm:$0xf] (!%p298_p2) }
   0xc   : > { %v14070_v40 = vpack.c.bf16 (!%p298_p2), %v10920_v39, %v10919_v38  ;;  %v14084_v43 = vpack.c.bf16 (!%p298_p2), %v10922_v42, %v10921_v41  ;;  %v14111_v45 = vld [vmem:[%s15549_s5] ss:$0 sm:$0xff] (!%p298_p2)  ;;  %v386_v60 = vld [vmem:[%s15551_s7 + $0x8] sm:$0xff] (!%p298_p2)  ;;  %v387_v1 = vld [vmem:[%s15551_s7 + $0x10] sm:$0xff] (!%p298_p2) }
   0xd   : > { %s15555_s10 = smov (!%p338_p3, %s10902_s10), 1  ;;  %v385_v59 = vld [vmem:[%s15551_s7] sm:$0xff]  ;;  %v388_v2 = vld [vmem:[%s15551_s7 + $0x18] sm:$0xff]  ;;  %v10927_v20 = vld [vmem:[%s15551_s7 + $0x30] sm:$0xff] }
   0xe   : > { %s11365_s13 = sshll.u32 %s15555_s10, 7  ;;  %s11366_s14 = sshll.u32 %s15555_s10, 4  ;;  %v14129_v63 = vpack.c.bf16 %v386_v60, %v385_v59  ;;  %v10929_v29 = vld [vmem:[%s15551_s7 + $0x40] sm:$0xff]  ;;  %v10930_v30 = vld [vmem:[%s15551_s7 + $0x48] sm:$0xff] }
   0xf   : > { %s13925_s17 = scalar_lea.vmem %s15545_s1, %s11365_s13  ;;  %s347_s20 = scalar_lea.vmem %s15546_s2, %s11366_s14 }
  0x10   : > { %v13936_v3 = vld [vmem:[%s347_s20] sm:$0xff]  ;;  %v13938_v4 = vld [vmem:[%s347_s20 + $0x8] sm:$0xff]  ;;  %s14284_s16 = scalar_lea.vmem %s15553_s9, %s11365_s13 }
  0x11   : > { %v401_v5 = vld [vmem:[%s13925_s17] sm:$0xff]  ;;  %v13076_v6 = vpack.c.bf16 %v13938_v4, %v13936_v3  ;;  %v402_v7 = vld [vmem:[%s13925_s17 + $0x8] sm:$0xff]  ;;  %1724 = vrot.lane.b32.xlu0 %v13936_v3, %s13847_s24 }
  0x12   : > { %v13072_v8 = vpack.c.bf16 %v402_v7, %v401_v5  ;;  %v10925_v5 = vld [vmem:[%s15551_s7 + $0x20] sm:$0xff] }
  0x13   : > { %13077 = vmatprep.subr.bf16.mxu1 %v13076_v6 }
  0x14   : > { %13079 = vmatpush3.bf16.msra.mxu1 %v13076_v6  ;;  %13073 = vmatprep.subr.bf16.mxu0 %v13072_v8  ;;  %v10926_v6 = vld [vmem:[%s15551_s7 + $0x28] sm:$0xff] }
  0x15   : > { %13075 = vmatpush3.bf16.msra.mxu0 %v13072_v8  ;;  %1726 = vrot.lane.b32.xlu0 %v13938_v4, %s13847_s24  ;;  %v14166_v10 = vpack.c.bf16 %v10926_v6, %v10925_v5 }
  0x16   : > { %13081 = vmatprep.subr.bf16.mxu0 %v13944_v9 }
  0x17   : > { %12010 = vmatmul.mubr.msk.f32.vlgmr.msra.gmra.mrb[0].mxu1 %vm403_vm0, %v13955_v12 }
  0x18   : > { %11997 = vmatmul.mubr.msk.f32.vlgmr.msra.gmra.mrb[0].mxu0 %vm403_vm0, %v13955_v12  ;;  %12012 = vmatprep.mubr.msk.f32.mxu1 %vm403_vm0, %v13960_v13 }
  0x19   : > { %11999 = vmatprep.mubr.msk.f32.mxu0 %vm403_vm0, %v13960_v13  ;;  %13083 = vmatpush3.bf16.msra.mxu0 %v13944_v9 }
  0x1a   : > { %13085 = vmatprep.subr.bf16.mxu0 %v13963_v14 }
  0x1b   : > { %12013 = vmatmul.mubr.msk.f32.gmra.mrb[2].mxu1 %vm403_vm0, %v13974_v15 }
  0x1c   : > { %12000 = vmatmul.mubr.msk.f32.gmra.mrb[2].mxu0 %vm403_vm0, %v13974_v15  ;;  %12015 = vmatprep.mubr.msk.f32.mxu1 %vm403_vm0, %v13981_v16 }
  0x1d   : > { %12002 = vmatprep.mubr.msk.f32.mxu0 %vm403_vm0, %v13981_v16  ;;  %13087 = vmatpush3.bf16.msra.mxu0 %v13963_v14 }
  0x1e   : > { %12029 = vmatprep.subr.msk.mxu0 %vm701_vm1, %v14008_v18 }
  0x1f   : > { %12016 = vmatmul.mubr.msk.f32.gmra.mrb[4].mxu1 %vm403_vm0, %v13994_v17 }
  0x20   : > { %12003 = vmatmul.mubr.msk.f32.gmra.mrb[4].mxu0 %vm403_vm0, %v13994_v17  ;;  %12070 = vmatprep.mubr.msk.f32.mxu1 %vm403_vm0, %v13910_v0 }
  0xea   : > { %v12011_v21 = vpop.f32.mrb[0].mxu1 }
  0xeb   : > { %v583_v22 = vpop.f32.mrb[1].mxu1  ;;  %v14022_v23 = vpop.f32.mrb[0].mxu0 }
  0xec   : > { %12026 = vmatprep.mubr.msk.f32.mxu0 %vm612_vm2, %v583_v22  ;;  %v14027_v25 = vpop.f32.mrb[1].mxu0 }
  0xed   : > { %12027 = vmatmul.mubr.msk.f32.vlgmr.msra.gmra.mrb[6].mxu0 %vm612_vm2, %v12011_v21  ;;  %v10928_v21 = vld [vmem:[%s15551_s7 + $0x38] sm:$0xff] }
  0xee   : > { %12031 = vmatprep.mubr.msk.f32.mxu0 %vm694_vm3, %v14027_v25  ;;  %12030 = vmatpush3.msk.msra.mxu0 %vm701_vm1, %v14008_v18  ;;  %v12014_v26 = vpop.f32.mrb[2].mxu1 }
  0xef   : > { %13089 = vmatprep.subr.bf16.mxu0 %v14024_v24  ;;  %v593_v27 = vpop.f32.mrb[3].mxu1  ;;  %v14035_v28 = vpop.f32.mrb[2].mxu0 }
  0xf0   : > { %v14043_v31 = vpop.f32.mrb[3].mxu0 }
  0xf2   : > { %v12017_v32 = vpop.f32.mrb[4].mxu1 }
  0xf3   : > { %v603_v34 = vpop.f32.mrb[5].mxu1  ;;  %v14047_v35 = vpop.f32.mrb[4].mxu0 }
  0xf4   : > { %v14049_v36 = vpop.f32.mrb[5].mxu0 }
  0xf5   : > { %12032 = vmatmul.mubr.msk.f32.vlgmr.msra.gmra.mrb[6].mxu0 %vm694_vm3, %v14022_v23 }
  0xf6   : > { %13091 = vmatpush3.bf16.msra.mxu0 %v14024_v24  ;;  %12042 = vmatprep.mubr.msk.f32.mxu0 %vm612_vm2, %v593_v27 }
  0xf7   : > { %13093 = vmatprep.subr.bf16.mxu0 %v14045_v33 }
  0xfa   : > { %13095 = vmatpush3.bf16.msra.mxu0 %v14045_v33 }
  0xfb   : > { %12045 = vmatprep.subr.msk.mxu0 %vm701_vm1, %v14059_v37 }
  0xfd   : > { %12043 = vmatmul.mubr.msk.f32.vlgmr.msra.gmra.mrb[6].mxu0 %vm612_vm2, %v12014_v26  ;;  %v14181_v26 = vpack.c.bf16 %v10928_v21, %v10927_v20 }
  0xfe   : > { %12047 = vmatprep.mubr.msk.f32.mxu0 %vm694_vm3, %v14043_v31  ;;  %12046 = vmatpush3.msk.msra.mxu0 %vm701_vm1, %v14059_v37 }
  0xff   : > { %13097 = vmatprep.subr.bf16.mxu0 %v14070_v40 }
 0x105   : > { %12048 = vmatmul.mubr.msk.f32.vlgmr.msra.gmra.mrb[6].mxu0 %vm694_vm3, %v14035_v28 }
 0x106   : > { %13099 = vmatpush3.bf16.msra.mxu0 %v14070_v40  ;;  %12058 = vmatprep.mubr.msk.f32.mxu0 %vm612_vm2, %v603_v34  ;;  %v10932_v34 = vld [vmem:[%s15551_s7 + $0x58] sm:$0xff] }
 0x107   : > { %13101 = vmatprep.subr.bf16.mxu0 %v14084_v43 }
 0x10a   : > { %13103 = vmatpush3.bf16.msra.mxu0 %v14084_v43 }
 0x10b   : > { %12061 = vmatprep.subr.msk.mxu0 %vm701_vm1, %v14094_v44 }
 0x10d   : > { %12059 = vmatmul.mubr.msk.f32.vlgmr.msra.gmra.mrb[6].mxu0 %vm612_vm2, %v12017_v32  ;;  %v10931_v32 = vld [vmem:[%s15551_s7 + $0x50] sm:$0xff] }
 0x10e   : > { %12063 = vmatprep.mubr.msk.f32.mxu0 %vm694_vm3, %v14049_v36  ;;  %12062 = vmatpush3.msk.msra.mxu0 %vm701_vm1, %v14094_v44  ;;  %v14216_v38 = vpack.c.bf16 %v10932_v34, %v10931_v32 }
 0x115   : > { %12064 = vmatmul.mubr.msk.f32.vlgmr.msra.gmra.mrb[6].mxu0 %vm694_vm3, %v14047_v35 }
 0x116   : > { %12144 = vmatprep.mubr.msk.f32.mxu0 %vm403_vm0, %v13910_v0 }
 0x1e8   : > { %v12065_v46 = vpop.f32.mrb[6].mxu0 }
 0x1e9   : > { %v1121_v47 = vadd.f32 %v12065_v46, %v14111_v45  ;;  %v1103_v48 = vpop.f32.mrb[7].mxu0 }
 0x1ea   : > { %v1120_v49 = vadd.f32 %v14111_v45, %v1103_v48 }
 0x1eb   : > { %v10962_v50 = vmul.f32 -1.442695, %v1121_v47  ;;  %v1725_v47 = vpop.permute.xlu0 %1724 }
 0x1ec   : > { %v10961_v51 = vmul.f32 -1.442695, %v1120_v49 }
 0x1ed   : > { %13722 = vpow2.f32 %v10962_v50 }
 0x1ee   : > { %13724 = vpow2.f32 %v10961_v51 }
 0x1f7   : > { %v13723_v52 = vpop.eup %13722 }
 0x1f8   : > { %v13725_v53 = vpop.eup %13724  ;;  %v1129_v54 = vadd.f32 1.0, %v13723_v52  ;;  %v1727_v52 = vpop.permute.xlu0 %1726 }
 0x1f9   : > { %v1128_v55 = vadd.f32 1.0, %v13725_v53  ;;  %v10985_v53 = vld [vmem:[%s13925_s17 + $0x10] sm:$0xff] }
 0x1fa   : > { %13726 = vrcp.f32 %v1129_v54  ;;  %v10986_v54 = vld [vmem:[%s13925_s17 + $0x18] sm:$0xff] }
 0x1fb   : > { %13728 = vrcp.f32 %v1128_v55  ;;  %v13132_v59 = vpack.c.bf16 %v10986_v54, %v10985_v53 }
 0x204   : > { %v14115_v56 = vpop.eup %13726 }
 0x205   : > { %v14117_v57 = vpop.eup %13728  ;;  %v1135_v58 = vmul.f32 %v14115_v56, %v13938_v4  ;;  %v14138_v4 = vpack.c.bf16 %v388_v2, %v387_v1 }
 0x206   : > { %v1134_v61 = vmul.f32 %v14117_v57, %v13936_v3  ;;  %v14156_v3 = vld [vmem:[%s15550_s6] sm:$0xf]  ;;  %v1732_v48 = vsub.f32 1.0, %v14117_v57  ;;  %v1730_v50 = vmul.f32 %v14117_v57, %v1725_v47 }
 0x208   : > { %v13104_v62 = vpack.c.bf16 %v1135_v58, %v1134_v61  ;;  %v1733_v58 = vsub.f32 1.0, %v14115_v56  ;;  %v1731_v61 = vmul.f32 %v14115_v56, %v1727_v52 }
 0x20a   : > { %13105 = vmatprep.subr.bf16.mxu1 %v13104_v62 }
 0x20b   : > { %13107 = vmatpush3.bf16.msra.mxu1 %v13104_v62 }
 0x20c   : > { %13109 = vmatprep.subr.bf16.mxu1 %v14129_v63 }
 0x20e   : > { %12071 = vmatmul.mubr.msk.f32.vlgmr.msra.gmra.mrb[6].mxu1 %vm403_vm0, %v13955_v12 }
 0x20f   : > { %12073 = vmatprep.mubr.msk.f32.mxu1 %vm403_vm0, %v13960_v13  ;;  %13111 = vmatpush3.bf16.msra.mxu1 %v14129_v63 }
 0x210   : > { %13113 = vmatprep.subr.bf16.mxu1 %v14138_v4 }
 0x212   : > { %12074 = vmatmul.mubr.msk.f32.gmra.mrb[8].mxu1 %vm403_vm0, %v13974_v15 }
 0x213   : > { %12076 = vmatprep.mubr.msk.f32.mxu1 %vm403_vm0, %v13981_v16  ;;  %13115 = vmatpush3.bf16.msra.mxu1 %v14138_v4 }
 0x214   : > { %12090 = vmatprep.subr.msk.mxu1 %vm701_vm1, %v14156_v3 }
 0x216   : > { %12077 = vmatmul.mubr.msk.f32.gmra.mrb[10].mxu1 %vm403_vm0, %v13994_v17 }
 0x2e1   : > { %v12072_v7 = vpop.f32.mrb[6].mxu1 }
 0x2e2   : > { %v1202_v8 = vpop.f32.mrb[7].mxu1 }
 0x2e3   : > { %12087 = vmatprep.mubr.msk.f32.mxu1 %vm612_vm2, %v1202_v8 }
 0x2e4   : > { %12088 = vmatmul.mubr.msk.f32.vlgmr.msra.gmra.mrb[12].mxu1 %vm612_vm2, %v12072_v7 }
 0x2e5   : > { %12092 = vmatprep.mubr.msk.f32.mxu1 %vm694_vm3, %v14027_v25  ;;  %12091 = vmatpush3.msk.msra.mxu1 %vm701_vm1, %v14156_v3  ;;  %v12075_v11 = vpop.f32.mrb[8].mxu1  ;;  %v14191_v25 = vld [vmem:[%s15550_s6 + $0x4] sm:$0xf] }
 0x2e6   : > { %13117 = vmatprep.subr.bf16.mxu1 %v14166_v10  ;;  %v1212_v19 = vpop.f32.mrb[9].mxu1 }
 0x2e9   : > { %v12078_v22 = vpop.f32.mrb[10].mxu1 }
 0x2ea   : > { %v1222_v27 = vpop.f32.mrb[11].mxu1 }
 0x2ec   : > { %12093 = vmatmul.mubr.msk.f32.vlgmr.msra.gmra.mrb[12].mxu1 %vm694_vm3, %v14022_v23  ;;  %v14202_v23 = vpack.c.bf16 %v10930_v30, %v10929_v29 }
 0x2ed   : > { %13119 = vmatpush3.bf16.msra.mxu1 %v14166_v10  ;;  %12103 = vmatprep.mubr.msk.f32.mxu1 %vm612_vm2, %v1212_v19 }
 0x2ee   : > { %13121 = vmatprep.subr.bf16.mxu1 %v14181_v26 }
 0x2f1   : > { %13123 = vmatpush3.bf16.msra.mxu1 %v14181_v26 }
 0x2f2   : > { %12106 = vmatprep.subr.msk.mxu1 %vm701_vm1, %v14191_v25 }
 0x2f4   : > { %12104 = vmatmul.mubr.msk.f32.vlgmr.msra.gmra.mrb[12].mxu1 %vm612_vm2, %v12075_v11 }
 0x2f5   : > { %12108 = vmatprep.mubr.msk.f32.mxu1 %vm694_vm3, %v14043_v31  ;;  %12107 = vmatpush3.msk.msra.mxu1 %vm701_vm1, %v14191_v25  ;;  %v14226_v31 = vld [vmem:[%s15550_s6 + $0x8] sm:$0xf] }
 0x2f6   : > { %13125 = vmatprep.subr.bf16.mxu1 %v14202_v23 }
 0x2fc   : > { %12109 = vmatmul.mubr.msk.f32.vlgmr.msra.gmra.mrb[12].mxu1 %vm694_vm3, %v14035_v28  ;;  %v14243_v28 = vld [vmem:[%s15552_s8] ss:$0 sm:$0xff] }
 0x2fd   : > { %13127 = vmatpush3.bf16.msra.mxu1 %v14202_v23  ;;  %12119 = vmatprep.mubr.msk.f32.mxu1 %vm612_vm2, %v1222_v27 }
 0x2fe   : > { %13129 = vmatprep.subr.bf16.mxu1 %v14216_v38 }
 0x301   : > { %13131 = vmatpush3.bf16.msra.mxu1 %v14216_v38 }
 0x302   : > { %12122 = vmatprep.subr.msk.mxu1 %vm701_vm1, %v14226_v31 }
 0x304   : > { %12120 = vmatmul.mubr.msk.f32.vlgmr.msra.gmra.mrb[12].mxu1 %vm612_vm2, %v12078_v22 }
 0x305   : > { %12124 = vmatprep.mubr.msk.f32.mxu1 %vm694_vm3, %v14049_v36  ;;  %12123 = vmatpush3.msk.msra.mxu1 %vm701_vm1, %v14226_v31 }
 0x306   : > { %13133 = vmatprep.subr.bf16.mxu1 %v13132_v59 }
 0x30c   : > { %12125 = vmatmul.mubr.msk.f32.vlgmr.msra.gmra.mrb[12].mxu1 %vm694_vm3, %v14047_v35 }
 0x30d   : > { %12131 = vmatprep.mubr.msk.f32.mxu1 %vm403_vm0, %v13910_v0  ;;  %13135 = vmatpush3.bf16.msra.mxu1 %v13132_v59 }
 0x30e   : > { %13141 = vmatprep.subr.bf16.mxu1 %v13944_v9 }
 0x310   : > { %12132 = vmatmul.mubr.msk.f32.vlgmr.msra.gmra.mrb[14].mxu1 %vm403_vm0, %v13955_v12 }
 0x311   : > { %12134 = vmatprep.mubr.msk.f32.mxu1 %vm403_vm0, %v13960_v13  ;;  %13143 = vmatpush3.bf16.msra.mxu1 %v13944_v9 }
 0x312   : > { %13145 = vmatprep.subr.bf16.mxu1 %v13963_v14 }
 0x314   : > { %12135 = vmatmul.mubr.msk.f32.gmra.mrb[16].mxu1 %vm403_vm0, %v13974_v15 }
 0x315   : > { %12137 = vmatprep.mubr.msk.f32.mxu1 %vm403_vm0, %v13981_v16  ;;  %13147 = vmatpush3.bf16.msra.mxu1 %v13963_v14 }
 0x316   : > { %12164 = vmatprep.subr.msk.mxu1 %vm701_vm1, %v14008_v18 }
 0x318   : > { %12138 = vmatmul.mubr.msk.f32.gmra.mrb[18].mxu1 %vm403_vm0, %v13994_v17 }
 0x3df   : > { %v12126_v39 = vpop.f32.mrb[12].mxu1 }
 0x3e0   : > { %v1701_v41 = vpop.f32.mrb[13].mxu1  ;;  %v1719_v42 = vadd.f32 %v12126_v39, %v14243_v28 }
 0x3e1   : > { %v1718_v36 = vadd.f32 %v14243_v28, %v1701_v41 }
 0x3e3   : > { %13730 = vtanh.f32 %v1718_v36  ;;  %v14310_v5 = vpop.f32.mrb[14].mxu1 }
 0x3e4   : > { %13732 = vtanh.f32 %v1719_v42  ;;  %v14312_v6 = vpop.f32.mrb[15].mxu1 }
 0x3e7   : > { %v14314_v7 = vpop.f32.mrb[16].mxu1 }
 0x3e8   : > { %v14316_v8 = vpop.f32.mrb[17].mxu1 }
 0x3eb   : > { %v14318_v11 = vpop.f32.mrb[18].mxu1 }
 0x3ec   : > { %v14320_v19 = vpop.f32.mrb[19].mxu1 }
 0x3ed   : > { %v13731_v46 = vpop.eup %13730 }
 0x3ee   : > { %1736 = vrot.lane.b32.xlu1 %v13731_v46, %s13847_s24  ;;  %v13733_v35 = vpop.eup %13732 }
 0x3f2   : > { %1738 = vrot.lane.b32.xlu1 %v13733_v35, %s13847_s24 }
 0x460   : > { %v1737_v49 = vpop.permute.xlu1 %1736 }
 0x461   : > { %v1742_v51 = vmul.f32 %v1737_v49, %v1732_v48 }
 0x463   : > { %v14253_v55 = vadd.f32 %v1742_v51, %v1730_v50 }
 0x464   : > { %v1739_v60 = vpop.permute.xlu1 %1738 }
 0x465   : > { %v1743_v62 = vmul.f32 %v1739_v60, %v1733_v58  ;;  %1748 = vrot.lane.b32.xlu0 %v14253_v55, %s13848_s12 }
 0x467   : > { %v14259_v57 = vadd.f32 %v1743_v62, %v1731_v61 }
 0x469   : > { %1750 = vrot.lane.b32.xlu1 %v14259_v57, %s13848_s12 }
 0x4d7   : > { %v14286_v56 = vpop.permute.xlu0 %1748 }
 0x4d8   : > { %1754 = vst.msk [vmem:[%s14284_s16] sm:$0xff] %vm612_vm2, %v14286_v56 }
 0x4db   : > { %v14291_v1 = vpop.permute.xlu1 %1750 }
 0x4dc   : > { %1755 = vst.msk [vmem:[%s14284_s16 + $0x8] sm:$0xff] %vm612_vm2, %v14291_v1  ;;  %v13136_v2 = vpack.c.bf16 %v14291_v1, %v14286_v56 }
 0x4de   : > { %13137 = vmatprep.subr.bf16.mxu0 %v13136_v2 }
 0x4df   : > { %13139 = vmatpush3.bf16.msra.mxu0 %v13136_v2 }
 0x4e2   : > { %12145 = vmatmul.mubr.msk.f32.vlgmr.msra.gmra.mrb[8].mxu0 %vm403_vm0, %v13955_v12 }
 0x4e3   : > { %12147 = vmatprep.mubr.msk.f32.mxu0 %vm403_vm0, %v13960_v13 }
 0x4e6   : > { %12148 = vmatmul.mubr.msk.f32.gmra.mrb[10].mxu0 %vm403_vm0, %v13974_v15 }
 0x4e7   : > { %12150 = vmatprep.mubr.msk.f32.mxu0 %vm403_vm0, %v13981_v16 }
 0x4ea   : > { %12151 = vmatmul.mubr.msk.f32.gmra.mrb[12].mxu0 %vm403_vm0, %v13994_v17 }
 0x4eb   : > { %12205 = vmatprep.mubr.msk.f32.mxu0 %vm403_vm0, %v13910_v0 }
 0x5b5   : > { %v12146_v20 = vpop.f32.mrb[8].mxu0 }
 0x5b6   : > { %v1920_v21 = vpop.f32.mrb[9].mxu0 }
 0x5b7   : > { %12161 = vmatprep.mubr.msk.f32.mxu1 %vm612_vm2, %v1920_v21 }
 0x5b8   : > { %12162 = vmatmul.mubr.msk.f32.vlgmr.msra.gmra.mrb[20].mxu1 %vm612_vm2, %v12146_v20 }
 0x5b9   : > { %12166 = vmatprep.mubr.msk.f32.mxu1 %vm694_vm3, %v14312_v6  ;;  %12165 = vmatpush3.msk.msra.mxu1 %vm701_vm1, %v14008_v18  ;;  %v12149_v22 = vpop.f32.mrb[10].mxu0 }
 0x5ba   : > { %13149 = vmatprep.subr.bf16.mxu1 %v14024_v24  ;;  %v1930_v27 = vpop.f32.mrb[11].mxu0 }
 0x5bd   : > { %v12152_v29 = vpop.f32.mrb[12].mxu0 }
 0x5be   : > { %v1940_v30 = vpop.f32.mrb[13].mxu0 }
 0x5c0   : > { %12167 = vmatmul.mubr.msk.f32.vlgmr.msra.gmra.mrb[20].mxu1 %vm694_vm3, %v14310_v5 }
 0x5c1   : > { %13151 = vmatpush3.bf16.msra.mxu1 %v14024_v24  ;;  %12177 = vmatprep.mubr.msk.f32.mxu1 %vm612_vm2, %v1930_v27 }
 0x5c2   : > { %13153 = vmatprep.subr.bf16.mxu1 %v14045_v33 }
 0x5c5   : > { %13155 = vmatpush3.bf16.msra.mxu1 %v14045_v33 }
 0x5c6   : > { %12180 = vmatprep.subr.msk.mxu1 %vm701_vm1, %v14059_v37 }
 0x5c8   : > { %12178 = vmatmul.mubr.msk.f32.vlgmr.msra.gmra.mrb[20].mxu1 %vm612_vm2, %v12149_v22 }
 0x5c9   : > { %12182 = vmatprep.mubr.msk.f32.mxu1 %vm694_vm3, %v14316_v8  ;;  %12181 = vmatpush3.msk.msra.mxu1 %vm701_vm1, %v14059_v37 }
 0x5ca   : > { %13157 = vmatprep.subr.bf16.mxu1 %v14070_v40 }
 0x5d0   : > { %12183 = vmatmul.mubr.msk.f32.vlgmr.msra.gmra.mrb[20].mxu1 %vm694_vm3, %v14314_v7 }
 0x5d1   : > { %13159 = vmatpush3.bf16.msra.mxu1 %v14070_v40  ;;  %12193 = vmatprep.mubr.msk.f32.mxu1 %vm612_vm2, %v1940_v30 }
 0x5d2   : > { %13161 = vmatprep.subr.bf16.mxu1 %v14084_v43 }
 0x5d5   : > { %13163 = vmatpush3.bf16.msra.mxu1 %v14084_v43 }
 0x5d6   : > { %12196 = vmatprep.subr.msk.mxu1 %vm701_vm1, %v14094_v44 }
 0x5d8   : > { %12194 = vmatmul.mubr.msk.f32.vlgmr.msra.gmra.mrb[20].mxu1 %vm612_vm2, %v12152_v29 }
 0x5d9   : > { %12198 = vmatprep.mubr.msk.f32.mxu1 %vm694_vm3, %v14320_v19  ;;  %12197 = vmatpush3.msk.msra.mxu1 %vm701_vm1, %v14094_v44 }
 0x5e0   : > { %12199 = vmatmul.mubr.msk.f32.vlgmr.msra.gmra.mrb[20].mxu1 %vm694_vm3, %v14318_v11 }
 0x5e1   : > { %12266 = vmatprep.mubr.msk.f32.mxu1 %vm403_vm0, %v13910_v0 }
 0x6b3   : > { %v12200_v32 = vpop.f32.mrb[20].mxu1 }
 0x6b4   : > { %v2440_v34 = vadd.f32 %v12200_v32, %v14111_v45  ;;  %v2428_v39 = vpop.f32.mrb[21].mxu1 }
 0x6b5   : > { %v2439_v41 = vadd.f32 %v14111_v45, %v2428_v39 }
 0x6b6   : > { %v11015_v36 = vmul.f32 -1.442695, %v2440_v34 }
 0x6b7   : > { %v11014_v42 = vmul.f32 -1.442695, %v2439_v41 }
 0x6b8   : > { %13734 = vpow2.f32 %v11015_v36 }
 0x6b9   : > { %13736 = vpow2.f32 %v11014_v42 }
 0x6c2   : > { %v13735_v46 = vpop.eup %13734 }
 0x6c3   : > { %v13737_v35 = vpop.eup %13736  ;;  %v2448_v47 = vadd.f32 1.0, %v13735_v46 }
 0x6c4   : > { %v2447_v48 = vadd.f32 1.0, %v13737_v35 }
 0x6c5   : > { %13738 = vrcp.f32 %v2448_v47 }
 0x6c6   : > { %13740 = vrcp.f32 %v2447_v48 }
 0x6cf   : > { %v14362_v49 = vpop.eup %13738 }
 0x6d0   : > { %v14364_v50 = vpop.eup %13740  ;;  %v2454_v51 = vmul.f32 %v14362_v49, %v14291_v1  ;;  %v3029_v20 = vsub.f32 1.0, %v14362_v49  ;;  %v3027_v27 = vmul.f32 %v14362_v49, %v14259_v57 }
 0x6d1   : > { %v2453_v52 = vmul.f32 %v14364_v50, %v14286_v56  ;;  %v3028_v22 = vsub.f32 1.0, %v14364_v50  ;;  %v3026_v32 = vmul.f32 %v14364_v50, %v14253_v55 }
 0x6d3   : > { %v13164_v53 = vpack.c.bf16 %v2454_v51, %v2453_v52 }
 0x6d5   : > { %13165 = vmatprep.subr.bf16.mxu0 %v13164_v53 }
 0x6d6   : > { %13167 = vmatpush3.bf16.msra.mxu0 %v13164_v53 }
 0x6d7   : > { %13169 = vmatprep.subr.bf16.mxu0 %v14129_v63 }
 0x6d9   : > { %12206 = vmatmul.mubr.msk.f32.vlgmr.msra.gmra.mrb[14].mxu0 %vm403_vm0, %v13955_v12 }
 0x6da   : > { %12208 = vmatprep.mubr.msk.f32.mxu0 %vm403_vm0, %v13960_v13  ;;  %13171 = vmatpush3.bf16.msra.mxu0 %v14129_v63 }
 0x6db   : > { %13173 = vmatprep.subr.bf16.mxu0 %v14138_v4 }
 0x6dd   : > { %12209 = vmatmul.mubr.msk.f32.gmra.mrb[16].mxu0 %vm403_vm0, %v13974_v15 }
 0x6de   : > { %12211 = vmatprep.mubr.msk.f32.mxu0 %vm403_vm0, %v13981_v16  ;;  %13175 = vmatpush3.bf16.msra.mxu0 %v14138_v4 }
 0x6df   : > { %12225 = vmatprep.subr.msk.mxu0 %vm701_vm1, %v14156_v3 }
 0x6e1   : > { %12212 = vmatmul.mubr.msk.f32.gmra.mrb[18].mxu0 %vm403_vm0, %v13994_v17 }
 0x7ac   : > { %v12207_v54 = vpop.f32.mrb[14].mxu0 }
 0x7ad   : > { %v2521_v58 = vpop.f32.mrb[15].mxu0 }
 0x7ae   : > { %12222 = vmatprep.mubr.msk.f32.mxu0 %vm612_vm2, %v2521_v58 }
 0x7af   : > { %12223 = vmatmul.mubr.msk.f32.vlgmr.msra.gmra.mrb[20].mxu0 %vm612_vm2, %v12207_v54 }
 0x7b0   : > { %12227 = vmatprep.mubr.msk.f32.mxu0 %vm694_vm3, %v14312_v6  ;;  %12226 = vmatpush3.msk.msra.mxu0 %vm701_vm1, %v14156_v3  ;;  %v12210_v59 = vpop.f32.mrb[16].mxu0  ;;  %v11039_v6 = vld [vmem:[%s13925_s17 + $0x20] sm:$0xff] }
 0x7b1   : > { %13177 = vmatprep.subr.bf16.mxu0 %v14166_v10  ;;  %v2531_v60 = vpop.f32.mrb[17].mxu0 }
 0x7b4   : > { %v12213_v61 = vpop.f32.mrb[18].mxu0 }
 0x7b5   : > { %v2541_v62 = vpop.f32.mrb[19].mxu0 }
 0x7b7   : > { %12228 = vmatmul.mubr.msk.f32.vlgmr.msra.gmra.mrb[20].mxu0 %vm694_vm3, %v14310_v5 }
 0x7b8   : > { %13179 = vmatpush3.bf16.msra.mxu0 %v14166_v10  ;;  %12238 = vmatprep.mubr.msk.f32.mxu0 %vm612_vm2, %v2531_v60 }
 0x7b9   : > { %13181 = vmatprep.subr.bf16.mxu0 %v14181_v26 }
 0x7bc   : > { %13183 = vmatpush3.bf16.msra.mxu0 %v14181_v26 }
 0x7bd   : > { %12241 = vmatprep.subr.msk.mxu0 %vm701_vm1, %v14191_v25 }
 0x7bf   : > { %12239 = vmatmul.mubr.msk.f32.vlgmr.msra.gmra.mrb[20].mxu0 %vm612_vm2, %v12210_v59 }
 0x7c0   : > { %12243 = vmatprep.mubr.msk.f32.mxu0 %vm694_vm3, %v14316_v8  ;;  %12242 = vmatpush3.msk.msra.mxu0 %vm701_vm1, %v14191_v25 }
 0x7c1   : > { %13185 = vmatprep.subr.bf16.mxu0 %v14202_v23 }
 0x7c7   : > { %12244 = vmatmul.mubr.msk.f32.vlgmr.msra.gmra.mrb[20].mxu0 %vm694_vm3, %v14314_v7  ;;  %v11040_v7 = vld [vmem:[%s13925_s17 + $0x28] sm:$0xff] }
 0x7c8   : > { %13187 = vmatpush3.bf16.msra.mxu0 %v14202_v23  ;;  %12254 = vmatprep.mubr.msk.f32.mxu0 %vm612_vm2, %v2541_v62  ;;  %v13192_v8 = vpack.c.bf16 %v11040_v7, %v11039_v6 }
 0x7c9   : > { %13189 = vmatprep.subr.bf16.mxu0 %v14216_v38 }
 0x7ca   : > { %13193 = vmatprep.subr.bf16.mxu1 %v13192_v8 }
 0x7cb   : > { %13195 = vmatpush3.bf16.msra.mxu1 %v13192_v8 }
 0x7cc   : > { %13191 = vmatpush3.bf16.msra.mxu0 %v14216_v38 }
 0x7cd   : > { %12257 = vmatprep.subr.msk.mxu0 %vm701_vm1, %v14226_v31 }
 0x7ce   : > { %12267 = vmatmul.mubr.msk.f32.vlgmr.msra.gmra.mrb[22].mxu1 %vm403_vm0, %v13955_v12 }
 0x7cf   : > { %12255 = vmatmul.mubr.msk.f32.vlgmr.msra.gmra.mrb[20].mxu0 %vm612_vm2, %v12213_v61  ;;  %12269 = vmatprep.mubr.msk.f32.mxu1 %vm403_vm0, %v13960_v13 }
 0x7d0   : > { %12259 = vmatprep.mubr.msk.f32.mxu0 %vm694_vm3, %v14320_v19  ;;  %12258 = vmatpush3.msk.msra.mxu0 %vm701_vm1, %v14226_v31 }
 0x7d1   : > { %13201 = vmatprep.subr.bf16.mxu0 %v13944_v9 }
 0x7d2   : > { %12270 = vmatmul.mubr.msk.f32.gmra.mrb[24].mxu1 %vm403_vm0, %v13974_v15 }
 0x7d3   : > { %12272 = vmatprep.mubr.msk.f32.mxu1 %vm403_vm0, %v13981_v16 }
 0x7d6   : > { %12273 = vmatmul.mubr.msk.f32.gmra.mrb[26].mxu1 %vm403_vm0, %v13994_v17 }
 0x7d7   : > { %12260 = vmatmul.mubr.msk.f32.vlgmr.msra.gmra.mrb[20].mxu0 %vm694_vm3, %v14318_v11  ;;  %12279 = vmatprep.mubr.msk.f32.mxu1 %vm403_vm0, %v13910_v0 }
 0x7d8   : > { %13203 = vmatpush3.bf16.msra.mxu0 %v13944_v9 }
 0x7d9   : > { %13205 = vmatprep.subr.bf16.mxu0 %v13963_v14 }
 0x7dc   : > { %13207 = vmatpush3.bf16.msra.mxu0 %v13963_v14 }
 0x7dd   : > { %12299 = vmatprep.subr.msk.mxu0 %vm701_vm1, %v14008_v18 }
 0x8a1   : > { %v14460_v36 = vpop.f32.mrb[22].mxu1 }
 0x8a2   : > { %v14462_v57 = vpop.f32.mrb[23].mxu1 }
 0x8a5   : > { %v14464_v42 = vpop.f32.mrb[24].mxu1 }
 0x8a6   : > { %v14466_v46 = vpop.f32.mrb[25].mxu1 }
 0x8a9   : > { %v14468_v55 = vpop.f32.mrb[26].mxu1 }
 0x8aa   : > { %v12261_v56 = vpop.f32.mrb[20].mxu0  ;;  %v14470_v35 = vpop.f32.mrb[27].mxu1 }
 0x8ab   : > { %v3023_v1 = vadd.f32 %v12261_v56, %v14243_v28  ;;  %v3011_v2 = vpop.f32.mrb[21].mxu0 }
 0x8ac   : > { %v3022_v5 = vadd.f32 %v14243_v28, %v3011_v2 }
 0x8ad   : > { %13742 = vtanh.f32 %v3023_v1 }
 0x8ae   : > { %13744 = vtanh.f32 %v3022_v5 }
 0x8b7   : > { %v13743_v11 = vpop.eup %13742 }
 0x8b8   : > { %v13745_v19 = vpop.eup %13744  ;;  %3034 = vrot.lane.b32.xlu1 %v13743_v11, %s13847_s24 }
 0x8b9   : > { %3032 = vrot.lane.b32.xlu0 %v13745_v19, %s13847_s24 }
 0x92a   : > { %v3035_v21 = vpop.permute.xlu1 %3034 }
 0x92b   : > { %v3039_v29 = vmul.f32 %v3035_v21, %v3029_v20  ;;  %v3033_v30 = vpop.permute.xlu0 %3032 }
 0x92c   : > { %v3038_v34 = vmul.f32 %v3033_v30, %v3028_v22 }
 0x92d   : > { %v14452_v39 = vadd.f32 %v3039_v29, %v3027_v27 }
 0x92e   : > { %v14454_v41 = vadd.f32 %v3038_v34, %v3026_v32 }
 0x92f   : > { %3046 = vrot.lane.b32.xlu1 %v14452_v39, %s13848_s12 }
 0x930   : > { %3044 = vrot.lane.b32.xlu0 %v14454_v41, %s13848_s12 }
 0x9a1   : > { %v3047_v47 = vpop.permute.xlu1 %3046 }
 0x9a2   : > { %11038 = vst.msk [vmem:[%s14284_s16 + $0x18] sm:$0xff] %vm612_vm2, %v3047_v47  ;;  %v3045_v48 = vpop.permute.xlu0 %3044 }
 0x9a3   : > { %11037 = vst.msk [vmem:[%s14284_s16 + $0x10] sm:$0xff] %vm612_vm2, %v3045_v48  ;;  %v13196_v49 = vpack.c.bf16 %v3047_v47, %v3045_v48 }
 0x9a5   : > { %13197 = vmatprep.subr.bf16.mxu1 %v13196_v49 }
 0x9a6   : > { %13199 = vmatpush3.bf16.msra.mxu1 %v13196_v49 }
 0x9a9   : > { %12280 = vmatmul.mubr.msk.f32.vlgmr.msra.gmra.mrb[28].mxu1 %vm403_vm0, %v13955_v12 }
 0x9aa   : > { %12282 = vmatprep.mubr.msk.f32.mxu1 %vm403_vm0, %v13960_v13 }
 0x9ad   : > { %12283 = vmatmul.mubr.msk.f32.gmra.mrb[30].mxu1 %vm403_vm0, %v13974_v15 }
 0x9ae   : > { %12285 = vmatprep.mubr.msk.f32.mxu1 %vm403_vm0, %v13981_v16 }
 0x9b1   : > { %12286 = vmatmul.mubr.msk.f32.gmra.mrb[32].mxu1 %vm403_vm0, %v13994_v17 }
 0x9b2   : > { %12340 = vmatprep.mubr.msk.f32.mxu1 %vm403_vm0, %v13910_v0 }
 0xa7c   : > { %v12281_v50 = vpop.f32.mrb[28].mxu1 }
 0xa7d   : > { %v3217_v51 = vpop.f32.mrb[29].mxu1 }
 0xa7e   : > { %12296 = vmatprep.mubr.msk.f32.mxu0 %vm612_vm2, %v3217_v51 }
 0xa7f   : > { %12297 = vmatmul.mubr.msk.f32.vlgmr.msra.gmra.mrb[22].mxu0 %vm612_vm2, %v12281_v50 }
 0xa80   : > { %12301 = vmatprep.mubr.msk.f32.mxu0 %vm694_vm3, %v14462_v57  ;;  %12300 = vmatpush3.msk.msra.mxu0 %vm701_vm1, %v14008_v18  ;;  %v12284_v52 = vpop.f32.mrb[30].mxu1 }
 0xa81   : > { %13209 = vmatprep.subr.bf16.mxu0 %v14024_v24  ;;  %v3227_v53 = vpop.f32.mrb[31].mxu1 }
 0xa84   : > { %v12287_v54 = vpop.f32.mrb[32].mxu1 }
 0xa85   : > { %v3237_v58 = vpop.f32.mrb[33].mxu1 }
 0xa87   : > { %12302 = vmatmul.mubr.msk.f32.vlgmr.msra.gmra.mrb[22].mxu0 %vm694_vm3, %v14460_v36 }
 0xa88   : > { %13211 = vmatpush3.bf16.msra.mxu0 %v14024_v24  ;;  %12312 = vmatprep.mubr.msk.f32.mxu0 %vm612_vm2, %v3227_v53 }
 0xa89   : > { %13213 = vmatprep.subr.bf16.mxu0 %v14045_v33 }
 0xa8c   : > { %13215 = vmatpush3.bf16.msra.mxu0 %v14045_v33 }
 0xa8d   : > { %12315 = vmatprep.subr.msk.mxu0 %vm701_vm1, %v14059_v37 }
 0xa8f   : > { %12313 = vmatmul.mubr.msk.f32.vlgmr.msra.gmra.mrb[22].mxu0 %vm612_vm2, %v12284_v52 }
 0xa90   : > { %12317 = vmatprep.mubr.msk.f32.mxu0 %vm694_vm3, %v14466_v46  ;;  %12316 = vmatpush3.msk.msra.mxu0 %vm701_vm1, %v14059_v37 }
 0xa91   : > { %13217 = vmatprep.subr.bf16.mxu0 %v14070_v40 }
 0xa97   : > { %12318 = vmatmul.mubr.msk.f32.vlgmr.msra.gmra.mrb[22].mxu0 %vm694_vm3, %v14464_v42 }
 0xa98   : > { %13219 = vmatpush3.bf16.msra.mxu0 %v14070_v40  ;;  %12328 = vmatprep.mubr.msk.f32.mxu0 %vm612_vm2, %v3237_v58 }
 0xa99   : > { %13221 = vmatprep.subr.bf16.mxu0 %v14084_v43 }
 0xa9c   : > { %13223 = vmatpush3.bf16.msra.mxu0 %v14084_v43 }
 0xa9d   : > { %12331 = vmatprep.subr.msk.mxu0 %vm701_vm1, %v14094_v44 }
 0xa9f   : > { %12329 = vmatmul.mubr.msk.f32.vlgmr.msra.gmra.mrb[22].mxu0 %vm612_vm2, %v12287_v54 }
 0xaa0   : > { %12333 = vmatprep.mubr.msk.f32.mxu0 %vm694_vm3, %v14470_v35  ;;  %12332 = vmatpush3.msk.msra.mxu0 %vm701_vm1, %v14094_v44 }
 0xaa7   : > { %12334 = vmatmul.mubr.msk.f32.vlgmr.msra.gmra.mrb[22].mxu0 %vm694_vm3, %v14468_v55 }
 0xaa8   : > { %12401 = vmatprep.mubr.msk.f32.mxu0 %vm403_vm0, %v13910_v0 }
 0xb7a   : > { %v12335_v59 = vpop.f32.mrb[22].mxu0 }
 0xb7b   : > { %v3737_v60 = vadd.f32 %v12335_v59, %v14111_v45  ;;  %v3725_v61 = vpop.f32.mrb[23].mxu0 }
 0xb7c   : > { %v3736_v62 = vadd.f32 %v14111_v45, %v3725_v61 }
 0xb7d   : > { %v11069_v56 = vmul.f32 -1.442695, %v3737_v60 }
 0xb7e   : > { %v11068_v1 = vmul.f32 -1.442695, %v3736_v62 }
 0xb7f   : > { %13746 = vpow2.f32 %v11069_v56 }
 0xb80   : > { %13748 = vpow2.f32 %v11068_v1  ;;  %v14656_v1 = vld [vmem:[%s15544_s0 + $0x8] sm:$0xff] }
 0xb89   : > { %v13747_v2 = vpop.eup %13746 }
 0xb8a   : > { %v13749_v5 = vpop.eup %13748  ;;  %v3745_v6 = vadd.f32 1.0, %v13747_v2  ;;  %v14663_v2 = vld [vmem:[%s15544_s0 + $0x10] sm:$0xff] }
 0xb8b   : > { %v3744_v7 = vadd.f32 1.0, %v13749_v5  ;;  %v14670_v5 = vld [vmem:[%s15544_s0 + $0x18] sm:$0xff] }
 0xb8c   : > { %13750 = vrcp.f32 %v3745_v6  ;;  %v14677_v6 = vld [vmem:[%s15544_s0 + $0x20] sm:$0xff] }
 0xb8d   : > { %13752 = vrcp.f32 %v3744_v7  ;;  %v14684_v7 = vld [vmem:[%s15544_s0 + $0x28] sm:$0xff] }
 0xb96   : > { %v14528_v8 = vpop.eup %13750 }
 0xb97   : > { %v14530_v11 = vpop.eup %13752  ;;  %v3751_v0 = vmul.f32 %v14528_v8, %v3047_v47 }
 0xb98   : > { %v3750_v19 = vmul.f32 %v14530_v11, %v3045_v48  ;;  %v4325_v49 = vsub.f32 1.0, %v14530_v11 }
 0xb9a   : > { %v13224_v20 = vpack.c.bf16 %v3751_v0, %v3750_v19  ;;  %v14697_v0 = vld [vmem:[%s15547_s3] sm:$0xf] }
 0xb9c   : > { %13225 = vmatprep.subr.bf16.mxu1 %v13224_v20 }
 0xb9d   : > { %13227 = vmatpush3.bf16.msra.mxu1 %v13224_v20 }
 0xb9e   : > { %13229 = vmatprep.subr.bf16.mxu1 %v14129_v63 }
 0xba0   : > { %12341 = vmatmul.mubr.msk.f32.vlgmr.msra.gmra.mrb[34].mxu1 %vm403_vm0, %v13955_v12 }
 0xba1   : > { %12343 = vmatprep.mubr.msk.f32.mxu1 %vm403_vm0, %v13960_v13  ;;  %13231 = vmatpush3.bf16.msra.mxu1 %v14129_v63 }
 0xba2   : > { %13233 = vmatprep.subr.bf16.mxu1 %v14138_v4 }
 0xba4   : > { %12344 = vmatmul.mubr.msk.f32.gmra.mrb[36].mxu1 %vm403_vm0, %v13974_v15 }
 0xba5   : > { %12346 = vmatprep.mubr.msk.f32.mxu1 %vm403_vm0, %v13981_v16  ;;  %13235 = vmatpush3.bf16.msra.mxu1 %v14138_v4 }
 0xba6   : > { %12360 = vmatprep.subr.msk.mxu1 %vm701_vm1, %v14156_v3 }
 0xba8   : > { %12347 = vmatmul.mubr.msk.f32.gmra.mrb[38].mxu1 %vm403_vm0, %v13994_v17 }
 0xc73   : > { %v12342_v21 = vpop.f32.mrb[34].mxu1 }
 0xc74   : > { %v3818_v22 = vpop.f32.mrb[35].mxu1 }
 0xc75   : > { %12357 = vmatprep.mubr.msk.f32.mxu1 %vm612_vm2, %v3818_v22 }
 0xc76   : > { %12358 = vmatmul.mubr.msk.f32.vlgmr.msra.gmra.mrb[40].mxu1 %vm612_vm2, %v12342_v21 }
 0xc77   : > { %12362 = vmatprep.mubr.msk.f32.mxu1 %vm694_vm3, %v14462_v57  ;;  %12361 = vmatpush3.msk.msra.mxu1 %vm701_vm1, %v14156_v3  ;;  %v12345_v27 = vpop.f32.mrb[36].mxu1 }
 0xc78   : > { %13237 = vmatprep.subr.bf16.mxu1 %v14166_v10  ;;  %v3828_v29 = vpop.f32.mrb[37].mxu1 }
 0xc7b   : > { %v12348_v30 = vpop.f32.mrb[38].mxu1 }
 0xc7c   : > { %v3838_v32 = vpop.f32.mrb[39].mxu1 }
 0xc7e   : > { %12363 = vmatmul.mubr.msk.f32.vlgmr.msra.gmra.mrb[40].mxu1 %vm694_vm3, %v14460_v36 }
 0xc7f   : > { %13239 = vmatpush3.bf16.msra.mxu1 %v14166_v10  ;;  %12373 = vmatprep.mubr.msk.f32.mxu1 %vm612_vm2, %v3828_v29 }
 0xc80   : > { %13241 = vmatprep.subr.bf16.mxu1 %v14181_v26 }
 0xc83   : > { %13243 = vmatpush3.bf16.msra.mxu1 %v14181_v26 }
 0xc84   : > { %12376 = vmatprep.subr.msk.mxu1 %vm701_vm1, %v14191_v25 }
 0xc86   : > { %12374 = vmatmul.mubr.msk.f32.vlgmr.msra.gmra.mrb[40].mxu1 %vm612_vm2, %v12345_v27 }
 0xc87   : > { %12378 = vmatprep.mubr.msk.f32.mxu1 %vm694_vm3, %v14466_v46  ;;  %12377 = vmatpush3.msk.msra.mxu1 %vm701_vm1, %v14191_v25  ;;  %v11093_v46 = vld [vmem:[%s13925_s17 + $0x30] sm:$0xff] }
 0xc88   : > { %13245 = vmatprep.subr.bf16.mxu1 %v14202_v23 }
 0xc8e   : > { %12379 = vmatmul.mubr.msk.f32.vlgmr.msra.gmra.mrb[40].mxu1 %vm694_vm3, %v14464_v42 }
 0xc8f   : > { %13247 = vmatpush3.bf16.msra.mxu1 %v14202_v23  ;;  %12389 = vmatprep.mubr.msk.f32.mxu1 %vm612_vm2, %v3838_v32 }
 0xc90   : > { %13249 = vmatprep.subr.bf16.mxu1 %v14216_v38 }
 0xc93   : > { %13251 = vmatpush3.bf16.msra.mxu1 %v14216_v38 }
 0xc94   : > { %12392 = vmatprep.subr.msk.mxu1 %vm701_vm1, %v14226_v31 }
 0xc96   : > { %12390 = vmatmul.mubr.msk.f32.vlgmr.msra.gmra.mrb[40].mxu1 %vm612_vm2, %v12348_v30 }
 0xc97   : > { %12394 = vmatprep.mubr.msk.f32.mxu1 %vm694_vm3, %v14470_v35  ;;  %12393 = vmatpush3.msk.msra.mxu1 %vm701_vm1, %v14226_v31  ;;  %v11094_v35 = vld [vmem:[%s13925_s17 + $0x38] sm:$0xff] }
 0xc98   : > { %13261 = vmatprep.subr.bf16.mxu1 %v13944_v9 }
 0xc9e   : > { %12395 = vmatmul.mubr.msk.f32.vlgmr.msra.gmra.mrb[40].mxu1 %vm694_vm3, %v14468_v55  ;;  %v13252_v55 = vpack.c.bf16 %v11094_v35, %v11093_v46 }
 0xc9f   : > { %13263 = vmatpush3.bf16.msra.mxu1 %v13944_v9 }
 0xca0   : > { %13265 = vmatprep.subr.bf16.mxu1 %v13963_v14  ;;  %13253 = vmatprep.subr.bf16.mxu0 %v13252_v55 }
 0xca1   : > { %13255 = vmatpush3.bf16.msra.mxu0 %v13252_v55 }
 0xca3   : > { %13267 = vmatpush3.bf16.msra.mxu1 %v13963_v14 }
 0xca4   : > { %12434 = vmatprep.subr.msk.mxu1 %vm701_vm1, %v14008_v18  ;;  %12402 = vmatmul.mubr.msk.f32.vlgmr.msra.gmra.mrb[24].mxu0 %vm403_vm0, %v13955_v12  ;;  %v14611_v12 = vld [vmem:[%s15544_s0] sm:$0xff] }
 0xca5   : > { %12404 = vmatprep.mubr.msk.f32.mxu0 %vm403_vm0, %v13960_v13  ;;  %v4326_v13 = vsub.f32 1.0, %v14528_v8 }
 0xca8   : > { %12405 = vmatmul.mubr.msk.f32.gmra.mrb[26].mxu0 %vm403_vm0, %v13974_v15  ;;  %v4324_v15 = vmul.f32 %v14528_v8, %v14452_v39 }
 0xca9   : > { %12407 = vmatprep.mubr.msk.f32.mxu0 %vm403_vm0, %v13981_v16 }
 0xcac   : > { %12408 = vmatmul.mubr.msk.f32.gmra.mrb[28].mxu0 %vm403_vm0, %v13994_v17  ;;  %v4323_v17 = vmul.f32 %v14530_v11, %v14454_v41 }
 0xcad   : > { %12414 = vmatprep.mubr.msk.f32.mxu0 %vm403_vm0, %v14611_v12 }
 0xd71   : > { %v12396_v34 = vpop.f32.mrb[40].mxu1 }
 0xd72   : > { %v4320_v36 = vadd.f32 %v12396_v34, %v14243_v28  ;;  %v4308_v57 = vpop.f32.mrb[41].mxu1 }
 0xd73   : > { %v4319_v42 = vadd.f32 %v14243_v28, %v4308_v57 }
 0xd74   : > { %13754 = vtanh.f32 %v4320_v36 }
 0xd75   : > { %13756 = vtanh.f32 %v4319_v42 }
 0xd77   : > { %v14629_v54 = vpop.f32.mrb[24].mxu0 }
 0xd78   : > { %v14631_v39 = vpop.f32.mrb[25].mxu0 }
 0xd7b   : > { %v14633_v58 = vpop.f32.mrb[26].mxu0 }
 0xd7c   : > { %v14635_v59 = vpop.f32.mrb[27].mxu0 }
 0xd7e   : > { %v13755_v47 = vpop.eup %13754 }
 0xd7f   : > { %v13757_v48 = vpop.eup %13756  ;;  %4331 = vrot.lane.b32.xlu1 %v13755_v47, %s13847_s24  ;;  %v14637_v41 = vpop.f32.mrb[28].mxu0 }
 0xd80   : > { %4329 = vrot.lane.b32.xlu0 %v13757_v48, %s13847_s24  ;;  %v14639_v60 = vpop.f32.mrb[29].mxu0 }
 0xdf1   : > { %v4332_v18 = vpop.permute.xlu1 %4331 }
 0xdf2   : > { %v4336_v16 = vmul.f32 %v4332_v18, %v4326_v13  ;;  %v4330_v50 = vpop.permute.xlu0 %4329 }
 0xdf3   : > { %v4335_v51 = vmul.f32 %v4330_v50, %v4325_v49 }
 0xdf4   : > { %v14621_v52 = vadd.f32 %v4336_v16, %v4324_v15 }
 0xdf5   : > { %v14623_v53 = vadd.f32 %v4335_v51, %v4323_v17  ;;  %v11147_v17 = vld [vmem:[%s13925_s17 + $0x40] sm:$0xff]  ;;  %v11148_v51 = vld [vmem:[%s13925_s17 + $0x48] sm:$0xff] }
 0xdf6   : > { %4343 = vrot.lane.b32.xlu1 %v14621_v52, %s13848_s12 }
 0xdf7   : > { %4341 = vrot.lane.b32.xlu0 %v14623_v53, %s13848_s12 }
 0xe68   : > { %v14641_v61 = vpop.permute.xlu1 %4343 }
 0xe69   : > { %11092 = vst.msk [vmem:[%s14284_s16 + $0x28] sm:$0xff] %vm612_vm2, %v14641_v61  ;;  %v14646_v62 = vpop.permute.xlu0 %4341 }
 0xe6a   : > { %11091 = vst.msk [vmem:[%s14284_s16 + $0x20] sm:$0xff] %vm612_vm2, %v14646_v62  ;;  %v13256_v56 = vpack.c.bf16 %v14641_v61, %v14646_v62 }
 0xe6c   : > { %13257 = vmatprep.subr.bf16.mxu0 %v13256_v56 }
 0xe6d   : > { %13259 = vmatpush3.bf16.msra.mxu0 %v13256_v56 }
 0xe70   : > { %12415 = vmatmul.mubr.msk.f32.vlgmr.msra.gmra.mrb[30].mxu0 %vm403_vm0, %v14656_v1 }
 0xe71   : > { %12417 = vmatprep.mubr.msk.f32.mxu0 %vm403_vm0, %v14663_v2 }
 0xe74   : > { %12418 = vmatmul.mubr.msk.f32.gmra.mrb[32].mxu0 %vm403_vm0, %v14670_v5 }
 0xe75   : > { %12420 = vmatprep.mubr.msk.f32.mxu0 %vm403_vm0, %v14677_v6 }
 0xe78   : > { %12421 = vmatmul.mubr.msk.f32.gmra.mrb[34].mxu0 %vm403_vm0, %v14684_v7 }
 0xe79   : > { %12475 = vmatprep.mubr.msk.f32.mxu0 %vm403_vm0, %v14611_v12 }
 0xf43   : > { %v12416_v8 = vpop.f32.mrb[30].mxu0 }
 0xf44   : > { %v4514_v11 = vpop.f32.mrb[31].mxu0 }
 0xf45   : > { %12431 = vmatprep.mubr.msk.f32.mxu1 %vm612_vm2, %v4514_v11 }
 0xf46   : > { %12432 = vmatmul.mubr.msk.f32.vlgmr.msra.gmra.mrb[42].mxu1 %vm612_vm2, %v12416_v8 }
 0xf47   : > { %12436 = vmatprep.mubr.msk.f32.mxu1 %vm694_vm3, %v14631_v39  ;;  %12435 = vmatpush3.msk.msra.mxu1 %vm701_vm1, %v14697_v0  ;;  %v12419_v19 = vpop.f32.mrb[32].mxu0 }
 0xf48   : > { %13269 = vmatprep.subr.bf16.mxu1 %v14024_v24  ;;  %v4524_v20 = vpop.f32.mrb[33].mxu0 }
 0xf4b   : > { %v12422_v21 = vpop.f32.mrb[34].mxu0 }
 0xf4c   : > { %v4534_v22 = vpop.f32.mrb[35].mxu0 }
 0xf4e   : > { %12437 = vmatmul.mubr.msk.f32.vlgmr.msra.gmra.mrb[42].mxu1 %vm694_vm3, %v14629_v54 }
 0xf4f   : > { %13271 = vmatpush3.bf16.msra.mxu1 %v14024_v24  ;;  %12447 = vmatprep.mubr.msk.f32.mxu1 %vm612_vm2, %v4524_v20 }
 0xf50   : > { %13273 = vmatprep.subr.bf16.mxu1 %v14045_v33 }
 0xf53   : > { %13275 = vmatpush3.bf16.msra.mxu1 %v14045_v33 }
 0xf54   : > { %12450 = vmatprep.subr.msk.mxu1 %vm701_vm1, %v14059_v37 }
 0xf56   : > { %12448 = vmatmul.mubr.msk.f32.vlgmr.msra.gmra.mrb[42].mxu1 %vm612_vm2, %v12419_v19 }
 0xf57   : > { %12452 = vmatprep.mubr.msk.f32.mxu1 %vm694_vm3, %v14635_v59  ;;  %12451 = vmatpush3.msk.msra.mxu1 %vm701_vm1, %v14059_v37 }
 0xf58   : > { %13277 = vmatprep.subr.bf16.mxu1 %v14070_v40 }
 0xf5e   : > { %12453 = vmatmul.mubr.msk.f32.vlgmr.msra.gmra.mrb[42].mxu1 %vm694_vm3, %v14633_v58 }
 0xf5f   : > { %13279 = vmatpush3.bf16.msra.mxu1 %v14070_v40  ;;  %12463 = vmatprep.mubr.msk.f32.mxu1 %vm612_vm2, %v4534_v22 }
 0xf60   : > { %13281 = vmatprep.subr.bf16.mxu1 %v14084_v43 }
 0xf63   : > { %13283 = vmatpush3.bf16.msra.mxu1 %v14084_v43 }
 0xf64   : > { %12466 = vmatprep.subr.msk.mxu1 %vm701_vm1, %v14094_v44 }
 0xf66   : > { %12464 = vmatmul.mubr.msk.f32.vlgmr.msra.gmra.mrb[42].mxu1 %vm612_vm2, %v12422_v21 }
 0xf67   : > { %12468 = vmatprep.mubr.msk.f32.mxu1 %vm694_vm3, %v14639_v60  ;;  %12467 = vmatpush3.msk.msra.mxu1 %vm701_vm1, %v14094_v44 }
 0xf6e   : > { %12469 = vmatmul.mubr.msk.f32.vlgmr.msra.gmra.mrb[42].mxu1 %vm694_vm3, %v14637_v41 }
 0xf6f   : > { %12536 = vmatprep.mubr.msk.f32.mxu1 %vm403_vm0, %v14611_v12 }
0x1041   : > { %v12470_v37 = vpop.f32.mrb[42].mxu1 }
0x1042   : > { %v5034_v27 = vadd.f32 %v12470_v37, %v14111_v45  ;;  %v5022_v29 = vpop.f32.mrb[43].mxu1 }
0x1043   : > { %v5033_v30 = vadd.f32 %v14111_v45, %v5022_v29 }
0x1044   : > { %v11123_v32 = vmul.f32 -1.442695, %v5034_v27 }
0x1045   : > { %v11122_v34 = vmul.f32 -1.442695, %v5033_v30 }
0x1046   : > { %13758 = vpow2.f32 %v11123_v32 }
0x1047   : > { %13760 = vpow2.f32 %v11122_v34 }
0x1050   : > { %v13759_v36 = vpop.eup %13758 }
0x1051   : > { %v13761_v57 = vpop.eup %13760  ;;  %v5042_v42 = vadd.f32 1.0, %v13759_v36 }
0x1052   : > { %v5041_v44 = vadd.f32 1.0, %v13761_v57 }
0x1053   : > { %13762 = vrcp.f32 %v5042_v42 }
0x1054   : > { %13764 = vrcp.f32 %v5041_v44 }
0x105d   : > { %v14735_v46 = vpop.eup %13762 }
0x105e   : > { %v14737_v35 = vpop.eup %13764  ;;  %v5048_v55 = vmul.f32 %v14735_v46, %v14641_v61 }
0x105f   : > { %v5047_v45 = vmul.f32 %v14737_v35, %v14646_v62  ;;  %v5620_v56 = vmul.f32 %v14737_v35, %v14623_v53 }
0x1061   : > { %v13284_v47 = vpack.c.bf16 %v5048_v55, %v5047_v45  ;;  %v14920_v45 = vld [vmem:[%s15549_s5] ss:$0 sm:$0xff] }
0x1063   : > { %13285 = vmatprep.subr.bf16.mxu0 %v13284_v47 }
0x1064   : > { %13287 = vmatpush3.bf16.msra.mxu0 %v13284_v47 }
0x1065   : > { %13289 = vmatprep.subr.bf16.mxu0 %v14129_v63 }
0x1067   : > { %12476 = vmatmul.mubr.msk.f32.vlgmr.msra.gmra.mrb[36].mxu0 %vm403_vm0, %v14656_v1 }
0x1068   : > { %12478 = vmatprep.mubr.msk.f32.mxu0 %vm403_vm0, %v14663_v2  ;;  %13291 = vmatpush3.bf16.msra.mxu0 %v14129_v63 }
0x1069   : > { %13293 = vmatprep.subr.bf16.mxu0 %v14138_v4 }
0x106b   : > { %12479 = vmatmul.mubr.msk.f32.gmra.mrb[38].mxu0 %vm403_vm0, %v14670_v5 }
0x106c   : > { %12481 = vmatprep.mubr.msk.f32.mxu0 %vm403_vm0, %v14677_v6  ;;  %13295 = vmatpush3.bf16.msra.mxu0 %v14138_v4 }
0x106d   : > { %12495 = vmatprep.subr.msk.mxu0 %vm701_vm1, %v14156_v3 }
0x106f   : > { %12482 = vmatmul.mubr.msk.f32.gmra.mrb[40].mxu0 %vm403_vm0, %v14684_v7 }
0x113a   : > { %v12477_v48 = vpop.f32.mrb[36].mxu0 }
0x113b   : > { %v5115_v13 = vpop.f32.mrb[37].mxu0 }
0x113c   : > { %12492 = vmatprep.mubr.msk.f32.mxu0 %vm612_vm2, %v5115_v13 }
0x113d   : > { %12493 = vmatmul.mubr.msk.f32.vlgmr.msra.gmra.mrb[42].mxu0 %vm612_vm2, %v12477_v48 }
0x113e   : > { %12497 = vmatprep.mubr.msk.f32.mxu0 %vm694_vm3, %v14631_v39  ;;  %12496 = vmatpush3.msk.msra.mxu0 %vm701_vm1, %v14156_v3  ;;  %v12480_v18 = vpop.f32.mrb[38].mxu0 }
0x113f   : > { %13297 = vmatprep.subr.bf16.mxu0 %v14166_v10  ;;  %v5125_v49 = vpop.f32.mrb[39].mxu0 }
0x1142   : > { %v12483_v15 = vpop.f32.mrb[40].mxu0 }
0x1143   : > { %v5135_v16 = vpop.f32.mrb[41].mxu0 }
0x1145   : > { %12498 = vmatmul.mubr.msk.f32.vlgmr.msra.gmra.mrb[42].mxu0 %vm694_vm3, %v14629_v54  ;;  %v13312_v54 = vpack.c.bf16 %v11148_v51, %v11147_v17 }
0x1146   : > { %13299 = vmatpush3.bf16.msra.mxu0 %v14166_v10  ;;  %12508 = vmatprep.mubr.msk.f32.mxu0 %vm612_vm2, %v5125_v49 }
0x1147   : > { %13301 = vmatprep.subr.bf16.mxu0 %v14181_v26  ;;  %13313 = vmatprep.subr.bf16.mxu1 %v13312_v54 }
0x1148   : > { %13315 = vmatpush3.bf16.msra.mxu1 %v13312_v54 }
0x114a   : > { %13303 = vmatpush3.bf16.msra.mxu0 %v14181_v26 }
0x114b   : > { %12511 = vmatprep.subr.msk.mxu0 %vm701_vm1, %v14191_v25  ;;  %12537 = vmatmul.mubr.msk.f32.vlgmr.msra.gmra.mrb[44].mxu1 %vm403_vm0, %v14656_v1 }
0x114c   : > { %12539 = vmatprep.mubr.msk.f32.mxu1 %vm403_vm0, %v14663_v2 }
0x114d   : > { %12509 = vmatmul.mubr.msk.f32.vlgmr.msra.gmra.mrb[42].mxu0 %vm612_vm2, %v12480_v18 }
0x114e   : > { %12513 = vmatprep.mubr.msk.f32.mxu0 %vm694_vm3, %v14635_v59  ;;  %12512 = vmatpush3.msk.msra.mxu0 %vm701_vm1, %v14191_v25 }
0x114f   : > { %13305 = vmatprep.subr.bf16.mxu0 %v14202_v23  ;;  %12540 = vmatmul.mubr.msk.f32.gmra.mrb[46].mxu1 %vm403_vm0, %v14670_v5 }
0x1150   : > { %12542 = vmatprep.mubr.msk.f32.mxu1 %vm403_vm0, %v14677_v6 }
0x1153   : > { %12543 = vmatmul.mubr.msk.f32.gmra.mrb[48].mxu1 %vm403_vm0, %v14684_v7 }
0x1154   : > { %12549 = vmatprep.mubr.msk.f32.mxu1 %vm403_vm0, %v14611_v12 }
0x1155   : > { %12514 = vmatmul.mubr.msk.f32.vlgmr.msra.gmra.mrb[42].mxu0 %vm694_vm3, %v14633_v58 }
0x1156   : > { %13307 = vmatpush3.bf16.msra.mxu0 %v14202_v23  ;;  %12524 = vmatprep.mubr.msk.f32.mxu0 %vm612_vm2, %v5135_v16 }
0x1157   : > { %13309 = vmatprep.subr.bf16.mxu0 %v14216_v38 }
0x115a   : > { %13311 = vmatpush3.bf16.msra.mxu0 %v14216_v38 }
0x115b   : > { %12527 = vmatprep.subr.msk.mxu0 %vm701_vm1, %v14226_v31 }
0x115d   : > { %12525 = vmatmul.mubr.msk.f32.vlgmr.msra.gmra.mrb[42].mxu0 %vm612_vm2, %v12483_v15 }
0x115e   : > { %12529 = vmatprep.mubr.msk.f32.mxu0 %vm694_vm3, %v14639_v60  ;;  %12528 = vmatpush3.msk.msra.mxu0 %vm701_vm1, %v14226_v31  ;;  %v5621_v60 = vmul.f32 %v14735_v46, %v14621_v52 }
0x115f   : > { %13321 = vmatprep.subr.bf16.mxu0 %v13944_v9 }
0x1165   : > { %12530 = vmatmul.mubr.msk.f32.vlgmr.msra.gmra.mrb[42].mxu0 %vm694_vm3, %v14637_v41  ;;  %v5622_v41 = vsub.f32 1.0, %v14737_v35  ;;  %v14904_v35 = vld [vmem:[%s15547_s3 + $0x8] sm:$0xf] }
0x1166   : > { %13323 = vmatpush3.bf16.msra.mxu0 %v13944_v9 }
0x1167   : > { %13325 = vmatprep.subr.bf16.mxu0 %v13963_v14 }
0x116a   : > { %13327 = vmatpush3.bf16.msra.mxu0 %v13963_v14 }
0x116b   : > { %12569 = vmatprep.subr.msk.mxu0 %vm701_vm1, %v14697_v0 }
0x121e   : > { %v14833_v20 = vpop.f32.mrb[44].mxu1 }
0x121f   : > { %v14835_v52 = vpop.f32.mrb[45].mxu1 }
0x1222   : > { %v14837_v21 = vpop.f32.mrb[46].mxu1 }
0x1223   : > { %v14839_v22 = vpop.f32.mrb[47].mxu1 }
0x1226   : > { %v14841_v53 = vpop.f32.mrb[48].mxu1 }
0x1227   : > { %v14843_v37 = vpop.f32.mrb[49].mxu1 }
0x1238   : > { %v12531_v3 = vpop.f32.mrb[42].mxu0 }
0x1239   : > { %v5617_v25 = vadd.f32 %v12531_v3, %v14243_v28  ;;  %v5605_v50 = vpop.f32.mrb[43].mxu0 }
0x123a   : > { %v5616_v31 = vadd.f32 %v14243_v28, %v5605_v50  ;;  %v5623_v28 = vsub.f32 1.0, %v14735_v46  ;;  %v14885_v46 = vld [vmem:[%s15547_s3 + $0x4] sm:$0xf] }
0x123b   : > { %13766 = vtanh.f32 %v5617_v25 }
0x123c   : > { %13768 = vtanh.f32 %v5616_v31 }
0x1245   : > { %v13767_v39 = vpop.eup %13766 }
0x1246   : > { %v13769_v58 = vpop.eup %13768  ;;  %5628 = vrot.lane.b32.xlu1 %v13767_v39, %s13847_s24  ;;  %v14947_v39 = vld [vmem:[%s15550_s6] sm:$0xf] }
0x1247   : > { %5626 = vrot.lane.b32.xlu0 %v13769_v58, %s13847_s24 }
0x12b8   : > { %v5629_v59 = vpop.permute.xlu1 %5628 }
0x12b9   : > { %v5633_v61 = vmul.f32 %v5629_v59, %v5623_v28  ;;  %v5627_v62 = vpop.permute.xlu0 %5626 }
0x12ba   : > { %v5632_v8 = vmul.f32 %v5627_v62, %v5622_v41  ;;  %v14969_v62 = vld [vmem:[%s15550_s6 + $0x4] sm:$0xf] }
0x12bb   : > { %v14825_v11 = vadd.f32 %v5633_v61, %v5621_v60 }
0x12bc   : > { %v14827_v19 = vadd.f32 %v5632_v8, %v5620_v56  ;;  %v14988_v56 = vld [vmem:[%s15550_s6 + $0x8] sm:$0xf] }
0x12bd   : > { %5640 = vrot.lane.b32.xlu1 %v14825_v11, %s13848_s12 }
0x12be   : > { %5638 = vrot.lane.b32.xlu0 %v14827_v19, %s13848_s12 }
0x132f   : > { %v14845_v27 = vpop.permute.xlu1 %5640 }
0x1330   : > { %11146 = vst.msk [vmem:[%s14284_s16 + $0x38] sm:$0xff] %vm612_vm2, %v14845_v27  ;;  %v14850_v29 = vpop.permute.xlu0 %5638 }
0x1331   : > { %11145 = vst.msk [vmem:[%s14284_s16 + $0x30] sm:$0xff] %vm612_vm2, %v14850_v29  ;;  %v13316_v30 = vpack.c.bf16 %v14845_v27, %v14850_v29 }
0x1333   : > { %13317 = vmatprep.subr.bf16.mxu1 %v13316_v30 }
0x1334   : > { %13319 = vmatpush3.bf16.msra.mxu1 %v13316_v30 }
0x1337   : > { %12550 = vmatmul.mubr.msk.f32.vlgmr.msra.gmra.mrb[50].mxu1 %vm403_vm0, %v14656_v1 }
0x1338   : > { %12552 = vmatprep.mubr.msk.f32.mxu1 %vm403_vm0, %v14663_v2 }
0x133b   : > { %12553 = vmatmul.mubr.msk.f32.gmra.mrb[52].mxu1 %vm403_vm0, %v14670_v5 }
0x133c   : > { %12555 = vmatprep.mubr.msk.f32.mxu1 %vm403_vm0, %v14677_v6 }
0x133f   : > { %12556 = vmatmul.mubr.msk.f32.gmra.mrb[54].mxu1 %vm403_vm0, %v14684_v7 }
0x1340   : > { %12610 = vmatprep.mubr.msk.f32.mxu1 %vm403_vm0, %v14611_v12 }
0x140a   : > { %v12551_v32 = vpop.f32.mrb[50].mxu1 }
0x140b   : > { %v5811_v34 = vpop.f32.mrb[51].mxu1 }
0x140c   : > { %12566 = vmatprep.mubr.msk.f32.mxu0 %vm612_vm2, %v5811_v34 }
0x140d   : > { %12567 = vmatmul.mubr.msk.f32.vlgmr.msra.gmra.mrb[44].mxu0 %vm612_vm2, %v12551_v32 }
0x140e   : > { %12571 = vmatprep.mubr.msk.f32.mxu0 %vm694_vm3, %v14835_v52  ;;  %12570 = vmatpush3.msk.msra.mxu0 %vm701_vm1, %v14697_v0  ;;  %v12554_v36 = vpop.f32.mrb[52].mxu1 }
0x140f   : > { %13329 = vmatprep.subr.bf16.mxu0 %v14024_v24  ;;  %v5821_v57 = vpop.f32.mrb[53].mxu1 }
0x1412   : > { %v12557_v42 = vpop.f32.mrb[54].mxu1 }
0x1413   : > { %v5831_v44 = vpop.f32.mrb[55].mxu1 }
0x1415   : > { %12572 = vmatmul.mubr.msk.f32.vlgmr.msra.gmra.mrb[44].mxu0 %vm694_vm3, %v14833_v20 }
0x1416   : > { %13331 = vmatpush3.bf16.msra.mxu0 %v14024_v24  ;;  %12582 = vmatprep.mubr.msk.f32.mxu0 %vm612_vm2, %v5821_v57 }
0x1417   : > { %13333 = vmatprep.subr.bf16.mxu0 %v14045_v33 }
0x141a   : > { %13335 = vmatpush3.bf16.msra.mxu0 %v14045_v33 }
0x141b   : > { %12585 = vmatprep.subr.msk.mxu0 %vm701_vm1, %v14885_v46 }
0x141d   : > { %12583 = vmatmul.mubr.msk.f32.vlgmr.msra.gmra.mrb[44].mxu0 %vm612_vm2, %v12554_v36 }
0x141e   : > { %12587 = vmatprep.mubr.msk.f32.mxu0 %vm694_vm3, %v14839_v22  ;;  %12586 = vmatpush3.msk.msra.mxu0 %vm701_vm1, %v14885_v46 }
0x141f   : > { %13337 = vmatprep.subr.bf16.mxu0 %v14070_v40 }
0x1425   : > { %12588 = vmatmul.mubr.msk.f32.vlgmr.msra.gmra.mrb[44].mxu0 %vm694_vm3, %v14837_v21 }
0x1426   : > { %13339 = vmatpush3.bf16.msra.mxu0 %v14070_v40  ;;  %12598 = vmatprep.mubr.msk.f32.mxu0 %vm612_vm2, %v5831_v44 }
0x1427   : > { %13341 = vmatprep.subr.bf16.mxu0 %v14084_v43 }
0x142a   : > { %13343 = vmatpush3.bf16.msra.mxu0 %v14084_v43 }
0x142b   : > { %12601 = vmatprep.subr.msk.mxu0 %vm701_vm1, %v14904_v35 }
0x142d   : > { %12599 = vmatmul.mubr.msk.f32.vlgmr.msra.gmra.mrb[44].mxu0 %vm612_vm2, %v12557_v42 }
0x142e   : > { %12603 = vmatprep.mubr.msk.f32.mxu0 %vm694_vm3, %v14843_v37  ;;  %12602 = vmatpush3.msk.msra.mxu0 %vm701_vm1, %v14904_v35 }
0x1435   : > { %12604 = vmatmul.mubr.msk.f32.vlgmr.msra.gmra.mrb[44].mxu0 %vm694_vm3, %v14841_v53 }
0x1436   : > { %12671 = vmatprep.mubr.msk.f32.mxu0 %vm403_vm0, %v14611_v12 }
0x1508   : > { %v12605_v55 = vpop.f32.mrb[44].mxu0 }
0x1509   : > { %v6331_v47 = vadd.f32 %v14920_v45, %v12605_v55  ;;  %v6319_v48 = vpop.f32.mrb[45].mxu0 }
0x150a   : > { %v6330_v13 = vadd.f32 %v14920_v45, %v6319_v48 }
0x150b   : > { %v11177_v18 = vmul.f32 -1.442695, %v6331_v47 }
0x150c   : > { %v11176_v49 = vmul.f32 -1.442695, %v6330_v13 }
0x150d   : > { %13770 = vpow2.f32 %v11177_v18 }
0x150e   : > { %13772 = vpow2.f32 %v11176_v49 }
0x1517   : > { %v13771_v15 = vpop.eup %13770 }
0x1518   : > { %v13773_v16 = vpop.eup %13772  ;;  %v6339_v3 = vadd.f32 1.0, %v13771_v15 }
0x1519   : > { %v6338_v25 = vadd.f32 1.0, %v13773_v16 }
0x151a   : > { %13774 = vrcp.f32 %v6339_v3 }
0x151b   : > { %13776 = vrcp.f32 %v6338_v25 }
0x1524   : > { %v14924_v50 = vpop.eup %13774 }
0x1525   : > { %v14926_v31 = vpop.eup %13776  ;;  %v6345_v17 = vmul.f32 %v14924_v50, %v14845_v27  ;;  %v6920_v32 = vsub.f32 1.0, %v14924_v50  ;;  %v6918_v57 = vmul.f32 %v14924_v50, %v14825_v11 }
0x1526   : > { %v6344_v51 = vmul.f32 %v14926_v31, %v14850_v29  ;;  %v6919_v36 = vsub.f32 1.0, %v14926_v31  ;;  %v6917_v55 = vmul.f32 %v14926_v31, %v14827_v19 }
0x1528   : > { %v13344_v54 = vpack.c.bf16 %v6345_v17, %v6344_v51 }
0x152a   : > { %13345 = vmatprep.subr.bf16.mxu1 %v13344_v54 }
0x152b   : > { %13347 = vmatpush3.bf16.msra.mxu1 %v13344_v54 }
0x152c   : > { %13349 = vmatprep.subr.bf16.mxu1 %v14129_v63 }
0x152e   : > { %12611 = vmatmul.mubr.msk.f32.vlgmr.msra.gmra.mrb[56].mxu1 %vm403_vm0, %v14656_v1 }
0x152f   : > { %12613 = vmatprep.mubr.msk.f32.mxu1 %vm403_vm0, %v14663_v2  ;;  %13351 = vmatpush3.bf16.msra.mxu1 %v14129_v63 }
0x1530   : > { %13353 = vmatprep.subr.bf16.mxu1 %v14138_v4 }
0x1532   : > { %12614 = vmatmul.mubr.msk.f32.gmra.mrb[58].mxu1 %vm403_vm0, %v14670_v5 }
0x1533   : > { %12616 = vmatprep.mubr.msk.f32.mxu1 %vm403_vm0, %v14677_v6  ;;  %13355 = vmatpush3.bf16.msra.mxu1 %v14138_v4 }
0x1534   : > { %12630 = vmatprep.subr.msk.mxu1 %vm701_vm1, %v14947_v39 }
0x1536   : > { %12617 = vmatmul.mubr.msk.f32.gmra.mrb[60].mxu1 %vm403_vm0, %v14684_v7 }
0x1601   : > { %v12612_v58 = vpop.f32.mrb[56].mxu1 }
0x1602   : > { %v6412_v28 = vpop.f32.mrb[57].mxu1 }
0x1603   : > { %12627 = vmatprep.mubr.msk.f32.mxu1 %vm612_vm2, %v6412_v28 }
0x1604   : > { %12628 = vmatmul.mubr.msk.f32.vlgmr.msra.gmra.mrb[62].mxu1 %vm612_vm2, %v12612_v58 }
0x1605   : > { %12632 = vmatprep.mubr.msk.f32.mxu1 %vm694_vm3, %v14835_v52  ;;  %12631 = vmatpush3.msk.msra.mxu1 %vm701_vm1, %v14947_v39  ;;  %v12615_v59 = vpop.f32.mrb[58].mxu1 }
0x1606   : > { %13357 = vmatprep.subr.bf16.mxu1 %v14166_v10  ;;  %v6422_v41 = vpop.f32.mrb[59].mxu1 }
0x1609   : > { %v12618_v60 = vpop.f32.mrb[60].mxu1 }
0x160a   : > { %v6432_v61 = vpop.f32.mrb[61].mxu1 }
0x160c   : > { %12633 = vmatmul.mubr.msk.f32.vlgmr.msra.gmra.mrb[62].mxu1 %vm694_vm3, %v14833_v20  ;;  %v15008_v20 = vld [vmem:[%s15552_s8] ss:$0 sm:$0xff] }
0x160d   : > { %13359 = vmatpush3.bf16.msra.mxu1 %v14166_v10  ;;  %12643 = vmatprep.mubr.msk.f32.mxu1 %vm612_vm2, %v6422_v41 }
0x160e   : > { %13361 = vmatprep.subr.bf16.mxu1 %v14181_v26 }
0x1611   : > { %13363 = vmatpush3.bf16.msra.mxu1 %v14181_v26 }
0x1612   : > { %12646 = vmatprep.subr.msk.mxu1 %vm701_vm1, %v14969_v62 }
0x1614   : > { %12644 = vmatmul.mubr.msk.f32.vlgmr.msra.gmra.mrb[62].mxu1 %vm612_vm2, %v12615_v59 }
0x1615   : > { %12648 = vmatprep.mubr.msk.f32.mxu1 %vm694_vm3, %v14839_v22  ;;  %12647 = vmatpush3.msk.msra.mxu1 %vm701_vm1, %v14969_v62 }
0x1616   : > { %13365 = vmatprep.subr.bf16.mxu1 %v14202_v23 }
0x161c   : > { %12649 = vmatmul.mubr.msk.f32.vlgmr.msra.gmra.mrb[62].mxu1 %vm694_vm3, %v14837_v21 }
0x161d   : > { %13367 = vmatpush3.bf16.msra.mxu1 %v14202_v23  ;;  %12659 = vmatprep.mubr.msk.f32.mxu1 %vm612_vm2, %v6432_v61 }
0x161e   : > { %13369 = vmatprep.subr.bf16.mxu1 %v14216_v38 }
0x1621   : > { %13371 = vmatpush3.bf16.msra.mxu1 %v14216_v38 }
0x1622   : > { %12662 = vmatprep.subr.msk.mxu1 %vm701_vm1, %v14988_v56 }
0x1624   : > { %12660 = vmatmul.mubr.msk.f32.vlgmr.msra.gmra.mrb[62].mxu1 %vm612_vm2, %v12618_v60 }
0x1625   : > { %12664 = vmatprep.mubr.msk.f32.mxu1 %vm694_vm3, %v14843_v37  ;;  %12663 = vmatpush3.msk.msra.mxu1 %vm701_vm1, %v14988_v56  ;;  %v11202_v37 = vld [vmem:[%s13925_s17 + $0x58] sm:$0xff] }
0x1626   : > { %13381 = vmatprep.subr.bf16.mxu1 %v13944_v9 }
0x162c   : > { %12665 = vmatmul.mubr.msk.f32.vlgmr.msra.gmra.mrb[62].mxu1 %vm694_vm3, %v14841_v53  ;;  %v11201_v53 = vld [vmem:[%s13925_s17 + $0x50] sm:$0xff] }
0x162d   : > { %13383 = vmatpush3.bf16.msra.mxu1 %v13944_v9  ;;  %v13372_v27 = vpack.c.bf16 %v11202_v37, %v11201_v53 }
0x162e   : > { %13385 = vmatprep.subr.bf16.mxu1 %v13963_v14 }
0x162f   : > { %13373 = vmatprep.subr.bf16.mxu0 %v13372_v27 }
0x1630   : > { %13375 = vmatpush3.bf16.msra.mxu0 %v13372_v27 }
0x1631   : > { %13387 = vmatpush3.bf16.msra.mxu1 %v13963_v14 }
0x1632   : > { %12704 = vmatprep.subr.msk.mxu1 %vm701_vm1, %v14697_v0 }
0x1633   : > { %12672 = vmatmul.mubr.msk.f32.vlgmr.msra.gmra.mrb[46].mxu0 %vm403_vm0, %v14656_v1 }
0x1634   : > { %12674 = vmatprep.mubr.msk.f32.mxu0 %vm403_vm0, %v14663_v2 }
0x1637   : > { %12675 = vmatmul.mubr.msk.f32.gmra.mrb[48].mxu0 %vm403_vm0, %v14670_v5 }
0x1638   : > { %12677 = vmatprep.mubr.msk.f32.mxu0 %vm403_vm0, %v14677_v6 }
0x163b   : > { %12678 = vmatmul.mubr.msk.f32.gmra.mrb[50].mxu0 %vm403_vm0, %v14684_v7 }
0x163c   : > { %12684 = vmatprep.mubr.msk.f32.mxu0 %vm403_vm0, %v14611_v12 }
0x16ff   : > { %v12666_v8 = vpop.f32.mrb[62].mxu1 }
0x1700   : > { %v6914_v52 = vadd.f32 %v15008_v20, %v12666_v8  ;;  %v6902_v21 = vpop.f32.mrb[63].mxu1 }
0x1701   : > { %v6913_v22 = vadd.f32 %v15008_v20, %v6902_v21 }
0x1702   : > { %13778 = vtanh.f32 %v6914_v52 }
0x1703   : > { %13780 = vtanh.f32 %v6913_v22 }
0x1706   : > { %v15042_v18 = vpop.f32.mrb[46].mxu0 }
0x1707   : > { %v15044_v11 = vpop.f32.mrb[47].mxu0 }
0x170a   : > { %v15046_v49 = vpop.f32.mrb[48].mxu0 }
0x170b   : > { %v15048_v15 = vpop.f32.mrb[49].mxu0 }
0x170c   : > { %v13779_v29 = vpop.eup %13778 }
0x170d   : > { %v13781_v30 = vpop.eup %13780  ;;  %6925 = vrot.lane.b32.xlu1 %v13779_v29, %s13847_s24 }
0x170e   : > { %6923 = vrot.lane.b32.xlu0 %v13781_v30, %s13847_s24  ;;  %v15050_v19 = vpop.f32.mrb[50].mxu0 }
0x170f   : > { %v15052_v16 = vpop.f32.mrb[51].mxu0 }
0x177f   : > { %v6926_v34 = vpop.permute.xlu1 %6925 }
0x1780   : > { %v6930_v42 = vmul.f32 %v6926_v34, %v6920_v32  ;;  %v6924_v44 = vpop.permute.xlu0 %6923 }
0x1781   : > { %v6929_v47 = vmul.f32 %v6924_v44, %v6919_v36 }
0x1782   : > { %v15034_v48 = vadd.f32 %v6930_v42, %v6918_v57 }
0x1783   : > { %v15036_v13 = vadd.f32 %v6929_v47, %v6917_v55 }
0x1784   : > { %6937 = vrot.lane.b32.xlu1 %v15034_v48, %s13848_s12 }
0x1785   : > { %6935 = vrot.lane.b32.xlu0 %v15036_v13, %s13848_s12 }
0x17f6   : > { %v6938_v3 = vpop.permute.xlu1 %6937 }
0x17f7   : > { %11200 = vst.msk [vmem:[%s14284_s16 + $0x48] sm:$0xff] %vm612_vm2, %v6938_v3  ;;  %v6936_v25 = vpop.permute.xlu0 %6935 }
0x17f8   : > { %11199 = vst.msk [vmem:[%s14284_s16 + $0x40] sm:$0xff] %vm612_vm2, %v6936_v25  ;;  %v13376_v50 = vpack.c.bf16 %v6938_v3, %v6936_v25 }
0x17fa   : > { %13377 = vmatprep.subr.bf16.mxu0 %v13376_v50 }
0x17fb   : > { %13379 = vmatpush3.bf16.msra.mxu0 %v13376_v50 }
0x17fe   : > { %12685 = vmatmul.mubr.msk.f32.vlgmr.msra.gmra.mrb[52].mxu0 %vm403_vm0, %v14656_v1 }
0x17ff   : > { %12687 = vmatprep.mubr.msk.f32.mxu0 %vm403_vm0, %v14663_v2 }
0x1802   : > { %12688 = vmatmul.mubr.msk.f32.gmra.mrb[54].mxu0 %vm403_vm0, %v14670_v5 }
0x1803   : > { %12690 = vmatprep.mubr.msk.f32.mxu0 %vm403_vm0, %v14677_v6 }
0x1806   : > { %12691 = vmatmul.mubr.msk.f32.gmra.mrb[56].mxu0 %vm403_vm0, %v14684_v7 }
0x1807   : > { %12745 = vmatprep.mubr.msk.f32.mxu0 %vm403_vm0, %v14611_v12 }
0x18d1   : > { %v12686_v31 = vpop.f32.mrb[52].mxu0 }
0x18d2   : > { %v7108_v17 = vpop.f32.mrb[53].mxu0 }
0x18d3   : > { %12701 = vmatprep.mubr.msk.f32.mxu1 %vm612_vm2, %v7108_v17 }
0x18d4   : > { %12702 = vmatmul.mubr.msk.f32.vlgmr.msra.gmra.mrb[64].mxu1 %vm612_vm2, %v12686_v31 }
0x18d5   : > { %12706 = vmatprep.mubr.msk.f32.mxu1 %vm694_vm3, %v15044_v11  ;;  %12705 = vmatpush3.msk.msra.mxu1 %vm701_vm1, %v14697_v0  ;;  %v12689_v51 = vpop.f32.mrb[54].mxu0 }
0x18d6   : > { %13389 = vmatprep.subr.bf16.mxu1 %v14024_v24  ;;  %v7118_v54 = vpop.f32.mrb[55].mxu0 }
0x18d9   : > { %v12692_v58 = vpop.f32.mrb[56].mxu0 }
0x18da   : > { %v7128_v28 = vpop.f32.mrb[57].mxu0 }
0x18dc   : > { %12707 = vmatmul.mubr.msk.f32.vlgmr.msra.gmra.mrb[64].mxu1 %vm694_vm3, %v15042_v18 }
0x18dd   : > { %13391 = vmatpush3.bf16.msra.mxu1 %v14024_v24  ;;  %12717 = vmatprep.mubr.msk.f32.mxu1 %vm612_vm2, %v7118_v54 }
0x18de   : > { %13393 = vmatprep.subr.bf16.mxu1 %v14045_v33 }
0x18e1   : > { %13395 = vmatpush3.bf16.msra.mxu1 %v14045_v33 }
0x18e2   : > { %12720 = vmatprep.subr.msk.mxu1 %vm701_vm1, %v14885_v46 }
0x18e4   : > { %12718 = vmatmul.mubr.msk.f32.vlgmr.msra.gmra.mrb[64].mxu1 %vm612_vm2, %v12689_v51 }
0x18e5   : > { %12722 = vmatprep.mubr.msk.f32.mxu1 %vm694_vm3, %v15048_v15  ;;  %12721 = vmatpush3.msk.msra.mxu1 %vm701_vm1, %v14885_v46 }
0x18e6   : > { %13397 = vmatprep.subr.bf16.mxu1 %v14070_v40 }
0x18ec   : > { %12723 = vmatmul.mubr.msk.f32.vlgmr.msra.gmra.mrb[64].mxu1 %vm694_vm3, %v15046_v49 }
0x18ed   : > { %13399 = vmatpush3.bf16.msra.mxu1 %v14070_v40  ;;  %12733 = vmatprep.mubr.msk.f32.mxu1 %vm612_vm2, %v7128_v28 }
0x18ee   : > { %13401 = vmatprep.subr.bf16.mxu1 %v14084_v43 }
0x18f1   : > { %13403 = vmatpush3.bf16.msra.mxu1 %v14084_v43 }
0x18f2   : > { %12736 = vmatprep.subr.msk.mxu1 %vm701_vm1, %v14904_v35 }
0x18f4   : > { %12734 = vmatmul.mubr.msk.f32.vlgmr.msra.gmra.mrb[64].mxu1 %vm612_vm2, %v12692_v58 }
0x18f5   : > { %12738 = vmatprep.mubr.msk.f32.mxu1 %vm694_vm3, %v15052_v16  ;;  %12737 = vmatpush3.msk.msra.mxu1 %vm701_vm1, %v14904_v35 }
0x18fc   : > { %12739 = vmatmul.mubr.msk.f32.vlgmr.msra.gmra.mrb[64].mxu1 %vm694_vm3, %v15050_v19 }
0x18fd   : > { %12806 = vmatprep.mubr.msk.f32.mxu1 %vm403_vm0, %v14611_v12 }
0x19cf   : > { %v12740_v59 = vpop.f32.mrb[64].mxu1 }
0x19d0   : > { %v7628_v41 = vadd.f32 %v14920_v45, %v12740_v59  ;;  %v7616_v60 = vpop.f32.mrb[65].mxu1 }
0x19d1   : > { %v7627_v61 = vadd.f32 %v14920_v45, %v7616_v60 }
0x19d2   : > { %v11231_v8 = vmul.f32 -1.442695, %v7628_v41 }
0x19d3   : > { %v11230_v52 = vmul.f32 -1.442695, %v7627_v61 }
0x19d4   : > { %13782 = vpow2.f32 %v11231_v8 }
0x19d5   : > { %13784 = vpow2.f32 %v11230_v52 }
0x19de   : > { %v13783_v21 = vpop.eup %13782 }
0x19df   : > { %v13785_v22 = vpop.eup %13784  ;;  %v7636_v53 = vadd.f32 1.0, %v13783_v21 }
0x19e0   : > { %v7635_v37 = vadd.f32 1.0, %v13785_v22 }
0x19e1   : > { %13786 = vrcp.f32 %v7636_v53 }
0x19e2   : > { %13788 = vrcp.f32 %v7635_v37 }
0x19eb   : > { %v15110_v27 = vpop.eup %13786 }
0x19ec   : > { %v15112_v29 = vpop.eup %13788  ;;  %v7642_v30 = vmul.f32 %v15110_v27, %v6938_v3  ;;  %v11256_v3 = vld [vmem:[%s13925_s17 + $0x68] sm:$0xff]  ;;  %v8217_v31 = vsub.f32 1.0, %v15110_v27  ;;  %v8215_v54 = vmul.f32 %v15110_v27, %v15034_v48 }
0x19ed   : > { %v7641_v32 = vmul.f32 %v15112_v29, %v6936_v25  ;;  %v8216_v51 = vsub.f32 1.0, %v15112_v29  ;;  %v8214_v59 = vmul.f32 %v15112_v29, %v15036_v13 }
0x19ef   : > { %v13404_v34 = vpack.c.bf16 %v7642_v30, %v7641_v32 }
0x19f1   : > { %13405 = vmatprep.subr.bf16.mxu0 %v13404_v34 }
0x19f2   : > { %13407 = vmatpush3.bf16.msra.mxu0 %v13404_v34 }
0x19f3   : > { %13409 = vmatprep.subr.bf16.mxu0 %v14129_v63 }
0x19f5   : > { %12746 = vmatmul.mubr.msk.f32.vlgmr.msra.gmra.mrb[58].mxu0 %vm403_vm0, %v14656_v1 }
0x19f6   : > { %12748 = vmatprep.mubr.msk.f32.mxu0 %vm403_vm0, %v14663_v2  ;;  %13411 = vmatpush3.bf16.msra.mxu0 %v14129_v63 }
0x19f7   : > { %13413 = vmatprep.subr.bf16.mxu0 %v14138_v4 }
0x19f9   : > { %12749 = vmatmul.mubr.msk.f32.gmra.mrb[60].mxu0 %vm403_vm0, %v14670_v5 }
0x19fa   : > { %12751 = vmatprep.mubr.msk.f32.mxu0 %vm403_vm0, %v14677_v6  ;;  %13415 = vmatpush3.bf16.msra.mxu0 %v14138_v4 }
0x19fb   : > { %12765 = vmatprep.subr.msk.mxu0 %vm701_vm1, %v14947_v39 }
0x19fd   : > { %12752 = vmatmul.mubr.msk.f32.gmra.mrb[62].mxu0 %vm403_vm0, %v14684_v7 }
0x1ac8   : > { %v12747_v36 = vpop.f32.mrb[58].mxu0 }
0x1ac9   : > { %v7709_v57 = vpop.f32.mrb[59].mxu0 }
0x1aca   : > { %12762 = vmatprep.mubr.msk.f32.mxu0 %vm612_vm2, %v7709_v57 }
0x1acb   : > { %12763 = vmatmul.mubr.msk.f32.vlgmr.msra.gmra.mrb[64].mxu0 %vm612_vm2, %v12747_v36 }
0x1acc   : > { %12767 = vmatprep.mubr.msk.f32.mxu0 %vm694_vm3, %v15044_v11  ;;  %12766 = vmatpush3.msk.msra.mxu0 %vm701_vm1, %v14947_v39  ;;  %v12750_v42 = vpop.f32.mrb[60].mxu0 }
0x1acd   : > { %13417 = vmatprep.subr.bf16.mxu0 %v14166_v10  ;;  %v7719_v44 = vpop.f32.mrb[61].mxu0 }
0x1ad0   : > { %v12753_v55 = vpop.f32.mrb[62].mxu0 }
0x1ad1   : > { %v7729_v47 = vpop.f32.mrb[63].mxu0 }
0x1ad3   : > { %12768 = vmatmul.mubr.msk.f32.vlgmr.msra.gmra.mrb[64].mxu0 %vm694_vm3, %v15042_v18 }
0x1ad4   : > { %13419 = vmatpush3.bf16.msra.mxu0 %v14166_v10  ;;  %12778 = vmatprep.mubr.msk.f32.mxu0 %vm612_vm2, %v7719_v44 }
0x1ad5   : > { %13421 = vmatprep.subr.bf16.mxu0 %v14181_v26 }
0x1ad8   : > { %13423 = vmatpush3.bf16.msra.mxu0 %v14181_v26 }
0x1ad9   : > { %12781 = vmatprep.subr.msk.mxu0 %vm701_vm1, %v14969_v62 }
0x1adb   : > { %12779 = vmatmul.mubr.msk.f32.vlgmr.msra.gmra.mrb[64].mxu0 %vm612_vm2, %v12750_v42 }
0x1adc   : > { %12783 = vmatprep.mubr.msk.f32.mxu0 %vm694_vm3, %v15048_v15  ;;  %12782 = vmatpush3.msk.msra.mxu0 %vm701_vm1, %v14969_v62 }
0x1add   : > { %13425 = vmatprep.subr.bf16.mxu0 %v14202_v23 }
0x1ae3   : > { %12784 = vmatmul.mubr.msk.f32.vlgmr.msra.gmra.mrb[64].mxu0 %vm694_vm3, %v15046_v49 }
0x1ae4   : > { %13427 = vmatpush3.bf16.msra.mxu0 %v14202_v23  ;;  %12794 = vmatprep.mubr.msk.f32.mxu0 %vm612_vm2, %v7729_v47 }
0x1ae5   : > { %13429 = vmatprep.subr.bf16.mxu0 %v14216_v38 }
0x1ae8   : > { %13431 = vmatpush3.bf16.msra.mxu0 %v14216_v38 }
0x1ae9   : > { %12797 = vmatprep.subr.msk.mxu0 %vm701_vm1, %v14988_v56 }
0x1aeb   : > { %12795 = vmatmul.mubr.msk.f32.vlgmr.msra.gmra.mrb[64].mxu0 %vm612_vm2, %v12753_v55 }
0x1aec   : > { %12799 = vmatprep.mubr.msk.f32.mxu0 %vm694_vm3, %v15052_v16  ;;  %12798 = vmatpush3.msk.msra.mxu0 %vm701_vm1, %v14988_v56  ;;  %v11255_v16 = vld [vmem:[%s13925_s17 + $0x60] sm:$0xff] }
0x1aed   : > { %13441 = vmatprep.subr.bf16.mxu0 %v13944_v9 }
0x1af3   : > { %12800 = vmatmul.mubr.msk.f32.vlgmr.msra.gmra.mrb[64].mxu0 %vm694_vm3, %v15050_v19  ;;  %v13432_v19 = vpack.c.bf16 %v11256_v3, %v11255_v16  ;;  %v15289_v3 = vld [vmem:[%s15544_s0 + $0x8] sm:$0xff] }
0x1af4   : > { %13443 = vmatpush3.bf16.msra.mxu0 %v13944_v9 }
0x1af5   : > { %13445 = vmatprep.subr.bf16.mxu0 %v13963_v14  ;;  %13433 = vmatprep.subr.bf16.mxu1 %v13432_v19 }
0x1af6   : > { %13435 = vmatpush3.bf16.msra.mxu1 %v13432_v19  ;;  %v15296_v19 = vld [vmem:[%s15544_s0 + $0x10] sm:$0xff] }
0x1af8   : > { %13447 = vmatpush3.bf16.msra.mxu0 %v13963_v14 }
0x1af9   : > { %12839 = vmatprep.subr.msk.mxu0 %vm701_vm1, %v14697_v0  ;;  %12807 = vmatmul.mubr.msk.f32.vlgmr.msra.gmra.mrb[66].mxu1 %vm403_vm0, %v14656_v1 }
0x1afa   : > { %12809 = vmatprep.mubr.msk.f32.mxu1 %vm403_vm0, %v14663_v2 }
0x1afd   : > { %12810 = vmatmul.mubr.msk.f32.gmra.mrb[68].mxu1 %vm403_vm0, %v14670_v5 }
0x1afe   : > { %12812 = vmatprep.mubr.msk.f32.mxu1 %vm403_vm0, %v14677_v6 }
0x1b01   : > { %12813 = vmatmul.mubr.msk.f32.gmra.mrb[70].mxu1 %vm403_vm0, %v14684_v7 }
0x1b02   : > { %12819 = vmatprep.mubr.msk.f32.mxu1 %vm403_vm0, %v14611_v12 }
0x1bc6   : > { %v12801_v18 = vpop.f32.mrb[64].mxu0 }
0x1bc7   : > { %v8211_v11 = vadd.f32 %v15008_v20, %v12801_v18  ;;  %v8199_v49 = vpop.f32.mrb[65].mxu0 }
0x1bc8   : > { %v8210_v15 = vadd.f32 %v15008_v20, %v8199_v49 }
0x1bc9   : > { %13790 = vtanh.f32 %v8211_v11 }
0x1bca   : > { %13792 = vtanh.f32 %v8210_v15 }
0x1bcc   : > { %v15206_v8 = vpop.f32.mrb[66].mxu1 }
0x1bcd   : > { %v15208_v48 = vpop.f32.mrb[67].mxu1 }
0x1bd0   : > { %v15210_v52 = vpop.f32.mrb[68].mxu1 }
0x1bd1   : > { %v15212_v21 = vpop.f32.mrb[69].mxu1 }
0x1bd3   : > { %v13791_v25 = vpop.eup %13790 }
0x1bd4   : > { %v13793_v50 = vpop.eup %13792  ;;  %8222 = vrot.lane.b32.xlu1 %v13791_v25, %s13847_s24  ;;  %v15214_v13 = vpop.f32.mrb[70].mxu1  ;;  %v15305_v25 = vld [vmem:[%s15544_s0 + $0x18] sm:$0xff] }
0x1bd5   : > { %8220 = vrot.lane.b32.xlu0 %v13793_v50, %s13847_s24  ;;  %v15216_v22 = vpop.f32.mrb[71].mxu1  ;;  %v15312_v50 = vld [vmem:[%s15544_s0 + $0x20] sm:$0xff] }
0x1c46   : > { %v8223_v17 = vpop.permute.xlu1 %8222 }
0x1c47   : > { %v8227_v58 = vmul.f32 %v8223_v17, %v8217_v31  ;;  %v8221_v28 = vpop.permute.xlu0 %8220  ;;  %v15322_v31 = vld [vmem:[%s15544_s0 + $0x28] sm:$0xff] }
0x1c48   : > { %v8226_v41 = vmul.f32 %v8221_v28, %v8216_v51 }
0x1c49   : > { %v15198_v60 = vadd.f32 %v8227_v58, %v8215_v54 }
0x1c4a   : > { %v15200_v61 = vadd.f32 %v8226_v41, %v8214_v59  ;;  %v13838_v41 = vld [vmem:[%s15547_s3] sm:$0xf] }
0x1c4b   : > { %8234 = vrot.lane.b32.xlu1 %v15198_v60, %s13848_s12 }
0x1c4c   : > { %8232 = vrot.lane.b32.xlu0 %v15200_v61, %s13848_s12 }
0x1cbd   : > { %v8235_v53 = vpop.permute.xlu1 %8234 }
0x1cbe   : > { %11254 = vst.msk [vmem:[%s14284_s16 + $0x58] sm:$0xff] %vm612_vm2, %v8235_v53  ;;  %v8233_v37 = vpop.permute.xlu0 %8232 }
0x1cbf   : > { %11253 = vst.msk [vmem:[%s14284_s16 + $0x50] sm:$0xff] %vm612_vm2, %v8233_v37  ;;  %v13436_v27 = vpack.c.bf16 %v8235_v53, %v8233_v37 }
0x1cc1   : > { %13437 = vmatprep.subr.bf16.mxu1 %v13436_v27 }
0x1cc2   : > { %13439 = vmatpush3.bf16.msra.mxu1 %v13436_v27 }
0x1cc5   : > { %12820 = vmatmul.mubr.msk.f32.vlgmr.msra.gmra.mrb[72].mxu1 %vm403_vm0, %v14656_v1 }
0x1cc6   : > { %12822 = vmatprep.mubr.msk.f32.mxu1 %vm403_vm0, %v14663_v2 }
0x1cc9   : > { %12823 = vmatmul.mubr.msk.f32.gmra.mrb[74].mxu1 %vm403_vm0, %v14670_v5 }
0x1cca   : > { %12825 = vmatprep.mubr.msk.f32.mxu1 %vm403_vm0, %v14677_v6 }
0x1ccd   : > { %12826 = vmatmul.mubr.msk.f32.gmra.mrb[76].mxu1 %vm403_vm0, %v14684_v7 }
0x1cce   : > { %12880 = vmatprep.mubr.msk.f32.mxu1 %vm403_vm0, %v14611_v12  ;;  %v15273_v12 = vld [vmem:[%s15544_s0] sm:$0xff] }
0x1d98   : > { %v12821_v29 = vpop.f32.mrb[72].mxu1 }
0x1d99   : > { %v8405_v30 = vpop.f32.mrb[73].mxu1 }
0x1d9a   : > { %12836 = vmatprep.mubr.msk.f32.mxu0 %vm612_vm2, %v8405_v30 }
0x1d9b   : > { %12837 = vmatmul.mubr.msk.f32.vlgmr.msra.gmra.mrb[66].mxu0 %vm612_vm2, %v12821_v29 }
0x1d9c   : > { %12841 = vmatprep.mubr.msk.f32.mxu0 %vm694_vm3, %v15208_v48  ;;  %12840 = vmatpush3.msk.msra.mxu0 %vm701_vm1, %v14697_v0  ;;  %v12824_v1 = vpop.f32.mrb[74].mxu1 }
0x1d9d   : > { %13449 = vmatprep.subr.bf16.mxu0 %v14024_v24  ;;  %v8415_v2 = vpop.f32.mrb[75].mxu1 }
0x1da0   : > { %v12827_v5 = vpop.f32.mrb[76].mxu1 }
0x1da1   : > { %v8425_v6 = vpop.f32.mrb[77].mxu1 }
0x1da3   : > { %12842 = vmatmul.mubr.msk.f32.vlgmr.msra.gmra.mrb[66].mxu0 %vm694_vm3, %v15206_v8 }
0x1da4   : > { %13451 = vmatpush3.bf16.msra.mxu0 %v14024_v24  ;;  %12852 = vmatprep.mubr.msk.f32.mxu0 %vm612_vm2, %v8415_v2 }
0x1da5   : > { %13453 = vmatprep.subr.bf16.mxu0 %v14045_v33 }
0x1da8   : > { %13455 = vmatpush3.bf16.msra.mxu0 %v14045_v33 }
0x1da9   : > { %12855 = vmatprep.subr.msk.mxu0 %vm701_vm1, %v14885_v46 }
0x1dab   : > { %12853 = vmatmul.mubr.msk.f32.vlgmr.msra.gmra.mrb[66].mxu0 %vm612_vm2, %v12824_v1 }
0x1dac   : > { %12857 = vmatprep.mubr.msk.f32.mxu0 %vm694_vm3, %v15212_v21  ;;  %12856 = vmatpush3.msk.msra.mxu0 %vm701_vm1, %v14885_v46 }
0x1dad   : > { %13457 = vmatprep.subr.bf16.mxu0 %v14070_v40 }
0x1db3   : > { %12858 = vmatmul.mubr.msk.f32.vlgmr.msra.gmra.mrb[66].mxu0 %vm694_vm3, %v15210_v52 }
0x1db4   : > { %13459 = vmatpush3.bf16.msra.mxu0 %v14070_v40  ;;  %12868 = vmatprep.mubr.msk.f32.mxu0 %vm612_vm2, %v8425_v6 }
0x1db5   : > { %13461 = vmatprep.subr.bf16.mxu0 %v14084_v43 }
0x1db8   : > { %13463 = vmatpush3.bf16.msra.mxu0 %v14084_v43 }
0x1db9   : > { %12871 = vmatprep.subr.msk.mxu0 %vm701_vm1, %v14904_v35 }
0x1dbb   : > { %12869 = vmatmul.mubr.msk.f32.vlgmr.msra.gmra.mrb[66].mxu0 %vm612_vm2, %v12827_v5 }
0x1dbc   : > { %12873 = vmatprep.mubr.msk.f32.mxu0 %vm694_vm3, %v15216_v22  ;;  %12872 = vmatpush3.msk.msra.mxu0 %vm701_vm1, %v14904_v35 }
0x1dc3   : > { %12874 = vmatmul.mubr.msk.f32.vlgmr.msra.gmra.mrb[66].mxu0 %vm694_vm3, %v15214_v13 }
0x1dc4   : > { %12941 = vmatprep.mubr.msk.f32.mxu0 %vm403_vm0, %v15273_v12 }
0x1e96   : > { %v12875_v7 = vpop.f32.mrb[66].mxu0 }
0x1e97   : > { %v8925_v0 = vadd.f32 %v14920_v45, %v12875_v7  ;;  %v8913_v32 = vpop.f32.mrb[67].mxu0 }
0x1e98   : > { %v8924_v34 = vadd.f32 %v14920_v45, %v8913_v32 }
0x1e99   : > { %v11285_v36 = vmul.f32 -1.442695, %v8925_v0 }
0x1e9a   : > { %v11284_v57 = vmul.f32 -1.442695, %v8924_v34 }
0x1e9b   : > { %13794 = vpow2.f32 %v11285_v36 }
0x1e9c   : > { %13796 = vpow2.f32 %v11284_v57 }
0x1ea5   : > { %v13795_v42 = vpop.eup %13794 }
0x1ea6   : > { %v13797_v44 = vpop.eup %13796  ;;  %v8933_v55 = vadd.f32 1.0, %v13795_v42 }
0x1ea7   : > { %v8932_v47 = vadd.f32 1.0, %v13797_v44 }
0x1ea8   : > { %13798 = vrcp.f32 %v8933_v55 }
0x1ea9   : > { %13800 = vrcp.f32 %v8932_v47 }
0x1eb2   : > { %v15279_v18 = vpop.eup %13798 }
0x1eb3   : > { %v15281_v11 = vpop.eup %13800  ;;  %v8939_v49 = vmul.f32 %v15279_v18, %v8235_v53  ;;  %v9512_v30 = vmul.f32 %v15279_v18, %v15198_v60 }
0x1eb4   : > { %v8938_v15 = vmul.f32 %v15281_v11, %v8233_v37  ;;  %v9514_v37 = vsub.f32 1.0, %v15279_v18  ;;  %v9513_v29 = vsub.f32 1.0, %v15281_v11  ;;  %v9511_v5 = vmul.f32 %v15281_v11, %v15200_v61 }
0x1eb6   : > { %v13464_v16 = vpack.c.bf16 %v8939_v49, %v8938_v15 }
0x1eb8   : > { %13465 = vmatprep.subr.bf16.mxu1 %v13464_v16 }
0x1eb9   : > { %13467 = vmatpush3.bf16.msra.mxu1 %v13464_v16 }
0x1eba   : > { %13469 = vmatprep.subr.bf16.mxu1 %v14129_v63 }
0x1ebc   : > { %12881 = vmatmul.mubr.msk.f32.vlgmr.msra.gmra.mrb[78].mxu1 %vm403_vm0, %v15289_v3 }
0x1ebd   : > { %12883 = vmatprep.mubr.msk.f32.mxu1 %vm403_vm0, %v15296_v19  ;;  %13471 = vmatpush3.bf16.msra.mxu1 %v14129_v63 }
0x1ebe   : > { %13473 = vmatprep.subr.bf16.mxu1 %v14138_v4 }
0x1ec0   : > { %12884 = vmatmul.mubr.msk.f32.gmra.mrb[80].mxu1 %vm403_vm0, %v15305_v25 }
0x1ec1   : > { %12886 = vmatprep.mubr.msk.f32.mxu1 %vm403_vm0, %v15312_v50  ;;  %13475 = vmatpush3.bf16.msra.mxu1 %v14138_v4 }
0x1ec2   : > { %12900 = vmatprep.subr.msk.mxu1 %vm701_vm1, %v14947_v39 }
0x1ec4   : > { %12887 = vmatmul.mubr.msk.f32.gmra.mrb[82].mxu1 %vm403_vm0, %v15322_v31 }
0x1f8f   : > { %v12882_v17 = vpop.f32.mrb[78].mxu1 }
0x1f90   : > { %v9006_v51 = vpop.f32.mrb[79].mxu1 }
0x1f91   : > { %12897 = vmatprep.mubr.msk.f32.mxu1 %vm612_vm2, %v9006_v51 }
0x1f92   : > { %12898 = vmatmul.mubr.msk.f32.vlgmr.msra.gmra.mrb[84].mxu1 %vm612_vm2, %v12882_v17 }
0x1f93   : > { %12902 = vmatprep.mubr.msk.f32.mxu1 %vm694_vm3, %v15208_v48  ;;  %12901 = vmatpush3.msk.msra.mxu1 %vm701_vm1, %v14947_v39  ;;  %v12885_v54 = vpop.f32.mrb[80].mxu1 }
0x1f94   : > { %13477 = vmatprep.subr.bf16.mxu1 %v14166_v10  ;;  %v9016_v58 = vpop.f32.mrb[81].mxu1 }
0x1f97   : > { %v12888_v28 = vpop.f32.mrb[82].mxu1 }
0x1f98   : > { %v9026_v59 = vpop.f32.mrb[83].mxu1 }
0x1f9a   : > { %12903 = vmatmul.mubr.msk.f32.vlgmr.msra.gmra.mrb[84].mxu1 %vm694_vm3, %v15206_v8 }
0x1f9b   : > { %13479 = vmatpush3.bf16.msra.mxu1 %v14166_v10  ;;  %12913 = vmatprep.mubr.msk.f32.mxu1 %vm612_vm2, %v9016_v58 }
0x1f9c   : > { %13481 = vmatprep.subr.bf16.mxu1 %v14181_v26 }
0x1f9f   : > { %13483 = vmatpush3.bf16.msra.mxu1 %v14181_v26 }
0x1fa0   : > { %12916 = vmatprep.subr.msk.mxu1 %vm701_vm1, %v14969_v62 }
0x1fa2   : > { %12914 = vmatmul.mubr.msk.f32.vlgmr.msra.gmra.mrb[84].mxu1 %vm612_vm2, %v12885_v54 }
0x1fa3   : > { %12918 = vmatprep.mubr.msk.f32.mxu1 %vm694_vm3, %v15212_v21  ;;  %12917 = vmatpush3.msk.msra.mxu1 %vm701_vm1, %v14969_v62 }
0x1fa4   : > { %13485 = vmatprep.subr.bf16.mxu1 %v14202_v23 }
0x1faa   : > { %12919 = vmatmul.mubr.msk.f32.vlgmr.msra.gmra.mrb[84].mxu1 %vm694_vm3, %v15210_v52 }
0x1fab   : > { %13487 = vmatpush3.bf16.msra.mxu1 %v14202_v23  ;;  %12929 = vmatprep.mubr.msk.f32.mxu1 %vm612_vm2, %v9026_v59 }
0x1fac   : > { %13489 = vmatprep.subr.bf16.mxu1 %v14216_v38 }
0x1faf   : > { %13491 = vmatpush3.bf16.msra.mxu1 %v14216_v38 }
0x1fb0   : > { %12932 = vmatprep.subr.msk.mxu1 %vm701_vm1, %v14988_v56 }
0x1fb2   : > { %12930 = vmatmul.mubr.msk.f32.vlgmr.msra.gmra.mrb[84].mxu1 %vm612_vm2, %v12888_v28 }
0x1fb3   : > { %12934 = vmatprep.mubr.msk.f32.mxu1 %vm694_vm3, %v15216_v22  ;;  %12933 = vmatpush3.msk.msra.mxu1 %vm701_vm1, %v14988_v56 }
0x1fb4   : > { %13501 = vmatprep.subr.bf16.mxu1 %v13944_v9 }
0x1fba   : > { %12935 = vmatmul.mubr.msk.f32.vlgmr.msra.gmra.mrb[84].mxu1 %vm694_vm3, %v15214_v13  ;;  %v11309_v13 = vld [vmem:[%s13925_s17 + $0x70] sm:$0xff] }
0x1fbb   : > { %13503 = vmatpush3.bf16.msra.mxu1 %v13944_v9  ;;  %v11310_v9 = vld [vmem:[%s13925_s17 + $0x78] sm:$0xff] }
0x1fbc   : > { %13505 = vmatprep.subr.bf16.mxu1 %v13963_v14  ;;  %v13492_v22 = vpack.c.bf16 %v11310_v9, %v11309_v13 }
0x1fbe   : > { %13493 = vmatprep.subr.bf16.mxu0 %v13492_v22 }
0x1fbf   : > { %13507 = vmatpush3.bf16.msra.mxu1 %v13963_v14  ;;  %13495 = vmatpush3.bf16.msra.mxu0 %v13492_v22 }
0x1fc0   : > { %12974 = vmatprep.subr.msk.mxu1 %vm701_vm1, %v13838_v41 }
0x1fc2   : > { %12942 = vmatmul.mubr.msk.f32.vlgmr.msra.gmra.mrb[68].mxu0 %vm403_vm0, %v15289_v3 }
0x1fc3   : > { %12944 = vmatprep.mubr.msk.f32.mxu0 %vm403_vm0, %v15296_v19 }
0x1fc6   : > { %12945 = vmatmul.mubr.msk.f32.gmra.mrb[70].mxu0 %vm403_vm0, %v15305_v25 }
0x1fc7   : > { %12947 = vmatprep.mubr.msk.f32.mxu0 %vm403_vm0, %v15312_v50 }
0x1fca   : > { %12948 = vmatmul.mubr.msk.f32.gmra.mrb[72].mxu0 %vm403_vm0, %v15322_v31 }
0x1fcb   : > { %12954 = vmatprep.mubr.msk.f32.mxu0 %vm403_vm0, %v15273_v12 }
0x208d   : > { %v12936_v8 = vpop.f32.mrb[84].mxu1 }
0x208e   : > { %v9508_v48 = vadd.f32 %v15008_v20, %v12936_v8  ;;  %v9496_v52 = vpop.f32.mrb[85].mxu1 }
0x208f   : > { %v9507_v21 = vadd.f32 %v15008_v20, %v9496_v52 }
0x2090   : > { %13802 = vtanh.f32 %v9508_v48 }
0x2091   : > { %13804 = vtanh.f32 %v9507_v21 }
0x2095   : > { %v15402_v32 = vpop.f32.mrb[68].mxu0 }
0x2096   : > { %v15404_v60 = vpop.f32.mrb[69].mxu0 }
0x2099   : > { %v15406_v34 = vpop.f32.mrb[70].mxu0 }
0x209a   : > { %v13803_v14 = vpop.eup %13802  ;;  %v15408_v36 = vpop.f32.mrb[71].mxu0 }
0x209b   : > { %v13805_v53 = vpop.eup %13804  ;;  %9519 = vrot.lane.b32.xlu1 %v13803_v14, %s13847_s24 }
0x209c   : > { %9517 = vrot.lane.b32.xlu0 %v13805_v53, %s13847_s24 }
0x209d   : > { %v15410_v61 = vpop.f32.mrb[72].mxu0 }
0x209e   : > { %v15412_v57 = vpop.f32.mrb[73].mxu0 }
0x210d   : > { %v9520_v27 = vpop.permute.xlu1 %9519 }
0x210e   : > { %v9524_v1 = vmul.f32 %v9520_v27, %v9514_v37  ;;  %v9518_v2 = vpop.permute.xlu0 %9517 }
0x210f   : > { %v9523_v6 = vmul.f32 %v9518_v2, %v9513_v29 }
0x2110   : > { %v15394_v7 = vadd.f32 %v9524_v1, %v9512_v30 }
0x2111   : > { %v15396_v0 = vadd.f32 %v9523_v6, %v9511_v5 }
0x2112   : > { %9531 = vrot.lane.b32.xlu1 %v15394_v7, %s13848_s12 }
0x2113   : > { %9529 = vrot.lane.b32.xlu0 %v15396_v0, %s13848_s12 }
0x2184   : > { %v9532_v42 = vpop.permute.xlu1 %9531 }
0x2185   : > { %11308 = vst.msk [vmem:[%s14284_s16 + $0x68] sm:$0xff] %vm612_vm2, %v9532_v42  ;;  %v9530_v44 = vpop.permute.xlu0 %9529 }
0x2186   : > { %11307 = vst.msk [vmem:[%s14284_s16 + $0x60] sm:$0xff] %vm612_vm2, %v9530_v44  ;;  %v13496_v55 = vpack.c.bf16 %v9532_v42, %v9530_v44 }
0x2188   : > { %13497 = vmatprep.subr.bf16.mxu0 %v13496_v55 }
0x2189   : > { %13499 = vmatpush3.bf16.msra.mxu0 %v13496_v55 }
0x218c   : > { %12955 = vmatmul.mubr.msk.f32.vlgmr.msra.gmra.mrb[74].mxu0 %vm403_vm0, %v15289_v3 }
0x218d   : > { %12957 = vmatprep.mubr.msk.f32.mxu0 %vm403_vm0, %v15296_v19 }
0x2190   : > { %12958 = vmatmul.mubr.msk.f32.gmra.mrb[76].mxu0 %vm403_vm0, %v15305_v25 }
0x2191   : > { %12960 = vmatprep.mubr.msk.f32.mxu0 %vm403_vm0, %v15312_v50 }
0x2194   : > { %12961 = vmatmul.mubr.msk.f32.gmra.mrb[78].mxu0 %vm403_vm0, %v15322_v31 }
0x2195   : > { %13015 = vmatprep.mubr.msk.f32.mxu0 %vm403_vm0, %v15273_v12 }
0x225f   : > { %v12956_v47 = vpop.f32.mrb[74].mxu0 }
0x2260   : > { %v9702_v18 = vpop.f32.mrb[75].mxu0 }
0x2261   : > { %12971 = vmatprep.mubr.msk.f32.mxu1 %vm612_vm2, %v9702_v18 }
0x2262   : > { %12972 = vmatmul.mubr.msk.f32.vlgmr.msra.gmra.mrb[86].mxu1 %vm612_vm2, %v12956_v47 }
0x2263   : > { %12976 = vmatprep.mubr.msk.f32.mxu1 %vm694_vm3, %v15404_v60  ;;  %12975 = vmatpush3.msk.msra.mxu1 %vm701_vm1, %v13838_v41  ;;  %v12959_v11 = vpop.f32.mrb[76].mxu0 }
0x2264   : > { %13509 = vmatprep.subr.bf16.mxu1 %v14024_v24  ;;  %v9712_v49 = vpop.f32.mrb[77].mxu0 }
0x2267   : > { %v12962_v15 = vpop.f32.mrb[78].mxu0 }
0x2268   : > { %v9722_v16 = vpop.f32.mrb[79].mxu0 }
0x226a   : > { %12977 = vmatmul.mubr.msk.f32.vlgmr.msra.gmra.mrb[86].mxu1 %vm694_vm3, %v15402_v32 }
0x226b   : > { %13511 = vmatpush3.bf16.msra.mxu1 %v14024_v24  ;;  %12987 = vmatprep.mubr.msk.f32.mxu1 %vm612_vm2, %v9712_v49 }
0x226c   : > { %13513 = vmatprep.subr.bf16.mxu1 %v14045_v33 }
0x226f   : > { %13515 = vmatpush3.bf16.msra.mxu1 %v14045_v33 }
0x2270   : > { %12990 = vmatprep.subr.msk.mxu1 %vm701_vm1, %v14885_v46 }
0x2272   : > { %12988 = vmatmul.mubr.msk.f32.vlgmr.msra.gmra.mrb[86].mxu1 %vm612_vm2, %v12959_v11 }
0x2273   : > { %12992 = vmatprep.mubr.msk.f32.mxu1 %vm694_vm3, %v15408_v36  ;;  %12991 = vmatpush3.msk.msra.mxu1 %vm701_vm1, %v14885_v46 }
0x2274   : > { %13517 = vmatprep.subr.bf16.mxu1 %v14070_v40 }
0x227a   : > { %12993 = vmatmul.mubr.msk.f32.vlgmr.msra.gmra.mrb[86].mxu1 %vm694_vm3, %v15406_v34 }
0x227b   : > { %13519 = vmatpush3.bf16.msra.mxu1 %v14070_v40  ;;  %13003 = vmatprep.mubr.msk.f32.mxu1 %vm612_vm2, %v9722_v16 }
0x227c   : > { %13521 = vmatprep.subr.bf16.mxu1 %v14084_v43 }
0x227f   : > { %13523 = vmatpush3.bf16.msra.mxu1 %v14084_v43 }
0x2280   : > { %13006 = vmatprep.subr.msk.mxu1 %vm701_vm1, %v14904_v35 }
0x2282   : > { %13004 = vmatmul.mubr.msk.f32.vlgmr.msra.gmra.mrb[86].mxu1 %vm612_vm2, %v12962_v15 }
0x2283   : > { %13008 = vmatprep.mubr.msk.f32.mxu1 %vm694_vm3, %v15412_v57  ;;  %13007 = vmatpush3.msk.msra.mxu1 %vm701_vm1, %v14904_v35 }
0x228a   : > { %13009 = vmatmul.mubr.msk.f32.vlgmr.msra.gmra.mrb[86].mxu1 %vm694_vm3, %v15410_v61 }
0x235d   : > { %v13010_v24 = vpop.f32.mrb[86].mxu1 }
0x235e   : > { %v10222_v33 = vadd.f32 %v14920_v45, %v13010_v24  ;;  %v10210_v40 = vpop.f32.mrb[87].mxu1 }
0x235f   : > { %v10221_v43 = vadd.f32 %v14920_v45, %v10210_v40 }
0x2360   : > { %v11339_v46 = vmul.f32 -1.442695, %v10222_v33 }
0x2361   : > { %v11338_v12 = vmul.f32 -1.442695, %v10221_v43 }
0x2362   : > { %13806 = vpow2.f32 %v11339_v46 }
0x2363   : > { %13808 = vpow2.f32 %v11338_v12 }
0x236c   : > { %v13807_v17 = vpop.eup %13806 }
0x236d   : > { %v13809_v51 = vpop.eup %13808  ;;  %v10230_v54 = vadd.f32 1.0, %v13807_v17 }
0x236e   : > { %v10229_v58 = vadd.f32 1.0, %v13809_v51 }
0x236f   : > { %13810 = vrcp.f32 %v10230_v54 }
0x2370   : > { %13812 = vrcp.f32 %v10229_v58 }
0x2379   : > { %v15467_v35 = vpop.eup %13810 }
0x237a   : > { %v15469_v28 = vpop.eup %13812  ;;  %v10236_v59 = vmul.f32 %v15467_v35, %v9532_v42  ;;  %v10809_v48 = vmul.f32 %v15467_v35, %v15394_v7 }
0x237b   : > { %v10235_v41 = vmul.f32 %v15469_v28, %v9530_v44  ;;  %v10808_v21 = vmul.f32 %v15469_v28, %v15396_v0 }
0x237d   : > { %v13524_v8 = vpack.c.bf16 %v10236_v59, %v10235_v41 }
0x237f   : > { %13525 = vmatprep.subr.bf16.mxu0 %v13524_v8 }
0x2380   : > { %13527 = vmatpush3.bf16.msra.mxu0 %v13524_v8 }
0x2381   : > { %13529 = vmatprep.subr.bf16.mxu0 %v14129_v63 }
0x2383   : > { %13016 = vmatmul.mubr.msk.f32.vlgmr.msra.gmra.mrb[80].mxu0 %vm403_vm0, %v15289_v3 }
0x2384   : > { %13018 = vmatprep.mubr.msk.f32.mxu0 %vm403_vm0, %v15296_v19  ;;  %13531 = vmatpush3.bf16.msra.mxu0 %v14129_v63 }
0x2385   : > { %13533 = vmatprep.subr.bf16.mxu0 %v14138_v4 }
0x2387   : > { %13019 = vmatmul.mubr.msk.f32.gmra.mrb[82].mxu0 %vm403_vm0, %v15305_v25 }
0x2388   : > { %13021 = vmatprep.mubr.msk.f32.mxu0 %vm403_vm0, %v15312_v50  ;;  %13535 = vmatpush3.bf16.msra.mxu0 %v14138_v4 }
0x2389   : > { %13035 = vmatprep.subr.msk.mxu0 %vm701_vm1, %v14947_v39 }
0x238b   : > { %13022 = vmatmul.mubr.msk.f32.gmra.mrb[84].mxu0 %vm403_vm0, %v15322_v31  ;;  %v10810_v31 = vsub.f32 1.0, %v15469_v28 }
0x2456   : > { %v13017_v45 = vpop.f32.mrb[80].mxu0 }
0x2457   : > { %v10303_v3 = vpop.f32.mrb[81].mxu0 }
0x2458   : > { %13032 = vmatprep.mubr.msk.f32.mxu0 %vm612_vm2, %v10303_v3 }
0x2459   : > { %13033 = vmatmul.mubr.msk.f32.vlgmr.msra.gmra.mrb[86].mxu0 %vm612_vm2, %v13017_v45 }
0x245a   : > { %13037 = vmatprep.mubr.msk.f32.mxu0 %vm694_vm3, %v15404_v60  ;;  %13036 = vmatpush3.msk.msra.mxu0 %vm701_vm1, %v14947_v39  ;;  %v13020_v63 = vpop.f32.mrb[82].mxu0 }
0x245b   : > { %13537 = vmatprep.subr.bf16.mxu0 %v14166_v10  ;;  %v10313_v4 = vpop.f32.mrb[83].mxu0 }
0x245e   : > { %v13023_v19 = vpop.f32.mrb[84].mxu0 }
0x245f   : > { %v10323_v25 = vpop.f32.mrb[85].mxu0 }
0x2461   : > { %13038 = vmatmul.mubr.msk.f32.vlgmr.msra.gmra.mrb[86].mxu0 %vm694_vm3, %v15402_v32 }
0x2462   : > { %13539 = vmatpush3.bf16.msra.mxu0 %v14166_v10  ;;  %13048 = vmatprep.mubr.msk.f32.mxu0 %vm612_vm2, %v10313_v4 }
0x2463   : > { %13541 = vmatprep.subr.bf16.mxu0 %v14181_v26 }
0x2466   : > { %13543 = vmatpush3.bf16.msra.mxu0 %v14181_v26 }
0x2467   : > { %13051 = vmatprep.subr.msk.mxu0 %vm701_vm1, %v14969_v62 }
0x2469   : > { %13049 = vmatmul.mubr.msk.f32.vlgmr.msra.gmra.mrb[86].mxu0 %vm612_vm2, %v13020_v63 }
0x246a   : > { %13053 = vmatprep.mubr.msk.f32.mxu0 %vm694_vm3, %v15408_v36  ;;  %13052 = vmatpush3.msk.msra.mxu0 %vm701_vm1, %v14969_v62 }
0x246b   : > { %13545 = vmatprep.subr.bf16.mxu0 %v14202_v23 }
0x2471   : > { %13054 = vmatmul.mubr.msk.f32.vlgmr.msra.gmra.mrb[86].mxu0 %vm694_vm3, %v15406_v34 }
0x2472   : > { %13547 = vmatpush3.bf16.msra.mxu0 %v14202_v23  ;;  %13064 = vmatprep.mubr.msk.f32.mxu0 %vm612_vm2, %v10323_v25 }
0x2473   : > { %13549 = vmatprep.subr.bf16.mxu0 %v14216_v38 }
0x2476   : > { %13551 = vmatpush3.bf16.msra.mxu0 %v14216_v38 }
0x2477   : > { %13067 = vmatprep.subr.msk.mxu0 %vm701_vm1, %v14988_v56 }
0x2479   : > { %13065 = vmatmul.mubr.msk.f32.vlgmr.msra.gmra.mrb[86].mxu0 %vm612_vm2, %v13023_v19 }
0x247a   : > { %13069 = vmatprep.mubr.msk.f32.mxu0 %vm694_vm3, %v15412_v57  ;;  %13068 = vmatpush3.msk.msra.mxu0 %vm701_vm1, %v14988_v56  ;;  %v10811_v56 = vsub.f32 1.0, %v15467_v35 }
0x2481   : > { %13070 = vmatmul.mubr.msk.f32.vlgmr.msra.gmra.mrb[86].mxu0 %vm694_vm3, %v15410_v61 }
0x2554   : > { %v13071_v10 = vpop.f32.mrb[86].mxu0 }
0x2555   : > { %v10805_v26 = vadd.f32 %v15008_v20, %v13071_v10  ;;  %v10793_v23 = vpop.f32.mrb[87].mxu0 }
0x2556   : > { %v10804_v38 = vadd.f32 %v15008_v20, %v10793_v23 }
0x2557   : > { %13814 = vtanh.f32 %v10805_v26 }
0x2558   : > { %13816 = vtanh.f32 %v10804_v38 }
0x2561   : > { %v13815_v39 = vpop.eup %13814 }
0x2562   : > { %v13817_v62 = vpop.eup %13816  ;;  %10816 = vrot.lane.b32.xlu1 %v13815_v39, %s13847_s24 }
0x2563   : > { %10814 = vrot.lane.b32.xlu0 %v13817_v62, %s13847_s24 }
0x25d4   : > { %v10817_v50 = vpop.permute.xlu1 %10816 }
0x25d5   : > { %v10821_v52 = vmul.f32 %v10817_v50, %v10811_v56  ;;  %v10815_v20 = vpop.permute.xlu0 %10814 }
0x25d6   : > { %v10820_v13 = vmul.f32 %v10815_v20, %v10810_v31 }
0x25d7   : > { %v10823_v9 = vadd.f32 %v10821_v52, %v10809_v48 }
0x25d8   : > { %v10822_v22 = vadd.f32 %v10820_v13, %v10808_v21 }
0x25d9   : > { %10828 = vrot.lane.b32.xlu1 %v10823_v9, %s13848_s12 }
0x25da   : > { %10826 = vrot.lane.b32.xlu0 %v10822_v22, %s13848_s12 }
0x264b   : > { %v10829_v14 = vpop.permute.xlu1 %10828 }
0x264c   : > { %11362 = vst.msk [vmem:[%s14284_s16 + $0x78] sm:$0xff] %vm612_vm2, %v10829_v14  ;;  %v10827_v53 = vpop.permute.xlu0 %10826 }
0x264d   : > { %11361 = vst.msk [vmem:[%s14284_s16 + $0x70] sm:$0xff] %vm612_vm2, %v10827_v53 }
0x264e PF: > { %s19_s30 = sadd.s32 1, %s13845_s30  }
0x264f   : > { %p16_p4 = scmp.ge.s32.totalorder %s19_s30, 4  }
0x2651   :  { %18 = sbr.rel (!%p16_p4) target bundleno = 1 (0x1), region = 111 }

// kernel: gcrnn_forward.3
= control target key start
LH: loop header
LB: loop body
LE: loop exit
PB: predicated region body
PF: predicated region fallthrough
CT: control target
= control target key end

     0   :  { %s14671_s30 = smov 0   ;;  %s16392_s0 = inlined_call_operand.vmem [shape: f32[48,16], index: 0, kind: input, shape index: {}]   ;;  %s16393_s1 = inlined_call_operand.vmem [shape: f32[2,8,16,32], index: 1, kind: input, shape index: {}]   ;;  %s16394_s2 = inlined_call_operand.vmem [shape: f32[2,16,32], index: 2, kind: input, shape index: {}]   ;;  %s16395_s3 = inlined_call_operand.vmem [shape: f32[3,32,64], index: 3, kind: input, shape index: {}]   ;;  %s16396_s4 = inlined_call_operand.vmem [shape: f32[3,32,64], index: 4, kind: input, shape index: {}]   ;;  %s16397_s5 = inlined_call_operand.vmem [shape: f32[1,64], index: 5, kind: input, shape index: {}]   ;;  %s16398_s6 = inlined_call_operand.vmem [shape: f32[3,32,32], index: 6, kind: input, shape index: {}]   ;;  %s16399_s7 = inlined_call_operand.vmem [shape: f32[3,32,32], index: 7, kind: input, shape index: {}]   ;;  %s16400_s8 = inlined_call_operand.vmem [shape: f32[1,32], index: 8, kind: input, shape index: {}]   ;;  %s16401_s9 = inlined_call_operand.vmem [shape: f32[2,8,16,32], index: 9, kind: output, shape index: {}]  }
   0x1 LB: > { %s10900_s10 = sadd.s32 4294967295, %s14617_s30   ;;  %p10904_p0 = scmp.ge.s32.totalorder %s14617_s30, 1  ;;  %s14617_s30 = sphi %s14671_s30, %s19_s30  }
   0x2   : > { %p297_p1 = scmp.lt.s32.totalorder %s14617_s30, 3 }
   0x4   : > { %p298_p2 = pnand %p10904_p0, %p297_p1 }
   0x5   : > { %p338_p3 = scmp.lt.s32.totalorder (!%p298_p2), %s10900_s10, 1  ;;  %v14682_v0 = vld [vmem:[%s16392_s0] sm:$0xff] (!%p298_p2)  ;;  %vm421_vm0 = vcmask (!%p298_p2), 130048   ;;  %v376_v2 = vld [vmem:[%s16396_s4 + $0x8] sm:$0xff] (!%p298_p2)  ;;  %v377_v10 = vld [vmem:[%s16396_s4 + $0x10] sm:$0xff] (!%p298_p2)  ;;  %s14619_s26 = smov (!%p298_p2), 32  }
   0x6   : > { %301 = sbr.rel (%p298_p2) target bundleno = 9806 (0x264e), region = 56  ;;  %12115 = vmatprep.mubr.msk.f32.mxu1 (!%p298_p2), %vm421_vm0, %v14682_v0  ;;  %12102 = vmatprep.mubr.msk.f32.mxu0 (!%p298_p2), %vm421_vm0, %v14682_v0  ;;  %v375_v1 = vld [vmem:[%s16396_s4] sm:$0xff] (!%p298_p2)  ;;  %v378_v11 = vld [vmem:[%s16396_s4 + $0x18] sm:$0xff] (!%p298_p2)  ;;  %v14727_v12 = vld [vmem:[%s16392_s0 + $0x8] sm:$0xff] (!%p298_p2)  ;;  %vm630_vm1 = vcmask (!%p298_p2), 261120   ;;  %s14620_s18 = smov (!%p298_p2), 96  }
   0x7   : > { %v14716_v9 = vpack.c.bf16 (!%p298_p2), %v376_v2, %v375_v1  ;;  %v14732_v13 = vld [vmem:[%s16392_s0 + $0x10] sm:$0xff] (!%p298_p2)  ;;  %v14735_v14 = vpack.c.bf16 (!%p298_p2), %v378_v11, %v377_v10  ;;  %v14746_v15 = vld [vmem:[%s16392_s0 + $0x18] sm:$0xff] (!%p298_p2)  ;;  %v14753_v16 = vld [vmem:[%s16392_s0 + $0x20] sm:$0xff] (!%p298_p2) }
   0x8   : > { %v14766_v17 = vld [vmem:[%s16392_s0 + $0x28] sm:$0xff] (!%p298_p2)  ;;  %v361_v18 = vld [vmem:[%s16395_s3] sm:$0xff] (!%p298_p2)  ;;  %v363_v21 = vld [vmem:[%s16395_s3 + $0x10] sm:$0xff] (!%p298_p2) }
   0x9   : > { %v362_v19 = vld [vmem:[%s16395_s3 + $0x8] sm:$0xff] (!%p298_p2)  ;;  %v364_v22 = vld [vmem:[%s16395_s3 + $0x18] sm:$0xff] (!%p298_p2)  ;;  %v10919_v28 = vld [vmem:[%s16396_s4 + $0x20] sm:$0xff] (!%p298_p2) }
   0xa   : > { %v14783_v20 = vpack.c.bf16 (!%p298_p2), %v362_v19, %v361_v18  ;;  %v14798_v26 = vpack.c.bf16 (!%p298_p2), %v364_v22, %v363_v21  ;;  %v10920_v29 = vld [vmem:[%s16396_s4 + $0x28] sm:$0xff] (!%p298_p2)  ;;  %v10921_v34 = vld [vmem:[%s16396_s4 + $0x30] sm:$0xff] (!%p298_p2)  ;;  %v10922_v35 = vld [vmem:[%s16396_s4 + $0x38] sm:$0xff] (!%p298_p2) }
   0xb   : > { %v14814_v31 = vpack.c.bf16 (!%p298_p2), %v10920_v29, %v10919_v28  ;;  %v14828_v38 = vpack.c.bf16 (!%p298_p2), %v10922_v35, %v10921_v34  ;;  %v10911_v41 = vld [vmem:[%s16395_s3 + $0x20] sm:$0xff] (!%p298_p2)  ;;  %v10912_v42 = vld [vmem:[%s16395_s3 + $0x28] sm:$0xff] (!%p298_p2)  ;;  %v10913_v45 = vld [vmem:[%s16395_s3 + $0x30] sm:$0xff] (!%p298_p2) }
   0xc   : > { %v14845_v44 = vpack.c.bf16 (!%p298_p2), %v10912_v42, %v10911_v41  ;;  %v10914_v46 = vld [vmem:[%s16395_s3 + $0x38] sm:$0xff] (!%p298_p2)  ;;  %v10923_v48 = vld [vmem:[%s16396_s4 + $0x40] sm:$0xff] (!%p298_p2)  ;;  %v10924_v49 = vld [vmem:[%s16396_s4 + $0x48] sm:$0xff] (!%p298_p2) }
   0xd   : > { %s16403_s10 = smov (!%p338_p3, %s10900_s10), 1  ;;  %v14855_v47 = vpack.c.bf16 %v10914_v46, %v10913_v45  ;;  %v14868_v50 = vpack.c.bf16 %v10924_v49, %v10923_v48  ;;  %v10925_v51 = vld [vmem:[%s16396_s4 + $0x50] sm:$0xff]  ;;  %v10926_v52 = vld [vmem:[%s16396_s4 + $0x58] sm:$0xff]  ;;  %v10915_v54 = vld [vmem:[%s16395_s3 + $0x40] sm:$0xff] }
   0xe   : > { %s11327_s13 = sshll.u32 %s16403_s10, 7  ;;  %s11328_s14 = sshll.u32 %s16403_s10, 4  ;;  %v14878_v53 = vpack.c.bf16 %v10926_v52, %v10925_v51  ;;  %v10916_v55 = vld [vmem:[%s16395_s3 + $0x48] sm:$0xff]  ;;  %v10917_v57 = vld [vmem:[%s16395_s3 + $0x50] sm:$0xff]  ;;  %v10918_v58 = vld [vmem:[%s16395_s3 + $0x58] sm:$0xff] }
   0xf   : > { %s14697_s17 = scalar_lea.vmem %s16393_s1, %s11327_s13  ;;  %s347_s20 = scalar_lea.vmem %s16394_s2, %s11328_s14  ;;  %v14891_v56 = vpack.c.bf16 %v10916_v55, %v10915_v54  ;;  %v14901_v59 = vpack.c.bf16 %v10918_v58, %v10917_v57  ;;  %v14916_v60 = vld [vmem:[%s16397_s5] ss:$0 sm:$0xff]  ;;  %v404_v22 = vld [vmem:[%s16399_s7 + $0x8] sm:$0xff]  ;;  %v405_v29 = vld [vmem:[%s16399_s7 + $0x10] sm:$0xff] }
  0x10   : > { %v14708_v3 = vld [vmem:[%s347_s20] sm:$0xff]  ;;  %v14710_v4 = vld [vmem:[%s347_s20 + $0x8] sm:$0xff]  ;;  %v391_v35 = vld [vmem:[%s16398_s6 + $0x10] sm:$0xff]  ;;  %s15121_s21 = scalar_lea.vmem %s16401_s9, %s11327_s13 }
  0x11   : > { %v419_v5 = vld [vmem:[%s14697_s17] sm:$0xff]  ;;  %v13470_v6 = vpack.c.bf16 %v14710_v4, %v14708_v3  ;;  %v420_v7 = vld [vmem:[%s14697_s17 + $0x8] sm:$0xff]  ;;  %1722 = vrot.lane.b32.xlu0 %v14708_v3, %s14619_s26  ;;  %v10937_v52 = vld [vmem:[%s16399_s7 + $0x30] sm:$0xff] }
  0x12   : > { %v13466_v8 = vpack.c.bf16 %v420_v7, %v419_v5  ;;  %v403_v21 = vld [vmem:[%s16399_s7] sm:$0xff]  ;;  %v10936_v46 = vld [vmem:[%s16399_s7 + $0x28] sm:$0xff]  ;;  %v10938_v54 = vld [vmem:[%s16399_s7 + $0x38] sm:$0xff] }
  0x13   : > { %13471 = vmatprep.subr.bf16.mxu1 %v13470_v6  ;;  %v14934_v28 = vpack.c.bf16 %v404_v22, %v403_v21  ;;  %v10935_v45 = vld [vmem:[%s16399_s7 + $0x20] sm:$0xff]  ;;  %v10933_v22 = vld [vmem:[%s16398_s6 + $0x50] sm:$0xff] }
  0x14   : > { %13473 = vmatpush3.bf16.msra.mxu1 %v13470_v6  ;;  %13467 = vmatprep.subr.bf16.mxu0 %v13466_v8  ;;  %v14987_v49 = vpack.c.bf16 %v10936_v46, %v10935_v45  ;;  %v10927_v58 = vld [vmem:[%s16398_s6 + $0x20] sm:$0xff] }
  0x15   : > { %13469 = vmatpush3.bf16.msra.mxu0 %v13466_v8  ;;  %1724 = vrot.lane.b32.xlu0 %v14710_v4, %s14619_s26 }
  0x16   : > { %13475 = vmatprep.subr.bf16.mxu0 %v14716_v9 }
  0x17   : > { %12116 = vmatmul.mubr.msk.f32.vlgmr.msra.gmra.mrb[0].mxu1 %vm421_vm0, %v14727_v12 }
  0x18   : > { %12103 = vmatmul.mubr.msk.f32.vlgmr.msra.gmra.mrb[0].mxu0 %vm421_vm0, %v14727_v12  ;;  %12118 = vmatprep.mubr.msk.f32.mxu1 %vm421_vm0, %v14732_v13 }
  0x19   : > { %12105 = vmatprep.mubr.msk.f32.mxu0 %vm421_vm0, %v14732_v13  ;;  %13477 = vmatpush3.bf16.msra.mxu0 %v14716_v9 }
  0x1a   : > { %13479 = vmatprep.subr.bf16.mxu0 %v14735_v14 }
  0x1b   : > { %12119 = vmatmul.mubr.msk.f32.gmra.mrb[2].mxu1 %vm421_vm0, %v14746_v15 }
  0x1c   : > { %12106 = vmatmul.mubr.msk.f32.gmra.mrb[2].mxu0 %vm421_vm0, %v14746_v15  ;;  %12121 = vmatprep.mubr.msk.f32.mxu1 %vm421_vm0, %v14753_v16 }
  0x1d   : > { %12108 = vmatprep.mubr.msk.f32.mxu0 %vm421_vm0, %v14753_v16  ;;  %13481 = vmatpush3.bf16.msra.mxu0 %v14735_v14 }
  0x1e   : > { %13483 = vmatprep.subr.bf16.mxu0 %v14783_v20 }
  0x1f   : > { %12122 = vmatmul.mubr.msk.f32.gmra.mrb[4].mxu1 %vm421_vm0, %v14766_v17 }
  0x20   : > { %12109 = vmatmul.mubr.msk.f32.gmra.mrb[4].mxu0 %vm421_vm0, %v14766_v17  ;;  %12194 = vmatprep.mubr.msk.f32.mxu1 %vm421_vm0, %v14682_v0 }
  0xea   : > { %v12117_v23 = vpop.f32.mrb[0].mxu1 }
  0xeb   : > { %v601_v24 = vpop.f32.mrb[1].mxu1  ;;  %v14796_v25 = vpop.f32.mrb[0].mxu0 }
  0xec   : > { %12132 = vmatprep.mubr.msk.f32.mxu0 %vm630_vm1, %v601_v24  ;;  %v14801_v27 = vpop.f32.mrb[1].mxu0 }
  0xed   : > { %12133 = vmatmul.mubr.msk.f32.vlgmr.msra.gmra.mrb[6].mxu0 %vm630_vm1, %v12117_v23 }
  0xee   : > { %13485 = vmatpush3.bf16.msra.mxu0 %v14783_v20  ;;  %12143 = vmatprep.mubr.msk.f32.mxu0 %vm630_vm1, %v14801_v27  ;;  %v12120_v30 = vpop.f32.mrb[2].mxu1 }
  0xef   : > { %13487 = vmatprep.subr.bf16.mxu0 %v14798_v26  ;;  %v611_v32 = vpop.f32.mrb[3].mxu1  ;;  %v14816_v33 = vpop.f32.mrb[2].mxu0 }
  0xf0   : > { %v14824_v36 = vpop.f32.mrb[3].mxu0 }
  0xf2   : > { %13489 = vmatpush3.bf16.msra.mxu0 %v14798_v26  ;;  %v12123_v37 = vpop.f32.mrb[4].mxu1 }
  0xf3   : > { %13491 = vmatprep.subr.bf16.mxu0 %v14814_v31  ;;  %v621_v39 = vpop.f32.mrb[5].mxu1  ;;  %v14830_v40 = vpop.f32.mrb[4].mxu0 }
  0xf4   : > { %v14838_v43 = vpop.f32.mrb[5].mxu0 }
  0xf5   : > { %12144 = vmatmul.mubr.msk.f32.vlgmr.msra.gmra.mrb[6].mxu0 %vm630_vm1, %v14796_v25 }
  0xf6   : > { %13493 = vmatpush3.bf16.msra.mxu0 %v14814_v31  ;;  %12154 = vmatprep.mubr.msk.f32.mxu0 %vm630_vm1, %v611_v32  ;;  %v390_v32 = vld [vmem:[%s16398_s6 + $0x8] sm:$0xff] }
  0xf7   : > { %13495 = vmatprep.subr.bf16.mxu0 %v14828_v38 }
  0xfa   : > { %13497 = vmatpush3.bf16.msra.mxu0 %v14828_v38 }
  0xfb   : > { %13499 = vmatprep.subr.bf16.mxu0 %v14845_v44 }
  0xfd   : > { %12155 = vmatmul.mubr.msk.f32.vlgmr.msra.gmra.mrb[6].mxu0 %vm630_vm1, %v12120_v30 }
  0xfe   : > { %13501 = vmatpush3.bf16.msra.mxu0 %v14845_v44  ;;  %12165 = vmatprep.mubr.msk.f32.mxu0 %vm630_vm1, %v14824_v36 }
  0xff   : > { %13503 = vmatprep.subr.bf16.mxu0 %v14855_v47 }
 0x102   : > { %13505 = vmatpush3.bf16.msra.mxu0 %v14855_v47 }
 0x103   : > { %13507 = vmatprep.subr.bf16.mxu0 %v14868_v50 }
 0x105   : > { %12166 = vmatmul.mubr.msk.f32.vlgmr.msra.gmra.mrb[6].mxu0 %vm630_vm1, %v14816_v33 }
 0x106   : > { %13509 = vmatpush3.bf16.msra.mxu0 %v14868_v50  ;;  %12176 = vmatprep.mubr.msk.f32.mxu0 %vm630_vm1, %v621_v39 }
 0x107   : > { %13511 = vmatprep.subr.bf16.mxu0 %v14878_v53 }
 0x10a   : > { %13513 = vmatpush3.bf16.msra.mxu0 %v14878_v53 }
 0x10b   : > { %13515 = vmatprep.subr.bf16.mxu0 %v14891_v56 }
 0x10d   : > { %12177 = vmatmul.mubr.msk.f32.vlgmr.msra.gmra.mrb[6].mxu0 %vm630_vm1, %v12123_v37  ;;  %v392_v37 = vld [vmem:[%s16398_s6 + $0x18] sm:$0xff] }
 0x10e   : > { %13517 = vmatpush3.bf16.msra.mxu0 %v14891_v56  ;;  %12187 = vmatprep.mubr.msk.f32.mxu0 %vm630_vm1, %v14838_v43  ;;  %v14973_v42 = vpack.c.bf16 %v392_v37, %v391_v35  ;;  %v1723_v35 = vpop.permute.xlu0 %1722 }
 0x10f   : > { %13519 = vmatprep.subr.bf16.mxu0 %v14901_v59 }
 0x112   : > { %13521 = vmatpush3.bf16.msra.mxu0 %v14901_v59  ;;  %v1725_v46 = vpop.permute.xlu0 %1724 }
 0x115   : > { %12188 = vmatmul.mubr.msk.f32.vlgmr.msra.gmra.mrb[6].mxu0 %vm630_vm1, %v14830_v40 }
 0x116   : > { %12286 = vmatprep.mubr.msk.f32.mxu0 %vm421_vm0, %v14682_v0 }
 0x1e8   : > { %v12189_v61 = vpop.f32.mrb[6].mxu0 }
 0x1e9   : > { %v1128_v62 = vadd.f32 %v12189_v61, %v14916_v60  ;;  %v1110_v63 = vpop.f32.mrb[7].mxu0  ;;  %v10928_v61 = vld [vmem:[%s16398_s6 + $0x28] sm:$0xff] }
 0x1ea   : > { %v1127_v1 = vadd.f32 %v14916_v60, %v1110_v63  ;;  %v10929_v63 = vld [vmem:[%s16398_s6 + $0x30] sm:$0xff] }
 0x1eb   : > { %v10969_v2 = vmul.f32 -1.442695, %v1128_v62  ;;  %v15010_v62 = vpack.c.bf16 %v10928_v61, %v10927_v58 }
 0x1ec   : > { %v10968_v5 = vmul.f32 -1.442695, %v1127_v1  ;;  %v10930_v1 = vld [vmem:[%s16398_s6 + $0x38] sm:$0xff] }
 0x1ed   : > { %14500 = vpow2.f32 %v10969_v2  ;;  %v10939_v2 = vld [vmem:[%s16399_s7 + $0x40] sm:$0xff] }
 0x1ee   : > { %14502 = vpow2.f32 %v10968_v5  ;;  %v10940_v5 = vld [vmem:[%s16399_s7 + $0x48] sm:$0xff] }
 0x1f7   : > { %v14501_v6 = vpop.eup %14500 }
 0x1f8   : > { %v14503_v7 = vpop.eup %14502  ;;  %v1136_v8 = vadd.f32 1.0, %v14501_v6  ;;  %v15033_v6 = vpack.c.bf16 %v10940_v5, %v10939_v2 }
 0x1f9   : > { %v1135_v10 = vadd.f32 1.0, %v14503_v7  ;;  %v10941_v7 = vld [vmem:[%s16399_s7 + $0x50] sm:$0xff] }
 0x1fa   : > { %14504 = vrcp.f32 %v1136_v8  ;;  %v10942_v8 = vld [vmem:[%s16399_s7 + $0x58] sm:$0xff] }
 0x1fb   : > { %14506 = vrcp.f32 %v1135_v10  ;;  %v15043_v10 = vpack.c.bf16 %v10942_v8, %v10941_v7 }
 0x204   : > { %v14920_v11 = vpop.eup %14504 }
 0x205   : > { %v14922_v18 = vpop.eup %14506  ;;  %v1142_v19 = vmul.f32 %v14920_v11, %v14710_v4  ;;  %v406_v4 = vld [vmem:[%s16399_s7 + $0x18] sm:$0xff]  ;;  %v1729_v58 = vmul.f32 %v14920_v11, %v1725_v46 }
 0x206   : > { %v1141_v23 = vmul.f32 %v14922_v18, %v14708_v3  ;;  %v14943_v30 = vpack.c.bf16 %v406_v4, %v405_v29  ;;  %v389_v3 = vld [vmem:[%s16398_s6] sm:$0xff]  ;;  %v1730_v37 = vsub.f32 1.0, %v14922_v18 }
 0x207   : > { %v14964_v34 = vpack.c.bf16 %v390_v32, %v389_v3 }
 0x208   : > { %v13522_v24 = vpack.c.bf16 %v1142_v19, %v1141_v23  ;;  %v10932_v19 = vld [vmem:[%s16398_s6 + $0x48] sm:$0xff]  ;;  %v10934_v23 = vld [vmem:[%s16398_s6 + $0x58] sm:$0xff] }
 0x20a   : > { %13523 = vmatprep.subr.bf16.mxu1 %v13522_v24 }
 0x20b   : > { %13525 = vmatpush3.bf16.msra.mxu1 %v13522_v24  ;;  %v15081_v24 = vld [vmem:[%s16400_s8] ss:$0 sm:$0xff] }
 0x20c   : > { %13527 = vmatprep.subr.bf16.mxu1 %v14934_v28 }
 0x20e   : > { %12195 = vmatmul.mubr.msk.f32.vlgmr.msra.gmra.mrb[6].mxu1 %vm421_vm0, %v14727_v12 }
 0x20f   : > { %12197 = vmatprep.mubr.msk.f32.mxu1 %vm421_vm0, %v14732_v13  ;;  %13529 = vmatpush3.bf16.msra.mxu1 %v14934_v28 }
 0x210   : > { %13531 = vmatprep.subr.bf16.mxu1 %v14943_v30 }
 0x212   : > { %12198 = vmatmul.mubr.msk.f32.gmra.mrb[8].mxu1 %vm421_vm0, %v14746_v15 }
 0x213   : > { %12200 = vmatprep.mubr.msk.f32.mxu1 %vm421_vm0, %v14753_v16  ;;  %13533 = vmatpush3.bf16.msra.mxu1 %v14943_v30 }
 0x214   : > { %13535 = vmatprep.subr.bf16.mxu1 %v14964_v34 }
 0x216   : > { %12201 = vmatmul.mubr.msk.f32.gmra.mrb[10].mxu1 %vm421_vm0, %v14766_v17 }
 0x2e1   : > { %v12196_v39 = vpop.f32.mrb[6].mxu1 }
 0x2e2   : > { %v1209_v41 = vpop.f32.mrb[7].mxu1 }
 0x2e3   : > { %12211 = vmatprep.mubr.msk.f32.mxu1 %vm630_vm1, %v1209_v41  ;;  %v1728_v41 = vmul.f32 %v14922_v18, %v1723_v35 }
 0x2e4   : > { %12212 = vmatmul.mubr.msk.f32.vlgmr.msra.gmra.mrb[12].mxu1 %vm630_vm1, %v12196_v39 }
 0x2e5   : > { %13537 = vmatpush3.bf16.msra.mxu1 %v14964_v34  ;;  %12222 = vmatprep.mubr.msk.f32.mxu1 %vm630_vm1, %v14801_v27  ;;  %v12199_v48 = vpop.f32.mrb[8].mxu1  ;;  %v14997_v27 = vpack.c.bf16 %v10938_v54, %v10937_v52  ;;  %v1731_v54 = vsub.f32 1.0, %v14920_v11 }
 0x2e6   : > { %13539 = vmatprep.subr.bf16.mxu1 %v14973_v42  ;;  %v1219_v51 = vpop.f32.mrb[9].mxu1 }
 0x2e9   : > { %13541 = vmatpush3.bf16.msra.mxu1 %v14973_v42  ;;  %v12202_v55 = vpop.f32.mrb[10].mxu1 }
 0x2ea   : > { %13543 = vmatprep.subr.bf16.mxu1 %v14987_v49  ;;  %v1229_v57 = vpop.f32.mrb[11].mxu1 }
 0x2ec   : > { %12223 = vmatmul.mubr.msk.f32.vlgmr.msra.gmra.mrb[12].mxu1 %vm630_vm1, %v14796_v25  ;;  %v15020_v25 = vpack.c.bf16 %v10930_v1, %v10929_v63 }
 0x2ed   : > { %13545 = vmatpush3.bf16.msra.mxu1 %v14987_v49  ;;  %12233 = vmatprep.mubr.msk.f32.mxu1 %vm630_vm1, %v1219_v51  ;;  %v10990_v51 = vld [vmem:[%s14697_s17 + $0x18] sm:$0xff] }
 0x2ee   : > { %13547 = vmatprep.subr.bf16.mxu1 %v14997_v27 }
 0x2f1   : > { %13549 = vmatpush3.bf16.msra.mxu1 %v14997_v27 }
 0x2f2   : > { %13551 = vmatprep.subr.bf16.mxu1 %v15010_v62 }
 0x2f4   : > { %12234 = vmatmul.mubr.msk.f32.vlgmr.msra.gmra.mrb[12].mxu1 %vm630_vm1, %v12199_v48  ;;  %v10989_v48 = vld [vmem:[%s14697_s17 + $0x10] sm:$0xff] }
 0x2f5   : > { %13553 = vmatpush3.bf16.msra.mxu1 %v15010_v62  ;;  %12244 = vmatprep.mubr.msk.f32.mxu1 %vm630_vm1, %v14824_v36  ;;  %v10931_v36 = vld [vmem:[%s16398_s6 + $0x40] sm:$0xff] }
 0x2f6   : > { %13555 = vmatprep.subr.bf16.mxu1 %v15020_v25  ;;  %v15056_v21 = vpack.c.bf16 %v10932_v19, %v10931_v36 }
 0x2f9   : > { %13557 = vmatpush3.bf16.msra.mxu1 %v15020_v25 }
 0x2fa   : > { %13559 = vmatprep.subr.bf16.mxu1 %v15033_v6 }
 0x2fc   : > { %12245 = vmatmul.mubr.msk.f32.vlgmr.msra.gmra.mrb[12].mxu1 %vm630_vm1, %v14816_v33  ;;  %v15066_v33 = vpack.c.bf16 %v10934_v23, %v10933_v22 }
 0x2fd   : > { %13561 = vmatpush3.bf16.msra.mxu1 %v15033_v6  ;;  %12255 = vmatprep.mubr.msk.f32.mxu1 %vm630_vm1, %v1229_v57 }
 0x2fe   : > { %13563 = vmatprep.subr.bf16.mxu1 %v15043_v10 }
 0x301   : > { %13565 = vmatpush3.bf16.msra.mxu1 %v15043_v10 }
 0x302   : > { %13567 = vmatprep.subr.bf16.mxu1 %v15056_v21 }
 0x304   : > { %12256 = vmatmul.mubr.msk.f32.vlgmr.msra.gmra.mrb[12].mxu1 %vm630_vm1, %v12202_v55  ;;  %v13574_v55 = vpack.c.bf16 %v10990_v51, %v10989_v48 }
 0x305   : > { %13569 = vmatpush3.bf16.msra.mxu1 %v15056_v21  ;;  %12266 = vmatprep.mubr.msk.f32.mxu1 %vm630_vm1, %v14838_v43 }
 0x306   : > { %13571 = vmatprep.subr.bf16.mxu1 %v15066_v33 }
 0x309   : > { %13573 = vmatpush3.bf16.msra.mxu1 %v15066_v33 }
 0x30a   : > { %13575 = vmatprep.subr.bf16.mxu1 %v13574_v55 }
 0x30c   : > { %12267 = vmatmul.mubr.msk.f32.vlgmr.msra.gmra.mrb[12].mxu1 %vm630_vm1, %v14830_v40 }
 0x30d   : > { %12273 = vmatprep.mubr.msk.f32.mxu1 %vm421_vm0, %v14682_v0  ;;  %13577 = vmatpush3.bf16.msra.mxu1 %v13574_v55 }
 0x30e   : > { %13583 = vmatprep.subr.bf16.mxu1 %v14716_v9 }
 0x310   : > { %12274 = vmatmul.mubr.msk.f32.vlgmr.msra.gmra.mrb[14].mxu1 %vm421_vm0, %v14727_v12 }
 0x311   : > { %12276 = vmatprep.mubr.msk.f32.mxu1 %vm421_vm0, %v14732_v13  ;;  %13585 = vmatpush3.bf16.msra.mxu1 %v14716_v9 }
 0x312   : > { %13587 = vmatprep.subr.bf16.mxu1 %v14735_v14 }
 0x314   : > { %12277 = vmatmul.mubr.msk.f32.gmra.mrb[16].mxu1 %vm421_vm0, %v14746_v15 }
 0x315   : > { %12279 = vmatprep.mubr.msk.f32.mxu1 %vm421_vm0, %v14753_v16  ;;  %13589 = vmatpush3.bf16.msra.mxu1 %v14735_v14 }
 0x316   : > { %13591 = vmatprep.subr.bf16.mxu1 %v14783_v20 }
 0x318   : > { %12280 = vmatmul.mubr.msk.f32.gmra.mrb[18].mxu1 %vm421_vm0, %v14766_v17 }
 0x3df   : > { %v12268_v29 = vpop.f32.mrb[12].mxu1 }
 0x3e0   : > { %v1699_v4 = vpop.f32.mrb[13].mxu1  ;;  %v1717_v3 = vadd.f32 %v12268_v29, %v15081_v24 }
 0x3e1   : > { %v1716_v43 = vadd.f32 %v15081_v24, %v1699_v4 }
 0x3e3   : > { %14508 = vtanh.f32 %v1716_v43  ;;  %v15147_v2 = vpop.f32.mrb[14].mxu1 }
 0x3e4   : > { %14510 = vtanh.f32 %v1717_v3  ;;  %v15149_v5 = vpop.f32.mrb[15].mxu1 }
 0x3e7   : > { %v15151_v7 = vpop.f32.mrb[16].mxu1 }
 0x3e8   : > { %v15153_v8 = vpop.f32.mrb[17].mxu1 }
 0x3eb   : > { %v15155_v36 = vpop.f32.mrb[18].mxu1 }
 0x3ec   : > { %v15157_v19 = vpop.f32.mrb[19].mxu1 }
 0x3ed   : > { %v14509_v32 = vpop.eup %14508 }
 0x3ee   : > { %1734 = vrot.lane.b32.xlu1 %v14509_v32, %s14619_s26  ;;  %v14511_v40 = vpop.eup %14510 }
 0x3f2   : > { %1736 = vrot.lane.b32.xlu1 %v14511_v40, %s14619_s26 }
 0x460   : > { %v1735_v39 = vpop.permute.xlu1 %1734 }
 0x461   : > { %v1740_v45 = vmul.f32 %v1735_v39, %v1730_v37 }
 0x463   : > { %v15091_v52 = vadd.f32 %v1740_v45, %v1728_v41 }
 0x464   : > { %v1737_v57 = vpop.permute.xlu1 %1736 }
 0x465   : > { %v1741_v61 = vmul.f32 %v1737_v57, %v1731_v54  ;;  %1746 = vrot.lane.b32.xlu0 %v15091_v52, %s14620_s18 }
 0x467   : > { %v15097_v18 = vadd.f32 %v1741_v61, %v1729_v58 }
 0x469   : > { %1748 = vrot.lane.b32.xlu1 %v15097_v18, %s14620_s18 }
 0x4d7   : > { %v15123_v11 = vpop.permute.xlu0 %1746 }
 0x4d8   : > { %1752 = vst.msk [vmem:[%s15121_s21] sm:$0xff] %vm630_vm1, %v15123_v11 }
 0x4db   : > { %v15128_v63 = vpop.permute.xlu1 %1748 }
 0x4dc   : > { %1753 = vst.msk [vmem:[%s15121_s21 + $0x8] sm:$0xff] %vm630_vm1, %v15128_v63  ;;  %v13578_v1 = vpack.c.bf16 %v15128_v63, %v15123_v11 }
 0x4de   : > { %13579 = vmatprep.subr.bf16.mxu0 %v13578_v1 }
 0x4df   : > { %13581 = vmatpush3.bf16.msra.mxu0 %v13578_v1 }
 0x4e2   : > { %12287 = vmatmul.mubr.msk.f32.vlgmr.msra.gmra.mrb[8].mxu0 %vm421_vm0, %v14727_v12 }
 0x4e3   : > { %12289 = vmatprep.mubr.msk.f32.mxu0 %vm421_vm0, %v14732_v13 }
 0x4e6   : > { %12290 = vmatmul.mubr.msk.f32.gmra.mrb[10].mxu0 %vm421_vm0, %v14746_v15 }
 0x4e7   : > { %12292 = vmatprep.mubr.msk.f32.mxu0 %vm421_vm0, %v14753_v16 }
 0x4ea   : > { %12293 = vmatmul.mubr.msk.f32.gmra.mrb[12].mxu0 %vm421_vm0, %v14766_v17 }
 0x4eb   : > { %12365 = vmatprep.mubr.msk.f32.mxu0 %vm421_vm0, %v14682_v0 }
 0x5b5   : > { %v12288_v22 = vpop.f32.mrb[8].mxu0 }
 0x5b6   : > { %v1918_v23 = vpop.f32.mrb[9].mxu0 }
 0x5b7   : > { %12303 = vmatprep.mubr.msk.f32.mxu1 %vm630_vm1, %v1918_v23 }
 0x5b8   : > { %12304 = vmatmul.mubr.msk.f32.vlgmr.msra.gmra.mrb[20].mxu1 %vm630_vm1, %v12288_v22 }
 0x5b9   : > { %13593 = vmatpush3.bf16.msra.mxu1 %v14783_v20  ;;  %12314 = vmatprep.mubr.msk.f32.mxu1 %vm630_vm1, %v15149_v5  ;;  %v12291_v29 = vpop.f32.mrb[10].mxu0 }
 0x5ba   : > { %13595 = vmatprep.subr.bf16.mxu1 %v14798_v26  ;;  %v1928_v4 = vpop.f32.mrb[11].mxu0 }
 0x5bd   : > { %13597 = vmatpush3.bf16.msra.mxu1 %v14798_v26  ;;  %v12294_v43 = vpop.f32.mrb[12].mxu0 }
 0x5be   : > { %13599 = vmatprep.subr.bf16.mxu1 %v14814_v31  ;;  %v1938_v3 = vpop.f32.mrb[13].mxu0 }
 0x5c0   : > { %12315 = vmatmul.mubr.msk.f32.vlgmr.msra.gmra.mrb[20].mxu1 %vm630_vm1, %v15147_v2 }
 0x5c1   : > { %13601 = vmatpush3.bf16.msra.mxu1 %v14814_v31  ;;  %12325 = vmatprep.mubr.msk.f32.mxu1 %vm630_vm1, %v1928_v4  ;;  %v11038_v4 = vld [vmem:[%s14697_s17 + $0x28] sm:$0xff] }
 0x5c2   : > { %13603 = vmatprep.subr.bf16.mxu1 %v14828_v38 }
 0x5c5   : > { %13605 = vmatpush3.bf16.msra.mxu1 %v14828_v38 }
 0x5c6   : > { %13607 = vmatprep.subr.bf16.mxu1 %v14845_v44 }
 0x5c8   : > { %12326 = vmatmul.mubr.msk.f32.vlgmr.msra.gmra.mrb[20].mxu1 %vm630_vm1, %v12291_v29 }
 0x5c9   : > { %13609 = vmatpush3.bf16.msra.mxu1 %v14845_v44  ;;  %12336 = vmatprep.mubr.msk.f32.mxu1 %vm630_vm1, %v15153_v8 }
 0x5ca   : > { %13611 = vmatprep.subr.bf16.mxu1 %v14855_v47 }
 0x5cd   : > { %13613 = vmatpush3.bf16.msra.mxu1 %v14855_v47 }
 0x5ce   : > { %13615 = vmatprep.subr.bf16.mxu1 %v14868_v50 }
 0x5d0   : > { %12337 = vmatmul.mubr.msk.f32.vlgmr.msra.gmra.mrb[20].mxu1 %vm630_vm1, %v15151_v7 }
 0x5d1   : > { %13617 = vmatpush3.bf16.msra.mxu1 %v14868_v50  ;;  %12347 = vmatprep.mubr.msk.f32.mxu1 %vm630_vm1, %v1938_v3 }
 0x5d2   : > { %13619 = vmatprep.subr.bf16.mxu1 %v14878_v53 }
 0x5d5   : > { %13621 = vmatpush3.bf16.msra.mxu1 %v14878_v53 }
 0x5d6   : > { %13623 = vmatprep.subr.bf16.mxu1 %v14891_v56 }
 0x5d8   : > { %12348 = vmatmul.mubr.msk.f32.vlgmr.msra.gmra.mrb[20].mxu1 %vm630_vm1, %v12294_v43 }
 0x5d9   : > { %13625 = vmatpush3.bf16.msra.mxu1 %v14891_v56  ;;  %12358 = vmatprep.mubr.msk.f32.mxu1 %vm630_vm1, %v15157_v19 }
 0x5da   : > { %13627 = vmatprep.subr.bf16.mxu1 %v14901_v59 }
 0x5dd   : > { %13629 = vmatpush3.bf16.msra.mxu1 %v14901_v59 }
 0x5e0   : > { %12359 = vmatmul.mubr.msk.f32.vlgmr.msra.gmra.mrb[20].mxu1 %vm630_vm1, %v15155_v36 }
 0x5e1   : > { %12444 = vmatprep.mubr.msk.f32.mxu1 %vm421_vm0, %v14682_v0 }
 0x6b3   : > { %v12360_v32 = vpop.f32.mrb[20].mxu1 }
 0x6b4   : > { %v2438_v40 = vadd.f32 %v12360_v32, %v14916_v60  ;;  %v2426_v35 = vpop.f32.mrb[21].mxu1 }
 0x6b5   : > { %v2437_v37 = vadd.f32 %v14916_v60, %v2426_v35 }
 0x6b6   : > { %v11016_v39 = vmul.f32 -1.442695, %v2438_v40 }
 0x6b7   : > { %v11015_v41 = vmul.f32 -1.442695, %v2437_v37 }
 0x6b8   : > { %14512 = vpow2.f32 %v11016_v39 }
 0x6b9   : > { %14514 = vpow2.f32 %v11015_v41 }
 0x6c2   : > { %v14513_v45 = vpop.eup %14512 }
 0x6c3   : > { %v14515_v46 = vpop.eup %14514  ;;  %v2446_v48 = vadd.f32 1.0, %v14513_v45 }
 0x6c4   : > { %v2445_v51 = vadd.f32 1.0, %v14515_v46 }
 0x6c5   : > { %14516 = vrcp.f32 %v2446_v48 }
 0x6c6   : > { %14518 = vrcp.f32 %v2445_v51 }
 0x6cf   : > { %v15200_v54 = vpop.eup %14516 }
 0x6d0   : > { %v15202_v55 = vpop.eup %14518  ;;  %v2452_v57 = vmul.f32 %v15200_v54, %v15128_v63  ;;  %v3027_v32 = vsub.f32 1.0, %v15200_v54  ;;  %v3025_v37 = vmul.f32 %v15200_v54, %v15097_v18 }
 0x6d1   : > { %v2451_v58 = vmul.f32 %v15202_v55, %v15123_v11  ;;  %v3026_v35 = vsub.f32 1.0, %v15202_v55  ;;  %v3024_v45 = vmul.f32 %v15202_v55, %v15091_v52 }
 0x6d3   : > { %v13630_v61 = vpack.c.bf16 %v2452_v57, %v2451_v58 }
 0x6d5   : > { %13631 = vmatprep.subr.bf16.mxu0 %v13630_v61 }
 0x6d6   : > { %13633 = vmatpush3.bf16.msra.mxu0 %v13630_v61 }
 0x6d7   : > { %13635 = vmatprep.subr.bf16.mxu0 %v14934_v28 }
 0x6d9   : > { %12366 = vmatmul.mubr.msk.f32.vlgmr.msra.gmra.mrb[14].mxu0 %vm421_vm0, %v14727_v12 }
 0x6da   : > { %12368 = vmatprep.mubr.msk.f32.mxu0 %vm421_vm0, %v14732_v13  ;;  %13637 = vmatpush3.bf16.msra.mxu0 %v14934_v28 }
 0x6db   : > { %13639 = vmatprep.subr.bf16.mxu0 %v14943_v30 }
 0x6dd   : > { %12369 = vmatmul.mubr.msk.f32.gmra.mrb[16].mxu0 %vm421_vm0, %v14746_v15 }
 0x6de   : > { %12371 = vmatprep.mubr.msk.f32.mxu0 %vm421_vm0, %v14753_v16  ;;  %13641 = vmatpush3.bf16.msra.mxu0 %v14943_v30 }
 0x6df   : > { %13643 = vmatprep.subr.bf16.mxu0 %v14964_v34 }
 0x6e1   : > { %12372 = vmatmul.mubr.msk.f32.gmra.mrb[18].mxu0 %vm421_vm0, %v14766_v17 }
 0x7ac   : > { %v12367_v11 = vpop.f32.mrb[14].mxu0 }
 0x7ad   : > { %v2519_v63 = vpop.f32.mrb[15].mxu0 }
 0x7ae   : > { %12382 = vmatprep.mubr.msk.f32.mxu0 %vm630_vm1, %v2519_v63 }
 0x7af   : > { %12383 = vmatmul.mubr.msk.f32.vlgmr.msra.gmra.mrb[20].mxu0 %vm630_vm1, %v12367_v11 }
 0x7b0   : > { %13645 = vmatpush3.bf16.msra.mxu0 %v14964_v34  ;;  %12393 = vmatprep.mubr.msk.f32.mxu0 %vm630_vm1, %v15149_v5  ;;  %v12370_v1 = vpop.f32.mrb[16].mxu0 }
 0x7b1   : > { %13647 = vmatprep.subr.bf16.mxu0 %v14973_v42  ;;  %v2529_v22 = vpop.f32.mrb[17].mxu0 }
 0x7b4   : > { %13649 = vmatpush3.bf16.msra.mxu0 %v14973_v42  ;;  %v12373_v23 = vpop.f32.mrb[18].mxu0 }
 0x7b5   : > { %13651 = vmatprep.subr.bf16.mxu0 %v14987_v49  ;;  %v2539_v29 = vpop.f32.mrb[19].mxu0 }
 0x7b7   : > { %12394 = vmatmul.mubr.msk.f32.vlgmr.msra.gmra.mrb[20].mxu0 %vm630_vm1, %v15147_v2 }
 0x7b8   : > { %13653 = vmatpush3.bf16.msra.mxu0 %v14987_v49  ;;  %12404 = vmatprep.mubr.msk.f32.mxu0 %vm630_vm1, %v2529_v22 }
 0x7b9   : > { %13655 = vmatprep.subr.bf16.mxu0 %v14997_v27 }
 0x7bc   : > { %13657 = vmatpush3.bf16.msra.mxu0 %v14997_v27 }
 0x7bd   : > { %13659 = vmatprep.subr.bf16.mxu0 %v15010_v62 }
 0x7bf   : > { %12405 = vmatmul.mubr.msk.f32.vlgmr.msra.gmra.mrb[20].mxu0 %vm630_vm1, %v12370_v1 }
 0x7c0   : > { %13661 = vmatpush3.bf16.msra.mxu0 %v15010_v62  ;;  %12415 = vmatprep.mubr.msk.f32.mxu0 %vm630_vm1, %v15153_v8 }
 0x7c1   : > { %13663 = vmatprep.subr.bf16.mxu0 %v15020_v25 }
 0x7c4   : > { %13665 = vmatpush3.bf16.msra.mxu0 %v15020_v25 }
 0x7c5   : > { %13667 = vmatprep.subr.bf16.mxu0 %v15033_v6 }
 0x7c7   : > { %12416 = vmatmul.mubr.msk.f32.vlgmr.msra.gmra.mrb[20].mxu0 %vm630_vm1, %v15151_v7 }
 0x7c8   : > { %13669 = vmatpush3.bf16.msra.mxu0 %v15033_v6  ;;  %12426 = vmatprep.mubr.msk.f32.mxu0 %vm630_vm1, %v2539_v29 }
 0x7c9   : > { %13671 = vmatprep.subr.bf16.mxu0 %v15043_v10 }
 0x7cc   : > { %13673 = vmatpush3.bf16.msra.mxu0 %v15043_v10 }
 0x7cd   : > { %13675 = vmatprep.subr.bf16.mxu0 %v15056_v21 }
 0x7cf   : > { %12427 = vmatmul.mubr.msk.f32.vlgmr.msra.gmra.mrb[20].mxu0 %vm630_vm1, %v12373_v23 }
 0x7d0   : > { %13677 = vmatpush3.bf16.msra.mxu0 %v15056_v21  ;;  %12437 = vmatprep.mubr.msk.f32.mxu0 %vm630_vm1, %v15157_v19  ;;  %v11037_v19 = vld [vmem:[%s14697_s17 + $0x20] sm:$0xff] }
 0x7d1   : > { %13679 = vmatprep.subr.bf16.mxu0 %v15066_v33  ;;  %v13682_v43 = vpack.c.bf16 %v11038_v4, %v11037_v19 }
 0x7d3   : > { %13683 = vmatprep.subr.bf16.mxu1 %v13682_v43 }
 0x7d4   : > { %13681 = vmatpush3.bf16.msra.mxu0 %v15066_v33  ;;  %13685 = vmatpush3.bf16.msra.mxu1 %v13682_v43 }
 0x7d5   : > { %13691 = vmatprep.subr.bf16.mxu0 %v14716_v9 }
 0x7d7   : > { %12438 = vmatmul.mubr.msk.f32.vlgmr.msra.gmra.mrb[20].mxu0 %vm630_vm1, %v15155_v36  ;;  %12445 = vmatmul.mubr.msk.f32.vlgmr.msra.gmra.mrb[22].mxu1 %vm421_vm0, %v14727_v12 }
 0x7d8   : > { %13693 = vmatpush3.bf16.msra.mxu0 %v14716_v9  ;;  %12447 = vmatprep.mubr.msk.f32.mxu1 %vm421_vm0, %v14732_v13 }
 0x7d9   : > { %13695 = vmatprep.subr.bf16.mxu0 %v14735_v14 }
 0x7db   : > { %12448 = vmatmul.mubr.msk.f32.gmra.mrb[24].mxu1 %vm421_vm0, %v14746_v15 }
 0x7dc   : > { %13697 = vmatpush3.bf16.msra.mxu0 %v14735_v14  ;;  %12450 = vmatprep.mubr.msk.f32.mxu1 %vm421_vm0, %v14753_v16 }
 0x7dd   : > { %13699 = vmatprep.subr.bf16.mxu0 %v14783_v20 }
 0x7df   : > { %12451 = vmatmul.mubr.msk.f32.gmra.mrb[26].mxu1 %vm421_vm0, %v14766_v17 }
 0x7e0   : > { %12457 = vmatprep.mubr.msk.f32.mxu1 %vm421_vm0, %v14682_v0 }
 0x8aa   : > { %v12439_v2 = vpop.f32.mrb[20].mxu0  ;;  %v15297_v57 = vpop.f32.mrb[22].mxu1 }
 0x8ab   : > { %v3021_v5 = vadd.f32 %v12439_v2, %v15081_v24  ;;  %v3009_v7 = vpop.f32.mrb[21].mxu0  ;;  %v15299_v18 = vpop.f32.mrb[23].mxu1 }
 0x8ac   : > { %v3020_v8 = vadd.f32 %v15081_v24, %v3009_v7 }
 0x8ad   : > { %14520 = vtanh.f32 %v3021_v5 }
 0x8ae   : > { %14522 = vtanh.f32 %v3020_v8  ;;  %v15301_v54 = vpop.f32.mrb[24].mxu1 }
 0x8af   : > { %v15303_v58 = vpop.f32.mrb[25].mxu1 }
 0x8b2   : > { %v15305_v52 = vpop.f32.mrb[26].mxu1 }
 0x8b3   : > { %v15307_v55 = vpop.f32.mrb[27].mxu1 }
 0x8b7   : > { %v14521_v36 = vpop.eup %14520 }
 0x8b8   : > { %v14523_v3 = vpop.eup %14522  ;;  %3032 = vrot.lane.b32.xlu1 %v14521_v36, %s14619_s26 }
 0x8b9   : > { %3030 = vrot.lane.b32.xlu0 %v14523_v3, %s14619_s26 }
 0x92a   : > { %v3033_v40 = vpop.permute.xlu1 %3032 }
 0x92b   : > { %v3037_v39 = vmul.f32 %v3033_v40, %v3027_v32  ;;  %v3031_v41 = vpop.permute.xlu0 %3030 }
 0x92c   : > { %v3036_v46 = vmul.f32 %v3031_v41, %v3026_v35 }
 0x92d   : > { %v15289_v48 = vadd.f32 %v3037_v39, %v3025_v37 }
 0x92e   : > { %v15291_v51 = vadd.f32 %v3036_v46, %v3024_v45 }
 0x92f   : > { %3044 = vrot.lane.b32.xlu1 %v15289_v48, %s14620_s18 }
 0x930   : > { %3042 = vrot.lane.b32.xlu0 %v15291_v51, %s14620_s18 }
 0x9a1   : > { %v15309_v61 = vpop.permute.xlu1 %3044 }
 0x9a2   : > { %11036 = vst.msk [vmem:[%s15121_s21 + $0x18] sm:$0xff] %vm630_vm1, %v15309_v61  ;;  %v15314_v11 = vpop.permute.xlu0 %3042 }
 0x9a3   : > { %11035 = vst.msk [vmem:[%s15121_s21 + $0x10] sm:$0xff] %vm630_vm1, %v15314_v11  ;;  %v13686_v63 = vpack.c.bf16 %v15309_v61, %v15314_v11 }
 0x9a5   : > { %13687 = vmatprep.subr.bf16.mxu1 %v13686_v63 }
 0x9a6   : > { %13689 = vmatpush3.bf16.msra.mxu1 %v13686_v63 }
 0x9a9   : > { %12458 = vmatmul.mubr.msk.f32.vlgmr.msra.gmra.mrb[28].mxu1 %vm421_vm0, %v14727_v12 }
 0x9aa   : > { %12460 = vmatprep.mubr.msk.f32.mxu1 %vm421_vm0, %v14732_v13 }
 0x9ad   : > { %12461 = vmatmul.mubr.msk.f32.gmra.mrb[30].mxu1 %vm421_vm0, %v14746_v15 }
 0x9ae   : > { %12463 = vmatprep.mubr.msk.f32.mxu1 %vm421_vm0, %v14753_v16 }
 0x9b1   : > { %12464 = vmatmul.mubr.msk.f32.gmra.mrb[32].mxu1 %vm421_vm0, %v14766_v17 }
 0x9b2   : > { %12536 = vmatprep.mubr.msk.f32.mxu1 %vm421_vm0, %v14682_v0 }
 0xa7c   : > { %v12459_v1 = vpop.f32.mrb[28].mxu1 }
 0xa7d   : > { %v3215_v22 = vpop.f32.mrb[29].mxu1 }
 0xa7e   : > { %12474 = vmatprep.mubr.msk.f32.mxu0 %vm630_vm1, %v3215_v22  ;;  %v15462_v22 = vld [vmem:[%s16392_s0 + $0x18] sm:$0xff] }
 0xa7f   : > { %12475 = vmatmul.mubr.msk.f32.vlgmr.msra.gmra.mrb[22].mxu0 %vm630_vm1, %v12459_v1  ;;  %v15454_v1 = vld [vmem:[%s16392_s0 + $0x10] sm:$0xff] }
 0xa80   : > { %13701 = vmatpush3.bf16.msra.mxu0 %v14783_v20  ;;  %12485 = vmatprep.mubr.msk.f32.mxu0 %vm630_vm1, %v15299_v18  ;;  %v12462_v23 = vpop.f32.mrb[30].mxu1 }
 0xa81   : > { %13703 = vmatprep.subr.bf16.mxu0 %v14798_v26  ;;  %v3225_v29 = vpop.f32.mrb[31].mxu1 }
 0xa84   : > { %13705 = vmatpush3.bf16.msra.mxu0 %v14798_v26  ;;  %v12465_v2 = vpop.f32.mrb[32].mxu1 }
 0xa85   : > { %13707 = vmatprep.subr.bf16.mxu0 %v14814_v31  ;;  %v3235_v5 = vpop.f32.mrb[33].mxu1 }
 0xa87   : > { %12486 = vmatmul.mubr.msk.f32.vlgmr.msra.gmra.mrb[22].mxu0 %vm630_vm1, %v15297_v57 }
 0xa88   : > { %13709 = vmatpush3.bf16.msra.mxu0 %v14814_v31  ;;  %12496 = vmatprep.mubr.msk.f32.mxu0 %vm630_vm1, %v3225_v29  ;;  %v15476_v29 = vld [vmem:[%s16392_s0 + $0x28] sm:$0xff] }
 0xa89   : > { %13711 = vmatprep.subr.bf16.mxu0 %v14828_v38 }
 0xa8c   : > { %13713 = vmatpush3.bf16.msra.mxu0 %v14828_v38 }
 0xa8d   : > { %13715 = vmatprep.subr.bf16.mxu0 %v14845_v44 }
 0xa8f   : > { %12497 = vmatmul.mubr.msk.f32.vlgmr.msra.gmra.mrb[22].mxu0 %vm630_vm1, %v12462_v23  ;;  %v15469_v23 = vld [vmem:[%s16392_s0 + $0x20] sm:$0xff] }
 0xa90   : > { %13717 = vmatpush3.bf16.msra.mxu0 %v14845_v44  ;;  %12507 = vmatprep.mubr.msk.f32.mxu0 %vm630_vm1, %v15303_v58 }
 0xa91   : > { %13719 = vmatprep.subr.bf16.mxu0 %v14855_v47 }
 0xa94   : > { %13721 = vmatpush3.bf16.msra.mxu0 %v14855_v47 }
 0xa95   : > { %13723 = vmatprep.subr.bf16.mxu0 %v14868_v50 }
 0xa97   : > { %12508 = vmatmul.mubr.msk.f32.vlgmr.msra.gmra.mrb[22].mxu0 %vm630_vm1, %v15301_v54 }
 0xa98   : > { %13725 = vmatpush3.bf16.msra.mxu0 %v14868_v50  ;;  %12518 = vmatprep.mubr.msk.f32.mxu0 %vm630_vm1, %v3235_v5 }
 0xa99   : > { %13727 = vmatprep.subr.bf16.mxu0 %v14878_v53 }
 0xa9c   : > { %13729 = vmatpush3.bf16.msra.mxu0 %v14878_v53 }
 0xa9d   : > { %13731 = vmatprep.subr.bf16.mxu0 %v14891_v56 }
 0xa9f   : > { %12519 = vmatmul.mubr.msk.f32.vlgmr.msra.gmra.mrb[22].mxu0 %vm630_vm1, %v12465_v2  ;;  %v15483_v2 = vld [vmem:[%s16392_s0] sm:$0xff] }
 0xaa0   : > { %13733 = vmatpush3.bf16.msra.mxu0 %v14891_v56  ;;  %12529 = vmatprep.mubr.msk.f32.mxu0 %vm630_vm1, %v15307_v55 }
 0xaa1   : > { %13735 = vmatprep.subr.bf16.mxu0 %v14901_v59 }
 0xaa4   : > { %13737 = vmatpush3.bf16.msra.mxu0 %v14901_v59 }
 0xaa7   : > { %12530 = vmatmul.mubr.msk.f32.vlgmr.msra.gmra.mrb[22].mxu0 %vm630_vm1, %v15305_v52 }
 0xaa8   : > { %12615 = vmatprep.mubr.msk.f32.mxu0 %vm421_vm0, %v14682_v0 }
 0xb7a   : > { %v12531_v7 = vpop.f32.mrb[22].mxu0 }
 0xb7b   : > { %v3735_v8 = vadd.f32 %v12531_v7, %v14916_v60  ;;  %v3723_v19 = vpop.f32.mrb[23].mxu0 }
 0xb7c   : > { %v3734_v4 = vadd.f32 %v14916_v60, %v3723_v19 }
 0xb7d   : > { %v11064_v43 = vmul.f32 -1.442695, %v3735_v8 }
 0xb7e   : > { %v11063_v36 = vmul.f32 -1.442695, %v3734_v4 }
 0xb7f   : > { %14524 = vpow2.f32 %v11064_v43 }
 0xb80   : > { %14526 = vpow2.f32 %v11063_v36 }
 0xb89   : > { %v14525_v3 = vpop.eup %14524 }
 0xb8a   : > { %v14527_v32 = vpop.eup %14526  ;;  %v3743_v40 = vadd.f32 1.0, %v14525_v3 }
 0xb8b   : > { %v3742_v35 = vadd.f32 1.0, %v14527_v32 }
 0xb8c   : > { %14528 = vrcp.f32 %v3743_v40 }
 0xb8d   : > { %14530 = vrcp.f32 %v3742_v35 }
 0xb96   : > { %v15374_v37 = vpop.eup %14528 }
 0xb97   : > { %v15376_v39 = vpop.eup %14530  ;;  %v3749_v0 = vmul.f32 %v15374_v37, %v15309_v61  ;;  %v4324_v5 = vsub.f32 1.0, %v15374_v37  ;;  %v4322_v19 = vmul.f32 %v15374_v37, %v15289_v48 }
 0xb98   : > { %v3748_v60 = vmul.f32 %v15376_v39, %v15314_v11  ;;  %v15446_v11 = vld [vmem:[%s16392_s0 + $0x8] sm:$0xff]  ;;  %v4323_v8 = vsub.f32 1.0, %v15376_v39  ;;  %v4321_v36 = vmul.f32 %v15376_v39, %v15291_v51 }
 0xb9a   : > { %v13738_v41 = vpack.c.bf16 %v3749_v0, %v3748_v60 }
 0xb9c   : > { %13739 = vmatprep.subr.bf16.mxu1 %v13738_v41 }
 0xb9d   : > { %13741 = vmatpush3.bf16.msra.mxu1 %v13738_v41 }
 0xb9e   : > { %13743 = vmatprep.subr.bf16.mxu1 %v14934_v28 }
 0xba0   : > { %12537 = vmatmul.mubr.msk.f32.vlgmr.msra.gmra.mrb[34].mxu1 %vm421_vm0, %v14727_v12 }
 0xba1   : > { %12539 = vmatprep.mubr.msk.f32.mxu1 %vm421_vm0, %v14732_v13  ;;  %13745 = vmatpush3.bf16.msra.mxu1 %v14934_v28 }
 0xba2   : > { %13747 = vmatprep.subr.bf16.mxu1 %v14943_v30 }
 0xba4   : > { %12540 = vmatmul.mubr.msk.f32.gmra.mrb[36].mxu1 %vm421_vm0, %v14746_v15 }
 0xba5   : > { %12542 = vmatprep.mubr.msk.f32.mxu1 %vm421_vm0, %v14753_v16  ;;  %13749 = vmatpush3.bf16.msra.mxu1 %v14943_v30 }
 0xba6   : > { %13751 = vmatprep.subr.bf16.mxu1 %v14964_v34 }
 0xba8   : > { %12543 = vmatmul.mubr.msk.f32.gmra.mrb[38].mxu1 %vm421_vm0, %v14766_v17 }
 0xc73   : > { %v12538_v12 = vpop.f32.mrb[34].mxu1 }
 0xc74   : > { %v3816_v45 = vpop.f32.mrb[35].mxu1 }
 0xc75   : > { %12553 = vmatprep.mubr.msk.f32.mxu1 %vm630_vm1, %v3816_v45 }
 0xc76   : > { %12554 = vmatmul.mubr.msk.f32.vlgmr.msra.gmra.mrb[40].mxu1 %vm630_vm1, %v12538_v12 }
 0xc77   : > { %13753 = vmatpush3.bf16.msra.mxu1 %v14964_v34  ;;  %12564 = vmatprep.mubr.msk.f32.mxu1 %vm630_vm1, %v15299_v18  ;;  %v12541_v13 = vpop.f32.mrb[36].mxu1 }
 0xc78   : > { %13755 = vmatprep.subr.bf16.mxu1 %v14973_v42  ;;  %v3826_v15 = vpop.f32.mrb[37].mxu1 }
 0xc7b   : > { %13757 = vmatpush3.bf16.msra.mxu1 %v14973_v42  ;;  %v12544_v16 = vpop.f32.mrb[38].mxu1 }
 0xc7c   : > { %13759 = vmatprep.subr.bf16.mxu1 %v14987_v49  ;;  %v3836_v17 = vpop.f32.mrb[39].mxu1 }
 0xc7e   : > { %12565 = vmatmul.mubr.msk.f32.vlgmr.msra.gmra.mrb[40].mxu1 %vm630_vm1, %v15297_v57 }
 0xc7f   : > { %13761 = vmatpush3.bf16.msra.mxu1 %v14987_v49  ;;  %12575 = vmatprep.mubr.msk.f32.mxu1 %vm630_vm1, %v3826_v15 }
 0xc80   : > { %13763 = vmatprep.subr.bf16.mxu1 %v14997_v27 }
 0xc83   : > { %13765 = vmatpush3.bf16.msra.mxu1 %v14997_v27 }
 0xc84   : > { %13767 = vmatprep.subr.bf16.mxu1 %v15010_v62 }
 0xc86   : > { %12576 = vmatmul.mubr.msk.f32.vlgmr.msra.gmra.mrb[40].mxu1 %vm630_vm1, %v12541_v13 }
 0xc87   : > { %13769 = vmatpush3.bf16.msra.mxu1 %v15010_v62  ;;  %12586 = vmatprep.mubr.msk.f32.mxu1 %vm630_vm1, %v15303_v58  ;;  %v11085_v58 = vld [vmem:[%s14697_s17 + $0x30] sm:$0xff] }
 0xc88   : > { %13771 = vmatprep.subr.bf16.mxu1 %v15020_v25 }
 0xc8b   : > { %13773 = vmatpush3.bf16.msra.mxu1 %v15020_v25 }
 0xc8c   : > { %13775 = vmatprep.subr.bf16.mxu1 %v15033_v6 }
 0xc8e   : > { %12587 = vmatmul.mubr.msk.f32.vlgmr.msra.gmra.mrb[40].mxu1 %vm630_vm1, %v15301_v54 }
 0xc8f   : > { %13777 = vmatpush3.bf16.msra.mxu1 %v15033_v6  ;;  %12597 = vmatprep.mubr.msk.f32.mxu1 %vm630_vm1, %v3836_v17 }
 0xc90   : > { %13779 = vmatprep.subr.bf16.mxu1 %v15043_v10 }
 0xc93   : > { %13781 = vmatpush3.bf16.msra.mxu1 %v15043_v10 }
 0xc94   : > { %13783 = vmatprep.subr.bf16.mxu1 %v15056_v21 }
 0xc96   : > { %12598 = vmatmul.mubr.msk.f32.vlgmr.msra.gmra.mrb[40].mxu1 %vm630_vm1, %v12544_v16 }
 0xc97   : > { %13785 = vmatpush3.bf16.msra.mxu1 %v15056_v21  ;;  %12608 = vmatprep.mubr.msk.f32.mxu1 %vm630_vm1, %v15307_v55  ;;  %v11086_v55 = vld [vmem:[%s14697_s17 + $0x38] sm:$0xff] }
 0xc98   : > { %13787 = vmatprep.subr.bf16.mxu1 %v15066_v33  ;;  %v13790_v61 = vpack.c.bf16 %v11086_v55, %v11085_v58 }
 0xc9a   : > { %13791 = vmatprep.subr.bf16.mxu0 %v13790_v61 }
 0xc9b   : > { %13789 = vmatpush3.bf16.msra.mxu1 %v15066_v33  ;;  %13793 = vmatpush3.bf16.msra.mxu0 %v13790_v61 }
 0xc9c   : > { %13799 = vmatprep.subr.bf16.mxu1 %v14716_v9 }
 0xc9e   : > { %12609 = vmatmul.mubr.msk.f32.vlgmr.msra.gmra.mrb[40].mxu1 %vm630_vm1, %v15305_v52  ;;  %12616 = vmatmul.mubr.msk.f32.vlgmr.msra.gmra.mrb[24].mxu0 %vm421_vm0, %v15446_v11 }
 0xc9f   : > { %13801 = vmatpush3.bf16.msra.mxu1 %v14716_v9  ;;  %12618 = vmatprep.mubr.msk.f32.mxu0 %vm421_vm0, %v15454_v1 }
 0xca0   : > { %13803 = vmatprep.subr.bf16.mxu1 %v14735_v14 }
 0xca2   : > { %12619 = vmatmul.mubr.msk.f32.gmra.mrb[26].mxu0 %vm421_vm0, %v15462_v22 }
 0xca3   : > { %13805 = vmatpush3.bf16.msra.mxu1 %v14735_v14  ;;  %12621 = vmatprep.mubr.msk.f32.mxu0 %vm421_vm0, %v15469_v23 }
 0xca4   : > { %13807 = vmatprep.subr.bf16.mxu1 %v14783_v20 }
 0xca6   : > { %12622 = vmatmul.mubr.msk.f32.gmra.mrb[28].mxu0 %vm421_vm0, %v15476_v29 }
 0xca7   : > { %12628 = vmatprep.mubr.msk.f32.mxu0 %vm421_vm0, %v15483_v2 }
 0xd71   : > { %v12610_v46 = vpop.f32.mrb[40].mxu1  ;;  %v15501_v35 = vpop.f32.mrb[24].mxu0 }
 0xd72   : > { %v4318_v57 = vadd.f32 %v12610_v46, %v15081_v24  ;;  %v4306_v18 = vpop.f32.mrb[41].mxu1  ;;  %v15503_v48 = vpop.f32.mrb[25].mxu0 }
 0xd73   : > { %v4317_v54 = vadd.f32 %v15081_v24, %v4306_v18  ;;  %v15579_v18 = vld [vmem:[%s16397_s5] ss:$0 sm:$0xff] }
 0xd74   : > { %14532 = vtanh.f32 %v4318_v57 }
 0xd75   : > { %14534 = vtanh.f32 %v4317_v54  ;;  %v15505_v37 = vpop.f32.mrb[26].mxu0 }
 0xd76   : > { %v15507_v0 = vpop.f32.mrb[27].mxu0 }
 0xd79   : > { %v15509_v51 = vpop.f32.mrb[28].mxu0 }
 0xd7a   : > { %v15511_v39 = vpop.f32.mrb[29].mxu0 }
 0xd7e   : > { %v14533_v52 = vpop.eup %14532 }
 0xd7f   : > { %v14535_v63 = vpop.eup %14534  ;;  %4329 = vrot.lane.b32.xlu1 %v14533_v52, %s14619_s26 }
 0xd80   : > { %4327 = vrot.lane.b32.xlu0 %v14535_v63, %s14619_s26 }
 0xdf1   : > { %v4330_v7 = vpop.permute.xlu1 %4329 }
 0xdf2   : > { %v4334_v4 = vmul.f32 %v4330_v7, %v4324_v5  ;;  %v4328_v43 = vpop.permute.xlu0 %4327 }
 0xdf3   : > { %v4333_v3 = vmul.f32 %v4328_v43, %v4323_v8 }
 0xdf4   : > { %v15493_v32 = vadd.f32 %v4334_v4, %v4322_v19 }
 0xdf5   : > { %v15495_v40 = vadd.f32 %v4333_v3, %v4321_v36 }
 0xdf6   : > { %4341 = vrot.lane.b32.xlu1 %v15493_v32, %s14620_s18 }
 0xdf7   : > { %4339 = vrot.lane.b32.xlu0 %v15495_v40, %s14620_s18 }
 0xe68   : > { %v15513_v60 = vpop.permute.xlu1 %4341 }
 0xe69   : > { %11084 = vst.msk [vmem:[%s15121_s21 + $0x28] sm:$0xff] %vm630_vm1, %v15513_v60  ;;  %v15518_v41 = vpop.permute.xlu0 %4339 }
 0xe6a   : > { %11083 = vst.msk [vmem:[%s15121_s21 + $0x20] sm:$0xff] %vm630_vm1, %v15518_v41  ;;  %v13794_v12 = vpack.c.bf16 %v15513_v60, %v15518_v41 }
 0xe6c   : > { %13795 = vmatprep.subr.bf16.mxu0 %v13794_v12 }
 0xe6d   : > { %13797 = vmatpush3.bf16.msra.mxu0 %v13794_v12 }
 0xe70   : > { %12629 = vmatmul.mubr.msk.f32.vlgmr.msra.gmra.mrb[30].mxu0 %vm421_vm0, %v15446_v11 }
 0xe71   : > { %12631 = vmatprep.mubr.msk.f32.mxu0 %vm421_vm0, %v15454_v1 }
 0xe74   : > { %12632 = vmatmul.mubr.msk.f32.gmra.mrb[32].mxu0 %vm421_vm0, %v15462_v22 }
 0xe75   : > { %12634 = vmatprep.mubr.msk.f32.mxu0 %vm421_vm0, %v15469_v23 }
 0xe78   : > { %12635 = vmatmul.mubr.msk.f32.gmra.mrb[34].mxu0 %vm421_vm0, %v15476_v29 }
 0xe79   : > { %12707 = vmatprep.mubr.msk.f32.mxu0 %vm421_vm0, %v15483_v2 }
 0xf43   : > { %v12630_v45 = vpop.f32.mrb[30].mxu0 }
 0xf44   : > { %v4512_v13 = vpop.f32.mrb[31].mxu0 }
 0xf45   : > { %12645 = vmatprep.mubr.msk.f32.mxu1 %vm630_vm1, %v4512_v13 }
 0xf46   : > { %12646 = vmatmul.mubr.msk.f32.vlgmr.msra.gmra.mrb[42].mxu1 %vm630_vm1, %v12630_v45 }
 0xf47   : > { %13809 = vmatpush3.bf16.msra.mxu1 %v14783_v20  ;;  %12656 = vmatprep.mubr.msk.f32.mxu1 %vm630_vm1, %v15503_v48  ;;  %v12633_v15 = vpop.f32.mrb[32].mxu0 }
 0xf48   : > { %13811 = vmatprep.subr.bf16.mxu1 %v14798_v26  ;;  %v4522_v16 = vpop.f32.mrb[33].mxu0 }
 0xf4b   : > { %13813 = vmatpush3.bf16.msra.mxu1 %v14798_v26  ;;  %v12636_v17 = vpop.f32.mrb[34].mxu0 }
 0xf4c   : > { %13815 = vmatprep.subr.bf16.mxu1 %v14814_v31  ;;  %v4532_v46 = vpop.f32.mrb[35].mxu0 }
 0xf4e   : > { %12657 = vmatmul.mubr.msk.f32.vlgmr.msra.gmra.mrb[42].mxu1 %vm630_vm1, %v15501_v35 }
 0xf4f   : > { %13817 = vmatpush3.bf16.msra.mxu1 %v14814_v31  ;;  %12667 = vmatprep.mubr.msk.f32.mxu1 %vm630_vm1, %v4522_v16  ;;  %v11134_v16 = vld [vmem:[%s14697_s17 + $0x48] sm:$0xff] }
 0xf50   : > { %13819 = vmatprep.subr.bf16.mxu1 %v14828_v38 }
 0xf53   : > { %13821 = vmatpush3.bf16.msra.mxu1 %v14828_v38 }
 0xf54   : > { %13823 = vmatprep.subr.bf16.mxu1 %v14845_v44 }
 0xf56   : > { %12668 = vmatmul.mubr.msk.f32.vlgmr.msra.gmra.mrb[42].mxu1 %vm630_vm1, %v12633_v15 }
 0xf57   : > { %13825 = vmatpush3.bf16.msra.mxu1 %v14845_v44  ;;  %12678 = vmatprep.mubr.msk.f32.mxu1 %vm630_vm1, %v15507_v0 }
 0xf58   : > { %13827 = vmatprep.subr.bf16.mxu1 %v14855_v47 }
 0xf5b   : > { %13829 = vmatpush3.bf16.msra.mxu1 %v14855_v47 }
 0xf5c   : > { %13831 = vmatprep.subr.bf16.mxu1 %v14868_v50 }
 0xf5e   : > { %12679 = vmatmul.mubr.msk.f32.vlgmr.msra.gmra.mrb[42].mxu1 %vm630_vm1, %v15505_v37 }
 0xf5f   : > { %13833 = vmatpush3.bf16.msra.mxu1 %v14868_v50  ;;  %12689 = vmatprep.mubr.msk.f32.mxu1 %vm630_vm1, %v4532_v46 }
 0xf60   : > { %13835 = vmatprep.subr.bf16.mxu1 %v14878_v53 }
 0xf63   : > { %13837 = vmatpush3.bf16.msra.mxu1 %v14878_v53 }
 0xf64   : > { %13839 = vmatprep.subr.bf16.mxu1 %v14891_v56 }
 0xf66   : > { %12690 = vmatmul.mubr.msk.f32.vlgmr.msra.gmra.mrb[42].mxu1 %vm630_vm1, %v12636_v17 }
 0xf67   : > { %13841 = vmatpush3.bf16.msra.mxu1 %v14891_v56  ;;  %12700 = vmatprep.mubr.msk.f32.mxu1 %vm630_vm1, %v15511_v39 }
 0xf68   : > { %13843 = vmatprep.subr.bf16.mxu1 %v14901_v59 }
 0xf6b   : > { %13845 = vmatpush3.bf16.msra.mxu1 %v14901_v59 }
 0xf6e   : > { %12701 = vmatmul.mubr.msk.f32.vlgmr.msra.gmra.mrb[42].mxu1 %vm630_vm1, %v15509_v51 }
 0xf6f   : > { %12786 = vmatprep.mubr.msk.f32.mxu1 %vm421_vm0, %v15483_v2 }
0x1041   : > { %v12702_v57 = vpop.f32.mrb[42].mxu1 }
0x1042   : > { %v5032_v54 = vadd.f32 %v15579_v18, %v12702_v57  ;;  %v5020_v58 = vpop.f32.mrb[43].mxu1 }
0x1043   : > { %v5031_v55 = vadd.f32 %v15579_v18, %v5020_v58 }
0x1044   : > { %v11112_v61 = vmul.f32 -1.442695, %v5032_v54 }
0x1045   : > { %v11111_v52 = vmul.f32 -1.442695, %v5031_v55 }
0x1046   : > { %14536 = vpow2.f32 %v11112_v61 }
0x1047   : > { %14538 = vpow2.f32 %v11111_v52 }
0x1050   : > { %v14537_v63 = vpop.eup %14536 }
0x1051   : > { %v14539_v5 = vpop.eup %14538  ;;  %v5040_v7 = vadd.f32 1.0, %v14537_v63 }
0x1052   : > { %v5039_v8 = vadd.f32 1.0, %v14539_v5 }
0x1053   : > { %14540 = vrcp.f32 %v5040_v7 }
0x1054   : > { %14542 = vrcp.f32 %v5039_v8 }
0x105d   : > { %v15583_v19 = vpop.eup %14540 }
0x105e   : > { %v15585_v4 = vpop.eup %14542  ;;  %v5046_v43 = vmul.f32 %v15583_v19, %v15513_v60  ;;  %v5619_v58 = vmul.f32 %v15583_v19, %v15493_v32 }
0x105f   : > { %v5045_v36 = vmul.f32 %v15585_v4, %v15518_v41  ;;  %v5620_v54 = vsub.f32 1.0, %v15585_v4  ;;  %v5618_v52 = vmul.f32 %v15585_v4, %v15495_v40 }
0x1061   : > { %v13846_v3 = vpack.c.bf16 %v5046_v43, %v5045_v36 }
0x1063   : > { %13847 = vmatprep.subr.bf16.mxu0 %v13846_v3 }
0x1064   : > { %13849 = vmatpush3.bf16.msra.mxu0 %v13846_v3 }
0x1065   : > { %13851 = vmatprep.subr.bf16.mxu0 %v14934_v28 }
0x1067   : > { %12708 = vmatmul.mubr.msk.f32.vlgmr.msra.gmra.mrb[36].mxu0 %vm421_vm0, %v15446_v11 }
0x1068   : > { %12710 = vmatprep.mubr.msk.f32.mxu0 %vm421_vm0, %v15454_v1  ;;  %13853 = vmatpush3.bf16.msra.mxu0 %v14934_v28 }
0x1069   : > { %13855 = vmatprep.subr.bf16.mxu0 %v14943_v30 }
0x106b   : > { %12711 = vmatmul.mubr.msk.f32.gmra.mrb[38].mxu0 %vm421_vm0, %v15462_v22 }
0x106c   : > { %12713 = vmatprep.mubr.msk.f32.mxu0 %vm421_vm0, %v15469_v23  ;;  %13857 = vmatpush3.bf16.msra.mxu0 %v14943_v30 }
0x106d   : > { %13859 = vmatprep.subr.bf16.mxu0 %v14964_v34 }
0x106f   : > { %12714 = vmatmul.mubr.msk.f32.gmra.mrb[40].mxu0 %vm421_vm0, %v15476_v29 }
0x113a   : > { %v12709_v60 = vpop.f32.mrb[36].mxu0 }
0x113b   : > { %v5113_v41 = vpop.f32.mrb[37].mxu0 }
0x113c   : > { %12724 = vmatprep.mubr.msk.f32.mxu0 %vm630_vm1, %v5113_v41 }
0x113d   : > { %12725 = vmatmul.mubr.msk.f32.vlgmr.msra.gmra.mrb[42].mxu0 %vm630_vm1, %v12709_v60 }
0x113e   : > { %13861 = vmatpush3.bf16.msra.mxu0 %v14964_v34  ;;  %12735 = vmatprep.mubr.msk.f32.mxu0 %vm630_vm1, %v15503_v48  ;;  %v12712_v12 = vpop.f32.mrb[38].mxu0 }
0x113f   : > { %13863 = vmatprep.subr.bf16.mxu0 %v14973_v42  ;;  %v5123_v45 = vpop.f32.mrb[39].mxu0 }
0x1142   : > { %13865 = vmatpush3.bf16.msra.mxu0 %v14973_v42  ;;  %v12715_v13 = vpop.f32.mrb[40].mxu0 }
0x1143   : > { %13867 = vmatprep.subr.bf16.mxu0 %v14987_v49  ;;  %v5133_v15 = vpop.f32.mrb[41].mxu0 }
0x1145   : > { %12736 = vmatmul.mubr.msk.f32.vlgmr.msra.gmra.mrb[42].mxu0 %vm630_vm1, %v15501_v35 }
0x1146   : > { %13869 = vmatpush3.bf16.msra.mxu0 %v14987_v49  ;;  %12746 = vmatprep.mubr.msk.f32.mxu0 %vm630_vm1, %v5123_v45 }
0x1147   : > { %13871 = vmatprep.subr.bf16.mxu0 %v14997_v27 }
0x114a   : > { %13873 = vmatpush3.bf16.msra.mxu0 %v14997_v27 }
0x114b   : > { %13875 = vmatprep.subr.bf16.mxu0 %v15010_v62 }
0x114d   : > { %12747 = vmatmul.mubr.msk.f32.vlgmr.msra.gmra.mrb[42].mxu0 %vm630_vm1, %v12712_v12 }
0x114e   : > { %13877 = vmatpush3.bf16.msra.mxu0 %v15010_v62  ;;  %12757 = vmatprep.mubr.msk.f32.mxu0 %vm630_vm1, %v15507_v0 }
0x114f   : > { %13879 = vmatprep.subr.bf16.mxu0 %v15020_v25 }
0x1152   : > { %13881 = vmatpush3.bf16.msra.mxu0 %v15020_v25 }
0x1153   : > { %13883 = vmatprep.subr.bf16.mxu0 %v15033_v6 }
0x1155   : > { %12758 = vmatmul.mubr.msk.f32.vlgmr.msra.gmra.mrb[42].mxu0 %vm630_vm1, %v15505_v37 }
0x1156   : > { %13885 = vmatpush3.bf16.msra.mxu0 %v15033_v6  ;;  %12768 = vmatprep.mubr.msk.f32.mxu0 %vm630_vm1, %v5133_v15 }
0x1157   : > { %13887 = vmatprep.subr.bf16.mxu0 %v15043_v10 }
0x115a   : > { %13889 = vmatpush3.bf16.msra.mxu0 %v15043_v10 }
0x115b   : > { %13891 = vmatprep.subr.bf16.mxu0 %v15056_v21 }
0x115d   : > { %12769 = vmatmul.mubr.msk.f32.vlgmr.msra.gmra.mrb[42].mxu0 %vm630_vm1, %v12715_v13 }
0x115e   : > { %13893 = vmatpush3.bf16.msra.mxu0 %v15056_v21  ;;  %12779 = vmatprep.mubr.msk.f32.mxu0 %vm630_vm1, %v15511_v39  ;;  %v11133_v39 = vld [vmem:[%s14697_s17 + $0x40] sm:$0xff] }
0x115f   : > { %13895 = vmatprep.subr.bf16.mxu0 %v15066_v33  ;;  %v13898_v17 = vpack.c.bf16 %v11134_v16, %v11133_v39 }
0x1161   : > { %13899 = vmatprep.subr.bf16.mxu1 %v13898_v17 }
0x1162   : > { %13897 = vmatpush3.bf16.msra.mxu0 %v15066_v33  ;;  %13901 = vmatpush3.bf16.msra.mxu1 %v13898_v17 }
0x1163   : > { %13907 = vmatprep.subr.bf16.mxu0 %v14716_v9 }
0x1165   : > { %12780 = vmatmul.mubr.msk.f32.vlgmr.msra.gmra.mrb[42].mxu0 %vm630_vm1, %v15509_v51  ;;  %12787 = vmatmul.mubr.msk.f32.vlgmr.msra.gmra.mrb[44].mxu1 %vm421_vm0, %v15446_v11 }
0x1166   : > { %13909 = vmatpush3.bf16.msra.mxu0 %v14716_v9  ;;  %12789 = vmatprep.mubr.msk.f32.mxu1 %vm421_vm0, %v15454_v1 }
0x1167   : > { %13911 = vmatprep.subr.bf16.mxu0 %v14735_v14 }
0x1169   : > { %12790 = vmatmul.mubr.msk.f32.gmra.mrb[46].mxu1 %vm421_vm0, %v15462_v22 }
0x116a   : > { %13913 = vmatpush3.bf16.msra.mxu0 %v14735_v14  ;;  %12792 = vmatprep.mubr.msk.f32.mxu1 %vm421_vm0, %v15469_v23 }
0x116b   : > { %13915 = vmatprep.subr.bf16.mxu0 %v14783_v20 }
0x116d   : > { %12793 = vmatmul.mubr.msk.f32.gmra.mrb[48].mxu1 %vm421_vm0, %v15476_v29 }
0x116e   : > { %12799 = vmatprep.mubr.msk.f32.mxu1 %vm421_vm0, %v15483_v2 }
0x1238   : > { %v12781_v35 = vpop.f32.mrb[42].mxu0  ;;  %v15680_v8 = vpop.f32.mrb[44].mxu1 }
0x1239   : > { %v5615_v48 = vadd.f32 %v12781_v35, %v15081_v24  ;;  %v5603_v37 = vpop.f32.mrb[43].mxu0  ;;  %v15682_v32 = vpop.f32.mrb[45].mxu1 }
0x123a   : > { %v5614_v0 = vadd.f32 %v15081_v24, %v5603_v37  ;;  %v5621_v24 = vsub.f32 1.0, %v15583_v19 }
0x123b   : > { %14544 = vtanh.f32 %v5615_v48 }
0x123c   : > { %14546 = vtanh.f32 %v5614_v0  ;;  %v15684_v19 = vpop.f32.mrb[46].mxu1 }
0x123d   : > { %v15686_v43 = vpop.f32.mrb[47].mxu1 }
0x1240   : > { %v15688_v40 = vpop.f32.mrb[48].mxu1 }
0x1241   : > { %v15690_v4 = vpop.f32.mrb[49].mxu1 }
0x1245   : > { %v14545_v51 = vpop.eup %14544 }
0x1246   : > { %v14547_v46 = vpop.eup %14546  ;;  %5626 = vrot.lane.b32.xlu1 %v14545_v51, %s14619_s26 }
0x1247   : > { %5624 = vrot.lane.b32.xlu0 %v14547_v46, %s14619_s26 }
0x12b8   : > { %v5627_v57 = vpop.permute.xlu1 %5626 }
0x12b9   : > { %v5631_v55 = vmul.f32 %v5627_v57, %v5621_v24  ;;  %v5625_v61 = vpop.permute.xlu0 %5624 }
0x12ba   : > { %v5630_v63 = vmul.f32 %v5625_v61, %v5620_v54 }
0x12bb   : > { %v15672_v5 = vadd.f32 %v5631_v55, %v5619_v58 }
0x12bc   : > { %v15674_v7 = vadd.f32 %v5630_v63, %v5618_v52 }
0x12bd   : > { %5638 = vrot.lane.b32.xlu1 %v15672_v5, %s14620_s18 }
0x12be   : > { %5636 = vrot.lane.b32.xlu0 %v15674_v7, %s14620_s18 }
0x132f   : > { %v15692_v36 = vpop.permute.xlu1 %5638 }
0x1330   : > { %11132 = vst.msk [vmem:[%s15121_s21 + $0x38] sm:$0xff] %vm630_vm1, %v15692_v36  ;;  %v15697_v3 = vpop.permute.xlu0 %5636 }
0x1331   : > { %11131 = vst.msk [vmem:[%s15121_s21 + $0x30] sm:$0xff] %vm630_vm1, %v15697_v3  ;;  %v13902_v60 = vpack.c.bf16 %v15692_v36, %v15697_v3 }
0x1333   : > { %13903 = vmatprep.subr.bf16.mxu1 %v13902_v60 }
0x1334   : > { %13905 = vmatpush3.bf16.msra.mxu1 %v13902_v60 }
0x1337   : > { %12800 = vmatmul.mubr.msk.f32.vlgmr.msra.gmra.mrb[50].mxu1 %vm421_vm0, %v15446_v11 }
0x1338   : > { %12802 = vmatprep.mubr.msk.f32.mxu1 %vm421_vm0, %v15454_v1 }
0x133b   : > { %12803 = vmatmul.mubr.msk.f32.gmra.mrb[52].mxu1 %vm421_vm0, %v15462_v22 }
0x133c   : > { %12805 = vmatprep.mubr.msk.f32.mxu1 %vm421_vm0, %v15469_v23 }
0x133f   : > { %12806 = vmatmul.mubr.msk.f32.gmra.mrb[54].mxu1 %vm421_vm0, %v15476_v29 }
0x1340   : > { %12878 = vmatprep.mubr.msk.f32.mxu1 %vm421_vm0, %v15483_v2 }
0x140a   : > { %v12801_v41 = vpop.f32.mrb[50].mxu1 }
0x140b   : > { %v5809_v12 = vpop.f32.mrb[51].mxu1 }
0x140c   : > { %12816 = vmatprep.mubr.msk.f32.mxu0 %vm630_vm1, %v5809_v12 }
0x140d   : > { %12817 = vmatmul.mubr.msk.f32.vlgmr.msra.gmra.mrb[44].mxu0 %vm630_vm1, %v12801_v41 }
0x140e   : > { %13917 = vmatpush3.bf16.msra.mxu0 %v14783_v20  ;;  %12827 = vmatprep.mubr.msk.f32.mxu0 %vm630_vm1, %v15682_v32  ;;  %v12804_v45 = vpop.f32.mrb[52].mxu1 }
0x140f   : > { %13919 = vmatprep.subr.bf16.mxu0 %v14798_v26  ;;  %v5819_v13 = vpop.f32.mrb[53].mxu1 }
0x1412   : > { %13921 = vmatpush3.bf16.msra.mxu0 %v14798_v26  ;;  %v12807_v15 = vpop.f32.mrb[54].mxu1 }
0x1413   : > { %13923 = vmatprep.subr.bf16.mxu0 %v14814_v31  ;;  %v5829_v35 = vpop.f32.mrb[55].mxu1 }
0x1415   : > { %12828 = vmatmul.mubr.msk.f32.vlgmr.msra.gmra.mrb[44].mxu0 %vm630_vm1, %v15680_v8 }
0x1416   : > { %13925 = vmatpush3.bf16.msra.mxu0 %v14814_v31  ;;  %12838 = vmatprep.mubr.msk.f32.mxu0 %vm630_vm1, %v5819_v13 }
0x1417   : > { %13927 = vmatprep.subr.bf16.mxu0 %v14828_v38 }
0x141a   : > { %13929 = vmatpush3.bf16.msra.mxu0 %v14828_v38 }
0x141b   : > { %13931 = vmatprep.subr.bf16.mxu0 %v14845_v44 }
0x141d   : > { %12839 = vmatmul.mubr.msk.f32.vlgmr.msra.gmra.mrb[44].mxu0 %vm630_vm1, %v12804_v45  ;;  %v11182_v45 = vld [vmem:[%s14697_s17 + $0x58] sm:$0xff] }
0x141e   : > { %13933 = vmatpush3.bf16.msra.mxu0 %v14845_v44  ;;  %12849 = vmatprep.mubr.msk.f32.mxu0 %vm630_vm1, %v15686_v43 }
0x141f   : > { %13935 = vmatprep.subr.bf16.mxu0 %v14855_v47 }
0x1422   : > { %13937 = vmatpush3.bf16.msra.mxu0 %v14855_v47 }
0x1423   : > { %13939 = vmatprep.subr.bf16.mxu0 %v14868_v50 }
0x1425   : > { %12850 = vmatmul.mubr.msk.f32.vlgmr.msra.gmra.mrb[44].mxu0 %vm630_vm1, %v15684_v19 }
0x1426   : > { %13941 = vmatpush3.bf16.msra.mxu0 %v14868_v50  ;;  %12860 = vmatprep.mubr.msk.f32.mxu0 %vm630_vm1, %v5829_v35 }
0x1427   : > { %13943 = vmatprep.subr.bf16.mxu0 %v14878_v53 }
0x142a   : > { %13945 = vmatpush3.bf16.msra.mxu0 %v14878_v53 }
0x142b   : > { %13947 = vmatprep.subr.bf16.mxu0 %v14891_v56 }
0x142d   : > { %12861 = vmatmul.mubr.msk.f32.vlgmr.msra.gmra.mrb[44].mxu0 %vm630_vm1, %v12807_v15 }
0x142e   : > { %13949 = vmatpush3.bf16.msra.mxu0 %v14891_v56  ;;  %12871 = vmatprep.mubr.msk.f32.mxu0 %vm630_vm1, %v15690_v4 }
0x142f   : > { %13951 = vmatprep.subr.bf16.mxu0 %v14901_v59 }
0x1432   : > { %13953 = vmatpush3.bf16.msra.mxu0 %v14901_v59 }
0x1435   : > { %12872 = vmatmul.mubr.msk.f32.vlgmr.msra.gmra.mrb[44].mxu0 %vm630_vm1, %v15688_v40 }
0x1436   : > { %12957 = vmatprep.mubr.msk.f32.mxu0 %vm421_vm0, %v15483_v2 }
0x1508   : > { %v12873_v48 = vpop.f32.mrb[44].mxu0 }
0x1509   : > { %v6329_v37 = vadd.f32 %v15579_v18, %v12873_v48  ;;  %v6317_v0 = vpop.f32.mrb[45].mxu0 }
0x150a   : > { %v6328_v39 = vadd.f32 %v15579_v18, %v6317_v0 }
0x150b   : > { %v11160_v16 = vmul.f32 -1.442695, %v6329_v37 }
0x150c   : > { %v11159_v17 = vmul.f32 -1.442695, %v6328_v39 }
0x150d   : > { %14548 = vpow2.f32 %v11160_v16 }
0x150e   : > { %14550 = vpow2.f32 %v11159_v17 }
0x1517   : > { %v14549_v51 = vpop.eup %14548 }
0x1518   : > { %v14551_v46 = vpop.eup %14550  ;;  %v6337_v24 = vadd.f32 1.0, %v14549_v51 }
0x1519   : > { %v6336_v57 = vadd.f32 1.0, %v14551_v46 }
0x151a   : > { %14552 = vrcp.f32 %v6337_v24 }
0x151b   : > { %14554 = vrcp.f32 %v6336_v57 }
0x1524   : > { %v15757_v54 = vpop.eup %14552 }
0x1525   : > { %v15759_v58 = vpop.eup %14554  ;;  %v6343_v55 = vmul.f32 %v15757_v54, %v15692_v36  ;;  %v6918_v48 = vsub.f32 1.0, %v15757_v54  ;;  %v6916_v39 = vmul.f32 %v15757_v54, %v15672_v5 }
0x1526   : > { %v6342_v61 = vmul.f32 %v15759_v58, %v15697_v3  ;;  %v6917_v0 = vsub.f32 1.0, %v15759_v58  ;;  %v6915_v51 = vmul.f32 %v15759_v58, %v15674_v7 }
0x1528   : > { %v13954_v52 = vpack.c.bf16 %v6343_v55, %v6342_v61 }
0x152a   : > { %13955 = vmatprep.subr.bf16.mxu1 %v13954_v52 }
0x152b   : > { %13957 = vmatpush3.bf16.msra.mxu1 %v13954_v52 }
0x152c   : > { %13959 = vmatprep.subr.bf16.mxu1 %v14934_v28 }
0x152e   : > { %12879 = vmatmul.mubr.msk.f32.vlgmr.msra.gmra.mrb[56].mxu1 %vm421_vm0, %v15446_v11 }
0x152f   : > { %12881 = vmatprep.mubr.msk.f32.mxu1 %vm421_vm0, %v15454_v1  ;;  %13961 = vmatpush3.bf16.msra.mxu1 %v14934_v28 }
0x1530   : > { %13963 = vmatprep.subr.bf16.mxu1 %v14943_v30 }
0x1532   : > { %12882 = vmatmul.mubr.msk.f32.gmra.mrb[58].mxu1 %vm421_vm0, %v15462_v22 }
0x1533   : > { %12884 = vmatprep.mubr.msk.f32.mxu1 %vm421_vm0, %v15469_v23  ;;  %13965 = vmatpush3.bf16.msra.mxu1 %v14943_v30 }
0x1534   : > { %13967 = vmatprep.subr.bf16.mxu1 %v14964_v34 }
0x1536   : > { %12885 = vmatmul.mubr.msk.f32.gmra.mrb[60].mxu1 %vm421_vm0, %v15476_v29 }
0x1601   : > { %v12880_v63 = vpop.f32.mrb[56].mxu1 }
0x1602   : > { %v6410_v36 = vpop.f32.mrb[57].mxu1 }
0x1603   : > { %12895 = vmatprep.mubr.msk.f32.mxu1 %vm630_vm1, %v6410_v36 }
0x1604   : > { %12896 = vmatmul.mubr.msk.f32.vlgmr.msra.gmra.mrb[62].mxu1 %vm630_vm1, %v12880_v63 }
0x1605   : > { %13969 = vmatpush3.bf16.msra.mxu1 %v14964_v34  ;;  %12906 = vmatprep.mubr.msk.f32.mxu1 %vm630_vm1, %v15682_v32  ;;  %v12883_v3 = vpop.f32.mrb[58].mxu1  ;;  %v15825_v32 = vld [vmem:[%s16400_s8] ss:$0 sm:$0xff] }
0x1606   : > { %13971 = vmatprep.subr.bf16.mxu1 %v14973_v42  ;;  %v6420_v60 = vpop.f32.mrb[59].mxu1 }
0x1609   : > { %13973 = vmatpush3.bf16.msra.mxu1 %v14973_v42  ;;  %v12886_v41 = vpop.f32.mrb[60].mxu1 }
0x160a   : > { %13975 = vmatprep.subr.bf16.mxu1 %v14987_v49  ;;  %v6430_v12 = vpop.f32.mrb[61].mxu1 }
0x160c   : > { %12907 = vmatmul.mubr.msk.f32.vlgmr.msra.gmra.mrb[62].mxu1 %vm630_vm1, %v15680_v8 }
0x160d   : > { %13977 = vmatpush3.bf16.msra.mxu1 %v14987_v49  ;;  %12917 = vmatprep.mubr.msk.f32.mxu1 %vm630_vm1, %v6420_v60 }
0x160e   : > { %13979 = vmatprep.subr.bf16.mxu1 %v14997_v27 }
0x1611   : > { %13981 = vmatpush3.bf16.msra.mxu1 %v14997_v27 }
0x1612   : > { %13983 = vmatprep.subr.bf16.mxu1 %v15010_v62 }
0x1614   : > { %12918 = vmatmul.mubr.msk.f32.vlgmr.msra.gmra.mrb[62].mxu1 %vm630_vm1, %v12883_v3 }
0x1615   : > { %13985 = vmatpush3.bf16.msra.mxu1 %v15010_v62  ;;  %12928 = vmatprep.mubr.msk.f32.mxu1 %vm630_vm1, %v15686_v43 }
0x1616   : > { %13987 = vmatprep.subr.bf16.mxu1 %v15020_v25 }
0x1619   : > { %13989 = vmatpush3.bf16.msra.mxu1 %v15020_v25 }
0x161a   : > { %13991 = vmatprep.subr.bf16.mxu1 %v15033_v6 }
0x161c   : > { %12929 = vmatmul.mubr.msk.f32.vlgmr.msra.gmra.mrb[62].mxu1 %vm630_vm1, %v15684_v19 }
0x161d   : > { %13993 = vmatpush3.bf16.msra.mxu1 %v15033_v6  ;;  %12939 = vmatprep.mubr.msk.f32.mxu1 %vm630_vm1, %v6430_v12 }
0x161e   : > { %13995 = vmatprep.subr.bf16.mxu1 %v15043_v10 }
0x1621   : > { %13997 = vmatpush3.bf16.msra.mxu1 %v15043_v10 }
0x1622   : > { %13999 = vmatprep.subr.bf16.mxu1 %v15056_v21 }
0x1624   : > { %12940 = vmatmul.mubr.msk.f32.vlgmr.msra.gmra.mrb[62].mxu1 %vm630_vm1, %v12886_v41 }
0x1625   : > { %14001 = vmatpush3.bf16.msra.mxu1 %v15056_v21  ;;  %12950 = vmatprep.mubr.msk.f32.mxu1 %vm630_vm1, %v15690_v4 }
0x1626   : > { %14003 = vmatprep.subr.bf16.mxu1 %v15066_v33 }
0x1629   : > { %14005 = vmatpush3.bf16.msra.mxu1 %v15066_v33 }
0x162a   : > { %14015 = vmatprep.subr.bf16.mxu1 %v14716_v9 }
0x162c   : > { %12951 = vmatmul.mubr.msk.f32.vlgmr.msra.gmra.mrb[62].mxu1 %vm630_vm1, %v15688_v40  ;;  %v11181_v40 = vld [vmem:[%s14697_s17 + $0x50] sm:$0xff] }
0x162d   : > { %14017 = vmatpush3.bf16.msra.mxu1 %v14716_v9  ;;  %v14006_v13 = vpack.c.bf16 %v11182_v45, %v11181_v40 }
0x162e   : > { %14019 = vmatprep.subr.bf16.mxu1 %v14735_v14 }
0x162f   : > { %14007 = vmatprep.subr.bf16.mxu0 %v14006_v13 }
0x1630   : > { %14009 = vmatpush3.bf16.msra.mxu0 %v14006_v13 }
0x1631   : > { %14021 = vmatpush3.bf16.msra.mxu1 %v14735_v14 }
0x1632   : > { %14023 = vmatprep.subr.bf16.mxu1 %v14783_v20 }
0x1633   : > { %12958 = vmatmul.mubr.msk.f32.vlgmr.msra.gmra.mrb[46].mxu0 %vm421_vm0, %v15446_v11 }
0x1634   : > { %12960 = vmatprep.mubr.msk.f32.mxu0 %vm421_vm0, %v15454_v1 }
0x1637   : > { %12961 = vmatmul.mubr.msk.f32.gmra.mrb[48].mxu0 %vm421_vm0, %v15462_v22 }
0x1638   : > { %12963 = vmatprep.mubr.msk.f32.mxu0 %vm421_vm0, %v15469_v23 }
0x163b   : > { %12964 = vmatmul.mubr.msk.f32.gmra.mrb[50].mxu0 %vm421_vm0, %v15476_v29 }
0x163c   : > { %12970 = vmatprep.mubr.msk.f32.mxu0 %vm421_vm0, %v15483_v2 }
0x16ff   : > { %v12952_v8 = vpop.f32.mrb[62].mxu1 }
0x1700   : > { %v6912_v19 = vadd.f32 %v15825_v32, %v12952_v8  ;;  %v6900_v43 = vpop.f32.mrb[63].mxu1 }
0x1701   : > { %v6911_v4 = vadd.f32 %v15825_v32, %v6900_v43 }
0x1702   : > { %14556 = vtanh.f32 %v6912_v19 }
0x1703   : > { %14558 = vtanh.f32 %v6911_v4 }
0x1706   : > { %v15859_v55 = vpop.f32.mrb[46].mxu0 }
0x1707   : > { %v15861_v5 = vpop.f32.mrb[47].mxu0 }
0x170a   : > { %v15863_v54 = vpop.f32.mrb[48].mxu0 }
0x170b   : > { %v15865_v61 = vpop.f32.mrb[49].mxu0 }
0x170c   : > { %v14557_v15 = vpop.eup %14556 }
0x170d   : > { %v14559_v35 = vpop.eup %14558  ;;  %6923 = vrot.lane.b32.xlu1 %v14557_v15, %s14619_s26 }
0x170e   : > { %6921 = vrot.lane.b32.xlu0 %v14559_v35, %s14619_s26  ;;  %v15867_v7 = vpop.f32.mrb[50].mxu0 }
0x170f   : > { %v15869_v58 = vpop.f32.mrb[51].mxu0 }
0x177f   : > { %v6924_v37 = vpop.permute.xlu1 %6923 }
0x1780   : > { %v6928_v16 = vmul.f32 %v6924_v37, %v6918_v48  ;;  %v6922_v17 = vpop.permute.xlu0 %6921 }
0x1781   : > { %v6927_v46 = vmul.f32 %v6922_v17, %v6917_v0 }
0x1782   : > { %v15851_v24 = vadd.f32 %v6928_v16, %v6916_v39 }
0x1783   : > { %v15853_v57 = vadd.f32 %v6927_v46, %v6915_v51 }
0x1784   : > { %6935 = vrot.lane.b32.xlu1 %v15851_v24, %s14620_s18 }
0x1785   : > { %6933 = vrot.lane.b32.xlu0 %v15853_v57, %s14620_s18 }
0x17f6   : > { %v15871_v52 = vpop.permute.xlu1 %6935 }
0x17f7   : > { %11180 = vst.msk [vmem:[%s15121_s21 + $0x48] sm:$0xff] %vm630_vm1, %v15871_v52  ;;  %v15876_v63 = vpop.permute.xlu0 %6933 }
0x17f8   : > { %11179 = vst.msk [vmem:[%s15121_s21 + $0x40] sm:$0xff] %vm630_vm1, %v15876_v63  ;;  %v14010_v36 = vpack.c.bf16 %v15871_v52, %v15876_v63 }
0x17fa   : > { %14011 = vmatprep.subr.bf16.mxu0 %v14010_v36 }
0x17fb   : > { %14013 = vmatpush3.bf16.msra.mxu0 %v14010_v36 }
0x17fe   : > { %12971 = vmatmul.mubr.msk.f32.vlgmr.msra.gmra.mrb[52].mxu0 %vm421_vm0, %v15446_v11 }
0x17ff   : > { %12973 = vmatprep.mubr.msk.f32.mxu0 %vm421_vm0, %v15454_v1 }
0x1802   : > { %12974 = vmatmul.mubr.msk.f32.gmra.mrb[54].mxu0 %vm421_vm0, %v15462_v22 }
0x1803   : > { %12976 = vmatprep.mubr.msk.f32.mxu0 %vm421_vm0, %v15469_v23 }
0x1806   : > { %12977 = vmatmul.mubr.msk.f32.gmra.mrb[56].mxu0 %vm421_vm0, %v15476_v29 }
0x1807   : > { %13049 = vmatprep.mubr.msk.f32.mxu0 %vm421_vm0, %v15483_v2 }
0x18d1   : > { %v12972_v3 = vpop.f32.mrb[52].mxu0 }
0x18d2   : > { %v7106_v60 = vpop.f32.mrb[53].mxu0 }
0x18d3   : > { %12987 = vmatprep.mubr.msk.f32.mxu1 %vm630_vm1, %v7106_v60 }
0x18d4   : > { %12988 = vmatmul.mubr.msk.f32.vlgmr.msra.gmra.mrb[64].mxu1 %vm630_vm1, %v12972_v3 }
0x18d5   : > { %14025 = vmatpush3.bf16.msra.mxu1 %v14783_v20  ;;  %12998 = vmatprep.mubr.msk.f32.mxu1 %vm630_vm1, %v15861_v5  ;;  %v12975_v41 = vpop.f32.mrb[54].mxu0 }
0x18d6   : > { %14027 = vmatprep.subr.bf16.mxu1 %v14798_v26  ;;  %v7116_v12 = vpop.f32.mrb[55].mxu0 }
0x18d9   : > { %14029 = vmatpush3.bf16.msra.mxu1 %v14798_v26  ;;  %v12978_v8 = vpop.f32.mrb[56].mxu0 }
0x18da   : > { %14031 = vmatprep.subr.bf16.mxu1 %v14814_v31  ;;  %v7126_v19 = vpop.f32.mrb[57].mxu0 }
0x18dc   : > { %12999 = vmatmul.mubr.msk.f32.vlgmr.msra.gmra.mrb[64].mxu1 %vm630_vm1, %v15859_v55 }
0x18dd   : > { %14033 = vmatpush3.bf16.msra.mxu1 %v14814_v31  ;;  %13009 = vmatprep.mubr.msk.f32.mxu1 %vm630_vm1, %v7116_v12  ;;  %v11230_v12 = vld [vmem:[%s14697_s17 + $0x68] sm:$0xff] }
0x18de   : > { %14035 = vmatprep.subr.bf16.mxu1 %v14828_v38 }
0x18e1   : > { %14037 = vmatpush3.bf16.msra.mxu1 %v14828_v38 }
0x18e2   : > { %14039 = vmatprep.subr.bf16.mxu1 %v14845_v44 }
0x18e4   : > { %13010 = vmatmul.mubr.msk.f32.vlgmr.msra.gmra.mrb[64].mxu1 %vm630_vm1, %v12975_v41 }
0x18e5   : > { %14041 = vmatpush3.bf16.msra.mxu1 %v14845_v44  ;;  %13020 = vmatprep.mubr.msk.f32.mxu1 %vm630_vm1, %v15865_v61 }
0x18e6   : > { %14043 = vmatprep.subr.bf16.mxu1 %v14855_v47 }
0x18e9   : > { %14045 = vmatpush3.bf16.msra.mxu1 %v14855_v47 }
0x18ea   : > { %14047 = vmatprep.subr.bf16.mxu1 %v14868_v50 }
0x18ec   : > { %13021 = vmatmul.mubr.msk.f32.vlgmr.msra.gmra.mrb[64].mxu1 %vm630_vm1, %v15863_v54 }
0x18ed   : > { %14049 = vmatpush3.bf16.msra.mxu1 %v14868_v50  ;;  %13031 = vmatprep.mubr.msk.f32.mxu1 %vm630_vm1, %v7126_v19 }
0x18ee   : > { %14051 = vmatprep.subr.bf16.mxu1 %v14878_v53 }
0x18f1   : > { %14053 = vmatpush3.bf16.msra.mxu1 %v14878_v53 }
0x18f2   : > { %14055 = vmatprep.subr.bf16.mxu1 %v14891_v56 }
0x18f4   : > { %13032 = vmatmul.mubr.msk.f32.vlgmr.msra.gmra.mrb[64].mxu1 %vm630_vm1, %v12978_v8 }
0x18f5   : > { %14057 = vmatpush3.bf16.msra.mxu1 %v14891_v56  ;;  %13042 = vmatprep.mubr.msk.f32.mxu1 %vm630_vm1, %v15869_v58 }
0x18f6   : > { %14059 = vmatprep.subr.bf16.mxu1 %v14901_v59 }
0x18f9   : > { %14061 = vmatpush3.bf16.msra.mxu1 %v14901_v59 }
0x18fc   : > { %13043 = vmatmul.mubr.msk.f32.vlgmr.msra.gmra.mrb[64].mxu1 %vm630_vm1, %v15867_v7 }
0x18fd   : > { %13128 = vmatprep.mubr.msk.f32.mxu1 %vm421_vm0, %v15483_v2 }
0x19cf   : > { %v13044_v43 = vpop.f32.mrb[64].mxu1 }
0x19d0   : > { %v7626_v4 = vadd.f32 %v15579_v18, %v13044_v43  ;;  %v7614_v40 = vpop.f32.mrb[65].mxu1 }
0x19d1   : > { %v7625_v45 = vadd.f32 %v15579_v18, %v7614_v40 }
0x19d2   : > { %v11208_v13 = vmul.f32 -1.442695, %v7626_v4 }
0x19d3   : > { %v11207_v15 = vmul.f32 -1.442695, %v7625_v45 }
0x19d4   : > { %14560 = vpow2.f32 %v11208_v13 }
0x19d5   : > { %14562 = vpow2.f32 %v11207_v15 }
0x19de   : > { %v14561_v35 = vpop.eup %14560 }
0x19df   : > { %v14563_v48 = vpop.eup %14562  ;;  %v7634_v37 = vadd.f32 1.0, %v14561_v35 }
0x19e0   : > { %v7633_v0 = vadd.f32 1.0, %v14563_v48 }
0x19e1   : > { %14564 = vrcp.f32 %v7634_v37 }
0x19e2   : > { %14566 = vrcp.f32 %v7633_v0 }
0x19eb   : > { %v15936_v39 = vpop.eup %14564 }
0x19ec   : > { %v15938_v16 = vpop.eup %14566  ;;  %v7640_v17 = vmul.f32 %v15936_v39, %v15871_v52 }
0x19ed   : > { %v7639_v51 = vmul.f32 %v15938_v16, %v15876_v63  ;;  %v8214_v4 = vsub.f32 1.0, %v15938_v16 }
0x19ef   : > { %v14062_v46 = vpack.c.bf16 %v7640_v17, %v7639_v51  ;;  %v16067_v17 = vld [vmem:[%s16392_s0 + $0x10] sm:$0xff]  ;;  %v16074_v51 = vld [vmem:[%s16392_s0 + $0x18] sm:$0xff] }
0x19f1   : > { %14063 = vmatprep.subr.bf16.mxu0 %v14062_v46 }
0x19f2   : > { %14065 = vmatpush3.bf16.msra.mxu0 %v14062_v46  ;;  %v16081_v46 = vld [vmem:[%s16392_s0 + $0x20] sm:$0xff] }
0x19f3   : > { %14067 = vmatprep.subr.bf16.mxu0 %v14934_v28 }
0x19f5   : > { %13050 = vmatmul.mubr.msk.f32.vlgmr.msra.gmra.mrb[58].mxu0 %vm421_vm0, %v15446_v11 }
0x19f6   : > { %13052 = vmatprep.mubr.msk.f32.mxu0 %vm421_vm0, %v15454_v1  ;;  %14069 = vmatpush3.bf16.msra.mxu0 %v14934_v28 }
0x19f7   : > { %14071 = vmatprep.subr.bf16.mxu0 %v14943_v30 }
0x19f9   : > { %13053 = vmatmul.mubr.msk.f32.gmra.mrb[60].mxu0 %vm421_vm0, %v15462_v22 }
0x19fa   : > { %13055 = vmatprep.mubr.msk.f32.mxu0 %vm421_vm0, %v15469_v23  ;;  %14073 = vmatpush3.bf16.msra.mxu0 %v14943_v30 }
0x19fb   : > { %14075 = vmatprep.subr.bf16.mxu0 %v14964_v34 }
0x19fd   : > { %13056 = vmatmul.mubr.msk.f32.gmra.mrb[62].mxu0 %vm421_vm0, %v15476_v29 }
0x1ac8   : > { %v13051_v52 = vpop.f32.mrb[58].mxu0 }
0x1ac9   : > { %v7707_v63 = vpop.f32.mrb[59].mxu0 }
0x1aca   : > { %13066 = vmatprep.mubr.msk.f32.mxu0 %vm630_vm1, %v7707_v63  ;;  %v16095_v63 = vld [vmem:[%s16392_s0] sm:$0xff] }
0x1acb   : > { %13067 = vmatmul.mubr.msk.f32.vlgmr.msra.gmra.mrb[64].mxu0 %vm630_vm1, %v13051_v52  ;;  %v16088_v52 = vld [vmem:[%s16392_s0 + $0x28] sm:$0xff] }
0x1acc   : > { %14077 = vmatpush3.bf16.msra.mxu0 %v14964_v34  ;;  %13077 = vmatprep.mubr.msk.f32.mxu0 %vm630_vm1, %v15861_v5  ;;  %v13054_v36 = vpop.f32.mrb[60].mxu0 }
0x1acd   : > { %14079 = vmatprep.subr.bf16.mxu0 %v14973_v42  ;;  %v7717_v3 = vpop.f32.mrb[61].mxu0 }
0x1ad0   : > { %14081 = vmatpush3.bf16.msra.mxu0 %v14973_v42  ;;  %v13057_v60 = vpop.f32.mrb[62].mxu0 }
0x1ad1   : > { %14083 = vmatprep.subr.bf16.mxu0 %v14987_v49  ;;  %v7727_v41 = vpop.f32.mrb[63].mxu0 }
0x1ad3   : > { %13078 = vmatmul.mubr.msk.f32.vlgmr.msra.gmra.mrb[64].mxu0 %vm630_vm1, %v15859_v55 }
0x1ad4   : > { %14085 = vmatpush3.bf16.msra.mxu0 %v14987_v49  ;;  %13088 = vmatprep.mubr.msk.f32.mxu0 %vm630_vm1, %v7717_v3 }
0x1ad5   : > { %14087 = vmatprep.subr.bf16.mxu0 %v14997_v27 }
0x1ad8   : > { %14089 = vmatpush3.bf16.msra.mxu0 %v14997_v27 }
0x1ad9   : > { %14091 = vmatprep.subr.bf16.mxu0 %v15010_v62 }
0x1adb   : > { %13089 = vmatmul.mubr.msk.f32.vlgmr.msra.gmra.mrb[64].mxu0 %vm630_vm1, %v13054_v36 }
0x1adc   : > { %14093 = vmatpush3.bf16.msra.mxu0 %v15010_v62  ;;  %13099 = vmatprep.mubr.msk.f32.mxu0 %vm630_vm1, %v15865_v61 }
0x1add   : > { %14095 = vmatprep.subr.bf16.mxu0 %v15020_v25 }
0x1ae0   : > { %14097 = vmatpush3.bf16.msra.mxu0 %v15020_v25 }
0x1ae1   : > { %14099 = vmatprep.subr.bf16.mxu0 %v15033_v6 }
0x1ae3   : > { %13100 = vmatmul.mubr.msk.f32.vlgmr.msra.gmra.mrb[64].mxu0 %vm630_vm1, %v15863_v54 }
0x1ae4   : > { %14101 = vmatpush3.bf16.msra.mxu0 %v15033_v6  ;;  %13110 = vmatprep.mubr.msk.f32.mxu0 %vm630_vm1, %v7727_v41 }
0x1ae5   : > { %14103 = vmatprep.subr.bf16.mxu0 %v15043_v10 }
0x1ae8   : > { %14105 = vmatpush3.bf16.msra.mxu0 %v15043_v10 }
0x1ae9   : > { %14107 = vmatprep.subr.bf16.mxu0 %v15056_v21 }
0x1aeb   : > { %13111 = vmatmul.mubr.msk.f32.vlgmr.msra.gmra.mrb[64].mxu0 %vm630_vm1, %v13057_v60 }
0x1aec   : > { %14109 = vmatpush3.bf16.msra.mxu0 %v15056_v21  ;;  %13121 = vmatprep.mubr.msk.f32.mxu0 %vm630_vm1, %v15869_v58  ;;  %v11229_v58 = vld [vmem:[%s14697_s17 + $0x60] sm:$0xff] }
0x1aed   : > { %14111 = vmatprep.subr.bf16.mxu0 %v15066_v33  ;;  %v14114_v8 = vpack.c.bf16 %v11230_v12, %v11229_v58 }
0x1aef   : > { %14115 = vmatprep.subr.bf16.mxu1 %v14114_v8 }
0x1af0   : > { %14113 = vmatpush3.bf16.msra.mxu0 %v15066_v33  ;;  %14117 = vmatpush3.bf16.msra.mxu1 %v14114_v8 }
0x1af1   : > { %14123 = vmatprep.subr.bf16.mxu0 %v14716_v9 }
0x1af3   : > { %13122 = vmatmul.mubr.msk.f32.vlgmr.msra.gmra.mrb[64].mxu0 %vm630_vm1, %v15867_v7  ;;  %13129 = vmatmul.mubr.msk.f32.vlgmr.msra.gmra.mrb[66].mxu1 %vm421_vm0, %v15446_v11  ;;  %v8215_v11 = vsub.f32 1.0, %v15936_v39 }
0x1af4   : > { %14125 = vmatpush3.bf16.msra.mxu0 %v14716_v9  ;;  %13131 = vmatprep.mubr.msk.f32.mxu1 %vm421_vm0, %v15454_v1  ;;  %v8213_v1 = vmul.f32 %v15936_v39, %v15851_v24 }
0x1af5   : > { %14127 = vmatprep.subr.bf16.mxu0 %v14735_v14 }
0x1af7   : > { %13132 = vmatmul.mubr.msk.f32.gmra.mrb[68].mxu1 %vm421_vm0, %v15462_v22 }
0x1af8   : > { %14129 = vmatpush3.bf16.msra.mxu0 %v14735_v14  ;;  %13134 = vmatprep.mubr.msk.f32.mxu1 %vm421_vm0, %v15469_v23  ;;  %v8212_v23 = vmul.f32 %v15938_v16, %v15853_v57  ;;  %v16060_v16 = vld [vmem:[%s16392_s0 + $0x8] sm:$0xff] }
0x1af9   : > { %14131 = vmatprep.subr.bf16.mxu0 %v14783_v20 }
0x1afb   : > { %13135 = vmatmul.mubr.msk.f32.gmra.mrb[70].mxu1 %vm421_vm0, %v15476_v29 }
0x1afc   : > { %13141 = vmatprep.mubr.msk.f32.mxu1 %vm421_vm0, %v15483_v2 }
0x1bc6   : > { %v13123_v55 = vpop.f32.mrb[64].mxu0  ;;  %v16033_v2 = vpop.f32.mrb[66].mxu1 }
0x1bc7   : > { %v8209_v5 = vadd.f32 %v15825_v32, %v13123_v55  ;;  %v8197_v54 = vpop.f32.mrb[65].mxu0  ;;  %v16035_v24 = vpop.f32.mrb[67].mxu1 }
0x1bc8   : > { %v8208_v61 = vadd.f32 %v15825_v32, %v8197_v54 }
0x1bc9   : > { %14568 = vtanh.f32 %v8209_v5 }
0x1bca   : > { %14570 = vtanh.f32 %v8208_v61  ;;  %v16037_v15 = vpop.f32.mrb[68].mxu1 }
0x1bcb   : > { %v16039_v35 = vpop.f32.mrb[69].mxu1 }
0x1bce   : > { %v16041_v57 = vpop.f32.mrb[70].mxu1 }
0x1bcf   : > { %v16043_v48 = vpop.f32.mrb[71].mxu1 }
0x1bd3   : > { %v14569_v7 = vpop.eup %14568 }
0x1bd4   : > { %v14571_v19 = vpop.eup %14570  ;;  %8220 = vrot.lane.b32.xlu1 %v14569_v7, %s14619_s26 }
0x1bd5   : > { %8218 = vrot.lane.b32.xlu0 %v14571_v19, %s14619_s26 }
0x1c46   : > { %v8221_v43 = vpop.permute.xlu1 %8220 }
0x1c47   : > { %v8225_v40 = vmul.f32 %v8221_v43, %v8215_v11  ;;  %v8219_v22 = vpop.permute.xlu0 %8218 }
0x1c48   : > { %v8224_v45 = vmul.f32 %v8219_v22, %v8214_v4 }
0x1c49   : > { %v16025_v29 = vadd.f32 %v8225_v40, %v8213_v1 }
0x1c4a   : > { %v16027_v13 = vadd.f32 %v8224_v45, %v8212_v23 }
0x1c4b   : > { %8232 = vrot.lane.b32.xlu1 %v16025_v29, %s14620_s18 }
0x1c4c   : > { %8230 = vrot.lane.b32.xlu0 %v16027_v13, %s14620_s18 }
0x1cbd   : > { %v16045_v37 = vpop.permute.xlu1 %8232 }
0x1cbe   : > { %11228 = vst.msk [vmem:[%s15121_s21 + $0x58] sm:$0xff] %vm630_vm1, %v16045_v37  ;;  %v16050_v0 = vpop.permute.xlu0 %8230 }
0x1cbf   : > { %11227 = vst.msk [vmem:[%s15121_s21 + $0x50] sm:$0xff] %vm630_vm1, %v16050_v0  ;;  %v14118_v39 = vpack.c.bf16 %v16045_v37, %v16050_v0 }
0x1cc1   : > { %14119 = vmatprep.subr.bf16.mxu1 %v14118_v39 }
0x1cc2   : > { %14121 = vmatpush3.bf16.msra.mxu1 %v14118_v39 }
0x1cc5   : > { %13142 = vmatmul.mubr.msk.f32.vlgmr.msra.gmra.mrb[72].mxu1 %vm421_vm0, %v16060_v16 }
0x1cc6   : > { %13144 = vmatprep.mubr.msk.f32.mxu1 %vm421_vm0, %v16067_v17 }
0x1cc9   : > { %13145 = vmatmul.mubr.msk.f32.gmra.mrb[74].mxu1 %vm421_vm0, %v16074_v51 }
0x1cca   : > { %13147 = vmatprep.mubr.msk.f32.mxu1 %vm421_vm0, %v16081_v46 }
0x1ccd   : > { %13148 = vmatmul.mubr.msk.f32.gmra.mrb[76].mxu1 %vm421_vm0, %v16088_v52 }
0x1cce   : > { %13220 = vmatprep.mubr.msk.f32.mxu1 %vm421_vm0, %v16095_v63 }
0x1d98   : > { %v13143_v36 = vpop.f32.mrb[72].mxu1 }
0x1d99   : > { %v8403_v3 = vpop.f32.mrb[73].mxu1 }
0x1d9a   : > { %13158 = vmatprep.mubr.msk.f32.mxu0 %vm630_vm1, %v8403_v3 }
0x1d9b   : > { %13159 = vmatmul.mubr.msk.f32.vlgmr.msra.gmra.mrb[66].mxu0 %vm630_vm1, %v13143_v36 }
0x1d9c   : > { %14133 = vmatpush3.bf16.msra.mxu0 %v14783_v20  ;;  %13169 = vmatprep.mubr.msk.f32.mxu0 %vm630_vm1, %v16035_v24  ;;  %v13146_v60 = vpop.f32.mrb[74].mxu1 }
0x1d9d   : > { %14135 = vmatprep.subr.bf16.mxu0 %v14798_v26  ;;  %v8413_v41 = vpop.f32.mrb[75].mxu1 }
0x1da0   : > { %14137 = vmatpush3.bf16.msra.mxu0 %v14798_v26  ;;  %v13149_v55 = vpop.f32.mrb[76].mxu1 }
0x1da1   : > { %14139 = vmatprep.subr.bf16.mxu0 %v14814_v31  ;;  %v8423_v5 = vpop.f32.mrb[77].mxu1 }
0x1da3   : > { %13170 = vmatmul.mubr.msk.f32.vlgmr.msra.gmra.mrb[66].mxu0 %vm630_vm1, %v16033_v2 }
0x1da4   : > { %14141 = vmatpush3.bf16.msra.mxu0 %v14814_v31  ;;  %13180 = vmatprep.mubr.msk.f32.mxu0 %vm630_vm1, %v8413_v41 }
0x1da5   : > { %14143 = vmatprep.subr.bf16.mxu0 %v14828_v38 }
0x1da8   : > { %14145 = vmatpush3.bf16.msra.mxu0 %v14828_v38 }
0x1da9   : > { %14147 = vmatprep.subr.bf16.mxu0 %v14845_v44 }
0x1dab   : > { %13181 = vmatmul.mubr.msk.f32.vlgmr.msra.gmra.mrb[66].mxu0 %vm630_vm1, %v13146_v60  ;;  %v11278_v60 = vld [vmem:[%s14697_s17 + $0x78] sm:$0xff] }
0x1dac   : > { %14149 = vmatpush3.bf16.msra.mxu0 %v14845_v44  ;;  %13191 = vmatprep.mubr.msk.f32.mxu0 %vm630_vm1, %v16039_v35 }
0x1dad   : > { %14151 = vmatprep.subr.bf16.mxu0 %v14855_v47 }
0x1db0   : > { %14153 = vmatpush3.bf16.msra.mxu0 %v14855_v47 }
0x1db1   : > { %14155 = vmatprep.subr.bf16.mxu0 %v14868_v50 }
0x1db3   : > { %13192 = vmatmul.mubr.msk.f32.vlgmr.msra.gmra.mrb[66].mxu0 %vm630_vm1, %v16037_v15 }
0x1db4   : > { %14157 = vmatpush3.bf16.msra.mxu0 %v14868_v50  ;;  %13202 = vmatprep.mubr.msk.f32.mxu0 %vm630_vm1, %v8423_v5 }
0x1db5   : > { %14159 = vmatprep.subr.bf16.mxu0 %v14878_v53 }
0x1db8   : > { %14161 = vmatpush3.bf16.msra.mxu0 %v14878_v53 }
0x1db9   : > { %14163 = vmatprep.subr.bf16.mxu0 %v14891_v56 }
0x1dbb   : > { %13203 = vmatmul.mubr.msk.f32.vlgmr.msra.gmra.mrb[66].mxu0 %vm630_vm1, %v13149_v55 }
0x1dbc   : > { %14165 = vmatpush3.bf16.msra.mxu0 %v14891_v56  ;;  %13213 = vmatprep.mubr.msk.f32.mxu0 %vm630_vm1, %v16043_v48 }
0x1dbd   : > { %14167 = vmatprep.subr.bf16.mxu0 %v14901_v59 }
0x1dc0   : > { %14169 = vmatpush3.bf16.msra.mxu0 %v14901_v59 }
0x1dc3   : > { %13214 = vmatmul.mubr.msk.f32.vlgmr.msra.gmra.mrb[66].mxu0 %vm630_vm1, %v16041_v57 }
0x1dc4   : > { %13299 = vmatprep.mubr.msk.f32.mxu0 %vm421_vm0, %v16095_v63 }
0x1e96   : > { %v13215_v54 = vpop.f32.mrb[66].mxu0 }
0x1e97   : > { %v8923_v61 = vadd.f32 %v15579_v18, %v13215_v54  ;;  %v8911_v58 = vpop.f32.mrb[67].mxu0 }
0x1e98   : > { %v8922_v12 = vadd.f32 %v15579_v18, %v8911_v58 }
0x1e99   : > { %v11256_v8 = vmul.f32 -1.442695, %v8923_v61 }
0x1e9a   : > { %v11255_v7 = vmul.f32 -1.442695, %v8922_v12 }
0x1e9b   : > { %14572 = vpow2.f32 %v11256_v8 }
0x1e9c   : > { %14574 = vpow2.f32 %v11255_v7 }
0x1ea5   : > { %v14573_v19 = vpop.eup %14572 }
0x1ea6   : > { %v14575_v11 = vpop.eup %14574  ;;  %v8931_v43 = vadd.f32 1.0, %v14573_v19 }
0x1ea7   : > { %v8930_v4 = vadd.f32 1.0, %v14575_v11 }
0x1ea8   : > { %14576 = vrcp.f32 %v8931_v43 }
0x1ea9   : > { %14578 = vrcp.f32 %v8930_v4 }
0x1eb2   : > { %v16140_v1 = vpop.eup %14576 }
0x1eb3   : > { %v16142_v40 = vpop.eup %14578  ;;  %v8937_v22 = vmul.f32 %v16140_v1, %v16045_v37  ;;  %v9510_v54 = vmul.f32 %v16140_v1, %v16025_v29 }
0x1eb4   : > { %v8936_v18 = vmul.f32 %v16142_v40, %v16050_v0  ;;  %v9511_v5 = vsub.f32 1.0, %v16142_v40  ;;  %v9509_v12 = vmul.f32 %v16142_v40, %v16027_v13 }
0x1eb6   : > { %v14170_v23 = vpack.c.bf16 %v8937_v22, %v8936_v18 }
0x1eb8   : > { %14171 = vmatprep.subr.bf16.mxu1 %v14170_v23 }
0x1eb9   : > { %14173 = vmatpush3.bf16.msra.mxu1 %v14170_v23 }
0x1eba   : > { %14175 = vmatprep.subr.bf16.mxu1 %v14934_v28 }
0x1ebc   : > { %13221 = vmatmul.mubr.msk.f32.vlgmr.msra.gmra.mrb[78].mxu1 %vm421_vm0, %v16060_v16 }
0x1ebd   : > { %13223 = vmatprep.mubr.msk.f32.mxu1 %vm421_vm0, %v16067_v17  ;;  %14177 = vmatpush3.bf16.msra.mxu1 %v14934_v28 }
0x1ebe   : > { %14179 = vmatprep.subr.bf16.mxu1 %v14943_v30 }
0x1ec0   : > { %13224 = vmatmul.mubr.msk.f32.gmra.mrb[80].mxu1 %vm421_vm0, %v16074_v51 }
0x1ec1   : > { %13226 = vmatprep.mubr.msk.f32.mxu1 %vm421_vm0, %v16081_v46  ;;  %14181 = vmatpush3.bf16.msra.mxu1 %v14943_v30 }
0x1ec2   : > { %14183 = vmatprep.subr.bf16.mxu1 %v14964_v34 }
0x1ec4   : > { %13227 = vmatmul.mubr.msk.f32.gmra.mrb[82].mxu1 %vm421_vm0, %v16088_v52 }
0x1f8f   : > { %v13222_v45 = vpop.f32.mrb[78].mxu1 }
0x1f90   : > { %v9004_v37 = vpop.f32.mrb[79].mxu1 }
0x1f91   : > { %13237 = vmatprep.mubr.msk.f32.mxu1 %vm630_vm1, %v9004_v37 }
0x1f92   : > { %13238 = vmatmul.mubr.msk.f32.vlgmr.msra.gmra.mrb[84].mxu1 %vm630_vm1, %v13222_v45 }
0x1f93   : > { %14185 = vmatpush3.bf16.msra.mxu1 %v14964_v34  ;;  %13248 = vmatprep.mubr.msk.f32.mxu1 %vm630_vm1, %v16035_v24  ;;  %v13225_v0 = vpop.f32.mrb[80].mxu1 }
0x1f94   : > { %14187 = vmatprep.subr.bf16.mxu1 %v14973_v42  ;;  %v9014_v39 = vpop.f32.mrb[81].mxu1 }
0x1f97   : > { %14189 = vmatpush3.bf16.msra.mxu1 %v14973_v42  ;;  %v13228_v36 = vpop.f32.mrb[82].mxu1 }
0x1f98   : > { %14191 = vmatprep.subr.bf16.mxu1 %v14987_v49  ;;  %v9024_v3 = vpop.f32.mrb[83].mxu1 }
0x1f9a   : > { %13249 = vmatmul.mubr.msk.f32.vlgmr.msra.gmra.mrb[84].mxu1 %vm630_vm1, %v16033_v2 }
0x1f9b   : > { %14193 = vmatpush3.bf16.msra.mxu1 %v14987_v49  ;;  %13259 = vmatprep.mubr.msk.f32.mxu1 %vm630_vm1, %v9014_v39 }
0x1f9c   : > { %14195 = vmatprep.subr.bf16.mxu1 %v14997_v27 }
0x1f9f   : > { %14197 = vmatpush3.bf16.msra.mxu1 %v14997_v27 }
0x1fa0   : > { %14199 = vmatprep.subr.bf16.mxu1 %v15010_v62 }
0x1fa2   : > { %13260 = vmatmul.mubr.msk.f32.vlgmr.msra.gmra.mrb[84].mxu1 %vm630_vm1, %v13225_v0 }
0x1fa3   : > { %14201 = vmatpush3.bf16.msra.mxu1 %v15010_v62  ;;  %13270 = vmatprep.mubr.msk.f32.mxu1 %vm630_vm1, %v16039_v35 }
0x1fa4   : > { %14203 = vmatprep.subr.bf16.mxu1 %v15020_v25 }
0x1fa7   : > { %14205 = vmatpush3.bf16.msra.mxu1 %v15020_v25 }
0x1fa8   : > { %14207 = vmatprep.subr.bf16.mxu1 %v15033_v6 }
0x1faa   : > { %13271 = vmatmul.mubr.msk.f32.vlgmr.msra.gmra.mrb[84].mxu1 %vm630_vm1, %v16037_v15 }
0x1fab   : > { %14209 = vmatpush3.bf16.msra.mxu1 %v15033_v6  ;;  %13281 = vmatprep.mubr.msk.f32.mxu1 %vm630_vm1, %v9024_v3 }
0x1fac   : > { %14211 = vmatprep.subr.bf16.mxu1 %v15043_v10 }
0x1faf   : > { %14213 = vmatpush3.bf16.msra.mxu1 %v15043_v10 }
0x1fb0   : > { %14215 = vmatprep.subr.bf16.mxu1 %v15056_v21 }
0x1fb2   : > { %13282 = vmatmul.mubr.msk.f32.vlgmr.msra.gmra.mrb[84].mxu1 %vm630_vm1, %v13228_v36 }
0x1fb3   : > { %14217 = vmatpush3.bf16.msra.mxu1 %v15056_v21  ;;  %13292 = vmatprep.mubr.msk.f32.mxu1 %vm630_vm1, %v16043_v48  ;;  %v11277_v48 = vld [vmem:[%s14697_s17 + $0x70] sm:$0xff] }
0x1fb4   : > { %14219 = vmatprep.subr.bf16.mxu1 %v15066_v33  ;;  %v14222_v41 = vpack.c.bf16 %v11278_v60, %v11277_v48 }
0x1fb6   : > { %14223 = vmatprep.subr.bf16.mxu0 %v14222_v41 }
0x1fb7   : > { %14221 = vmatpush3.bf16.msra.mxu1 %v15066_v33  ;;  %14225 = vmatpush3.bf16.msra.mxu0 %v14222_v41 }
0x1fb8   : > { %14231 = vmatprep.subr.bf16.mxu1 %v14716_v9 }
0x1fba   : > { %13293 = vmatmul.mubr.msk.f32.vlgmr.msra.gmra.mrb[84].mxu1 %vm630_vm1, %v16041_v57  ;;  %13300 = vmatmul.mubr.msk.f32.vlgmr.msra.gmra.mrb[68].mxu0 %vm421_vm0, %v16060_v16  ;;  %v9512_v57 = vsub.f32 1.0, %v16140_v1 }
0x1fbb   : > { %14233 = vmatpush3.bf16.msra.mxu1 %v14716_v9  ;;  %13302 = vmatprep.mubr.msk.f32.mxu0 %vm421_vm0, %v16067_v17 }
0x1fbc   : > { %14235 = vmatprep.subr.bf16.mxu1 %v14735_v14 }
0x1fbe   : > { %13303 = vmatmul.mubr.msk.f32.gmra.mrb[70].mxu0 %vm421_vm0, %v16074_v51 }
0x1fbf   : > { %14237 = vmatpush3.bf16.msra.mxu1 %v14735_v14  ;;  %13305 = vmatprep.mubr.msk.f32.mxu0 %vm421_vm0, %v16081_v46 }
0x1fc0   : > { %14239 = vmatprep.subr.bf16.mxu1 %v14783_v20 }
0x1fc2   : > { %13306 = vmatmul.mubr.msk.f32.gmra.mrb[72].mxu0 %vm421_vm0, %v16088_v52 }
0x1fc3   : > { %13312 = vmatprep.mubr.msk.f32.mxu0 %vm421_vm0, %v16095_v63 }
0x208d   : > { %v13294_v2 = vpop.f32.mrb[84].mxu1  ;;  %v16237_v11 = vpop.f32.mrb[68].mxu0 }
0x208e   : > { %v9506_v24 = vadd.f32 %v15825_v32, %v13294_v2  ;;  %v9494_v15 = vpop.f32.mrb[85].mxu1  ;;  %v16239_v29 = vpop.f32.mrb[69].mxu0 }
0x208f   : > { %v9505_v35 = vadd.f32 %v15825_v32, %v9494_v15 }
0x2090   : > { %14580 = vtanh.f32 %v9506_v24 }
0x2091   : > { %14582 = vtanh.f32 %v9505_v35  ;;  %v16241_v43 = vpop.f32.mrb[70].mxu0 }
0x2092   : > { %v16243_v4 = vpop.f32.mrb[71].mxu0 }
0x2095   : > { %v16245_v13 = vpop.f32.mrb[72].mxu0 }
0x2096   : > { %v16247_v1 = vpop.f32.mrb[73].mxu0 }
0x209a   : > { %v14581_v9 = vpop.eup %14580 }
0x209b   : > { %v14583_v14 = vpop.eup %14582  ;;  %9517 = vrot.lane.b32.xlu1 %v14581_v9, %s14619_s26 }
0x209c   : > { %9515 = vrot.lane.b32.xlu0 %v14583_v14, %s14619_s26 }
0x210d   : > { %v9518_v55 = vpop.permute.xlu1 %9517 }
0x210e   : > { %v9522_v61 = vmul.f32 %v9518_v55, %v9512_v57  ;;  %v9516_v58 = vpop.permute.xlu0 %9515 }
0x210f   : > { %v9521_v8 = vmul.f32 %v9516_v58, %v9511_v5 }
0x2110   : > { %v16229_v7 = vadd.f32 %v9522_v61, %v9510_v54 }
0x2111   : > { %v16231_v19 = vadd.f32 %v9521_v8, %v9509_v12 }
0x2112   : > { %9529 = vrot.lane.b32.xlu1 %v16229_v7, %s14620_s18 }
0x2113   : > { %9527 = vrot.lane.b32.xlu0 %v16231_v19, %s14620_s18 }
0x2184   : > { %v16249_v40 = vpop.permute.xlu1 %9529 }
0x2185   : > { %11276 = vst.msk [vmem:[%s15121_s21 + $0x68] sm:$0xff] %vm630_vm1, %v16249_v40  ;;  %v16254_v22 = vpop.permute.xlu0 %9527 }
0x2186   : > { %11275 = vst.msk [vmem:[%s15121_s21 + $0x60] sm:$0xff] %vm630_vm1, %v16254_v22  ;;  %v14226_v18 = vpack.c.bf16 %v16249_v40, %v16254_v22 }
0x2188   : > { %14227 = vmatprep.subr.bf16.mxu0 %v14226_v18 }
0x2189   : > { %14229 = vmatpush3.bf16.msra.mxu0 %v14226_v18 }
0x218c   : > { %13313 = vmatmul.mubr.msk.f32.vlgmr.msra.gmra.mrb[74].mxu0 %vm421_vm0, %v16060_v16 }
0x218d   : > { %13315 = vmatprep.mubr.msk.f32.mxu0 %vm421_vm0, %v16067_v17 }
0x2190   : > { %13316 = vmatmul.mubr.msk.f32.gmra.mrb[76].mxu0 %vm421_vm0, %v16074_v51 }
0x2191   : > { %13318 = vmatprep.mubr.msk.f32.mxu0 %vm421_vm0, %v16081_v46 }
0x2194   : > { %13319 = vmatmul.mubr.msk.f32.gmra.mrb[78].mxu0 %vm421_vm0, %v16088_v52 }
0x2195   : > { %13391 = vmatprep.mubr.msk.f32.mxu0 %vm421_vm0, %v16095_v63 }
0x225f   : > { %v13314_v23 = vpop.f32.mrb[74].mxu0 }
0x2260   : > { %v9700_v45 = vpop.f32.mrb[75].mxu0 }
0x2261   : > { %13329 = vmatprep.mubr.msk.f32.mxu1 %vm630_vm1, %v9700_v45 }
0x2262   : > { %13330 = vmatmul.mubr.msk.f32.vlgmr.msra.gmra.mrb[86].mxu1 %vm630_vm1, %v13314_v23 }
0x2263   : > { %14241 = vmatpush3.bf16.msra.mxu1 %v14783_v20  ;;  %13340 = vmatprep.mubr.msk.f32.mxu1 %vm630_vm1, %v16239_v29  ;;  %v13317_v37 = vpop.f32.mrb[76].mxu0 }
0x2264   : > { %14243 = vmatprep.subr.bf16.mxu1 %v14798_v26  ;;  %v9710_v0 = vpop.f32.mrb[77].mxu0 }
0x2267   : > { %14245 = vmatpush3.bf16.msra.mxu1 %v14798_v26  ;;  %v13320_v39 = vpop.f32.mrb[78].mxu0  ;;  %v14610_v26 = vld [vmem:[%s16397_s5] ss:$0 sm:$0xff] }
0x2268   : > { %14247 = vmatprep.subr.bf16.mxu1 %v14814_v31  ;;  %v9720_v63 = vpop.f32.mrb[79].mxu0 }
0x226a   : > { %13341 = vmatmul.mubr.msk.f32.vlgmr.msra.gmra.mrb[86].mxu1 %vm630_vm1, %v16237_v11 }
0x226b   : > { %14249 = vmatpush3.bf16.msra.mxu1 %v14814_v31  ;;  %13351 = vmatprep.mubr.msk.f32.mxu1 %vm630_vm1, %v9710_v0 }
0x226c   : > { %14251 = vmatprep.subr.bf16.mxu1 %v14828_v38 }
0x226f   : > { %14253 = vmatpush3.bf16.msra.mxu1 %v14828_v38 }
0x2270   : > { %14255 = vmatprep.subr.bf16.mxu1 %v14845_v44 }
0x2272   : > { %13352 = vmatmul.mubr.msk.f32.vlgmr.msra.gmra.mrb[86].mxu1 %vm630_vm1, %v13317_v37 }
0x2273   : > { %14257 = vmatpush3.bf16.msra.mxu1 %v14845_v44  ;;  %13362 = vmatprep.mubr.msk.f32.mxu1 %vm630_vm1, %v16243_v4 }
0x2274   : > { %14259 = vmatprep.subr.bf16.mxu1 %v14855_v47 }
0x2277   : > { %14261 = vmatpush3.bf16.msra.mxu1 %v14855_v47 }
0x2278   : > { %14263 = vmatprep.subr.bf16.mxu1 %v14868_v50 }
0x227a   : > { %13363 = vmatmul.mubr.msk.f32.vlgmr.msra.gmra.mrb[86].mxu1 %vm630_vm1, %v16241_v43 }
0x227b   : > { %14265 = vmatpush3.bf16.msra.mxu1 %v14868_v50  ;;  %13373 = vmatprep.mubr.msk.f32.mxu1 %vm630_vm1, %v9720_v63 }
0x227c   : > { %14267 = vmatprep.subr.bf16.mxu1 %v14878_v53 }
0x227f   : > { %14269 = vmatpush3.bf16.msra.mxu1 %v14878_v53 }
0x2280   : > { %14271 = vmatprep.subr.bf16.mxu1 %v14891_v56 }
0x2282   : > { %13374 = vmatmul.mubr.msk.f32.vlgmr.msra.gmra.mrb[86].mxu1 %vm630_vm1, %v13320_v39 }
0x2283   : > { %14273 = vmatpush3.bf16.msra.mxu1 %v14891_v56  ;;  %13384 = vmatprep.mubr.msk.f32.mxu1 %vm630_vm1, %v16247_v1 }
0x2284   : > { %14275 = vmatprep.subr.bf16.mxu1 %v14901_v59 }
0x2287   : > { %14277 = vmatpush3.bf16.msra.mxu1 %v14901_v59 }
0x228a   : > { %13385 = vmatmul.mubr.msk.f32.vlgmr.msra.gmra.mrb[86].mxu1 %vm630_vm1, %v16245_v13 }
0x235d   : > { %v13386_v20 = vpop.f32.mrb[86].mxu1 }
0x235e   : > { %v10220_v31 = vadd.f32 %v14610_v26, %v13386_v20  ;;  %v10208_v38 = vpop.f32.mrb[87].mxu1 }
0x235f   : > { %v10219_v44 = vadd.f32 %v14610_v26, %v10208_v38 }
0x2360   : > { %v11304_v47 = vmul.f32 -1.442695, %v10220_v31 }
0x2361   : > { %v11303_v50 = vmul.f32 -1.442695, %v10219_v44 }
0x2362   : > { %14584 = vpow2.f32 %v11304_v47 }
0x2363   : > { %14586 = vpow2.f32 %v11303_v50 }
0x236c   : > { %v14585_v53 = vpop.eup %14584 }
0x236d   : > { %v14587_v56 = vpop.eup %14586  ;;  %v10228_v36 = vadd.f32 1.0, %v14585_v53 }
0x236e   : > { %v10227_v3 = vadd.f32 1.0, %v14587_v56 }
0x236f   : > { %14588 = vrcp.f32 %v10228_v36 }
0x2370   : > { %14590 = vrcp.f32 %v10227_v3 }
0x2379   : > { %v16313_v59 = vpop.eup %14588 }
0x237a   : > { %v16315_v2 = vpop.eup %14590  ;;  %v10234_v24 = vmul.f32 %v16313_v59, %v16249_v40 }
0x237b   : > { %v10233_v15 = vmul.f32 %v16315_v2, %v16254_v22 }
0x237d   : > { %v14278_v35 = vpack.c.bf16 %v10234_v24, %v10233_v15 }
0x237f   : > { %14279 = vmatprep.subr.bf16.mxu0 %v14278_v35 }
0x2380   : > { %14281 = vmatpush3.bf16.msra.mxu0 %v14278_v35 }
0x2381   : > { %14283 = vmatprep.subr.bf16.mxu0 %v14934_v28 }
0x2383   : > { %13392 = vmatmul.mubr.msk.f32.vlgmr.msra.gmra.mrb[80].mxu0 %vm421_vm0, %v16060_v16 }
0x2384   : > { %13394 = vmatprep.mubr.msk.f32.mxu0 %vm421_vm0, %v16067_v17  ;;  %14285 = vmatpush3.bf16.msra.mxu0 %v14934_v28 }
0x2385   : > { %14287 = vmatprep.subr.bf16.mxu0 %v14943_v30 }
0x2387   : > { %13395 = vmatmul.mubr.msk.f32.gmra.mrb[82].mxu0 %vm421_vm0, %v16074_v51 }
0x2388   : > { %13397 = vmatprep.mubr.msk.f32.mxu0 %vm421_vm0, %v16081_v46  ;;  %14289 = vmatpush3.bf16.msra.mxu0 %v14943_v30 }
0x2389   : > { %14291 = vmatprep.subr.bf16.mxu0 %v14964_v34 }
0x238b   : > { %13398 = vmatmul.mubr.msk.f32.gmra.mrb[84].mxu0 %vm421_vm0, %v16088_v52  ;;  %v10806_v52 = vmul.f32 %v16315_v2, %v16231_v19 }
0x2456   : > { %v13393_v16 = vpop.f32.mrb[80].mxu0 }
0x2457   : > { %v10301_v48 = vpop.f32.mrb[81].mxu0 }
0x2458   : > { %13408 = vmatprep.mubr.msk.f32.mxu0 %vm630_vm1, %v10301_v48 }
0x2459   : > { %13409 = vmatmul.mubr.msk.f32.vlgmr.msra.gmra.mrb[86].mxu0 %vm630_vm1, %v13393_v16 }
0x245a   : > { %14293 = vmatpush3.bf16.msra.mxu0 %v14964_v34  ;;  %13419 = vmatprep.mubr.msk.f32.mxu0 %vm630_vm1, %v16239_v29  ;;  %v13396_v28 = vpop.f32.mrb[82].mxu0 }
0x245b   : > { %14295 = vmatprep.subr.bf16.mxu0 %v14973_v42  ;;  %v10311_v30 = vpop.f32.mrb[83].mxu0 }
0x245e   : > { %14297 = vmatpush3.bf16.msra.mxu0 %v14973_v42  ;;  %v13399_v17 = vpop.f32.mrb[84].mxu0 }
0x245f   : > { %14299 = vmatprep.subr.bf16.mxu0 %v14987_v49  ;;  %v10321_v51 = vpop.f32.mrb[85].mxu0 }
0x2461   : > { %13420 = vmatmul.mubr.msk.f32.vlgmr.msra.gmra.mrb[86].mxu0 %vm630_vm1, %v16237_v11 }
0x2462   : > { %14301 = vmatpush3.bf16.msra.mxu0 %v14987_v49  ;;  %13430 = vmatprep.mubr.msk.f32.mxu0 %vm630_vm1, %v10311_v30 }
0x2463   : > { %14303 = vmatprep.subr.bf16.mxu0 %v14997_v27 }
0x2466   : > { %14305 = vmatpush3.bf16.msra.mxu0 %v14997_v27 }
0x2467   : > { %14307 = vmatprep.subr.bf16.mxu0 %v15010_v62 }
0x2469   : > { %13431 = vmatmul.mubr.msk.f32.vlgmr.msra.gmra.mrb[86].mxu0 %vm630_vm1, %v13396_v28 }
0x246a   : > { %14309 = vmatpush3.bf16.msra.mxu0 %v15010_v62  ;;  %13441 = vmatprep.mubr.msk.f32.mxu0 %vm630_vm1, %v16243_v4 }
0x246b   : > { %14311 = vmatprep.subr.bf16.mxu0 %v15020_v25 }
0x246e   : > { %14313 = vmatpush3.bf16.msra.mxu0 %v15020_v25 }
0x246f   : > { %14315 = vmatprep.subr.bf16.mxu0 %v15033_v6 }
0x2471   : > { %13442 = vmatmul.mubr.msk.f32.vlgmr.msra.gmra.mrb[86].mxu0 %vm630_vm1, %v16241_v43 }
0x2472   : > { %14317 = vmatpush3.bf16.msra.mxu0 %v15033_v6  ;;  %13452 = vmatprep.mubr.msk.f32.mxu0 %vm630_vm1, %v10321_v51  ;;  %v10809_v6 = vsub.f32 1.0, %v16313_v59 }
0x2473   : > { %14319 = vmatprep.subr.bf16.mxu0 %v15043_v10 }
0x2476   : > { %14321 = vmatpush3.bf16.msra.mxu0 %v15043_v10 }
0x2477   : > { %14323 = vmatprep.subr.bf16.mxu0 %v15056_v21 }
0x2479   : > { %13453 = vmatmul.mubr.msk.f32.vlgmr.msra.gmra.mrb[86].mxu0 %vm630_vm1, %v13399_v17 }
0x247a   : > { %14325 = vmatpush3.bf16.msra.mxu0 %v15056_v21  ;;  %13463 = vmatprep.mubr.msk.f32.mxu0 %vm630_vm1, %v16247_v1  ;;  %v10808_v21 = vsub.f32 1.0, %v16315_v2 }
0x247b   : > { %14327 = vmatprep.subr.bf16.mxu0 %v15066_v33 }
0x247e   : > { %14329 = vmatpush3.bf16.msra.mxu0 %v15066_v33  ;;  %v10807_v33 = vmul.f32 %v16313_v59, %v16229_v7 }
0x2481   : > { %13464 = vmatmul.mubr.msk.f32.vlgmr.msra.gmra.mrb[86].mxu0 %vm630_vm1, %v16245_v13 }
0x2554   : > { %v13465_v34 = vpop.f32.mrb[86].mxu0 }
0x2555   : > { %v10803_v42 = vadd.f32 %v15825_v32, %v13465_v34  ;;  %v10791_v49 = vpop.f32.mrb[87].mxu0 }
0x2556   : > { %v10802_v27 = vadd.f32 %v15825_v32, %v10791_v49 }
0x2557   : > { %14592 = vtanh.f32 %v10803_v42 }
0x2558   : > { %14594 = vtanh.f32 %v10802_v27 }
0x2561   : > { %v14593_v62 = vpop.eup %14592 }
0x2562   : > { %v14595_v25 = vpop.eup %14594  ;;  %10814 = vrot.lane.b32.xlu1 %v14593_v62, %s14619_s26 }
0x2563   : > { %10812 = vrot.lane.b32.xlu0 %v14595_v25, %s14619_s26 }
0x25d4   : > { %v10815_v10 = vpop.permute.xlu1 %10814 }
0x25d5   : > { %v10819_v46 = vmul.f32 %v10815_v10, %v10809_v6  ;;  %v10813_v32 = vpop.permute.xlu0 %10812 }
0x25d6   : > { %v10818_v60 = vmul.f32 %v10813_v32, %v10808_v21 }
0x25d7   : > { %v10821_v41 = vadd.f32 %v10819_v46, %v10807_v33 }
0x25d8   : > { %v10820_v9 = vadd.f32 %v10818_v60, %v10806_v52 }
0x25d9   : > { %10826 = vrot.lane.b32.xlu1 %v10821_v41, %s14620_s18 }
0x25da   : > { %10824 = vrot.lane.b32.xlu0 %v10820_v9, %s14620_s18 }
0x264b   : > { %v10827_v14 = vpop.permute.xlu1 %10826 }
0x264c   : > { %11324 = vst.msk [vmem:[%s15121_s21 + $0x78] sm:$0xff] %vm630_vm1, %v10827_v14  ;;  %v10825_v57 = vpop.permute.xlu0 %10824 }
0x264d   : > { %11323 = vst.msk [vmem:[%s15121_s21 + $0x70] sm:$0xff] %vm630_vm1, %v10825_v57 }
0x264e PF: > { %s19_s30 = sadd.s32 1, %s14617_s30  }
0x264f   : > { %p16_p4 = scmp.ge.s32.totalorder %s19_s30, 4  }
0x2651   :  { %18 = sbr.rel (!%p16_p4) target bundleno = 1 (0x1), region = 111 }

</bundles_post_ra>
